<compile_context>
chip_gen: v7x
topology: tpu7x:2x2x1
jax: 0.10.0
libtpu: 0.0.40
codegen_flags: <defaults>
</compile_context>

<pallas_src>
import functools
import math

import jax
import jax.numpy as jnp
from jax import lax
from jax.experimental import pallas as pl
from jax.experimental.pallas import tpu as pltpu

HIDDEN = 100        # PyTorch hidden_size (fixed in the module)
HIDDEN_PAD = 128    # lane-aligned internal hidden width (exact zero-padding)


# -----------------------------------------------------------------------------
# Fused BLSTM2 kernel
# -----------------------------------------------------------------------------
def _blstm2_kernel(
    x_ref,                       # (S*Bp, F) bf16, rows ordered (t, b)
    w1_ih_ref, b1_ref,           # (F, 8*Hp) bf16, (1, 8*Hp) f32   both layer-1 dirs fused
    w1_hh_ref,                   # (2*Hp, 8*Hp) bf16  block-diag [W_hh_f, 0; 0, W_hh_b]
    w2f_ih_ref, w2f_hh_ref, b2f_ref,   # (2*Hp,4*Hp) bf16, (Hp,4*Hp) bf16, (1,4*Hp) f32
    w2b_ih_ref, b2b_ref,               # (2*Hp,4*Hp) bf16, (1,4*Hp) f32  (first step only)
    wfc_ref, bfc_ref,            # (2*Hp, C) bf16, (1, C) f32
    out_ref,                     # (Bp, C) f32
    gx_ref,                      # scratch (S*Bp, 8*Hp) f32: hoisted gates (reused by layer 2)
    seq1_ref,                    # scratch (S*Bp, 2*Hp) f32: post-ReLU layer-1 out [fwd|bwd]
    *, seq_len, batch_pad, hidden_pad, unroll,
):
    S, Bp, Hp = seq_len, batch_pad, hidden_pad
    G = 4 * Hp
    f32, bf16 = jnp.float32, jnp.bfloat16

    def cell(gates, c_prev):
        # gate column order (i, f, o, g): ONE sigmoid over 3*Hp lanes, ONE tanh over Hp.
        sig = jax.nn.sigmoid(gates[:, 0:3 * Hp])
        g_g = jnp.tanh(gates[:, 3 * Hp:4 * Hp])
        c_new = sig[:, Hp:2 * Hp] * c_prev + sig[:, 0:Hp] * g_g
        h_new = sig[:, 2 * Hp:3 * Hp] * jnp.tanh(c_new)
        return h_new, c_new

    zero = jnp.zeros((Bp, Hp), f32)

    # ---- Layer 1: hoisted input projection for BOTH directions (one bf16 matmul),
    #      single whole-slab store (no per-t scatter).
    gx_ref[...] = (jnp.dot(x_ref[...], w1_ih_ref[...], preferred_element_type=f32)
                   + b1_ref[...])

    # ---- Layer 1: merged fwd+bwd recurrence, block-diagonal recurrent matmul (K = 2*Hp).
    def l1_step(s, carry):
        h_cat, c_f, c_b = carry
        row_f = pl.multiple_of(s * Bp, Bp)                 # fwd time index s
        row_b = pl.multiple_of((S - 1 - s) * Bp, Bp)       # bwd time index S-1-s
        rec = jnp.dot(h_cat.astype(bf16), w1_hh_ref[...], preferred_element_type=f32)
        gates_f = gx_ref[pl.ds(row_f, Bp), 0:G] + rec[:, 0:G]
        gates_b = gx_ref[pl.ds(row_b, Bp), G:2 * G] + rec[:, G:2 * G]
        h_f, c_f = cell(gates_f, c_f)
        h_b, c_b = cell(gates_b, c_b)
        # relu1 folded into the stored sequence; fwd in lanes 0:Hp, bwd in Hp:2Hp.
        seq1_ref[pl.ds(row_f, Bp), 0:Hp] = jnp.maximum(h_f, 0.0)
        seq1_ref[pl.ds(row_b, Bp), Hp:2 * Hp] = jnp.maximum(h_b, 0.0)
        return (jnp.concatenate([h_f, h_b], axis=1), c_f, c_b)

    lax.fori_loop(0, S, l1_step,
                  (jnp.zeros((Bp, 2 * Hp), f32), zero, zero), unroll=unroll)

    # ---- Layer 2 forward: hoisted input projection over the whole sequence
    #      (one stacked K=2*Hp matmul); result reuses gx_ref columns 0:G.
    s1_bf = seq1_ref[...].astype(bf16)                     # (S*Bp, 2*Hp)
    gx_ref[:, 0:G] = (jnp.dot(s1_bf, w2f_ih_ref[...], preferred_element_type=f32)
                      + b2f_ref[...])

    def l2_step(s, carry):
        h, c = carry
        row = pl.multiple_of(s * Bp, Bp)
        gates = gx_ref[pl.ds(row, Bp), 0:G] + jnp.dot(
            h.astype(bf16), w2f_hh_ref[...], preferred_element_type=f32)
        return cell(gates, c)

    h2f, _ = lax.fori_loop(0, S, l2_step, (zero, zero), unroll=unroll)

    # ---- Layer 2 backward: only its t = S-1 output feeds fc(x[:, -1, :]) and that is this
    #      direction's FIRST step (h0 = c0 = 0) -> one fused cell, no recurrent matmul.
    s1_last = s1_bf[(S - 1) * Bp:S * Bp, :]                # (Bp, 2*Hp)
    gb = jnp.dot(s1_last, w2b_ih_ref[...], preferred_element_type=f32) + b2b_ref[...]
    h2b, _ = cell(gb, zero)

    # ---- relu2 + fused Linear (stacked (2*Hp, C) weight) + softmax(dim=1)
    y = jnp.concatenate([jnp.maximum(h2f, 0.0), jnp.maximum(h2b, 0.0)], axis=1)
    logits = jnp.dot(y.astype(bf16), wfc_ref[...], preferred_element_type=f32) + bfc_ref[...]
    m = jnp.max(logits, axis=1, keepdims=True)
    e = jnp.exp(logits - m)
    out_ref[...] = e / jnp.sum(e, axis=1, keepdims=True)


def blstm2_forward(kp, x, *, hidden_pad=HIDDEN_PAD, n_classes):
    """x: (B, S, features) float32, batch_first like the PyTorch module."""
    B, S, F = x.shape
    Hp = hidden_pad
    Bp = max(8, ((B + 7) // 8) * 8)   # sublane-aligned batch: no masked vreg ops in-kernel

    # Sequence-major rows (t, b), batch zero-padded to Bp, bf16 to halve the input DMA.
    x_p = jnp.zeros((S, Bp, F), jnp.float32).at[:, :B, :].set(jnp.transpose(x, (1, 0, 2)))
    x_flat = x_p.reshape(S * Bp, F).astype(jnp.bfloat16)

    unroll = True if S <= 16 else 4   # cap unroll at larger S to avoid vreg spills
    kernel = functools.partial(_blstm2_kernel, seq_len=S, batch_pad=Bp,
                               hidden_pad=Hp, unroll=unroll)
    # NOTE: gridless single-TC kernel; at realistic B (>=16) add a parallel batch grid axis
    # (v7x 2 TCs) and time-tile the hoisted projections if S*Bp*8*Hp*4 bytes nears VMEM.
    out = pl.pallas_call(
        kernel,
        out_shape=jax.ShapeDtypeStruct((Bp, n_classes), jnp.float32),
        scratch_shapes=[
            pltpu.VMEM((S * Bp, 8 * Hp), jnp.float32),   # gx: hoisted gate slabs (layer1+2)
            pltpu.VMEM((S * Bp, 2 * Hp), jnp.float32),   # seq1: post-ReLU layer-1 [fwd|bwd]
        ],
    )(
        x_flat,
        kp["w1_ih"], kp["b1"], kp["w1_hh"],
        kp["w2f_ih"], kp["w2f_hh"], kp["b2f"],
        kp["w2b_ih"], kp["b2b"],
        kp["wfc"], kp["bfc"],
    )
    return out[:B]


# -----------------------------------------------------------------------------
# Parameters: PyTorch-layout init + conversion to kernel layout
# -----------------------------------------------------------------------------
def init_torch_params(key, features, hidden, n_classes):
    """Random params in PyTorch layout: w_ih (4H, in), w_hh (4H, H), biases (4H,),
    gate row order (i, f, g, o); Linear weight (n_classes, 2H)."""
    ks = iter(jax.random.split(key, 24))
    uni = lambda k, shape, s: jax.random.uniform(k, shape, jnp.float32, -s, s)
    kH = 1.0 / math.sqrt(hidden)

    def lstm_dir(in_size):
        return (uni(next(ks), (4 * hidden, in_size), kH),
                uni(next(ks), (4 * hidden, hidden), kH),
                uni(next(ks), (4 * hidden,), kH),
                uni(next(ks), (4 * hidden,), kH))

    tp = {
        "l1_fwd": lstm_dir(features),
        "l1_bwd": lstm_dir(features),
        "l2_fwd": lstm_dir(2 * hidden),
        "l2_bwd": lstm_dir(2 * hidden),
    }
    kf = 1.0 / math.sqrt(2 * hidden)
    tp["fc_w"] = uni(next(ks), (n_classes, 2 * hidden), kf)
    tp["fc_b"] = uni(next(ks), (n_classes,), kf)
    return tp


def prepare_kernel_params(tp, hidden, hidden_pad, n_classes):
    """Convert PyTorch-layout params to kernel layout: transpose, reorder gate blocks
    (i,f,g,o)->(i,f,o,g), zero-pad H->Hp (exact), fuse/stack/block-diag weights, cast
    matmul weights to bf16 (biases stay f32)."""
    H, Hp = hidden, hidden_pad
    bf16 = jnp.bfloat16

    def gate_mat(w, in_pad=None):
        # w: (4H, I) torch layout -> (I [padded to in_pad], 4*Hp), gate cols (i, f, o, g)
        i_, f_, g_, o_ = jnp.split(w, 4, axis=0)
        blocks = [jnp.pad(b, ((0, Hp - H), (0, 0))) for b in (i_, f_, o_, g_)]
        wk = jnp.concatenate(blocks, axis=0).T
        if in_pad is not None:
            wk = jnp.pad(wk, ((0, in_pad - wk.shape[0]), (0, 0)))
        return wk

    def gate_bias(b_ih, b_hh):
        b = b_ih + b_hh
        i_, f_, g_, o_ = jnp.split(b, 4)
        blocks = [jnp.pad(v, (0, Hp - H)) for v in (i_, f_, o_, g_)]
        return jnp.concatenate(blocks).reshape(1, 4 * Hp)

    w1f_ih, w1f_hh, b1f_ih, b1f_hh = tp["l1_fwd"]
    w1b_ih, w1b_hh, b1b_ih, b1b_hh = tp["l1_bwd"]
    w2f_ih, w2f_hh, b2f_ih, b2f_hh = tp["l2_fwd"]
    w2b_ih, w2b_hh, b2b_ih, b2b_hh = tp["l2_bwd"]
    del w2b_hh  # unused: only the backward direction's first step feeds fc(x[:, -1, :])

    zero_blk = jnp.zeros((Hp, 4 * Hp), jnp.float32)
    kp = {
        # Layer 1: both directions' input projections fused -> (F, 8*Hp).
        "w1_ih": jnp.concatenate([gate_mat(w1f_ih), gate_mat(w1b_ih)], axis=1).astype(bf16),
        "b1": jnp.concatenate([gate_bias(b1f_ih, b1f_hh), gate_bias(b1b_ih, b1b_hh)], axis=1),
        # Layer 1: block-diagonal recurrent weight -> (2*Hp, 8*Hp) (fills K=256 on the MXU).
        "w1_hh": jnp.concatenate(
            [jnp.concatenate([gate_mat(w1f_hh, in_pad=Hp), zero_blk], axis=1),
             jnp.concatenate([zero_blk, gate_mat(w1b_hh, in_pad=Hp)], axis=1)],
            axis=0).astype(bf16),
        # Layer 2 forward: fwd/bwd input halves stacked -> (2*Hp, 4*Hp), one K=256 matmul.
        "w2f_ih": jnp.concatenate([gate_mat(w2f_ih[:, :H], in_pad=Hp),
                                   gate_mat(w2f_ih[:, H:], in_pad=Hp)], axis=0).astype(bf16),
        "w2f_hh": gate_mat(w2f_hh, in_pad=Hp).astype(bf16),
        "b2f": gate_bias(b2f_ih, b2f_hh),
        # Layer 2 backward (first step only): stacked input weight, no W_hh needed.
        "w2b_ih": jnp.concatenate([gate_mat(w2b_ih[:, :H], in_pad=Hp),
                                   gate_mat(w2b_ih[:, H:], in_pad=Hp)], axis=0).astype(bf16),
        "b2b": gate_bias(b2b_ih, b2b_hh),
        # FC head: Linear(2H -> n_classes); fwd/bwd halves stacked -> (2*Hp, C).
        "wfc": jnp.concatenate([jnp.pad(tp["fc_w"][:, :H].T, ((0, Hp - H), (0, 0))),
                                jnp.pad(tp["fc_w"][:, H:].T, ((0, Hp - H), (0, 0)))],
                               axis=0).astype(bf16),
        "bfc": tp["fc_b"].reshape(1, n_classes),
    }
    return kp


# -----------------------------------------------------------------------------
# Pure-JAX reference (PyTorch semantics); mm_dtype selects matmul-operand precision.
# -----------------------------------------------------------------------------
def _lstm_dir_ref(x_sbi, w_ih, w_hh, b_ih, b_hh, *, reverse, mm_dtype):
    S, B, _ = x_sbi.shape
    H = w_hh.shape[1]
    xs = x_sbi[::-1] if reverse else x_sbi
    bias = b_ih + b_hh
    w_ih_t = w_ih.T.astype(mm_dtype)
    w_hh_t = w_hh.T.astype(mm_dtype)

    def step(carry, x_t):
        h, c = carry
        gates = (jnp.dot(x_t.astype(mm_dtype), w_ih_t,
                         preferred_element_type=jnp.float32, precision="highest")
                 + jnp.dot(h.astype(mm_dtype), w_hh_t,
                           preferred_element_type=jnp.float32, precision="highest")
                 + bias)
        i_g = jax.nn.sigmoid(gates[:, 0:H])
        f_g = jax.nn.sigmoid(gates[:, H:2 * H])
        g_g = jnp.tanh(gates[:, 2 * H:3 * H])
        o_g = jax.nn.sigmoid(gates[:, 3 * H:4 * H])
        c = f_g * c + i_g * g_g
        h = o_g * jnp.tanh(c)
        return (h, c), h

    z = jnp.zeros((B, H), jnp.float32)
    _, hs = lax.scan(step, (z, z), xs)
    return hs[::-1] if reverse else hs      # (S, B, H), aligned to original time order


def blstm2_reference(tp, x, *, mm_dtype=jnp.float32):
    x_sbi = jnp.transpose(x, (1, 0, 2))
    h1f = _lstm_dir_ref(x_sbi, *tp["l1_fwd"], reverse=False, mm_dtype=mm_dtype)
    h1b = _lstm_dir_ref(x_sbi, *tp["l1_bwd"], reverse=True, mm_dtype=mm_dtype)
    y1 = jnp.maximum(jnp.concatenate([h1f, h1b], axis=-1), 0.0)
    h2f = _lstm_dir_ref(y1, *tp["l2_fwd"], reverse=False, mm_dtype=mm_dtype)
    h2b = _lstm_dir_ref(y1, *tp["l2_bwd"], reverse=True, mm_dtype=mm_dtype)
    y2 = jnp.maximum(jnp.concatenate([h2f, h2b], axis=-1), 0.0)
    logits = (jnp.dot(y2[-1].astype(mm_dtype), tp["fc_w"].T.astype(mm_dtype),
                      preferred_element_type=jnp.float32, precision="highest")
              + tp["fc_b"])
    return jax.nn.softmax(logits, axis=1)


# -----------------------------------------------------------------------------
if __name__ == "__main__":
    B, timesteps, features, n_classes = 2, 8, 16, 6   # input_shape = (timesteps, features)
    key = jax.random.PRNGKey(0)
    k_param, k_x = jax.random.split(key)

    torch_params = init_torch_params(k_param, features, HIDDEN, n_classes)
    kernel_params = prepare_kernel_params(torch_params, HIDDEN, HIDDEN_PAD, n_classes)
    x = jax.random.normal(k_x, (B, timesteps, features), dtype=jnp.float32)

    fwd = jax.jit(functools.partial(blstm2_forward, hidden_pad=HIDDEN_PAD, n_classes=n_classes))
    out = jax.block_until_ready(fwd(kernel_params, x))

    assert out.shape == (B, n_classes)
    assert bool(jnp.all(jnp.isfinite(out)))
    assert bool(jnp.allclose(jnp.sum(out, axis=1), 1.0, atol=1e-5))

    # Tight check: same math with bf16 matmul operands + f32 accumulation (what the MXU does).
    ref_bf16 = blstm2_reference(torch_params, x, mm_dtype=jnp.bfloat16)
    assert bool(jnp.allclose(out, ref_bf16, atol=2e-3)), (out, ref_bf16)

    # Sanity check vs the full-f32 PyTorch-semantics reference; the gap is solely the
    # bf16 rounding of matmul operands recommended by the perf review.
    ref_f32 = blstm2_reference(torch_params, x, mm_dtype=jnp.float32)
    assert bool(jnp.allclose(out, ref_f32, atol=2e-2)), (out, ref_f32)

    print("KERNEL_OK")
</pallas_src>

<mosaic_0001>
module attributes {stable_mosaic.version = 11 : i64} {
  func.func @_blstm2_kernel(%arg0: memref<64x16xbf16, #tpu.memory_space<vmem>>, %arg1: memref<16x1024xbf16, #tpu.memory_space<vmem>>, %arg2: memref<1x1024xf32, #tpu.memory_space<vmem>>, %arg3: memref<256x1024xbf16, #tpu.memory_space<vmem>>, %arg4: memref<256x512xbf16, #tpu.memory_space<vmem>>, %arg5: memref<128x512xbf16, #tpu.memory_space<vmem>>, %arg6: memref<1x512xf32, #tpu.memory_space<vmem>>, %arg7: memref<256x512xbf16, #tpu.memory_space<vmem>>, %arg8: memref<1x512xf32, #tpu.memory_space<vmem>>, %arg9: memref<256x6xbf16, #tpu.memory_space<vmem>>, %arg10: memref<1x6xf32, #tpu.memory_space<vmem>>, %arg11: memref<8x6xf32, #tpu.memory_space<vmem>>, %arg12: memref<64x1024xf32, #tpu.memory_space<vmem>>, %arg13: memref<64x256xf32, #tpu.memory_space<vmem>>) attributes {dimension_semantics = [], scalar_prefetch = 0 : i64, scratch_operands = 2 : i64, tpu.core_type = #tpu.core_type<tc>} {
    %cst = arith.constant 0.000000e+00 : f32
    %0 = vector.broadcast %cst : f32 to vector<8x128xf32>
    %c0 = arith.constant 0 : index
    %c0_0 = arith.constant 0 : index
    %1 = vector.load %arg0[%c0, %c0_0] : memref<64x16xbf16, #tpu.memory_space<vmem>>, vector<64x16xbf16>
    %c0_1 = arith.constant 0 : index
    %c0_2 = arith.constant 0 : index
    %2 = vector.load %arg1[%c0_1, %c0_2] : memref<16x1024xbf16, #tpu.memory_space<vmem>>, vector<16x1024xbf16>
    %cst_3 = arith.constant dense<0.000000e+00> : vector<64x1024xf32>
    %3 = tpu.matmul %1, %2, %cst_3 {dimension_numbers = #tpu.dot_dimension_numbers<[1], [0], [0], [1], [0, 0, 1, 1], [], []>} : vector<64x16xbf16>, vector<16x1024xbf16>, vector<64x1024xf32> -> vector<64x1024xf32>
    %c0_4 = arith.constant 0 : index
    %c0_5 = arith.constant 0 : index
    %4 = vector.load %arg2[%c0_4, %c0_5] : memref<1x1024xf32, #tpu.memory_space<vmem>>, vector<1x1024xf32>
    %5 = vector.broadcast %4 : vector<1x1024xf32> to vector<64x1024xf32>
    %6 = arith.addf %3, %5 : vector<64x1024xf32>
    %c0_6 = arith.constant 0 : index
    %c0_7 = arith.constant 0 : index
    %7 = vector.load %arg12[%c0_6, %c0_7] : memref<64x1024xf32, #tpu.memory_space<vmem>>, vector<64x1024xf32>
    tpu.vector_store %arg12[%c0_6, %c0_7], %6 {strides = array<i32>} : memref<64x1024xf32, #tpu.memory_space<vmem>>, vector<64x1024xf32>,
    %cst_8 = arith.constant 0.000000e+00 : f32
    %8 = vector.broadcast %cst_8 : f32 to vector<8x256xf32>
    %c0_i32 = arith.constant 0 : i32
    %c8_i32 = arith.constant 8 : i32
    %9 = arith.muli %c0_i32, %c8_i32 : i32
    %10 = tpu.assume_multiple %9, 8 : i32
    %c7_i32 = arith.constant 7 : i32
    %11 = arith.subi %c7_i32, %c0_i32 : i32
    %c8_i32_9 = arith.constant 8 : i32
    %12 = arith.muli %11, %c8_i32_9 : i32
    %13 = tpu.assume_multiple %12, 8 : i32
    %14 = arith.truncf %8 : vector<8x256xf32> to vector<8x256xbf16>
    %c0_10 = arith.constant 0 : index
    %c0_11 = arith.constant 0 : index
    %15 = vector.load %arg3[%c0_10, %c0_11] : memref<256x1024xbf16, #tpu.memory_space<vmem>>, vector<256x1024xbf16>
    %cst_12 = arith.constant dense<0.000000e+00> : vector<8x1024xf32>
    %16 = tpu.matmul %14, %15, %cst_12 {dimension_numbers = #tpu.dot_dimension_numbers<[1], [0], [0], [1], [0, 0, 1, 1], [], []>} : vector<8x256xbf16>, vector<256x1024xbf16>, vector<8x1024xf32> -> vector<8x1024xf32>
    %17 = arith.index_cast %10 : i32 to index
    %c0_13 = arith.constant 0 : index
    %18 = vector.load %arg12[%17, %c0_13] : memref<64x1024xf32, #tpu.memory_space<vmem>>, vector<8x512xf32>
    %19 = vector.extract_strided_slice %16 {offsets = [0, 0], sizes = [8, 512], strides = [1, 1]} : vector<8x1024xf32> to vector<8x512xf32>
    %20 = arith.addf %18, %19 : vector<8x512xf32>
    %21 = arith.index_cast %13 : i32 to index
    %c512 = arith.constant 512 : index
    %22 = vector.load %arg12[%21, %c512] : memref<64x1024xf32, #tpu.memory_space<vmem>>, vector<8x512xf32>
    %23 = vector.extract_strided_slice %16 {offsets = [0, 512], sizes = [8, 512], strides = [1, 1]} : vector<8x1024xf32> to vector<8x512xf32>
    %24 = arith.addf %22, %23 : vector<8x512xf32>
    %25 = vector.extract_strided_slice %20 {offsets = [0, 0], sizes = [8, 384], strides = [1, 1]} : vector<8x512xf32> to vector<8x384xf32>
    %26 = arith.negf %25 : vector<8x384xf32>
    %27 = math.exp %26 : vector<8x384xf32>
    %cst_14 = arith.constant 1.000000e+00 : f32
    %28 = vector.broadcast %cst_14 : f32 to vector<8x384xf32>
    %29 = arith.addf %28, %27 : vector<8x384xf32>
    %30 = arith.divf %28, %29 : vector<8x384xf32>
    %31 = vector.extract_strided_slice %20 {offsets = [0, 384], sizes = [8, 128], strides = [1, 1]} : vector<8x512xf32> to vector<8x128xf32>
    %32 = math.tanh %31 : vector<8x128xf32>
    %33 = vector.extract_strided_slice %30 {offsets = [0, 128], sizes = [8, 128], strides = [1, 1]} : vector<8x384xf32> to vector<8x128xf32>
    %34 = arith.mulf %33, %0 : vector<8x128xf32>
    %35 = vector.extract_strided_slice %30 {offsets = [0, 0], sizes = [8, 128], strides = [1, 1]} : vector<8x384xf32> to vector<8x128xf32>
    %36 = arith.mulf %35, %32 : vector<8x128xf32>
    %37 = arith.addf %34, %36 : vector<8x128xf32>
    %38 = vector.extract_strided_slice %30 {offsets = [0, 256], sizes = [8, 128], strides = [1, 1]} : vector<8x384xf32> to vector<8x128xf32>
    %39 = math.tanh %37 : vector<8x128xf32>
    %40 = arith.mulf %38, %39 : vector<8x128xf32>
    %41 = vector.extract_strided_slice %24 {offsets = [0, 0], sizes = [8, 384], strides = [1, 1]} : vector<8x512xf32> to vector<8x384xf32>
    %42 = arith.negf %41 : vector<8x384xf32>
    %43 = math.exp %42 : vector<8x384xf32>
    %cst_15 = arith.constant 1.000000e+00 : f32
    %44 = vector.broadcast %cst_15 : f32 to vector<8x384xf32>
    %45 = arith.addf %44, %43 : vector<8x384xf32>
    %46 = arith.divf %44, %45 : vector<8x384xf32>
    %47 = vector.extract_strided_slice %24 {offsets = [0, 384], sizes = [8, 128], strides = [1, 1]} : vector<8x512xf32> to vector<8x128xf32>
    %48 = math.tanh %47 : vector<8x128xf32>
    %49 = vector.extract_strided_slice %46 {offsets = [0, 128], sizes = [8, 128], strides = [1, 1]} : vector<8x384xf32> to vector<8x128xf32>
    %50 = arith.mulf %49, %0 : vector<8x128xf32>
    %51 = vector.extract_strided_slice %46 {offsets = [0, 0], sizes = [8, 128], strides = [1, 1]} : vector<8x384xf32> to vector<8x128xf32>
    %52 = arith.mulf %51, %48 : vector<8x128xf32>
    %53 = arith.addf %50, %52 : vector<8x128xf32>
    %54 = vector.extract_strided_slice %46 {offsets = [0, 256], sizes = [8, 128], strides = [1, 1]} : vector<8x384xf32> to vector<8x128xf32>
    %55 = math.tanh %53 : vector<8x128xf32>
    %56 = arith.mulf %54, %55 : vector<8x128xf32>
    %cst_16 = arith.constant 0.000000e+00 : f32
    %57 = vector.broadcast %cst_16 : f32 to vector<8x128xf32>
    %58 = arith.maximumf %40, %57 : vector<8x128xf32>
    %59 = arith.index_cast %10 : i32 to index
    %c0_17 = arith.constant 0 : index
    %60 = vector.load %arg13[%59, %c0_17] : memref<64x256xf32, #tpu.memory_space<vmem>>, vector<8x128xf32>
    tpu.vector_store %arg13[%59, %c0_17], %58 {strides = array<i32>} : memref<64x256xf32, #tpu.memory_space<vmem>>, vector<8x128xf32>,
    %cst_18 = arith.constant 0.000000e+00 : f32
    %61 = vector.broadcast %cst_18 : f32 to vector<8x128xf32>
    %62 = arith.maximumf %56, %61 : vector<8x128xf32>
    %63 = arith.index_cast %13 : i32 to index
    %c128 = arith.constant 128 : index
    %64 = vector.load %arg13[%63, %c128] : memref<64x256xf32, #tpu.memory_space<vmem>>, vector<8x128xf32>
    tpu.vector_store %arg13[%63, %c128], %62 {strides = array<i32>} : memref<64x256xf32, #tpu.memory_space<vmem>>, vector<8x128xf32>,
    %65 = tpu.concatenate %40, %56 in 1 : vector<8x128xf32>, vector<8x128xf32> -> vector<8x256xf32>
    %c1_i32 = arith.constant 1 : i32
    %c8_i32_19 = arith.constant 8 : i32
    %66 = arith.muli %c1_i32, %c8_i32_19 : i32
    %67 = tpu.assume_multiple %66, 8 : i32
    %c7_i32_20 = arith.constant 7 : i32
    %68 = arith.subi %c7_i32_20, %c1_i32 : i32
    %c8_i32_21 = arith.constant 8 : i32
    %69 = arith.muli %68, %c8_i32_21 : i32
    %70 = tpu.assume_multiple %69, 8 : i32
    %71 = arith.truncf %65 : vector<8x256xf32> to vector<8x256xbf16>
    %c0_22 = arith.constant 0 : index
    %c0_23 = arith.constant 0 : index
    %72 = vector.load %arg3[%c0_22, %c0_23] : memref<256x1024xbf16, #tpu.memory_space<vmem>>, vector<256x1024xbf16>
    %cst_24 = arith.constant dense<0.000000e+00> : vector<8x1024xf32>
    %73 = tpu.matmul %71, %72, %cst_24 {dimension_numbers = #tpu.dot_dimension_numbers<[1], [0], [0], [1], [0, 0, 1, 1], [], []>} : vector<8x256xbf16>, vector<256x1024xbf16>, vector<8x1024xf32> -> vector<8x1024xf32>
    %74 = arith.index_cast %67 : i32 to index
    %c0_25 = arith.constant 0 : index
    %75 = vector.load %arg12[%74, %c0_25] : memref<64x1024xf32, #tpu.memory_space<vmem>>, vector<8x512xf32>
    %76 = vector.extract_strided_slice %73 {offsets = [0, 0], sizes = [8, 512], strides = [1, 1]} : vector<8x1024xf32> to vector<8x512xf32>
    %77 = arith.addf %75, %76 : vector<8x512xf32>
    %78 = arith.index_cast %70 : i32 to index
    %c512_26 = arith.constant 512 : index
    %79 = vector.load %arg12[%78, %c512_26] : memref<64x1024xf32, #tpu.memory_space<vmem>>, vector<8x512xf32>
    %80 = vector.extract_strided_slice %73 {offsets = [0, 512], sizes = [8, 512], strides = [1, 1]} : vector<8x1024xf32> to vector<8x512xf32>
    %81 = arith.addf %79, %80 : vector<8x512xf32>
    %82 = vector.extract_strided_slice %77 {offsets = [0, 0], sizes = [8, 384], strides = [1, 1]} : vector<8x512xf32> to vector<8x384xf32>
    %83 = arith.negf %82 : vector<8x384xf32>
    %84 = math.exp %83 : vector<8x384xf32>
    %cst_27 = arith.constant 1.000000e+00 : f32
    %85 = vector.broadcast %cst_27 : f32 to vector<8x384xf32>
    %86 = arith.addf %85, %84 : vector<8x384xf32>
    %87 = arith.divf %85, %86 : vector<8x384xf32>
    %88 = vector.extract_strided_slice %77 {offsets = [0, 384], sizes = [8, 128], strides = [1, 1]} : vector<8x512xf32> to vector<8x128xf32>
    %89 = math.tanh %88 : vector<8x128xf32>
    %90 = vector.extract_strided_slice %87 {offsets = [0, 128], sizes = [8, 128], strides = [1, 1]} : vector<8x384xf32> to vector<8x128xf32>
    %91 = arith.mulf %90, %37 : vector<8x128xf32>
    %92 = vector.extract_strided_slice %87 {offsets = [0, 0], sizes = [8, 128], strides = [1, 1]} : vector<8x384xf32> to vector<8x128xf32>
    %93 = arith.mulf %92, %89 : vector<8x128xf32>
    %94 = arith.addf %91, %93 : vector<8x128xf32>
    %95 = vector.extract_strided_slice %87 {offsets = [0, 256], sizes = [8, 128], strides = [1, 1]} : vector<8x384xf32> to vector<8x128xf32>
    %96 = math.tanh %94 : vector<8x128xf32>
    %97 = arith.mulf %95, %96 : vector<8x128xf32>
    %98 = vector.extract_strided_slice %81 {offsets = [0, 0], sizes = [8, 384], strides = [1, 1]} : vector<8x512xf32> to vector<8x384xf32>
    %99 = arith.negf %98 : vector<8x384xf32>
    %100 = math.exp %99 : vector<8x384xf32>
    %cst_28 = arith.constant 1.000000e+00 : f32
    %101 = vector.broadcast %cst_28 : f32 to vector<8x384xf32>
    %102 = arith.addf %101, %100 : vector<8x384xf32>
    %103 = arith.divf %101, %102 : vector<8x384xf32>
    %104 = vector.extract_strided_slice %81 {offsets = [0, 384], sizes = [8, 128], strides = [1, 1]} : vector<8x512xf32> to vector<8x128xf32>
    %105 = math.tanh %104 : vector<8x128xf32>
    %106 = vector.extract_strided_slice %103 {offsets = [0, 128], sizes = [8, 128], strides = [1, 1]} : vector<8x384xf32> to vector<8x128xf32>
    %107 = arith.mulf %106, %53 : vector<8x128xf32>
    %108 = vector.extract_strided_slice %103 {offsets = [0, 0], sizes = [8, 128], strides = [1, 1]} : vector<8x384xf32> to vector<8x128xf32>
    %109 = arith.mulf %108, %105 : vector<8x128xf32>
    %110 = arith.addf %107, %109 : vector<8x128xf32>
    %111 = vector.extract_strided_slice %103 {offsets = [0, 256], sizes = [8, 128], strides = [1, 1]} : vector<8x384xf32> to vector<8x128xf32>
    %112 = math.tanh %110 : vector<8x128xf32>
    %113 = arith.mulf %111, %112 : vector<8x128xf32>
    %cst_29 = arith.constant 0.000000e+00 : f32
    %114 = vector.broadcast %cst_29 : f32 to vector<8x128xf32>
    %115 = arith.maximumf %97, %114 : vector<8x128xf32>
    %116 = arith.index_cast %67 : i32 to index
    %c0_30 = arith.constant 0 : index
    %117 = vector.load %arg13[%116, %c0_30] : memref<64x256xf32, #tpu.memory_space<vmem>>, vector<8x128xf32>
    tpu.vector_store %arg13[%116, %c0_30], %115 {strides = array<i32>} : memref<64x256xf32, #tpu.memory_space<vmem>>, vector<8x128xf32>,
    %cst_31 = arith.constant 0.000000e+00 : f32
    %118 = vector.broadcast %cst_31 : f32 to vector<8x128xf32>
    %119 = arith.maximumf %113, %118 : vector<8x128xf32>
    %120 = arith.index_cast %70 : i32 to index
    %c128_32 = arith.constant 128 : index
    %121 = vector.load %arg13[%120, %c128_32] : memref<64x256xf32, #tpu.memory_space<vmem>>, vector<8x128xf32>
    tpu.vector_store %arg13[%120, %c128_32], %119 {strides = array<i32>} : memref<64x256xf32, #tpu.memory_space<vmem>>, vector<8x128xf32>,
    %122 = tpu.concatenate %97, %113 in 1 : vector<8x128xf32>, vector<8x128xf32> -> vector<8x256xf32>
    %c2_i32 = arith.constant 2 : i32
    %c8_i32_33 = arith.constant 8 : i32
    %123 = arith.muli %c2_i32, %c8_i32_33 : i32
    %124 = tpu.assume_multiple %123, 8 : i32
    %c7_i32_34 = arith.constant 7 : i32
    %125 = arith.subi %c7_i32_34, %c2_i32 : i32
    %c8_i32_35 = arith.constant 8 : i32
    %126 = arith.muli %125, %c8_i32_35 : i32
    %127 = tpu.assume_multiple %126, 8 : i32
    %128 = arith.truncf %122 : vector<8x256xf32> to vector<8x256xbf16>
    %c0_36 = arith.constant 0 : index
    %c0_37 = arith.constant 0 : index
    %129 = vector.load %arg3[%c0_36, %c0_37] : memref<256x1024xbf16, #tpu.memory_space<vmem>>, vector<256x1024xbf16>
    %cst_38 = arith.constant dense<0.000000e+00> : vector<8x1024xf32>
    %130 = tpu.matmul %128, %129, %cst_38 {dimension_numbers = #tpu.dot_dimension_numbers<[1], [0], [0], [1], [0, 0, 1, 1], [], []>} : vector<8x256xbf16>, vector<256x1024xbf16>, vector<8x1024xf32> -> vector<8x1024xf32>
    %131 = arith.index_cast %124 : i32 to index
    %c0_39 = arith.constant 0 : index
    %132 = vector.load %arg12[%131, %c0_39] : memref<64x1024xf32, #tpu.memory_space<vmem>>, vector<8x512xf32>
    %133 = vector.extract_strided_slice %130 {offsets = [0, 0], sizes = [8, 512], strides = [1, 1]} : vector<8x1024xf32> to vector<8x512xf32>
    %134 = arith.addf %132, %133 : vector<8x512xf32>
    %135 = arith.index_cast %127 : i32 to index
    %c512_40 = arith.constant 512 : index
    %136 = vector.load %arg12[%135, %c512_40] : memref<64x1024xf32, #tpu.memory_space<vmem>>, vector<8x512xf32>
    %137 = vector.extract_strided_slice %130 {offsets = [0, 512], sizes = [8, 512], strides = [1, 1]} : vector<8x1024xf32> to vector<8x512xf32>
    %138 = arith.addf %136, %137 : vector<8x512xf32>
    %139 = vector.extract_strided_slice %134 {offsets = [0, 0], sizes = [8, 384], strides = [1, 1]} : vector<8x512xf32> to vector<8x384xf32>
    %140 = arith.negf %139 : vector<8x384xf32>
    %141 = math.exp %140 : vector<8x384xf32>
    %cst_41 = arith.constant 1.000000e+00 : f32
    %142 = vector.broadcast %cst_41 : f32 to vector<8x384xf32>
    %143 = arith.addf %142, %141 : vector<8x384xf32>
    %144 = arith.divf %142, %143 : vector<8x384xf32>
    %145 = vector.extract_strided_slice %134 {offsets = [0, 384], sizes = [8, 128], strides = [1, 1]} : vector<8x512xf32> to vector<8x128xf32>
    %146 = math.tanh %145 : vector<8x128xf32>
    %147 = vector.extract_strided_slice %144 {offsets = [0, 128], sizes = [8, 128], strides = [1, 1]} : vector<8x384xf32> to vector<8x128xf32>
    %148 = arith.mulf %147, %94 : vector<8x128xf32>
    %149 = vector.extract_strided_slice %144 {offsets = [0, 0], sizes = [8, 128], strides = [1, 1]} : vector<8x384xf32> to vector<8x128xf32>
    %150 = arith.mulf %149, %146 : vector<8x128xf32>
    %151 = arith.addf %148, %150 : vector<8x128xf32>
    %152 = vector.extract_strided_slice %144 {offsets = [0, 256], sizes = [8, 128], strides = [1, 1]} : vector<8x384xf32> to vector<8x128xf32>
    %153 = math.tanh %151 : vector<8x128xf32>
    %154 = arith.mulf %152, %153 : vector<8x128xf32>
    %155 = vector.extract_strided_slice %138 {offsets = [0, 0], sizes = [8, 384], strides = [1, 1]} : vector<8x512xf32> to vector<8x384xf32>
    %156 = arith.negf %155 : vector<8x384xf32>
    %157 = math.exp %156 : vector<8x384xf32>
    %cst_42 = arith.constant 1.000000e+00 : f32
    %158 = vector.broadcast %cst_42 : f32 to vector<8x384xf32>
    %159 = arith.addf %158, %157 : vector<8x384xf32>
    %160 = arith.divf %158, %159 : vector<8x384xf32>
    %161 = vector.extract_strided_slice %138 {offsets = [0, 384], sizes = [8, 128], strides = [1, 1]} : vector<8x512xf32> to vector<8x128xf32>
    %162 = math.tanh %161 : vector<8x128xf32>
    %163 = vector.extract_strided_slice %160 {offsets = [0, 128], sizes = [8, 128], strides = [1, 1]} : vector<8x384xf32> to vector<8x128xf32>
    %164 = arith.mulf %163, %110 : vector<8x128xf32>
    %165 = vector.extract_strided_slice %160 {offsets = [0, 0], sizes = [8, 128], strides = [1, 1]} : vector<8x384xf32> to vector<8x128xf32>
    %166 = arith.mulf %165, %162 : vector<8x128xf32>
    %167 = arith.addf %164, %166 : vector<8x128xf32>
    %168 = vector.extract_strided_slice %160 {offsets = [0, 256], sizes = [8, 128], strides = [1, 1]} : vector<8x384xf32> to vector<8x128xf32>
    %169 = math.tanh %167 : vector<8x128xf32>
    %170 = arith.mulf %168, %169 : vector<8x128xf32>
    %cst_43 = arith.constant 0.000000e+00 : f32
    %171 = vector.broadcast %cst_43 : f32 to vector<8x128xf32>
    %172 = arith.maximumf %154, %171 : vector<8x128xf32>
    %173 = arith.index_cast %124 : i32 to index
    %c0_44 = arith.constant 0 : index
    %174 = vector.load %arg13[%173, %c0_44] : memref<64x256xf32, #tpu.memory_space<vmem>>, vector<8x128xf32>
    tpu.vector_store %arg13[%173, %c0_44], %172 {strides = array<i32>} : memref<64x256xf32, #tpu.memory_space<vmem>>, vector<8x128xf32>,
    %cst_45 = arith.constant 0.000000e+00 : f32
    %175 = vector.broadcast %cst_45 : f32 to vector<8x128xf32>
    %176 = arith.maximumf %170, %175 : vector<8x128xf32>
    %177 = arith.index_cast %127 : i32 to index
    %c128_46 = arith.constant 128 : index
    %178 = vector.load %arg13[%177, %c128_46] : memref<64x256xf32, #tpu.memory_space<vmem>>, vector<8x128xf32>
    tpu.vector_store %arg13[%177, %c128_46], %176 {strides = array<i32>} : memref<64x256xf32, #tpu.memory_space<vmem>>, vector<8x128xf32>,
    %179 = tpu.concatenate %154, %170 in 1 : vector<8x128xf32>, vector<8x128xf32> -> vector<8x256xf32>
    %c3_i32 = arith.constant 3 : i32
    %c8_i32_47 = arith.constant 8 : i32
    %180 = arith.muli %c3_i32, %c8_i32_47 : i32
    %181 = tpu.assume_multiple %180, 8 : i32
    %c7_i32_48 = arith.constant 7 : i32
    %182 = arith.subi %c7_i32_48, %c3_i32 : i32
    %c8_i32_49 = arith.constant 8 : i32
    %183 = arith.muli %182, %c8_i32_49 : i32
    %184 = tpu.assume_multiple %183, 8 : i32
    %185 = arith.truncf %179 : vector<8x256xf32> to vector<8x256xbf16>
    %c0_50 = arith.constant 0 : index
    %c0_51 = arith.constant 0 : index
    %186 = vector.load %arg3[%c0_50, %c0_51] : memref<256x1024xbf16, #tpu.memory_space<vmem>>, vector<256x1024xbf16>
    %cst_52 = arith.constant dense<0.000000e+00> : vector<8x1024xf32>
    %187 = tpu.matmul %185, %186, %cst_52 {dimension_numbers = #tpu.dot_dimension_numbers<[1], [0], [0], [1], [0, 0, 1, 1], [], []>} : vector<8x256xbf16>, vector<256x1024xbf16>, vector<8x1024xf32> -> vector<8x1024xf32>
    %188 = arith.index_cast %181 : i32 to index
    %c0_53 = arith.constant 0 : index
    %189 = vector.load %arg12[%188, %c0_53] : memref<64x1024xf32, #tpu.memory_space<vmem>>, vector<8x512xf32>
    %190 = vector.extract_strided_slice %187 {offsets = [0, 0], sizes = [8, 512], strides = [1, 1]} : vector<8x1024xf32> to vector<8x512xf32>
    %191 = arith.addf %189, %190 : vector<8x512xf32>
    %192 = arith.index_cast %184 : i32 to index
    %c512_54 = arith.constant 512 : index
    %193 = vector.load %arg12[%192, %c512_54] : memref<64x1024xf32, #tpu.memory_space<vmem>>, vector<8x512xf32>
    %194 = vector.extract_strided_slice %187 {offsets = [0, 512], sizes = [8, 512], strides = [1, 1]} : vector<8x1024xf32> to vector<8x512xf32>
    %195 = arith.addf %193, %194 : vector<8x512xf32>
    %196 = vector.extract_strided_slice %191 {offsets = [0, 0], sizes = [8, 384], strides = [1, 1]} : vector<8x512xf32> to vector<8x384xf32>
    %197 = arith.negf %196 : vector<8x384xf32>
    %198 = math.exp %197 : vector<8x384xf32>
    %cst_55 = arith.constant 1.000000e+00 : f32
    %199 = vector.broadcast %cst_55 : f32 to vector<8x384xf32>
    %200 = arith.addf %199, %198 : vector<8x384xf32>
    %201 = arith.divf %199, %200 : vector<8x384xf32>
    %202 = vector.extract_strided_slice %191 {offsets = [0, 384], sizes = [8, 128], strides = [1, 1]} : vector<8x512xf32> to vector<8x128xf32>
    %203 = math.tanh %202 : vector<8x128xf32>
    %204 = vector.extract_strided_slice %201 {offsets = [0, 128], sizes = [8, 128], strides = [1, 1]} : vector<8x384xf32> to vector<8x128xf32>
    %205 = arith.mulf %204, %151 : vector<8x128xf32>
    %206 = vector.extract_strided_slice %201 {offsets = [0, 0], sizes = [8, 128], strides = [1, 1]} : vector<8x384xf32> to vector<8x128xf32>
    %207 = arith.mulf %206, %203 : vector<8x128xf32>
    %208 = arith.addf %205, %207 : vector<8x128xf32>
    %209 = vector.extract_strided_slice %201 {offsets = [0, 256], sizes = [8, 128], strides = [1, 1]} : vector<8x384xf32> to vector<8x128xf32>
    %210 = math.tanh %208 : vector<8x128xf32>
    %211 = arith.mulf %209, %210 : vector<8x128xf32>
    %212 = vector.extract_strided_slice %195 {offsets = [0, 0], sizes = [8, 384], strides = [1, 1]} : vector<8x512xf32> to vector<8x384xf32>
    %213 = arith.negf %212 : vector<8x384xf32>
    %214 = math.exp %213 : vector<8x384xf32>
    %cst_56 = arith.constant 1.000000e+00 : f32
    %215 = vector.broadcast %cst_56 : f32 to vector<8x384xf32>
    %216 = arith.addf %215, %214 : vector<8x384xf32>
    %217 = arith.divf %215, %216 : vector<8x384xf32>
    %218 = vector.extract_strided_slice %195 {offsets = [0, 384], sizes = [8, 128], strides = [1, 1]} : vector<8x512xf32> to vector<8x128xf32>
    %219 = math.tanh %218 : vector<8x128xf32>
    %220 = vector.extract_strided_slice %217 {offsets = [0, 128], sizes = [8, 128], strides = [1, 1]} : vector<8x384xf32> to vector<8x128xf32>
    %221 = arith.mulf %220, %167 : vector<8x128xf32>
    %222 = vector.extract_strided_slice %217 {offsets = [0, 0], sizes = [8, 128], strides = [1, 1]} : vector<8x384xf32> to vector<8x128xf32>
    %223 = arith.mulf %222, %219 : vector<8x128xf32>
    %224 = arith.addf %221, %223 : vector<8x128xf32>
    %225 = vector.extract_strided_slice %217 {offsets = [0, 256], sizes = [8, 128], strides = [1, 1]} : vector<8x384xf32> to vector<8x128xf32>
    %226 = math.tanh %224 : vector<8x128xf32>
    %227 = arith.mulf %225, %226 : vector<8x128xf32>
    %cst_57 = arith.constant 0.000000e+00 : f32
    %228 = vector.broadcast %cst_57 : f32 to vector<8x128xf32>
    %229 = arith.maximumf %211, %228 : vector<8x128xf32>
    %230 = arith.index_cast %181 : i32 to index
    %c0_58 = arith.constant 0 : index
    %231 = vector.load %arg13[%230, %c0_58] : memref<64x256xf32, #tpu.memory_space<vmem>>, vector<8x128xf32>
    tpu.vector_store %arg13[%230, %c0_58], %229 {strides = array<i32>} : memref<64x256xf32, #tpu.memory_space<vmem>>, vector<8x128xf32>,
    %cst_59 = arith.constant 0.000000e+00 : f32
    %232 = vector.broadcast %cst_59 : f32 to vector<8x128xf32>
    %233 = arith.maximumf %227, %232 : vector<8x128xf32>
    %234 = arith.index_cast %184 : i32 to index
    %c128_60 = arith.constant 128 : index
    %235 = vector.load %arg13[%234, %c128_60] : memref<64x256xf32, #tpu.memory_space<vmem>>, vector<8x128xf32>
    tpu.vector_store %arg13[%234, %c128_60], %233 {strides = array<i32>} : memref<64x256xf32, #tpu.memory_space<vmem>>, vector<8x128xf32>,
    %236 = tpu.concatenate %211, %227 in 1 : vector<8x128xf32>, vector<8x128xf32> -> vector<8x256xf32>
    %c4_i32 = arith.constant 4 : i32
    %c8_i32_61 = arith.constant 8 : i32
    %237 = arith.muli %c4_i32, %c8_i32_61 : i32
    %238 = tpu.assume_multiple %237, 8 : i32
    %c7_i32_62 = arith.constant 7 : i32
    %239 = arith.subi %c7_i32_62, %c4_i32 : i32
    %c8_i32_63 = arith.constant 8 : i32
    %240 = arith.muli %239, %c8_i32_63 : i32
    %241 = tpu.assume_multiple %240, 8 : i32
    %242 = arith.truncf %236 : vector<8x256xf32> to vector<8x256xbf16>
    %c0_64 = arith.constant 0 : index
    %c0_65 = arith.constant 0 : index
    %243 = vector.load %arg3[%c0_64, %c0_65] : memref<256x1024xbf16, #tpu.memory_space<vmem>>, vector<256x1024xbf16>
    %cst_66 = arith.constant dense<0.000000e+00> : vector<8x1024xf32>
    %244 = tpu.matmul %242, %243, %cst_66 {dimension_numbers = #tpu.dot_dimension_numbers<[1], [0], [0], [1], [0, 0, 1, 1], [], []>} : vector<8x256xbf16>, vector<256x1024xbf16>, vector<8x1024xf32> -> vector<8x1024xf32>
    %245 = arith.index_cast %238 : i32 to index
    %c0_67 = arith.constant 0 : index
    %246 = vector.load %arg12[%245, %c0_67] : memref<64x1024xf32, #tpu.memory_space<vmem>>, vector<8x512xf32>
    %247 = vector.extract_strided_slice %244 {offsets = [0, 0], sizes = [8, 512], strides = [1, 1]} : vector<8x1024xf32> to vector<8x512xf32>
    %248 = arith.addf %246, %247 : vector<8x512xf32>
    %249 = arith.index_cast %241 : i32 to index
    %c512_68 = arith.constant 512 : index
    %250 = vector.load %arg12[%249, %c512_68] : memref<64x1024xf32, #tpu.memory_space<vmem>>, vector<8x512xf32>
    %251 = vector.extract_strided_slice %244 {offsets = [0, 512], sizes = [8, 512], strides = [1, 1]} : vector<8x1024xf32> to vector<8x512xf32>
    %252 = arith.addf %250, %251 : vector<8x512xf32>
    %253 = vector.extract_strided_slice %248 {offsets = [0, 0], sizes = [8, 384], strides = [1, 1]} : vector<8x512xf32> to vector<8x384xf32>
    %254 = arith.negf %253 : vector<8x384xf32>
    %255 = math.exp %254 : vector<8x384xf32>
    %cst_69 = arith.constant 1.000000e+00 : f32
    %256 = vector.broadcast %cst_69 : f32 to vector<8x384xf32>
    %257 = arith.addf %256, %255 : vector<8x384xf32>
    %258 = arith.divf %256, %257 : vector<8x384xf32>
    %259 = vector.extract_strided_slice %248 {offsets = [0, 384], sizes = [8, 128], strides = [1, 1]} : vector<8x512xf32> to vector<8x128xf32>
    %260 = math.tanh %259 : vector<8x128xf32>
    %261 = vector.extract_strided_slice %258 {offsets = [0, 128], sizes = [8, 128], strides = [1, 1]} : vector<8x384xf32> to vector<8x128xf32>
    %262 = arith.mulf %261, %208 : vector<8x128xf32>
    %263 = vector.extract_strided_slice %258 {offsets = [0, 0], sizes = [8, 128], strides = [1, 1]} : vector<8x384xf32> to vector<8x128xf32>
    %264 = arith.mulf %263, %260 : vector<8x128xf32>
    %265 = arith.addf %262, %264 : vector<8x128xf32>
    %266 = vector.extract_strided_slice %258 {offsets = [0, 256], sizes = [8, 128], strides = [1, 1]} : vector<8x384xf32> to vector<8x128xf32>
    %267 = math.tanh %265 : vector<8x128xf32>
    %268 = arith.mulf %266, %267 : vector<8x128xf32>
    %269 = vector.extract_strided_slice %252 {offsets = [0, 0], sizes = [8, 384], strides = [1, 1]} : vector<8x512xf32> to vector<8x384xf32>
    %270 = arith.negf %269 : vector<8x384xf32>
    %271 = math.exp %270 : vector<8x384xf32>
    %cst_70 = arith.constant 1.000000e+00 : f32
    %272 = vector.broadcast %cst_70 : f32 to vector<8x384xf32>
    %273 = arith.addf %272, %271 : vector<8x384xf32>
    %274 = arith.divf %272, %273 : vector<8x384xf32>
    %275 = vector.extract_strided_slice %252 {offsets = [0, 384], sizes = [8, 128], strides = [1, 1]} : vector<8x512xf32> to vector<8x128xf32>
    %276 = math.tanh %275 : vector<8x128xf32>
    %277 = vector.extract_strided_slice %274 {offsets = [0, 128], sizes = [8, 128], strides = [1, 1]} : vector<8x384xf32> to vector<8x128xf32>
    %278 = arith.mulf %277, %224 : vector<8x128xf32>
    %279 = vector.extract_strided_slice %274 {offsets = [0, 0], sizes = [8, 128], strides = [1, 1]} : vector<8x384xf32> to vector<8x128xf32>
    %280 = arith.mulf %279, %276 : vector<8x128xf32>
    %281 = arith.addf %278, %280 : vector<8x128xf32>
    %282 = vector.extract_strided_slice %274 {offsets = [0, 256], sizes = [8, 128], strides = [1, 1]} : vector<8x384xf32> to vector<8x128xf32>
    %283 = math.tanh %281 : vector<8x128xf32>
    %284 = arith.mulf %282, %283 : vector<8x128xf32>
    %cst_71 = arith.constant 0.000000e+00 : f32
    %285 = vector.broadcast %cst_71 : f32 to vector<8x128xf32>
    %286 = arith.maximumf %268, %285 : vector<8x128xf32>
    %287 = arith.index_cast %238 : i32 to index
    %c0_72 = arith.constant 0 : index
    %288 = vector.load %arg13[%287, %c0_72] : memref<64x256xf32, #tpu.memory_space<vmem>>, vector<8x128xf32>
    tpu.vector_store %arg13[%287, %c0_72], %286 {strides = array<i32>} : memref<64x256xf32, #tpu.memory_space<vmem>>, vector<8x128xf32>,
    %cst_73 = arith.constant 0.000000e+00 : f32
    %289 = vector.broadcast %cst_73 : f32 to vector<8x128xf32>
    %290 = arith.maximumf %284, %289 : vector<8x128xf32>
    %291 = arith.index_cast %241 : i32 to index
    %c128_74 = arith.constant 128 : index
    %292 = vector.load %arg13[%291, %c128_74] : memref<64x256xf32, #tpu.memory_space<vmem>>, vector<8x128xf32>
    tpu.vector_store %arg13[%291, %c128_74], %290 {strides = array<i32>} : memref<64x256xf32, #tpu.memory_space<vmem>>, vector<8x128xf32>,
    %293 = tpu.concatenate %268, %284 in 1 : vector<8x128xf32>, vector<8x128xf32> -> vector<8x256xf32>
    %c5_i32 = arith.constant 5 : i32
    %c8_i32_75 = arith.constant 8 : i32
    %294 = arith.muli %c5_i32, %c8_i32_75 : i32
    %295 = tpu.assume_multiple %294, 8 : i32
    %c7_i32_76 = arith.constant 7 : i32
    %296 = arith.subi %c7_i32_76, %c5_i32 : i32
    %c8_i32_77 = arith.constant 8 : i32
    %297 = arith.muli %296, %c8_i32_77 : i32
    %298 = tpu.assume_multiple %297, 8 : i32
    %299 = arith.truncf %293 : vector<8x256xf32> to vector<8x256xbf16>
    %c0_78 = arith.constant 0 : index
    %c0_79 = arith.constant 0 : index
    %300 = vector.load %arg3[%c0_78, %c0_79] : memref<256x1024xbf16, #tpu.memory_space<vmem>>, vector<256x1024xbf16>
    %cst_80 = arith.constant dense<0.000000e+00> : vector<8x1024xf32>
    %301 = tpu.matmul %299, %300, %cst_80 {dimension_numbers = #tpu.dot_dimension_numbers<[1], [0], [0], [1], [0, 0, 1, 1], [], []>} : vector<8x256xbf16>, vector<256x1024xbf16>, vector<8x1024xf32> -> vector<8x1024xf32>
    %302 = arith.index_cast %295 : i32 to index
    %c0_81 = arith.constant 0 : index
    %303 = vector.load %arg12[%302, %c0_81] : memref<64x1024xf32, #tpu.memory_space<vmem>>, vector<8x512xf32>
    %304 = vector.extract_strided_slice %301 {offsets = [0, 0], sizes = [8, 512], strides = [1, 1]} : vector<8x1024xf32> to vector<8x512xf32>
    %305 = arith.addf %303, %304 : vector<8x512xf32>
    %306 = arith.index_cast %298 : i32 to index
    %c512_82 = arith.constant 512 : index
    %307 = vector.load %arg12[%306, %c512_82] : memref<64x1024xf32, #tpu.memory_space<vmem>>, vector<8x512xf32>
    %308 = vector.extract_strided_slice %301 {offsets = [0, 512], sizes = [8, 512], strides = [1, 1]} : vector<8x1024xf32> to vector<8x512xf32>
    %309 = arith.addf %307, %308 : vector<8x512xf32>
    %310 = vector.extract_strided_slice %305 {offsets = [0, 0], sizes = [8, 384], strides = [1, 1]} : vector<8x512xf32> to vector<8x384xf32>
    %311 = arith.negf %310 : vector<8x384xf32>
    %312 = math.exp %311 : vector<8x384xf32>
    %cst_83 = arith.constant 1.000000e+00 : f32
    %313 = vector.broadcast %cst_83 : f32 to vector<8x384xf32>
    %314 = arith.addf %313, %312 : vector<8x384xf32>
    %315 = arith.divf %313, %314 : vector<8x384xf32>
    %316 = vector.extract_strided_slice %305 {offsets = [0, 384], sizes = [8, 128], strides = [1, 1]} : vector<8x512xf32> to vector<8x128xf32>
    %317 = math.tanh %316 : vector<8x128xf32>
    %318 = vector.extract_strided_slice %315 {offsets = [0, 128], sizes = [8, 128], strides = [1, 1]} : vector<8x384xf32> to vector<8x128xf32>
    %319 = arith.mulf %318, %265 : vector<8x128xf32>
    %320 = vector.extract_strided_slice %315 {offsets = [0, 0], sizes = [8, 128], strides = [1, 1]} : vector<8x384xf32> to vector<8x128xf32>
    %321 = arith.mulf %320, %317 : vector<8x128xf32>
    %322 = arith.addf %319, %321 : vector<8x128xf32>
    %323 = vector.extract_strided_slice %315 {offsets = [0, 256], sizes = [8, 128], strides = [1, 1]} : vector<8x384xf32> to vector<8x128xf32>
    %324 = math.tanh %322 : vector<8x128xf32>
    %325 = arith.mulf %323, %324 : vector<8x128xf32>
    %326 = vector.extract_strided_slice %309 {offsets = [0, 0], sizes = [8, 384], strides = [1, 1]} : vector<8x512xf32> to vector<8x384xf32>
    %327 = arith.negf %326 : vector<8x384xf32>
    %328 = math.exp %327 : vector<8x384xf32>
    %cst_84 = arith.constant 1.000000e+00 : f32
    %329 = vector.broadcast %cst_84 : f32 to vector<8x384xf32>
    %330 = arith.addf %329, %328 : vector<8x384xf32>
    %331 = arith.divf %329, %330 : vector<8x384xf32>
    %332 = vector.extract_strided_slice %309 {offsets = [0, 384], sizes = [8, 128], strides = [1, 1]} : vector<8x512xf32> to vector<8x128xf32>
    %333 = math.tanh %332 : vector<8x128xf32>
    %334 = vector.extract_strided_slice %331 {offsets = [0, 128], sizes = [8, 128], strides = [1, 1]} : vector<8x384xf32> to vector<8x128xf32>
    %335 = arith.mulf %334, %281 : vector<8x128xf32>
    %336 = vector.extract_strided_slice %331 {offsets = [0, 0], sizes = [8, 128], strides = [1, 1]} : vector<8x384xf32> to vector<8x128xf32>
    %337 = arith.mulf %336, %333 : vector<8x128xf32>
    %338 = arith.addf %335, %337 : vector<8x128xf32>
    %339 = vector.extract_strided_slice %331 {offsets = [0, 256], sizes = [8, 128], strides = [1, 1]} : vector<8x384xf32> to vector<8x128xf32>
    %340 = math.tanh %338 : vector<8x128xf32>
    %341 = arith.mulf %339, %340 : vector<8x128xf32>
    %cst_85 = arith.constant 0.000000e+00 : f32
    %342 = vector.broadcast %cst_85 : f32 to vector<8x128xf32>
    %343 = arith.maximumf %325, %342 : vector<8x128xf32>
    %344 = arith.index_cast %295 : i32 to index
    %c0_86 = arith.constant 0 : index
    %345 = vector.load %arg13[%344, %c0_86] : memref<64x256xf32, #tpu.memory_space<vmem>>, vector<8x128xf32>
    tpu.vector_store %arg13[%344, %c0_86], %343 {strides = array<i32>} : memref<64x256xf32, #tpu.memory_space<vmem>>, vector<8x128xf32>,
    %cst_87 = arith.constant 0.000000e+00 : f32
    %346 = vector.broadcast %cst_87 : f32 to vector<8x128xf32>
    %347 = arith.maximumf %341, %346 : vector<8x128xf32>
    %348 = arith.index_cast %298 : i32 to index
    %c128_88 = arith.constant 128 : index
    %349 = vector.load %arg13[%348, %c128_88] : memref<64x256xf32, #tpu.memory_space<vmem>>, vector<8x128xf32>
    tpu.vector_store %arg13[%348, %c128_88], %347 {strides = array<i32>} : memref<64x256xf32, #tpu.memory_space<vmem>>, vector<8x128xf32>,
    %350 = tpu.concatenate %325, %341 in 1 : vector<8x128xf32>, vector<8x128xf32> -> vector<8x256xf32>
    %c6_i32 = arith.constant 6 : i32
    %c8_i32_89 = arith.constant 8 : i32
    %351 = arith.muli %c6_i32, %c8_i32_89 : i32
    %352 = tpu.assume_multiple %351, 8 : i32
    %c7_i32_90 = arith.constant 7 : i32
    %353 = arith.subi %c7_i32_90, %c6_i32 : i32
    %c8_i32_91 = arith.constant 8 : i32
    %354 = arith.muli %353, %c8_i32_91 : i32
    %355 = tpu.assume_multiple %354, 8 : i32
    %356 = arith.truncf %350 : vector<8x256xf32> to vector<8x256xbf16>
    %c0_92 = arith.constant 0 : index
    %c0_93 = arith.constant 0 : index
    %357 = vector.load %arg3[%c0_92, %c0_93] : memref<256x1024xbf16, #tpu.memory_space<vmem>>, vector<256x1024xbf16>
    %cst_94 = arith.constant dense<0.000000e+00> : vector<8x1024xf32>
    %358 = tpu.matmul %356, %357, %cst_94 {dimension_numbers = #tpu.dot_dimension_numbers<[1], [0], [0], [1], [0, 0, 1, 1], [], []>} : vector<8x256xbf16>, vector<256x1024xbf16>, vector<8x1024xf32> -> vector<8x1024xf32>
    %359 = arith.index_cast %352 : i32 to index
    %c0_95 = arith.constant 0 : index
    %360 = vector.load %arg12[%359, %c0_95] : memref<64x1024xf32, #tpu.memory_space<vmem>>, vector<8x512xf32>
    %361 = vector.extract_strided_slice %358 {offsets = [0, 0], sizes = [8, 512], strides = [1, 1]} : vector<8x1024xf32> to vector<8x512xf32>
    %362 = arith.addf %360, %361 : vector<8x512xf32>
    %363 = arith.index_cast %355 : i32 to index
    %c512_96 = arith.constant 512 : index
    %364 = vector.load %arg12[%363, %c512_96] : memref<64x1024xf32, #tpu.memory_space<vmem>>, vector<8x512xf32>
    %365 = vector.extract_strided_slice %358 {offsets = [0, 512], sizes = [8, 512], strides = [1, 1]} : vector<8x1024xf32> to vector<8x512xf32>
    %366 = arith.addf %364, %365 : vector<8x512xf32>
    %367 = vector.extract_strided_slice %362 {offsets = [0, 0], sizes = [8, 384], strides = [1, 1]} : vector<8x512xf32> to vector<8x384xf32>
    %368 = arith.negf %367 : vector<8x384xf32>
    %369 = math.exp %368 : vector<8x384xf32>
    %cst_97 = arith.constant 1.000000e+00 : f32
    %370 = vector.broadcast %cst_97 : f32 to vector<8x384xf32>
    %371 = arith.addf %370, %369 : vector<8x384xf32>
    %372 = arith.divf %370, %371 : vector<8x384xf32>
    %373 = vector.extract_strided_slice %362 {offsets = [0, 384], sizes = [8, 128], strides = [1, 1]} : vector<8x512xf32> to vector<8x128xf32>
    %374 = math.tanh %373 : vector<8x128xf32>
    %375 = vector.extract_strided_slice %372 {offsets = [0, 128], sizes = [8, 128], strides = [1, 1]} : vector<8x384xf32> to vector<8x128xf32>
    %376 = arith.mulf %375, %322 : vector<8x128xf32>
    %377 = vector.extract_strided_slice %372 {offsets = [0, 0], sizes = [8, 128], strides = [1, 1]} : vector<8x384xf32> to vector<8x128xf32>
    %378 = arith.mulf %377, %374 : vector<8x128xf32>
    %379 = arith.addf %376, %378 : vector<8x128xf32>
    %380 = vector.extract_strided_slice %372 {offsets = [0, 256], sizes = [8, 128], strides = [1, 1]} : vector<8x384xf32> to vector<8x128xf32>
    %381 = math.tanh %379 : vector<8x128xf32>
    %382 = arith.mulf %380, %381 : vector<8x128xf32>
    %383 = vector.extract_strided_slice %366 {offsets = [0, 0], sizes = [8, 384], strides = [1, 1]} : vector<8x512xf32> to vector<8x384xf32>
    %384 = arith.negf %383 : vector<8x384xf32>
    %385 = math.exp %384 : vector<8x384xf32>
    %cst_98 = arith.constant 1.000000e+00 : f32
    %386 = vector.broadcast %cst_98 : f32 to vector<8x384xf32>
    %387 = arith.addf %386, %385 : vector<8x384xf32>
    %388 = arith.divf %386, %387 : vector<8x384xf32>
    %389 = vector.extract_strided_slice %366 {offsets = [0, 384], sizes = [8, 128], strides = [1, 1]} : vector<8x512xf32> to vector<8x128xf32>
    %390 = math.tanh %389 : vector<8x128xf32>
    %391 = vector.extract_strided_slice %388 {offsets = [0, 128], sizes = [8, 128], strides = [1, 1]} : vector<8x384xf32> to vector<8x128xf32>
    %392 = arith.mulf %391, %338 : vector<8x128xf32>
    %393 = vector.extract_strided_slice %388 {offsets = [0, 0], sizes = [8, 128], strides = [1, 1]} : vector<8x384xf32> to vector<8x128xf32>
    %394 = arith.mulf %393, %390 : vector<8x128xf32>
    %395 = arith.addf %392, %394 : vector<8x128xf32>
    %396 = vector.extract_strided_slice %388 {offsets = [0, 256], sizes = [8, 128], strides = [1, 1]} : vector<8x384xf32> to vector<8x128xf32>
    %397 = math.tanh %395 : vector<8x128xf32>
    %398 = arith.mulf %396, %397 : vector<8x128xf32>
    %cst_99 = arith.constant 0.000000e+00 : f32
    %399 = vector.broadcast %cst_99 : f32 to vector<8x128xf32>
    %400 = arith.maximumf %382, %399 : vector<8x128xf32>
    %401 = arith.index_cast %352 : i32 to index
    %c0_100 = arith.constant 0 : index
    %402 = vector.load %arg13[%401, %c0_100] : memref<64x256xf32, #tpu.memory_space<vmem>>, vector<8x128xf32>
    tpu.vector_store %arg13[%401, %c0_100], %400 {strides = array<i32>} : memref<64x256xf32, #tpu.memory_space<vmem>>, vector<8x128xf32>,
    %cst_101 = arith.constant 0.000000e+00 : f32
    %403 = vector.broadcast %cst_101 : f32 to vector<8x128xf32>
    %404 = arith.maximumf %398, %403 : vector<8x128xf32>
    %405 = arith.index_cast %355 : i32 to index
    %c128_102 = arith.constant 128 : index
    %406 = vector.load %arg13[%405, %c128_102] : memref<64x256xf32, #tpu.memory_space<vmem>>, vector<8x128xf32>
    tpu.vector_store %arg13[%405, %c128_102], %404 {strides = array<i32>} : memref<64x256xf32, #tpu.memory_space<vmem>>, vector<8x128xf32>,
    %407 = tpu.concatenate %382, %398 in 1 : vector<8x128xf32>, vector<8x128xf32> -> vector<8x256xf32>
    %c7_i32_103 = arith.constant 7 : i32
    %c8_i32_104 = arith.constant 8 : i32
    %408 = arith.muli %c7_i32_103, %c8_i32_104 : i32
    %409 = tpu.assume_multiple %408, 8 : i32
    %c7_i32_105 = arith.constant 7 : i32
    %410 = arith.subi %c7_i32_105, %c7_i32_103 : i32
    %c8_i32_106 = arith.constant 8 : i32
    %411 = arith.muli %410, %c8_i32_106 : i32
    %412 = tpu.assume_multiple %411, 8 : i32
    %413 = arith.truncf %407 : vector<8x256xf32> to vector<8x256xbf16>
    %c0_107 = arith.constant 0 : index
    %c0_108 = arith.constant 0 : index
    %414 = vector.load %arg3[%c0_107, %c0_108] : memref<256x1024xbf16, #tpu.memory_space<vmem>>, vector<256x1024xbf16>
    %cst_109 = arith.constant dense<0.000000e+00> : vector<8x1024xf32>
    %415 = tpu.matmul %413, %414, %cst_109 {dimension_numbers = #tpu.dot_dimension_numbers<[1], [0], [0], [1], [0, 0, 1, 1], [], []>} : vector<8x256xbf16>, vector<256x1024xbf16>, vector<8x1024xf32> -> vector<8x1024xf32>
    %416 = arith.index_cast %409 : i32 to index
    %c0_110 = arith.constant 0 : index
    %417 = vector.load %arg12[%416, %c0_110] : memref<64x1024xf32, #tpu.memory_space<vmem>>, vector<8x512xf32>
    %418 = vector.extract_strided_slice %415 {offsets = [0, 0], sizes = [8, 512], strides = [1, 1]} : vector<8x1024xf32> to vector<8x512xf32>
    %419 = arith.addf %417, %418 : vector<8x512xf32>
    %420 = arith.index_cast %412 : i32 to index
    %c512_111 = arith.constant 512 : index
    %421 = vector.load %arg12[%420, %c512_111] : memref<64x1024xf32, #tpu.memory_space<vmem>>, vector<8x512xf32>
    %422 = vector.extract_strided_slice %415 {offsets = [0, 512], sizes = [8, 512], strides = [1, 1]} : vector<8x1024xf32> to vector<8x512xf32>
    %423 = arith.addf %421, %422 : vector<8x512xf32>
    %424 = vector.extract_strided_slice %419 {offsets = [0, 0], sizes = [8, 384], strides = [1, 1]} : vector<8x512xf32> to vector<8x384xf32>
    %425 = arith.negf %424 : vector<8x384xf32>
    %426 = math.exp %425 : vector<8x384xf32>
    %cst_112 = arith.constant 1.000000e+00 : f32
    %427 = vector.broadcast %cst_112 : f32 to vector<8x384xf32>
    %428 = arith.addf %427, %426 : vector<8x384xf32>
    %429 = arith.divf %427, %428 : vector<8x384xf32>
    %430 = vector.extract_strided_slice %419 {offsets = [0, 384], sizes = [8, 128], strides = [1, 1]} : vector<8x512xf32> to vector<8x128xf32>
    %431 = math.tanh %430 : vector<8x128xf32>
    %432 = vector.extract_strided_slice %429 {offsets = [0, 128], sizes = [8, 128], strides = [1, 1]} : vector<8x384xf32> to vector<8x128xf32>
    %433 = arith.mulf %432, %379 : vector<8x128xf32>
    %434 = vector.extract_strided_slice %429 {offsets = [0, 0], sizes = [8, 128], strides = [1, 1]} : vector<8x384xf32> to vector<8x128xf32>
    %435 = arith.mulf %434, %431 : vector<8x128xf32>
    %436 = arith.addf %433, %435 : vector<8x128xf32>
    %437 = vector.extract_strided_slice %429 {offsets = [0, 256], sizes = [8, 128], strides = [1, 1]} : vector<8x384xf32> to vector<8x128xf32>
    %438 = math.tanh %436 : vector<8x128xf32>
    %439 = arith.mulf %437, %438 : vector<8x128xf32>
    %440 = vector.extract_strided_slice %423 {offsets = [0, 0], sizes = [8, 384], strides = [1, 1]} : vector<8x512xf32> to vector<8x384xf32>
    %441 = arith.negf %440 : vector<8x384xf32>
    %442 = math.exp %441 : vector<8x384xf32>
    %cst_113 = arith.constant 1.000000e+00 : f32
    %443 = vector.broadcast %cst_113 : f32 to vector<8x384xf32>
    %444 = arith.addf %443, %442 : vector<8x384xf32>
    %445 = arith.divf %443, %444 : vector<8x384xf32>
    %446 = vector.extract_strided_slice %423 {offsets = [0, 384], sizes = [8, 128], strides = [1, 1]} : vector<8x512xf32> to vector<8x128xf32>
    %447 = math.tanh %446 : vector<8x128xf32>
    %448 = vector.extract_strided_slice %445 {offsets = [0, 128], sizes = [8, 128], strides = [1, 1]} : vector<8x384xf32> to vector<8x128xf32>
    %449 = arith.mulf %448, %395 : vector<8x128xf32>
    %450 = vector.extract_strided_slice %445 {offsets = [0, 0], sizes = [8, 128], strides = [1, 1]} : vector<8x384xf32> to vector<8x128xf32>
    %451 = arith.mulf %450, %447 : vector<8x128xf32>
    %452 = arith.addf %449, %451 : vector<8x128xf32>
    %453 = vector.extract_strided_slice %445 {offsets = [0, 256], sizes = [8, 128], strides = [1, 1]} : vector<8x384xf32> to vector<8x128xf32>
    %454 = math.tanh %452 : vector<8x128xf32>
    %455 = arith.mulf %453, %454 : vector<8x128xf32>
    %cst_114 = arith.constant 0.000000e+00 : f32
    %456 = vector.broadcast %cst_114 : f32 to vector<8x128xf32>
    %457 = arith.maximumf %439, %456 : vector<8x128xf32>
    %458 = arith.index_cast %409 : i32 to index
    %c0_115 = arith.constant 0 : index
    %459 = vector.load %arg13[%458, %c0_115] : memref<64x256xf32, #tpu.memory_space<vmem>>, vector<8x128xf32>
    tpu.vector_store %arg13[%458, %c0_115], %457 {strides = array<i32>} : memref<64x256xf32, #tpu.memory_space<vmem>>, vector<8x128xf32>,
    %cst_116 = arith.constant 0.000000e+00 : f32
    %460 = vector.broadcast %cst_116 : f32 to vector<8x128xf32>
    %461 = arith.maximumf %455, %460 : vector<8x128xf32>
    %462 = arith.index_cast %412 : i32 to index
    %c128_117 = arith.constant 128 : index
    %463 = vector.load %arg13[%462, %c128_117] : memref<64x256xf32, #tpu.memory_space<vmem>>, vector<8x128xf32>
    tpu.vector_store %arg13[%462, %c128_117], %461 {strides = array<i32>} : memref<64x256xf32, #tpu.memory_space<vmem>>, vector<8x128xf32>,
    %464 = tpu.concatenate %439, %455 in 1 : vector<8x128xf32>, vector<8x128xf32> -> vector<8x256xf32>
    %c8_i32_118 = arith.constant 8 : i32
    %c0_119 = arith.constant 0 : index
    %c0_120 = arith.constant 0 : index
    %465 = vector.load %arg13[%c0_119, %c0_120] : memref<64x256xf32, #tpu.memory_space<vmem>>, vector<64x256xf32>
    %466 = arith.truncf %465 : vector<64x256xf32> to vector<64x256xbf16>
    %c0_121 = arith.constant 0 : index
    %c0_122 = arith.constant 0 : index
    %467 = vector.load %arg4[%c0_121, %c0_122] : memref<256x512xbf16, #tpu.memory_space<vmem>>, vector<256x512xbf16>
    %cst_123 = arith.constant dense<0.000000e+00> : vector<64x512xf32>
    %468 = tpu.matmul %466, %467, %cst_123 {dimension_numbers = #tpu.dot_dimension_numbers<[1], [0], [0], [1], [0, 0, 1, 1], [], []>} : vector<64x256xbf16>, vector<256x512xbf16>, vector<64x512xf32> -> vector<64x512xf32>
    %c0_124 = arith.constant 0 : index
    %c0_125 = arith.constant 0 : index
    %469 = vector.load %arg6[%c0_124, %c0_125] : memref<1x512xf32, #tpu.memory_space<vmem>>, vector<1x512xf32>
    %470 = vector.broadcast %469 : vector<1x512xf32> to vector<64x512xf32>
    %471 = arith.addf %468, %470 : vector<64x512xf32>
    %c0_126 = arith.constant 0 : index
    %c0_127 = arith.constant 0 : index
    %472 = vector.load %arg12[%c0_126, %c0_127] : memref<64x1024xf32, #tpu.memory_space<vmem>>, vector<64x512xf32>
    tpu.vector_store %arg12[%c0_126, %c0_127], %471 {strides = array<i32>} : memref<64x1024xf32, #tpu.memory_space<vmem>>, vector<64x512xf32>,
    %c0_i32_128 = arith.constant 0 : i32
    %c8_i32_129 = arith.constant 8 : i32
    %473 = arith.muli %c0_i32_128, %c8_i32_129 : i32
    %474 = tpu.assume_multiple %473, 8 : i32
    %475 = arith.index_cast %474 : i32 to index
    %c0_130 = arith.constant 0 : index
    %476 = vector.load %arg12[%475, %c0_130] : memref<64x1024xf32, #tpu.memory_space<vmem>>, vector<8x512xf32>
    %477 = arith.truncf %0 : vector<8x128xf32> to vector<8x128xbf16>
    %c0_131 = arith.constant 0 : index
    %c0_132 = arith.constant 0 : index
    %478 = vector.load %arg5[%c0_131, %c0_132] : memref<128x512xbf16, #tpu.memory_space<vmem>>, vector<128x512xbf16>
    %cst_133 = arith.constant dense<0.000000e+00> : vector<8x512xf32>
    %479 = tpu.matmul %477, %478, %cst_133 {dimension_numbers = #tpu.dot_dimension_numbers<[1], [0], [0], [1], [0, 0, 1, 1], [], []>} : vector<8x128xbf16>, vector<128x512xbf16>, vector<8x512xf32> -> vector<8x512xf32>
    %480 = arith.addf %476, %479 : vector<8x512xf32>
    %481 = vector.extract_strided_slice %480 {offsets = [0, 0], sizes = [8, 384], strides = [1, 1]} : vector<8x512xf32> to vector<8x384xf32>
    %482 = arith.negf %481 : vector<8x384xf32>
    %483 = math.exp %482 : vector<8x384xf32>
    %cst_134 = arith.constant 1.000000e+00 : f32
    %484 = vector.broadcast %cst_134 : f32 to vector<8x384xf32>
    %485 = arith.addf %484, %483 : vector<8x384xf32>
    %486 = arith.divf %484, %485 : vector<8x384xf32>
    %487 = vector.extract_strided_slice %480 {offsets = [0, 384], sizes = [8, 128], strides = [1, 1]} : vector<8x512xf32> to vector<8x128xf32>
    %488 = math.tanh %487 : vector<8x128xf32>
    %489 = vector.extract_strided_slice %486 {offsets = [0, 128], sizes = [8, 128], strides = [1, 1]} : vector<8x384xf32> to vector<8x128xf32>
    %490 = arith.mulf %489, %0 : vector<8x128xf32>
    %491 = vector.extract_strided_slice %486 {offsets = [0, 0], sizes = [8, 128], strides = [1, 1]} : vector<8x384xf32> to vector<8x128xf32>
    %492 = arith.mulf %491, %488 : vector<8x128xf32>
    %493 = arith.addf %490, %492 : vector<8x128xf32>
    %494 = vector.extract_strided_slice %486 {offsets = [0, 256], sizes = [8, 128], strides = [1, 1]} : vector<8x384xf32> to vector<8x128xf32>
    %495 = math.tanh %493 : vector<8x128xf32>
    %496 = arith.mulf %494, %495 : vector<8x128xf32>
    %c1_i32_135 = arith.constant 1 : i32
    %c8_i32_136 = arith.constant 8 : i32
    %497 = arith.muli %c1_i32_135, %c8_i32_136 : i32
    %498 = tpu.assume_multiple %497, 8 : i32
    %499 = arith.index_cast %498 : i32 to index
    %c0_137 = arith.constant 0 : index
    %500 = vector.load %arg12[%499, %c0_137] : memref<64x1024xf32, #tpu.memory_space<vmem>>, vector<8x512xf32>
    %501 = arith.truncf %496 : vector<8x128xf32> to vector<8x128xbf16>
    %c0_138 = arith.constant 0 : index
    %c0_139 = arith.constant 0 : index
    %502 = vector.load %arg5[%c0_138, %c0_139] : memref<128x512xbf16, #tpu.memory_space<vmem>>, vector<128x512xbf16>
    %cst_140 = arith.constant dense<0.000000e+00> : vector<8x512xf32>
    %503 = tpu.matmul %501, %502, %cst_140 {dimension_numbers = #tpu.dot_dimension_numbers<[1], [0], [0], [1], [0, 0, 1, 1], [], []>} : vector<8x128xbf16>, vector<128x512xbf16>, vector<8x512xf32> -> vector<8x512xf32>
    %504 = arith.addf %500, %503 : vector<8x512xf32>
    %505 = vector.extract_strided_slice %504 {offsets = [0, 0], sizes = [8, 384], strides = [1, 1]} : vector<8x512xf32> to vector<8x384xf32>
    %506 = arith.negf %505 : vector<8x384xf32>
    %507 = math.exp %506 : vector<8x384xf32>
    %cst_141 = arith.constant 1.000000e+00 : f32
    %508 = vector.broadcast %cst_141 : f32 to vector<8x384xf32>
    %509 = arith.addf %508, %507 : vector<8x384xf32>
    %510 = arith.divf %508, %509 : vector<8x384xf32>
    %511 = vector.extract_strided_slice %504 {offsets = [0, 384], sizes = [8, 128], strides = [1, 1]} : vector<8x512xf32> to vector<8x128xf32>
    %512 = math.tanh %511 : vector<8x128xf32>
    %513 = vector.extract_strided_slice %510 {offsets = [0, 128], sizes = [8, 128], strides = [1, 1]} : vector<8x384xf32> to vector<8x128xf32>
    %514 = arith.mulf %513, %493 : vector<8x128xf32>
    %515 = vector.extract_strided_slice %510 {offsets = [0, 0], sizes = [8, 128], strides = [1, 1]} : vector<8x384xf32> to vector<8x128xf32>
    %516 = arith.mulf %515, %512 : vector<8x128xf32>
    %517 = arith.addf %514, %516 : vector<8x128xf32>
    %518 = vector.extract_strided_slice %510 {offsets = [0, 256], sizes = [8, 128], strides = [1, 1]} : vector<8x384xf32> to vector<8x128xf32>
    %519 = math.tanh %517 : vector<8x128xf32>
    %520 = arith.mulf %518, %519 : vector<8x128xf32>
    %c2_i32_142 = arith.constant 2 : i32
    %c8_i32_143 = arith.constant 8 : i32
    %521 = arith.muli %c2_i32_142, %c8_i32_143 : i32
    %522 = tpu.assume_multiple %521, 8 : i32
    %523 = arith.index_cast %522 : i32 to index
    %c0_144 = arith.constant 0 : index
    %524 = vector.load %arg12[%523, %c0_144] : memref<64x1024xf32, #tpu.memory_space<vmem>>, vector<8x512xf32>
    %525 = arith.truncf %520 : vector<8x128xf32> to vector<8x128xbf16>
    %c0_145 = arith.constant 0 : index
    %c0_146 = arith.constant 0 : index
    %526 = vector.load %arg5[%c0_145, %c0_146] : memref<128x512xbf16, #tpu.memory_space<vmem>>, vector<128x512xbf16>
    %cst_147 = arith.constant dense<0.000000e+00> : vector<8x512xf32>
    %527 = tpu.matmul %525, %526, %cst_147 {dimension_numbers = #tpu.dot_dimension_numbers<[1], [0], [0], [1], [0, 0, 1, 1], [], []>} : vector<8x128xbf16>, vector<128x512xbf16>, vector<8x512xf32> -> vector<8x512xf32>
    %528 = arith.addf %524, %527 : vector<8x512xf32>
    %529 = vector.extract_strided_slice %528 {offsets = [0, 0], sizes = [8, 384], strides = [1, 1]} : vector<8x512xf32> to vector<8x384xf32>
    %530 = arith.negf %529 : vector<8x384xf32>
    %531 = math.exp %530 : vector<8x384xf32>
    %cst_148 = arith.constant 1.000000e+00 : f32
    %532 = vector.broadcast %cst_148 : f32 to vector<8x384xf32>
    %533 = arith.addf %532, %531 : vector<8x384xf32>
    %534 = arith.divf %532, %533 : vector<8x384xf32>
    %535 = vector.extract_strided_slice %528 {offsets = [0, 384], sizes = [8, 128], strides = [1, 1]} : vector<8x512xf32> to vector<8x128xf32>
    %536 = math.tanh %535 : vector<8x128xf32>
    %537 = vector.extract_strided_slice %534 {offsets = [0, 128], sizes = [8, 128], strides = [1, 1]} : vector<8x384xf32> to vector<8x128xf32>
    %538 = arith.mulf %537, %517 : vector<8x128xf32>
    %539 = vector.extract_strided_slice %534 {offsets = [0, 0], sizes = [8, 128], strides = [1, 1]} : vector<8x384xf32> to vector<8x128xf32>
    %540 = arith.mulf %539, %536 : vector<8x128xf32>
    %541 = arith.addf %538, %540 : vector<8x128xf32>
    %542 = vector.extract_strided_slice %534 {offsets = [0, 256], sizes = [8, 128], strides = [1, 1]} : vector<8x384xf32> to vector<8x128xf32>
    %543 = math.tanh %541 : vector<8x128xf32>
    %544 = arith.mulf %542, %543 : vector<8x128xf32>
    %c3_i32_149 = arith.constant 3 : i32
    %c8_i32_150 = arith.constant 8 : i32
    %545 = arith.muli %c3_i32_149, %c8_i32_150 : i32
    %546 = tpu.assume_multiple %545, 8 : i32
    %547 = arith.index_cast %546 : i32 to index
    %c0_151 = arith.constant 0 : index
    %548 = vector.load %arg12[%547, %c0_151] : memref<64x1024xf32, #tpu.memory_space<vmem>>, vector<8x512xf32>
    %549 = arith.truncf %544 : vector<8x128xf32> to vector<8x128xbf16>
    %c0_152 = arith.constant 0 : index
    %c0_153 = arith.constant 0 : index
    %550 = vector.load %arg5[%c0_152, %c0_153] : memref<128x512xbf16, #tpu.memory_space<vmem>>, vector<128x512xbf16>
    %cst_154 = arith.constant dense<0.000000e+00> : vector<8x512xf32>
    %551 = tpu.matmul %549, %550, %cst_154 {dimension_numbers = #tpu.dot_dimension_numbers<[1], [0], [0], [1], [0, 0, 1, 1], [], []>} : vector<8x128xbf16>, vector<128x512xbf16>, vector<8x512xf32> -> vector<8x512xf32>
    %552 = arith.addf %548, %551 : vector<8x512xf32>
    %553 = vector.extract_strided_slice %552 {offsets = [0, 0], sizes = [8, 384], strides = [1, 1]} : vector<8x512xf32> to vector<8x384xf32>
    %554 = arith.negf %553 : vector<8x384xf32>
    %555 = math.exp %554 : vector<8x384xf32>
    %cst_155 = arith.constant 1.000000e+00 : f32
    %556 = vector.broadcast %cst_155 : f32 to vector<8x384xf32>
    %557 = arith.addf %556, %555 : vector<8x384xf32>
    %558 = arith.divf %556, %557 : vector<8x384xf32>
    %559 = vector.extract_strided_slice %552 {offsets = [0, 384], sizes = [8, 128], strides = [1, 1]} : vector<8x512xf32> to vector<8x128xf32>
    %560 = math.tanh %559 : vector<8x128xf32>
    %561 = vector.extract_strided_slice %558 {offsets = [0, 128], sizes = [8, 128], strides = [1, 1]} : vector<8x384xf32> to vector<8x128xf32>
    %562 = arith.mulf %561, %541 : vector<8x128xf32>
    %563 = vector.extract_strided_slice %558 {offsets = [0, 0], sizes = [8, 128], strides = [1, 1]} : vector<8x384xf32> to vector<8x128xf32>
    %564 = arith.mulf %563, %560 : vector<8x128xf32>
    %565 = arith.addf %562, %564 : vector<8x128xf32>
    %566 = vector.extract_strided_slice %558 {offsets = [0, 256], sizes = [8, 128], strides = [1, 1]} : vector<8x384xf32> to vector<8x128xf32>
    %567 = math.tanh %565 : vector<8x128xf32>
    %568 = arith.mulf %566, %567 : vector<8x128xf32>
    %c4_i32_156 = arith.constant 4 : i32
    %c8_i32_157 = arith.constant 8 : i32
    %569 = arith.muli %c4_i32_156, %c8_i32_157 : i32
    %570 = tpu.assume_multiple %569, 8 : i32
    %571 = arith.index_cast %570 : i32 to index
    %c0_158 = arith.constant 0 : index
    %572 = vector.load %arg12[%571, %c0_158] : memref<64x1024xf32, #tpu.memory_space<vmem>>, vector<8x512xf32>
    %573 = arith.truncf %568 : vector<8x128xf32> to vector<8x128xbf16>
    %c0_159 = arith.constant 0 : index
    %c0_160 = arith.constant 0 : index
    %574 = vector.load %arg5[%c0_159, %c0_160] : memref<128x512xbf16, #tpu.memory_space<vmem>>, vector<128x512xbf16>
    %cst_161 = arith.constant dense<0.000000e+00> : vector<8x512xf32>
    %575 = tpu.matmul %573, %574, %cst_161 {dimension_numbers = #tpu.dot_dimension_numbers<[1], [0], [0], [1], [0, 0, 1, 1], [], []>} : vector<8x128xbf16>, vector<128x512xbf16>, vector<8x512xf32> -> vector<8x512xf32>
    %576 = arith.addf %572, %575 : vector<8x512xf32>
    %577 = vector.extract_strided_slice %576 {offsets = [0, 0], sizes = [8, 384], strides = [1, 1]} : vector<8x512xf32> to vector<8x384xf32>
    %578 = arith.negf %577 : vector<8x384xf32>
    %579 = math.exp %578 : vector<8x384xf32>
    %cst_162 = arith.constant 1.000000e+00 : f32
    %580 = vector.broadcast %cst_162 : f32 to vector<8x384xf32>
    %581 = arith.addf %580, %579 : vector<8x384xf32>
    %582 = arith.divf %580, %581 : vector<8x384xf32>
    %583 = vector.extract_strided_slice %576 {offsets = [0, 384], sizes = [8, 128], strides = [1, 1]} : vector<8x512xf32> to vector<8x128xf32>
    %584 = math.tanh %583 : vector<8x128xf32>
    %585 = vector.extract_strided_slice %582 {offsets = [0, 128], sizes = [8, 128], strides = [1, 1]} : vector<8x384xf32> to vector<8x128xf32>
    %586 = arith.mulf %585, %565 : vector<8x128xf32>
    %587 = vector.extract_strided_slice %582 {offsets = [0, 0], sizes = [8, 128], strides = [1, 1]} : vector<8x384xf32> to vector<8x128xf32>
    %588 = arith.mulf %587, %584 : vector<8x128xf32>
    %589 = arith.addf %586, %588 : vector<8x128xf32>
    %590 = vector.extract_strided_slice %582 {offsets = [0, 256], sizes = [8, 128], strides = [1, 1]} : vector<8x384xf32> to vector<8x128xf32>
    %591 = math.tanh %589 : vector<8x128xf32>
    %592 = arith.mulf %590, %591 : vector<8x128xf32>
    %c5_i32_163 = arith.constant 5 : i32
    %c8_i32_164 = arith.constant 8 : i32
    %593 = arith.muli %c5_i32_163, %c8_i32_164 : i32
    %594 = tpu.assume_multiple %593, 8 : i32
    %595 = arith.index_cast %594 : i32 to index
    %c0_165 = arith.constant 0 : index
    %596 = vector.load %arg12[%595, %c0_165] : memref<64x1024xf32, #tpu.memory_space<vmem>>, vector<8x512xf32>
    %597 = arith.truncf %592 : vector<8x128xf32> to vector<8x128xbf16>
    %c0_166 = arith.constant 0 : index
    %c0_167 = arith.constant 0 : index
    %598 = vector.load %arg5[%c0_166, %c0_167] : memref<128x512xbf16, #tpu.memory_space<vmem>>, vector<128x512xbf16>
    %cst_168 = arith.constant dense<0.000000e+00> : vector<8x512xf32>
    %599 = tpu.matmul %597, %598, %cst_168 {dimension_numbers = #tpu.dot_dimension_numbers<[1], [0], [0], [1], [0, 0, 1, 1], [], []>} : vector<8x128xbf16>, vector<128x512xbf16>, vector<8x512xf32> -> vector<8x512xf32>
    %600 = arith.addf %596, %599 : vector<8x512xf32>
    %601 = vector.extract_strided_slice %600 {offsets = [0, 0], sizes = [8, 384], strides = [1, 1]} : vector<8x512xf32> to vector<8x384xf32>
    %602 = arith.negf %601 : vector<8x384xf32>
    %603 = math.exp %602 : vector<8x384xf32>
    %cst_169 = arith.constant 1.000000e+00 : f32
    %604 = vector.broadcast %cst_169 : f32 to vector<8x384xf32>
    %605 = arith.addf %604, %603 : vector<8x384xf32>
    %606 = arith.divf %604, %605 : vector<8x384xf32>
    %607 = vector.extract_strided_slice %600 {offsets = [0, 384], sizes = [8, 128], strides = [1, 1]} : vector<8x512xf32> to vector<8x128xf32>
    %608 = math.tanh %607 : vector<8x128xf32>
    %609 = vector.extract_strided_slice %606 {offsets = [0, 128], sizes = [8, 128], strides = [1, 1]} : vector<8x384xf32> to vector<8x128xf32>
    %610 = arith.mulf %609, %589 : vector<8x128xf32>
    %611 = vector.extract_strided_slice %606 {offsets = [0, 0], sizes = [8, 128], strides = [1, 1]} : vector<8x384xf32> to vector<8x128xf32>
    %612 = arith.mulf %611, %608 : vector<8x128xf32>
    %613 = arith.addf %610, %612 : vector<8x128xf32>
    %614 = vector.extract_strided_slice %606 {offsets = [0, 256], sizes = [8, 128], strides = [1, 1]} : vector<8x384xf32> to vector<8x128xf32>
    %615 = math.tanh %613 : vector<8x128xf32>
    %616 = arith.mulf %614, %615 : vector<8x128xf32>
    %c6_i32_170 = arith.constant 6 : i32
    %c8_i32_171 = arith.constant 8 : i32
    %617 = arith.muli %c6_i32_170, %c8_i32_171 : i32
    %618 = tpu.assume_multiple %617, 8 : i32
    %619 = arith.index_cast %618 : i32 to index
    %c0_172 = arith.constant 0 : index
    %620 = vector.load %arg12[%619, %c0_172] : memref<64x1024xf32, #tpu.memory_space<vmem>>, vector<8x512xf32>
    %621 = arith.truncf %616 : vector<8x128xf32> to vector<8x128xbf16>
    %c0_173 = arith.constant 0 : index
    %c0_174 = arith.constant 0 : index
    %622 = vector.load %arg5[%c0_173, %c0_174] : memref<128x512xbf16, #tpu.memory_space<vmem>>, vector<128x512xbf16>
    %cst_175 = arith.constant dense<0.000000e+00> : vector<8x512xf32>
    %623 = tpu.matmul %621, %622, %cst_175 {dimension_numbers = #tpu.dot_dimension_numbers<[1], [0], [0], [1], [0, 0, 1, 1], [], []>} : vector<8x128xbf16>, vector<128x512xbf16>, vector<8x512xf32> -> vector<8x512xf32>
    %624 = arith.addf %620, %623 : vector<8x512xf32>
    %625 = vector.extract_strided_slice %624 {offsets = [0, 0], sizes = [8, 384], strides = [1, 1]} : vector<8x512xf32> to vector<8x384xf32>
    %626 = arith.negf %625 : vector<8x384xf32>
    %627 = math.exp %626 : vector<8x384xf32>
    %cst_176 = arith.constant 1.000000e+00 : f32
    %628 = vector.broadcast %cst_176 : f32 to vector<8x384xf32>
    %629 = arith.addf %628, %627 : vector<8x384xf32>
    %630 = arith.divf %628, %629 : vector<8x384xf32>
    %631 = vector.extract_strided_slice %624 {offsets = [0, 384], sizes = [8, 128], strides = [1, 1]} : vector<8x512xf32> to vector<8x128xf32>
    %632 = math.tanh %631 : vector<8x128xf32>
    %633 = vector.extract_strided_slice %630 {offsets = [0, 128], sizes = [8, 128], strides = [1, 1]} : vector<8x384xf32> to vector<8x128xf32>
    %634 = arith.mulf %633, %613 : vector<8x128xf32>
    %635 = vector.extract_strided_slice %630 {offsets = [0, 0], sizes = [8, 128], strides = [1, 1]} : vector<8x384xf32> to vector<8x128xf32>
    %636 = arith.mulf %635, %632 : vector<8x128xf32>
    %637 = arith.addf %634, %636 : vector<8x128xf32>
    %638 = vector.extract_strided_slice %630 {offsets = [0, 256], sizes = [8, 128], strides = [1, 1]} : vector<8x384xf32> to vector<8x128xf32>
    %639 = math.tanh %637 : vector<8x128xf32>
    %640 = arith.mulf %638, %639 : vector<8x128xf32>
    %c7_i32_177 = arith.constant 7 : i32
    %c8_i32_178 = arith.constant 8 : i32
    %641 = arith.muli %c7_i32_177, %c8_i32_178 : i32
    %642 = tpu.assume_multiple %641, 8 : i32
    %643 = arith.index_cast %642 : i32 to index
    %c0_179 = arith.constant 0 : index
    %644 = vector.load %arg12[%643, %c0_179] : memref<64x1024xf32, #tpu.memory_space<vmem>>, vector<8x512xf32>
    %645 = arith.truncf %640 : vector<8x128xf32> to vector<8x128xbf16>
    %c0_180 = arith.constant 0 : index
    %c0_181 = arith.constant 0 : index
    %646 = vector.load %arg5[%c0_180, %c0_181] : memref<128x512xbf16, #tpu.memory_space<vmem>>, vector<128x512xbf16>
    %cst_182 = arith.constant dense<0.000000e+00> : vector<8x512xf32>
    %647 = tpu.matmul %645, %646, %cst_182 {dimension_numbers = #tpu.dot_dimension_numbers<[1], [0], [0], [1], [0, 0, 1, 1], [], []>} : vector<8x128xbf16>, vector<128x512xbf16>, vector<8x512xf32> -> vector<8x512xf32>
    %648 = arith.addf %644, %647 : vector<8x512xf32>
    %649 = vector.extract_strided_slice %648 {offsets = [0, 0], sizes = [8, 384], strides = [1, 1]} : vector<8x512xf32> to vector<8x384xf32>
    %650 = arith.negf %649 : vector<8x384xf32>
    %651 = math.exp %650 : vector<8x384xf32>
    %cst_183 = arith.constant 1.000000e+00 : f32
    %652 = vector.broadcast %cst_183 : f32 to vector<8x384xf32>
    %653 = arith.addf %652, %651 : vector<8x384xf32>
    %654 = arith.divf %652, %653 : vector<8x384xf32>
    %655 = vector.extract_strided_slice %648 {offsets = [0, 384], sizes = [8, 128], strides = [1, 1]} : vector<8x512xf32> to vector<8x128xf32>
    %656 = math.tanh %655 : vector<8x128xf32>
    %657 = vector.extract_strided_slice %654 {offsets = [0, 128], sizes = [8, 128], strides = [1, 1]} : vector<8x384xf32> to vector<8x128xf32>
    %658 = arith.mulf %657, %637 : vector<8x128xf32>
    %659 = vector.extract_strided_slice %654 {offsets = [0, 0], sizes = [8, 128], strides = [1, 1]} : vector<8x384xf32> to vector<8x128xf32>
    %660 = arith.mulf %659, %656 : vector<8x128xf32>
    %661 = arith.addf %658, %660 : vector<8x128xf32>
    %662 = vector.extract_strided_slice %654 {offsets = [0, 256], sizes = [8, 128], strides = [1, 1]} : vector<8x384xf32> to vector<8x128xf32>
    %663 = math.tanh %661 : vector<8x128xf32>
    %664 = arith.mulf %662, %663 : vector<8x128xf32>
    %c8_i32_184 = arith.constant 8 : i32
    %665 = vector.extract_strided_slice %466 {offsets = [56, 0], sizes = [8, 256], strides = [1, 1]} : vector<64x256xbf16> to vector<8x256xbf16>
    %c0_185 = arith.constant 0 : index
    %c0_186 = arith.constant 0 : index
    %666 = vector.load %arg7[%c0_185, %c0_186] : memref<256x512xbf16, #tpu.memory_space<vmem>>, vector<256x512xbf16>
    %cst_187 = arith.constant dense<0.000000e+00> : vector<8x512xf32>
    %667 = tpu.matmul %665, %666, %cst_187 {dimension_numbers = #tpu.dot_dimension_numbers<[1], [0], [0], [1], [0, 0, 1, 1], [], []>} : vector<8x256xbf16>, vector<256x512xbf16>, vector<8x512xf32> -> vector<8x512xf32>
    %c0_188 = arith.constant 0 : index
    %c0_189 = arith.constant 0 : index
    %668 = vector.load %arg8[%c0_188, %c0_189] : memref<1x512xf32, #tpu.memory_space<vmem>>, vector<1x512xf32>
    %669 = vector.broadcast %668 : vector<1x512xf32> to vector<8x512xf32>
    %670 = arith.addf %667, %669 : vector<8x512xf32>
    %671 = vector.extract_strided_slice %670 {offsets = [0, 0], sizes = [8, 384], strides = [1, 1]} : vector<8x512xf32> to vector<8x384xf32>
    %672 = arith.negf %671 : vector<8x384xf32>
    %673 = math.exp %672 : vector<8x384xf32>
    %cst_190 = arith.constant 1.000000e+00 : f32
    %674 = vector.broadcast %cst_190 : f32 to vector<8x384xf32>
    %675 = arith.addf %674, %673 : vector<8x384xf32>
    %676 = arith.divf %674, %675 : vector<8x384xf32>
    %677 = vector.extract_strided_slice %670 {offsets = [0, 384], sizes = [8, 128], strides = [1, 1]} : vector<8x512xf32> to vector<8x128xf32>
    %678 = math.tanh %677 : vector<8x128xf32>
    %679 = vector.extract_strided_slice %676 {offsets = [0, 128], sizes = [8, 128], strides = [1, 1]} : vector<8x384xf32> to vector<8x128xf32>
    %680 = arith.mulf %679, %0 : vector<8x128xf32>
    %681 = vector.extract_strided_slice %676 {offsets = [0, 0], sizes = [8, 128], strides = [1, 1]} : vector<8x384xf32> to vector<8x128xf32>
    %682 = arith.mulf %681, %678 : vector<8x128xf32>
    %683 = arith.addf %680, %682 : vector<8x128xf32>
    %684 = vector.extract_strided_slice %676 {offsets = [0, 256], sizes = [8, 128], strides = [1, 1]} : vector<8x384xf32> to vector<8x128xf32>
    %685 = math.tanh %683 : vector<8x128xf32>
    %686 = arith.mulf %684, %685 : vector<8x128xf32>
    %cst_191 = arith.constant 0.000000e+00 : f32
    %687 = vector.broadcast %cst_191 : f32 to vector<8x128xf32>
    %688 = arith.maximumf %664, %687 : vector<8x128xf32>
    %cst_192 = arith.constant 0.000000e+00 : f32
    %689 = vector.broadcast %cst_192 : f32 to vector<8x128xf32>
    %690 = arith.maximumf %686, %689 : vector<8x128xf32>
    %691 = tpu.concatenate %688, %690 in 1 : vector<8x128xf32>, vector<8x128xf32> -> vector<8x256xf32>
    %692 = arith.truncf %691 : vector<8x256xf32> to vector<8x256xbf16>
    %c0_193 = arith.constant 0 : index
    %c0_194 = arith.constant 0 : index
    %693 = vector.load %arg9[%c0_193, %c0_194] : memref<256x6xbf16, #tpu.memory_space<vmem>>, vector<256x6xbf16>
    %cst_195 = arith.constant dense<0.000000e+00> : vector<8x6xf32>
    %694 = tpu.matmul %692, %693, %cst_195 {dimension_numbers = #tpu.dot_dimension_numbers<[1], [0], [0], [1], [0, 0, 1, 1], [], []>} : vector<8x256xbf16>, vector<256x6xbf16>, vector<8x6xf32> -> vector<8x6xf32>
    %c0_196 = arith.constant 0 : index
    %c0_197 = arith.constant 0 : index
    %695 = vector.load %arg10[%c0_196, %c0_197] : memref<1x6xf32, #tpu.memory_space<vmem>>, vector<1x6xf32>
    %696 = vector.broadcast %695 : vector<1x6xf32> to vector<8x6xf32>
    %697 = arith.addf %694, %696 : vector<8x6xf32>
    %cst_198 = arith.constant dense<0xFF800000> : vector<8xf32>
    %698 = vector.multi_reduction <maximumf>, %697, %cst_198 [1] : vector<8x6xf32> to vector<8xf32>
    %699 = vector.shape_cast %698 : vector<8xf32> to vector<8x1xf32>
    %700 = vector.broadcast %699 : vector<8x1xf32> to vector<8x6xf32>
    %701 = arith.subf %697, %700 : vector<8x6xf32>
    %702 = math.exp %701 : vector<8x6xf32>
    %cst_199 = arith.constant dense<0.000000e+00> : vector<8xf32>
    %703 = vector.multi_reduction <add>, %702, %cst_199 [1] : vector<8x6xf32> to vector<8xf32>
    %704 = vector.shape_cast %703 : vector<8xf32> to vector<8x1xf32>
    %705 = vector.broadcast %704 : vector<8x1xf32> to vector<8x6xf32>
    %706 = arith.divf %702, %705 : vector<8x6xf32>
    %c0_200 = arith.constant 0 : index
    %c0_201 = arith.constant 0 : index
    %707 = vector.load %arg11[%c0_200, %c0_201] : memref<8x6xf32, #tpu.memory_space<vmem>>, vector<8x6xf32>
    tpu.vector_store %arg11[%c0_200, %c0_201], %706 {strides = array<i32>} : memref<8x6xf32, #tpu.memory_space<vmem>>, vector<8x6xf32>,
    return
  }
}

</mosaic_0001>

<bundles_post_ra>
// kernel: blstm2_forward.1
= control target key start
LH: loop header
LB: loop body
LE: loop exit
PB: predicated region body
PF: predicated region fallthrough
CT: control target
= control target key end

     0   :  { %16 = vsyncpa [#allocation5], 0  ;;  %s16028_s0 = inlined_call_operand.vmem [shape: bf16[64,16], index: 0, kind: input, shape index: {}]   ;;  %s16029_s1 = inlined_call_operand.vmem [shape: bf16[16,1024], index: 1, kind: input, shape index: {}]   ;;  %s16030_s2 = inlined_call_operand.vmem [shape: f32[1,1024], index: 2, kind: input, shape index: {}]   ;;  %s16031_s3 = inlined_call_operand.hbm [shape: bf16[256,1024], index: 3, kind: input, shape index: {}]   ;;  %s16032_s4 = inlined_call_operand.hbm [shape: bf16[256,512], index: 4, kind: input, shape index: {}]   ;;  %s16033_s5 = inlined_call_operand.hbm [shape: bf16[128,512], index: 5, kind: input, shape index: {}]   ;;  %s16034_s6 = inlined_call_operand.vmem [shape: f32[1,512], index: 6, kind: input, shape index: {}]   ;;  %s16035_s7 = inlined_call_operand.hbm [shape: bf16[256,512], index: 7, kind: input, shape index: {}]   ;;  %s16036_s8 = inlined_call_operand.vmem [shape: f32[1,512], index: 8, kind: input, shape index: {}]   ;;  %s16037_s9 = inlined_call_operand.vmem [shape: bf16[256,6], index: 9, kind: input, shape index: {}]   ;;  %s16038_s10 = inlined_call_operand.vmem [shape: f32[1,6], index: 10, kind: input, shape index: {}]   ;;  %s16039_s11 = inlined_call_operand.vmem [shape: f32[8,6], index: 11, kind: output, shape index: {}]  }
   0x1   :  { %17 = vsyncpa [#allocation7], 0 }
   0x2   :  { %18 = vsyncpa [#allocation10], 0  ;;  %s13220_s17 = smov [#allocation6]   ;;  %s13126_s21 = scalar_lea.hbm %s16032_s4, 8192 }
   0x3   :  { %s42_s18 = sshll.u32 %s13220_s17, 4  ;;  %p13127_p0 = scmp.ne.s32.totalorder %s16032_s4, %s13126_s21  ;;  %s43_s18 = int_to_ptr.vmem [resolvable:$true] %s42_s18 }
   0x4   :  { %p13130_p1 = scmp.lt.u32.totalorder %s13126_s21, %s16032_s4 }
   0x6   :  { %p13132_p2 = pnand %p13130_p1, %p13127_p0 }
   0x8   :  { %13135 = shalt.err (!%p13132_p2)
}
   0x9   :  { %s13136_s26 = scalar_lea.vmem %s43_s18, 8192  ;;  %p13141_p4 = scmp.lt.s32.totalorder %s43_s18, %s43_s18 }
   0xa   :  { %p13137_p3 = scmp.ne.s32.totalorder %s43_s18, %s13136_s26  ;;  %p13142_p5 = scmp.lt.s32.totalorder %s13136_s26, %s13136_s26 }
   0xc   :  { %p13143_p6 = por %p13142_p5, %p13141_p4 }
   0xe   :  { %p13144_p7 = pnand %p13143_p6, %p13137_p3 }
  0x10   :  { %13147 = shalt.err (!%p13144_p7)
}
  0x11   :  { %s13221_s27 = smov 256   ;;  %s13222_s28 = smov 16  }
  0x12   :  { %48 = dma.hbm_to_vmem [thread:$0]  %s16032_s4, 8192, %s43_s18, [#allocation7], %s13221_s27, %s13221_s27, %s13222_s28  }
  0x13   :  { %s13223_s12 = smov [#allocation4]   ;;  %s13148_s16 = scalar_lea.hbm %s16031_s3, 16384 }
  0x14   :  { %s30_s13 = sshll.u32 %s13223_s12, 4  ;;  %p13149_p8 = scmp.ne.s32.totalorder %s16031_s3, %s13148_s16  ;;  %s31_s13 = int_to_ptr.vmem [resolvable:$true] %s30_s13 }
  0x15   :  { %p13152_p9 = scmp.lt.u32.totalorder %s13148_s16, %s16031_s3 }
  0x17   :  { %p13154_p10 = pnand %p13152_p9, %p13149_p8 }
  0x19   :  { %13157 = shalt.err (!%p13154_p10)
}
  0x1a   :  { %s13158_s22 = scalar_lea.vmem %s31_s13, 16384  ;;  %p13163_p12 = scmp.lt.s32.totalorder %s31_s13, %s31_s13 }
  0x1b   :  { %p13159_p11 = scmp.ne.s32.totalorder %s31_s13, %s13158_s22  ;;  %p13164_p13 = scmp.lt.s32.totalorder %s13158_s22, %s13158_s22 }
  0x1d   :  { %p13165_p0 = por %p13164_p13, %p13163_p12 }
  0x1f   :  { %p13166_p1 = pnand %p13165_p0, %p13159_p11 }
  0x21   :  { %13169 = shalt.err (!%p13166_p1)
}
  0x22   :  { %s13224_s4 = smov 512   ;;  %s13225_s18 = smov 32  }
  0x23   :  { %36 = dma.hbm_to_vmem [thread:$0]  %s16031_s3, 16384, %s31_s13, [#allocation5], %s13224_s4, %s13224_s4, %s13225_s18  }
  0x24   :  { %s13226_s25 = smov [#allocation8]   ;;  %s13227_s29 = smov [#allocation9]  }
  0x25   :  { %s54_s26 = sshll.u32 %s13226_s25, 4  ;;  %s68_s30 = sshll.u32 %s13227_s29, 4  ;;  %s55_s26 = int_to_ptr.vmem [resolvable:$true] %s54_s26  ;;  %s13316_s30 = int_to_ptr.vmem [resolvable:$true] %s68_s30 }
  0x26   :  { %s13170_s15 = scalar_lea.hbm %s16033_s5, 4096 }
  0x27   :  { %p13171_p2 = scmp.ne.s32.totalorder %s16033_s5, %s13170_s15  ;;  %p13174_p3 = scmp.lt.u32.totalorder %s13170_s15, %s16033_s5 }
  0x29   :  { %p13176_p4 = pnand %p13174_p3, %p13171_p2 }
  0x2b   :  { %13179 = shalt.err (!%p13176_p4)
}
  0x2c   :  { %s13180_s3 = scalar_lea.vmem %s55_s26, 4096  ;;  %p13185_p6 = scmp.lt.s32.totalorder %s55_s26, %s55_s26 }
  0x2d   :  { %p13181_p5 = scmp.ne.s32.totalorder %s55_s26, %s13180_s3  ;;  %p13186_p7 = scmp.lt.s32.totalorder %s13180_s3, %s13180_s3 }
  0x2f   :  { %p13187_p8 = por %p13186_p7, %p13185_p6 }
  0x31   :  { %p13188_p9 = pnand %p13187_p8, %p13181_p5 }
  0x33   :  { %13191 = shalt.err (!%p13188_p9)
}
  0x34   :  { %60 = dma.hbm_to_vmem [thread:$0]  %s16033_s5, 4096, %s55_s26, [#allocation7], %s13221_s27, %s13221_s27, %s13222_s28  }
  0x35   :  { %s13192_s18 = scalar_lea.hbm %s16035_s7, 8192 }
  0x36   :  { %p13193_p10 = scmp.ne.s32.totalorder %s16035_s7, %s13192_s18  ;;  %p13196_p11 = scmp.lt.u32.totalorder %s13192_s18, %s16035_s7 }
  0x38   :  { %p13198_p12 = pnand %p13196_p11, %p13193_p10 }
  0x3a   :  { %13201 = shalt.err (!%p13198_p12)
}
  0x3b   :  { %s13202_s12 = scalar_lea.vmem %s13316_s30, 8192  ;;  %p13207_p0 = scmp.lt.s32.totalorder %s13316_s30, %s13316_s30 }
  0x3c   :  { %p13203_p13 = scmp.ne.s32.totalorder %s13316_s30, %s13202_s12  ;;  %p13208_p1 = scmp.lt.s32.totalorder %s13202_s12, %s13202_s12 }
  0x3e   :  { %p13209_p2 = por %p13208_p1, %p13207_p0 }
  0x40   :  { %p13210_p3 = pnand %p13209_p2, %p13203_p13 }
  0x42   :  { %13213 = shalt.err (!%p13210_p3)
}
  0x43   :  { %74 = dma.hbm_to_vmem [thread:$0]  %s16035_s7, 8192, %s13316_s30, [#allocation10], %s13221_s27, %s13221_s27, %s13222_s28  }
  0x44   :  { %13214 = dma.done.wait [#allocation5], 16384  }
  0x45   :  { %13215 = vsyncadd [#allocation5], 4294950912 }
  0x46   :  { %13216 = dma.done.wait [#allocation7], 12288  }
  0x47   :  { %13217 = vsyncadd [#allocation7], 4294955008 }
  0x48   :  { %13218 = dma.done.wait [#allocation10], 8192  }
  0x49   :  { %13219 = vsyncadd [#allocation10], 4294959104  ;;  %v16040_v0 = vmov 0   ;;  %v102_v1 = vld [vmem:[%s16029_s1] sm:$0xff]  ;;  %v13369_v6 = vld [vmem:[%s16028_s0 + $0x10] sm:$0xff]   ;;  %vm212_vm0 = vcmask 130048  }
  0x4a   :  { %257 = vmatprep.mubr.bf16.mxu0 %v16040_v0  ;;  %277 = vmatprep.mubr.bf16.mxu1 %v16040_v0  ;;  %v106_v2 = vld [vmem:[%s16029_s1 + $0x20] sm:$0xff]  ;;  %v103_v7 = vld [vmem:[%s16029_s1 + $0x8] sm:$0xff]  ;;  %v104_v11 = vld [vmem:[%s16029_s1 + $0x10] sm:$0xff]  ;;  %vm11059_vm1 = vcmask 48128  }
  0x4b   :  { %v11098_v3 = vcombine.high %v102_v1, %v106_v2  ;;  %v11097_v4 = vcombine.low %v102_v1, %v106_v2  ;;  %v13364_v5 = vld [vmem:[%s16028_s0] sm:$0xff]   ;;  %v107_v8 = vld [vmem:[%s16029_s1 + $0x28] sm:$0xff]  ;;  %v108_v12 = vld [vmem:[%s16029_s1 + $0x30] sm:$0xff] }
  0x4c   :  { %v11099_v9 = vcombine.low %v103_v7, %v107_v8  ;;  %v11100_v10 = vcombine.high %v103_v7, %v107_v8  ;;  %v11101_v13 = vcombine.low %v104_v11, %v108_v12  ;;  %v11102_v14 = vcombine.high %v104_v11, %v108_v12  ;;  %v581_v15 = vld [vmem:[#allocation4] sm:$0xff]  ;;  %v105_v17 = vld [vmem:[%s16029_s1 + $0x18] sm:$0xff]  ;;  %v13398_v21 = vld [vmem:[%s16028_s0 + $0x8] sm:$0xff]  }
  0x4d   :  { %225 = vmatprep.subr.bf16.mxu0 %v11098_v3  ;;  %12419 = vmatprep.subr.bf16.mxu1 %v11098_v3  ;;  %v585_v16 = vld [vmem:[#allocation4 + $0x20] sm:$0xff]  ;;  %v109_v19 = vld [vmem:[%s16029_s1 + $0x38] sm:$0xff]  ;;  %v13411_v25 = vld [vmem:[#allocation4 + $0x8] sm:$0xff] }
  0x4e   :  { %226 = vmatpush1.bf16.msra.mxu0 %v11097_v4  ;;  %12420 = vmatpush1.bf16.msra.mxu1 %v11097_v4  ;;  %v11122_v18 = vcombine.high %v581_v15, %v585_v16  ;;  %v11104_v20 = vcombine.high %v105_v17, %v109_v19  ;;  %v13403_v22 = vld [vmem:[%s16028_s0 + $0x18] sm:$0xff]   ;;  %v589_v23 = vld [vmem:[#allocation4 + $0x40] sm:$0xff]  ;;  %v13413_v26 = vld [vmem:[#allocation4 + $0x28] sm:$0xff]  ;;  %v11121_v27 = vcombine.low %v581_v15, %v585_v16 }
  0x4f   :  { %298 = vmatprep.subr.bf16.mxu1 %v11100_v10  ;;  %371 = vmatprep.subr.bf16.mxu0 %v11102_v14  ;;  %v593_v24 = vld [vmem:[#allocation4 + $0x60] sm:$0xff]  ;;  %v11103_v28 = vcombine.low %v105_v17, %v109_v19  ;;  %v11124_v32 = vcombine.high %v13411_v25, %v13413_v26  ;;  %v590_v60 = vld [vmem:[#allocation4 + $0x48] sm:$0xff]  ;;  %v11123_v1 = vcombine.low %v13411_v25, %v13413_v26 }
  0x50   :  { %v11130_v29 = vcombine.high %v589_v23, %v593_v24  ;;  %v597_v30 = vld [vmem:[#allocation4 + $0x80] sm:$0xff]  ;;  %v11129_v33 = vcombine.low %v589_v23, %v593_v24  ;;  %v594_v62 = vld [vmem:[#allocation4 + $0x68] sm:$0xff] }
  0x51   :  { %11105 = vmatmul.mubr.msk.bf16.vlgmr.msra.gmra.mrb[0].mxu0 %vm212_vm0, %v13364_v5  ;;  %11107 = vmatmul.mubr.msk.bf16.vlgmr.msra.gmra.mrb[0].mxu1 %vm212_vm0, %v13369_v6  ;;  %v601_v31 = vld [vmem:[#allocation4 + $0xa0] sm:$0xff]  ;;  %v598_v4 = vld [vmem:[#allocation4 + $0x88] sm:$0xff]  ;;  %v11131_v11 = vcombine.low %v590_v60, %v594_v62 }
  0x52   :  { %299 = vmatpush1.bf16.msra.mxu1 %v11099_v9  ;;  %267 = vmatprep.mubr.bf16.mxu0 %v16040_v0  ;;  %v11138_v34 = vcombine.high %v597_v30, %v601_v31  ;;  %v605_v35 = vld [vmem:[#allocation4 + $0xc0] sm:$0xff]  ;;  %v11137_v37 = vcombine.low %v597_v30, %v601_v31  ;;  %v602_v7 = vld [vmem:[#allocation4 + $0xa8] sm:$0xff]  ;;  %v11132_v9 = vcombine.high %v590_v60, %v594_v62  ;;  %v595_v62 = vld [vmem:[#allocation4 + $0x70] sm:$0xff] }
  0x53   :  { %287 = vmatprep.mubr.bf16.mxu1 %v16040_v0  ;;  %372 = vmatpush1.bf16.msra.mxu0 %v11101_v13  ;;  %v609_v36 = vld [vmem:[#allocation4 + $0xe0] sm:$0xff]  ;;  %v606_v14 = vld [vmem:[#allocation4 + $0xc8] sm:$0xff]  ;;  %v11140_v17 = vcombine.high %v598_v4, %v602_v7  ;;  %v11139_v19 = vcombine.low %v598_v4, %v602_v7  ;;  %v599_v7 = vld [vmem:[#allocation4 + $0x90] sm:$0xff] }
  0x54   :  { %444 = vmatprep.subr.bf16.mxu1 %v11104_v20  ;;  %1349 = vmatprep.subr.bf16.mxu0 %v11122_v18  ;;  %v11146_v38 = vcombine.high %v605_v35, %v609_v36  ;;  %v613_v39 = vld [vmem:[#allocation4 + $0x100] sm:$0xff]  ;;  %v11145_v41 = vcombine.low %v605_v35, %v609_v36  ;;  %v610_v15 = vld [vmem:[#allocation4 + $0xe8] sm:$0xff] }
  0x55   :  { %v617_v40 = vld [vmem:[#allocation4 + $0x120] sm:$0xff]  ;;  %v614_v23 = vld [vmem:[#allocation4 + $0x108] sm:$0xff]  ;;  %v11148_v26 = vcombine.high %v606_v14, %v610_v15 }
  0x56   :  { %v11154_v42 = vcombine.high %v613_v39, %v617_v40  ;;  %v621_v43 = vld [vmem:[#allocation4 + $0x140] sm:$0xff]  ;;  %v11153_v45 = vcombine.low %v613_v39, %v617_v40  ;;  %v618_v24 = vld [vmem:[#allocation4 + $0x128] sm:$0xff] }
  0x57   :  { %v625_v44 = vld [vmem:[#allocation4 + $0x160] sm:$0xff]  ;;  %v622_v31 = vld [vmem:[#allocation4 + $0x148] sm:$0xff]  ;;  %v11155_v36 = vcombine.low %v614_v23, %v618_v24 }
  0x58   :  { %v11162_v46 = vcombine.high %v621_v43, %v625_v44  ;;  %v629_v47 = vld [vmem:[#allocation4 + $0x180] sm:$0xff]  ;;  %v11161_v49 = vcombine.low %v621_v43, %v625_v44  ;;  %v634_v39 = vld [vmem:[#allocation4 + $0x1a8] sm:$0xff] }
  0x59   :  { %11106 = vmatmul.mubr.msk.bf16.gmra.mrb[4].mxu0 %vm212_vm0, %v13398_v21  ;;  %11108 = vmatmul.mubr.msk.bf16.gmra.mrb[4].mxu1 %vm212_vm0, %v13403_v22  ;;  %v633_v48 = vld [vmem:[#allocation4 + $0x1a0] sm:$0xff]  ;;  %v658_v60 = vld [vmem:[#allocation4 + $0x268] sm:$0xff] }
  0x5a   :  { %330 = vmatprep.mubr.bf16.mxu1 %v16040_v0  ;;  %403 = vmatprep.mubr.bf16.mxu0 %v16040_v0  ;;  %v11170_v50 = vcombine.high %v629_v47, %v633_v48  ;;  %v637_v51 = vld [vmem:[#allocation4 + $0x1c0] sm:$0xff]  ;;  %v11169_v53 = vcombine.low %v629_v47, %v633_v48  ;;  %v642_v47 = vld [vmem:[#allocation4 + $0x1e8] sm:$0xff] }
  0x5b   :  { %v641_v52 = vld [vmem:[#allocation4 + $0x1e0] sm:$0xff]  ;;  %v662_v4 = vld [vmem:[#allocation4 + $0x288] sm:$0xff] }
  0x5c   :  { %v11178_v54 = vcombine.high %v637_v51, %v641_v52  ;;  %v645_v55 = vld [vmem:[#allocation4 + $0x200] sm:$0xff]  ;;  %v11177_v57 = vcombine.low %v637_v51, %v641_v52  ;;  %v646_v52 = vld [vmem:[#allocation4 + $0x208] sm:$0xff] }
  0x5d   :  { %v649_v56 = vld [vmem:[#allocation4 + $0x220] sm:$0xff] }
  0x5e   :  { %v653_v58 = vld [vmem:[#allocation4 + $0x240] sm:$0xff]  ;;  %v11186_v61 = vcombine.high %v645_v55, %v649_v56  ;;  %v11185_v63 = vcombine.low %v645_v55, %v649_v56 }
  0x5f   :  { %v657_v59 = vld [vmem:[#allocation4 + $0x260] sm:$0xff] }
  0x60   :  { %v661_v2 = vld [vmem:[#allocation4 + $0x280] sm:$0xff]  ;;  %v11194_v8 = vcombine.high %v653_v58, %v657_v59  ;;  %v11193_v10 = vcombine.low %v653_v58, %v657_v59  ;;  %v654_v59 = vld [vmem:[#allocation4 + $0x248] sm:$0xff] }
  0x61   :  { %11109 = vmatmul.mubr.msk.bf16.vlgmr.msra.gmra.mrb[8].mxu1 %vm212_vm0, %v13364_v5  ;;  %11113 = vmatmul.mubr.msk.bf16.vlgmr.msra.gmra.mrb[8].mxu0 %vm212_vm0, %v13364_v5  ;;  %v665_v3 = vld [vmem:[#allocation4 + $0x2a0] sm:$0xff] }
  0x62   :  { %1350 = vmatpush1.bf16.msra.mxu0 %v11121_v27  ;;  %445 = vmatpush1.bf16.msra.mxu1 %v11103_v28  ;;  %v669_v12 = vld [vmem:[#allocation4 + $0x2c0] sm:$0xff]  ;;  %v11202_v16 = vcombine.high %v661_v2, %v665_v3  ;;  %v11201_v18 = vcombine.low %v661_v2, %v665_v3  ;;  %v11147_v28 = vcombine.low %v606_v14, %v610_v15  ;;  %v674_v14 = vld [vmem:[#allocation4 + $0x2e8] sm:$0xff]  ;;  %v607_v15 = vld [vmem:[#allocation4 + $0xd0] sm:$0xff] }
  0x63   :  { %1351 = vmatprep.subr.bf16.mxu0 %v11130_v29  ;;  %340 = vmatprep.mubr.bf16.mxu1 %v16040_v0  ;;  %v673_v13 = vld [vmem:[#allocation4 + $0x2e0] sm:$0xff] }
  0x64   :  { %1390 = vmatprep.subr.bf16.mxu1 %v11124_v32  ;;  %413 = vmatprep.mubr.bf16.mxu0 %v16040_v0  ;;  %v677_v20 = vld [vmem:[#allocation4 + $0x300] sm:$0xff]  ;;  %v11210_v25 = vcombine.high %v669_v12, %v673_v13  ;;  %v11209_v27 = vcombine.low %v669_v12, %v673_v13  ;;  %v626_v32 = vld [vmem:[#allocation4 + $0x168] sm:$0xff] }
  0x65   :  { %v685_v29 = vld [vmem:[#allocation4 + $0x340] sm:$0xff]  ;;  %v11163_v43 = vcombine.low %v622_v31, %v626_v32  ;;  %v670_v13 = vld [vmem:[#allocation4 + $0x2c8] sm:$0xff] }
  0x66   :  { %1352 = vmatpush1.bf16.msra.mxu0 %v11129_v33  ;;  %v689_v30 = vld [vmem:[#allocation4 + $0x360] sm:$0xff] }
  0x67   :  { %1353 = vmatprep.subr.bf16.mxu0 %v11138_v34  ;;  %v11156_v34 = vcombine.high %v614_v23, %v618_v24  ;;  %v11226_v40 = vcombine.high %v685_v29, %v689_v30  ;;  %v701_v44 = vld [vmem:[#allocation4 + $0x3c0] sm:$0xff]  ;;  %v682_v23 = vld [vmem:[#allocation4 + $0x328] sm:$0xff]  ;;  %v615_v24 = vld [vmem:[#allocation4 + $0x110] sm:$0xff] }
  0x69   :  { %11110 = vmatmul.mubr.msk.bf16.gmra.mrb[12].mxu1 %vm212_vm0, %v13398_v21  ;;  %11114 = vmatmul.mubr.msk.bf16.gmra.mrb[12].mxu0 %vm212_vm0, %v13398_v21 }
  0x6a   :  { %1354 = vmatpush1.bf16.msra.mxu0 %v11137_v37  ;;  %350 = vmatprep.mubr.bf16.mxu1 %v16040_v0  ;;  %v693_v37 = vld [vmem:[#allocation4 + $0x380] sm:$0xff] }
  0x6b   :  { %1355 = vmatprep.subr.bf16.mxu0 %v11146_v38  ;;  %423 = vmatprep.mubr.bf16.mxu0 %v16040_v0  ;;  %v630_v38 = vld [vmem:[#allocation4 + $0x188] sm:$0xff] }
  0x6c   :  { %v11171_v51 = vcombine.low %v630_v38, %v634_v39 }
  0x6e   :  { %1356 = vmatpush1.bf16.msra.mxu0 %v11145_v41  ;;  %v11164_v41 = vcombine.high %v622_v31, %v626_v32  ;;  %v690_v31 = vld [vmem:[#allocation4 + $0x368] sm:$0xff]  ;;  %v623_v32 = vld [vmem:[#allocation4 + $0x150] sm:$0xff] }
  0x6f   :  { %1357 = vmatprep.subr.bf16.mxu0 %v11154_v42  ;;  %v11225_v42 = vcombine.low %v685_v29, %v689_v30  ;;  %v686_v30 = vld [vmem:[#allocation4 + $0x348] sm:$0xff] }
  0x71   :  { %11111 = vmatmul.mubr.msk.bf16.gmra.mrb[16].mxu1 %vm212_vm0, %v13369_v6  ;;  %11115 = vmatmul.mubr.msk.bf16.gmra.mrb[16].mxu0 %vm212_vm0, %v13369_v6 }
  0x72   :  { %1358 = vmatpush1.bf16.msra.mxu0 %v11153_v45  ;;  %360 = vmatprep.mubr.bf16.mxu1 %v16040_v0  ;;  %v705_v45 = vld [vmem:[#allocation4 + $0x3e0] sm:$0xff] }
  0x73   :  { %1359 = vmatprep.subr.bf16.mxu0 %v11162_v46  ;;  %433 = vmatprep.mubr.bf16.mxu0 %v16040_v0  ;;  %v638_v46 = vld [vmem:[#allocation4 + $0x1c8] sm:$0xff]  ;;  %v11242_v55 = vcombine.high %v701_v44, %v705_v45 }
  0x74   :  { %v11180_v56 = vcombine.high %v638_v46, %v642_v47  ;;  %v11179_v58 = vcombine.low %v638_v46, %v642_v47  ;;  %v706_v46 = vld [vmem:[#allocation4 + $0x3e8] sm:$0xff]  ;;  %v639_v47 = vld [vmem:[#allocation4 + $0x1d0] sm:$0xff] }
  0x76   :  { %1360 = vmatpush1.bf16.msra.mxu0 %v11161_v49  ;;  %v11172_v49 = vcombine.high %v630_v38, %v634_v39  ;;  %v698_v38 = vld [vmem:[#allocation4 + $0x3a8] sm:$0xff]  ;;  %v631_v39 = vld [vmem:[#allocation4 + $0x190] sm:$0xff] }
  0x77   :  { %1361 = vmatprep.subr.bf16.mxu0 %v11170_v50 }
  0x79   :  { %11112 = vmatmul.mubr.msk.bf16.gmra.mrb[20].mxu1 %vm212_vm0, %v13403_v22  ;;  %11116 = vmatmul.mubr.msk.bf16.gmra.mrb[20].mxu0 %vm212_vm0, %v13403_v22 }
  0x7a   :  { %1362 = vmatpush1.bf16.msra.mxu0 %v11169_v53  ;;  %476 = vmatprep.mubr.bf16.mxu1 %v16040_v0  ;;  %v583_v53 = vld [vmem:[#allocation4 + $0x10] sm:$0xff] }
  0x7b   :  { %1363 = vmatprep.subr.bf16.mxu0 %v11178_v54  ;;  %1381 = vmatprep.mubr.bf16.mxu0 %v16040_v0  ;;  %v587_v54 = vld [vmem:[#allocation4 + $0x30] sm:$0xff] }
  0x7c   :  { %v11125_v3 = vcombine.low %v583_v53, %v587_v54 }
  0x7e   :  { %1364 = vmatpush1.bf16.msra.mxu0 %v11177_v57  ;;  %v11241_v57 = vcombine.low %v701_v44, %v705_v45  ;;  %v702_v45 = vld [vmem:[#allocation4 + $0x3c8] sm:$0xff] }
  0x7f   :  { %1365 = vmatprep.subr.bf16.mxu0 %v11186_v61  ;;  %v591_v61 = vld [vmem:[#allocation4 + $0x50] sm:$0xff] }
  0x80   :  { %v11133_v12 = vcombine.low %v591_v61, %v595_v62 }
  0x81   :  { %11117 = vmatmul.mubr.msk.bf16.vlgmr.msra.gmra.mrb[24].mxu1 %vm212_vm0, %v13364_v5  ;;  %v681_v5 = vld [vmem:[#allocation4 + $0x320] sm:$0xff] }
  0x82   :  { %1366 = vmatpush1.bf16.msra.mxu0 %v11185_v63  ;;  %1391 = vmatpush1.bf16.msra.mxu1 %v11123_v1  ;;  %v11218_v33 = vcombine.high %v677_v20, %v681_v5  ;;  %v11217_v35 = vcombine.low %v677_v20, %v681_v5  ;;  %v11126_v1 = vcombine.high %v583_v53, %v587_v54  ;;  %v678_v5 = vld [vmem:[#allocation4 + $0x308] sm:$0xff]  ;;  %v651_v53 = vld [vmem:[#allocation4 + $0x230] sm:$0xff]  ;;  %v584_v54 = vld [vmem:[#allocation4 + $0x18] sm:$0xff] }
  0x83   :  { %1367 = vmatprep.subr.bf16.mxu0 %v11194_v8  ;;  %1392 = vmatprep.subr.bf16.mxu1 %v11132_v9  ;;  %v603_v8 = vld [vmem:[#allocation4 + $0xb0] sm:$0xff]  ;;  %v11196_v9 = vcombine.high %v654_v59, %v658_v60 }
  0x84   :  { %486 = vmatprep.mubr.bf16.mxu1 %v16040_v0  ;;  %v11141_v20 = vcombine.low %v599_v7, %v603_v8 }
  0x86   :  { %1368 = vmatpush1.bf16.msra.mxu0 %v11193_v10  ;;  %1393 = vmatpush1.bf16.msra.mxu1 %v11131_v11  ;;  %v11134_v10 = vcombine.high %v591_v61, %v595_v62  ;;  %v11195_v11 = vcombine.low %v654_v59, %v658_v60  ;;  %v655_v60 = vld [vmem:[#allocation4 + $0x250] sm:$0xff] }
  0x87   :  { %1369 = vmatprep.subr.bf16.mxu0 %v11202_v16  ;;  %1394 = vmatprep.subr.bf16.mxu1 %v11140_v17  ;;  %v611_v16 = vld [vmem:[#allocation4 + $0xf0] sm:$0xff] }
  0x88   :  { %v11149_v29 = vcombine.low %v607_v15, %v611_v16 }
  0x89   :  { %11118 = vmatmul.mubr.msk.bf16.gmra.mrb[28].mxu1 %vm212_vm0, %v13398_v21  ;;  %v697_v21 = vld [vmem:[#allocation4 + $0x3a0] sm:$0xff] }
  0x8a   :  { %1370 = vmatpush1.bf16.msra.mxu0 %v11201_v18  ;;  %1395 = vmatpush1.bf16.msra.mxu1 %v11139_v19  ;;  %v11234_v48 = vcombine.high %v693_v37, %v697_v21  ;;  %v11233_v50 = vcombine.low %v693_v37, %v697_v21  ;;  %v11142_v18 = vcombine.high %v599_v7, %v603_v8  ;;  %v694_v21 = vld [vmem:[#allocation4 + $0x388] sm:$0xff]  ;;  %v663_v8 = vld [vmem:[#allocation4 + $0x290] sm:$0xff] }
  0x8b   :  { %1371 = vmatprep.subr.bf16.mxu0 %v11210_v25  ;;  %1396 = vmatprep.subr.bf16.mxu1 %v11148_v26  ;;  %v619_v25 = vld [vmem:[#allocation4 + $0x130] sm:$0xff]  ;;  %v11212_v26 = vcombine.high %v670_v13, %v674_v14 }
  0x8c   :  { %496 = vmatprep.mubr.bf16.mxu1 %v16040_v0  ;;  %v11157_v37 = vcombine.low %v615_v24, %v619_v25 }
  0x8e   :  { %1372 = vmatpush1.bf16.msra.mxu0 %v11209_v27  ;;  %1397 = vmatpush1.bf16.msra.mxu1 %v11147_v28  ;;  %v11150_v27 = vcombine.high %v607_v15, %v611_v16  ;;  %v11211_v28 = vcombine.low %v670_v13, %v674_v14  ;;  %v671_v16 = vld [vmem:[#allocation4 + $0x2d0] sm:$0xff] }
  0x8f   :  { %1373 = vmatprep.subr.bf16.mxu0 %v11218_v33  ;;  %1398 = vmatprep.subr.bf16.mxu1 %v11156_v34  ;;  %v627_v33 = vld [vmem:[#allocation4 + $0x170] sm:$0xff]  ;;  %v11220_v34 = vcombine.high %v678_v5, %v682_v23 }
  0x90   :  { %v11165_v44 = vcombine.low %v623_v32, %v627_v33 }
  0x91   :  { %11119 = vmatmul.mubr.msk.bf16.gmra.mrb[32].mxu1 %vm212_vm0, %v13369_v6  ;;  %v650_v6 = vld [vmem:[#allocation4 + $0x228] sm:$0xff] }
  0x92   :  { %1374 = vmatpush1.bf16.msra.mxu0 %v11217_v35  ;;  %1399 = vmatpush1.bf16.msra.mxu1 %v11155_v36  ;;  %v11188_v63 = vcombine.high %v646_v52, %v650_v6  ;;  %v11187_v2 = vcombine.low %v646_v52, %v650_v6  ;;  %v11158_v35 = vcombine.high %v615_v24, %v619_v25  ;;  %v647_v6 = vld [vmem:[#allocation4 + $0x210] sm:$0xff] }
  0x93   :  { %1375 = vmatprep.subr.bf16.mxu0 %v11226_v40  ;;  %1400 = vmatprep.subr.bf16.mxu1 %v11164_v41  ;;  %v11219_v36 = vcombine.low %v678_v5, %v682_v23  ;;  %v635_v40 = vld [vmem:[#allocation4 + $0x1b0] sm:$0xff]  ;;  %v11228_v41 = vcombine.high %v686_v30, %v690_v31  ;;  %v11190_v61 = vcombine.high %v647_v6, %v651_v53 }
  0x94   :  { %506 = vmatprep.mubr.bf16.mxu1 %v16040_v0  ;;  %v11173_v52 = vcombine.low %v631_v39, %v635_v40  ;;  %v679_v25 = vld [vmem:[#allocation4 + $0x310] sm:$0xff] }
  0x96   :  { %1376 = vmatpush1.bf16.msra.mxu0 %v11225_v42  ;;  %1401 = vmatpush1.bf16.msra.mxu1 %v11163_v43  ;;  %v11166_v42 = vcombine.high %v623_v32, %v627_v33  ;;  %v11227_v43 = vcombine.low %v686_v30, %v690_v31  ;;  %v687_v33 = vld [vmem:[#allocation4 + $0x350] sm:$0xff] }
  0x97   :  { %1377 = vmatprep.subr.bf16.mxu0 %v11234_v48  ;;  %1402 = vmatprep.subr.bf16.mxu1 %v11172_v49  ;;  %v11236_v48 = vcombine.high %v694_v21, %v698_v38  ;;  %v11174_v49 = vcombine.high %v631_v39, %v635_v40  ;;  %v695_v40 = vld [vmem:[#allocation4 + $0x390] sm:$0xff] }
  0x99   :  { %11120 = vmatmul.mubr.msk.bf16.gmra.mrb[36].mxu1 %vm212_vm0, %v13403_v22  ;;  %v666_v22 = vld [vmem:[#allocation4 + $0x2a8] sm:$0xff] }
  0x9a   :  { %1378 = vmatpush1.bf16.msra.mxu0 %v11233_v50  ;;  %1403 = vmatpush1.bf16.msra.mxu1 %v11171_v51  ;;  %v11204_v17 = vcombine.high %v662_v4, %v666_v22  ;;  %v11203_v19 = vcombine.low %v662_v4, %v666_v22  ;;  %v643_v50 = vld [vmem:[#allocation4 + $0x1f0] sm:$0xff]  ;;  %v11235_v51 = vcombine.low %v694_v21, %v698_v38 }
  0x9b   :  { %1379 = vmatprep.subr.bf16.mxu0 %v11242_v55  ;;  %1404 = vmatprep.subr.bf16.mxu1 %v11180_v56  ;;  %v588_v55 = vld [vmem:[#allocation4 + $0x38] sm:$0xff]  ;;  %v11244_v56 = vcombine.high %v702_v45, %v706_v46  ;;  %v11181_v59 = vcombine.low %v639_v47, %v643_v50 }
  0x9c   :  { %1422 = vmatprep.mubr.bf16.mxu1 %v16040_v0  ;;  %v11128_v62 = vcombine.high %v584_v54, %v588_v55  ;;  %v11127_v4 = vcombine.low %v584_v54, %v588_v55  ;;  %v648_v55 = vld [vmem:[#allocation4 + $0x218] sm:$0xff] }
  0x9e   :  { %1380 = vmatpush1.bf16.msra.mxu0 %v11241_v57  ;;  %1405 = vmatpush1.bf16.msra.mxu1 %v11179_v58  ;;  %v11182_v57 = vcombine.high %v639_v47, %v643_v50  ;;  %v11243_v58 = vcombine.low %v702_v45, %v706_v46  ;;  %v640_v50 = vld [vmem:[#allocation4 + $0x1d8] sm:$0xff] }
  0x9f   :  { %1406 = vmatprep.subr.bf16.mxu1 %v11188_v63  ;;  %1431 = vmatprep.subr.bf16.mxu0 %v11126_v1  ;;  %v659_v63 = vld [vmem:[#allocation4 + $0x270] sm:$0xff]  ;;  %v592_v1 = vld [vmem:[#allocation4 + $0x58] sm:$0xff] }
  0xa0   :  { %v11198_v22 = vcombine.high %v655_v60, %v659_v63 }
  0xa1   :  { %1382 = vmatmul.mubr.bf16.vlgmr.msra.gmra.mrb[24].mxu0 %v16040_v0 }
  0xa2   :  { %1407 = vmatpush1.bf16.msra.mxu1 %v11187_v2  ;;  %1432 = vmatpush1.bf16.msra.mxu0 %v11125_v3  ;;  %v596_v2 = vld [vmem:[#allocation4 + $0x78] sm:$0xff]  ;;  %v11189_v3 = vcombine.low %v647_v6, %v651_v53 }
  0xa3   :  { %1408 = vmatprep.subr.bf16.mxu1 %v11196_v9  ;;  %1433 = vmatprep.subr.bf16.mxu0 %v11134_v10  ;;  %v11136_v7 = vcombine.high %v592_v1, %v596_v2  ;;  %v667_v9 = vld [vmem:[#allocation4 + $0x2b0] sm:$0xff]  ;;  %v600_v10 = vld [vmem:[#allocation4 + $0x98] sm:$0xff]  ;;  %v11135_v13 = vcombine.low %v592_v1, %v596_v2 }
  0xa4   :  { %1463 = vmatprep.mubr.bf16.mxu0 %v16040_v0  ;;  %v11206_v14 = vcombine.high %v663_v8, %v667_v9  ;;  %v664_v1 = vld [vmem:[#allocation4 + $0x298] sm:$0xff] }
  0xa5   :  { %v668_v2 = vld [vmem:[#allocation4 + $0x2b8] sm:$0xff] }
  0xa6   :  { %1409 = vmatpush1.bf16.msra.mxu1 %v11195_v11  ;;  %1434 = vmatpush1.bf16.msra.mxu0 %v11133_v12  ;;  %v604_v11 = vld [vmem:[#allocation4 + $0xb8] sm:$0xff]  ;;  %v11197_v12 = vcombine.low %v655_v60, %v659_v63 }
  0xa7   :  { %1410 = vmatprep.subr.bf16.mxu1 %v11204_v17  ;;  %1435 = vmatprep.subr.bf16.mxu0 %v11142_v18  ;;  %v11144_v15 = vcombine.high %v600_v10, %v604_v11  ;;  %v675_v17 = vld [vmem:[#allocation4 + $0x2f0] sm:$0xff]  ;;  %v608_v18 = vld [vmem:[#allocation4 + $0xd8] sm:$0xff]  ;;  %v11143_v5 = vcombine.low %v600_v10, %v604_v11 }
  0xa8   :  { %v11214_v23 = vcombine.high %v671_v16, %v675_v17  ;;  %v656_v60 = vld [vmem:[#allocation4 + $0x258] sm:$0xff] }
  0xa9   :  { %v680_v10 = vld [vmem:[#allocation4 + $0x318] sm:$0xff] }
  0xaa   :  { %1411 = vmatpush1.bf16.msra.mxu1 %v11203_v19  ;;  %1436 = vmatpush1.bf16.msra.mxu0 %v11141_v20  ;;  %v612_v19 = vld [vmem:[#allocation4 + $0xf8] sm:$0xff]  ;;  %v11205_v20 = vcombine.low %v663_v8, %v667_v9  ;;  %v11207_v8 = vcombine.low %v664_v1, %v668_v2 }
  0xab   :  { %1412 = vmatprep.subr.bf16.mxu1 %v11212_v26  ;;  %1437 = vmatprep.subr.bf16.mxu0 %v11150_v27  ;;  %v11152_v24 = vcombine.high %v608_v18, %v612_v19  ;;  %v683_v26 = vld [vmem:[#allocation4 + $0x330] sm:$0xff]  ;;  %v616_v27 = vld [vmem:[#allocation4 + $0x118] sm:$0xff]  ;;  %v11151_v30 = vcombine.low %v608_v18, %v612_v19 }
  0xac   :  { %v11222_v31 = vcombine.high %v679_v25, %v683_v26  ;;  %v684_v11 = vld [vmem:[#allocation4 + $0x338] sm:$0xff] }
  0xad   :  { %v696_v18 = vld [vmem:[#allocation4 + $0x398] sm:$0xff] }
  0xae   :  { %1413 = vmatpush1.bf16.msra.mxu1 %v11211_v28  ;;  %1438 = vmatpush1.bf16.msra.mxu0 %v11149_v29  ;;  %v620_v28 = vld [vmem:[#allocation4 + $0x138] sm:$0xff]  ;;  %v11213_v29 = vcombine.low %v671_v16, %v675_v17  ;;  %v11223_v16 = vcombine.low %v680_v10, %v684_v11 }
  0xaf   :  { %1414 = vmatprep.subr.bf16.mxu1 %v11220_v34  ;;  %1439 = vmatprep.subr.bf16.mxu0 %v11158_v35  ;;  %v11160_v32 = vcombine.high %v616_v27, %v620_v28  ;;  %v691_v34 = vld [vmem:[#allocation4 + $0x370] sm:$0xff]  ;;  %v624_v35 = vld [vmem:[#allocation4 + $0x158] sm:$0xff]  ;;  %v11159_v21 = vcombine.low %v616_v27, %v620_v28  ;;  %v112_v28 = vlaneseq }
  0xb0   :  { %v11230_v38 = vcombine.high %v687_v33, %v691_v34  ;;  %v700_v19 = vld [vmem:[#allocation4 + $0x3b8] sm:$0xff] }
  0xb2   :  { %1415 = vmatpush1.bf16.msra.mxu1 %v11219_v36  ;;  %1440 = vmatpush1.bf16.msra.mxu0 %v11157_v37  ;;  %v628_v36 = vld [vmem:[#allocation4 + $0x178] sm:$0xff]  ;;  %v11221_v37 = vcombine.low %v679_v25, %v683_v26  ;;  %v11239_v25 = vcombine.low %v696_v18, %v700_v19 }
  0xb3   :  { %1416 = vmatprep.subr.bf16.mxu1 %v11228_v41  ;;  %1441 = vmatprep.subr.bf16.mxu0 %v11166_v42  ;;  %v11168_v39 = vcombine.high %v624_v35, %v628_v36  ;;  %v699_v41 = vld [vmem:[#allocation4 + $0x3b0] sm:$0xff]  ;;  %v632_v42 = vld [vmem:[#allocation4 + $0x198] sm:$0xff]  ;;  %v11167_v45 = vcombine.low %v624_v35, %v628_v36 }
  0xb4   :  { %v11238_v46 = vcombine.high %v695_v40, %v699_v41 }
  0xb6   :  { %1417 = vmatpush1.bf16.msra.mxu1 %v11227_v43  ;;  %1442 = vmatpush1.bf16.msra.mxu0 %v11165_v44  ;;  %v636_v43 = vld [vmem:[#allocation4 + $0x1b8] sm:$0xff]  ;;  %v11229_v44 = vcombine.low %v687_v33, %v691_v34 }
  0xb7   :  { %1418 = vmatprep.subr.bf16.mxu1 %v11236_v48  ;;  %1443 = vmatprep.subr.bf16.mxu0 %v11174_v49  ;;  %v11176_v47 = vcombine.high %v632_v42, %v636_v43  ;;  %v703_v48 = vld [vmem:[#allocation4 + $0x3d0] sm:$0xff]  ;;  %v11175_v6 = vcombine.low %v632_v42, %v636_v43 }
  0xb8   :  { %v707_v49 = vld [vmem:[#allocation4 + $0x3f0] sm:$0xff] }
  0xb9   :  { %v11246_v53 = vcombine.high %v703_v48, %v707_v49 }
  0xba   :  { %1419 = vmatpush1.bf16.msra.mxu1 %v11235_v51  ;;  %1444 = vmatpush1.bf16.msra.mxu0 %v11173_v52  ;;  %v644_v51 = vld [vmem:[#allocation4 + $0x1f8] sm:$0xff]  ;;  %v11237_v52 = vcombine.low %v695_v40, %v699_v41 }
  0xbb   :  { %1420 = vmatprep.subr.bf16.mxu1 %v11244_v56  ;;  %1445 = vmatprep.subr.bf16.mxu0 %v11182_v57  ;;  %v11184_v54 = vcombine.high %v640_v50, %v644_v51  ;;  %v652_v56 = vld [vmem:[#allocation4 + $0x238] sm:$0xff]  ;;  %v11245_v57 = vcombine.low %v703_v48, %v707_v49 }
  0xbe   :  { %1421 = vmatpush1.bf16.msra.mxu1 %v11243_v58  ;;  %1446 = vmatpush1.bf16.msra.mxu0 %v11181_v59  ;;  %v11183_v58 = vcombine.low %v640_v50, %v644_v51  ;;  %v11192_v59 = vcombine.high %v648_v55, %v652_v56 }
  0xbf   :  { %1447 = vmatprep.subr.bf16.mxu0 %v11190_v61  ;;  %1472 = vmatprep.subr.bf16.mxu1 %v11128_v62  ;;  %v660_v61 = vld [vmem:[#allocation4 + $0x278] sm:$0xff]  ;;  %v11191_v62 = vcombine.low %v648_v55, %v652_v56 }
  0xc0   :  { %v11200_v63 = vcombine.high %v656_v60, %v660_v61 }
  0xc1   :  { %1423 = vmatmul.mubr.bf16.vlgmr.msra.gmra.mrb[40].mxu1 %v16040_v0 }
  0xc2   :  { %1448 = vmatpush1.bf16.msra.mxu0 %v11189_v3  ;;  %1473 = vmatpush1.bf16.msra.mxu1 %v11127_v4  ;;  %v11199_v3 = vcombine.low %v656_v60, %v660_v61  ;;  %v11208_v4 = vcombine.high %v664_v1, %v668_v2 }
  0xc3   :  { %1449 = vmatprep.subr.bf16.mxu0 %v11198_v22  ;;  %1474 = vmatprep.subr.bf16.mxu1 %v11136_v7  ;;  %v672_v22 = vld [vmem:[#allocation4 + $0x2d8] sm:$0xff] }
  0xc4   :  { %1504 = vmatprep.mubr.bf16.mxu1 %v16040_v0  ;;  %v676_v7 = vld [vmem:[#allocation4 + $0x2f8] sm:$0xff] }
  0xc5   :  { %v11216_v9 = vcombine.high %v672_v22, %v676_v7 }
  0xc6   :  { %1450 = vmatpush1.bf16.msra.mxu0 %v11197_v12  ;;  %1475 = vmatpush1.bf16.msra.mxu1 %v11135_v13  ;;  %v11215_v12 = vcombine.low %v672_v22, %v676_v7  ;;  %v11224_v13 = vcombine.high %v680_v10, %v684_v11  ;;  %v1595_v7 = vld [vmem:[#allocation4] sm:$0xff] }
  0xc7   :  { %1451 = vmatprep.subr.bf16.mxu0 %v11206_v14  ;;  %1476 = vmatprep.subr.bf16.mxu1 %v11144_v15  ;;  %v688_v14 = vld [vmem:[#allocation4 + $0x358] sm:$0xff] }
  0xc8   :  { %v692_v15 = vld [vmem:[#allocation4 + $0x378] sm:$0xff] }
  0xc9   :  { %v11232_v17 = vcombine.high %v688_v14, %v692_v15 }
  0xca   :  { %1452 = vmatpush1.bf16.msra.mxu0 %v11205_v20  ;;  %1477 = vmatpush1.bf16.msra.mxu1 %v11143_v5  ;;  %v11231_v20 = vcombine.low %v688_v14, %v692_v15  ;;  %v11240_v5 = vcombine.high %v696_v18, %v700_v19 }
  0xcb   :  { %1453 = vmatprep.subr.bf16.mxu0 %v11214_v23  ;;  %1478 = vmatprep.subr.bf16.mxu1 %v11152_v24  ;;  %v704_v23 = vld [vmem:[#allocation4 + $0x3d8] sm:$0xff] }
  0xcc   :  { %v708_v24 = vld [vmem:[#allocation4 + $0x3f8] sm:$0xff] }
  0xcd   :  { %v11248_v26 = vcombine.high %v704_v23, %v708_v24  ;;  %v11247_v27 = vcombine.low %v704_v23, %v708_v24 }
  0xce   :  { %1454 = vmatpush1.bf16.msra.mxu0 %v11213_v29  ;;  %1479 = vmatpush1.bf16.msra.mxu1 %v11151_v30  ;;  %v13461_v29 = vshrl.u32 %v112_v28, 7 }
  0xcf   :  { %1455 = vmatprep.subr.bf16.mxu0 %v11222_v31  ;;  %1480 = vmatprep.subr.bf16.mxu1 %v11160_v32  ;;  %v13469_v31 = vld [vmem:[%s16030_s2] sm:$0xff] }
  0xd0   :  { %v13464_v30 = vsub.s32 0, %v13461_v29  ;;  %v13472_v32 = vsub.s32 1, %v13461_v29  ;;  %v13531_v2 = vsub.s32 2, %v13461_v29 }
  0xd2   :  { %1456 = vmatpush1.bf16.msra.mxu0 %v11221_v37  ;;  %1481 = vmatpush1.bf16.msra.mxu1 %v11159_v21  ;;  %16287 = vst [vmem:[#allocation14_spill] sm:$0xff] %v13464_v30  ;;  %16288 = vst [vmem:[#allocation15_spill] sm:$0xff] %v13472_v32  ;;  %v13476_v33 = vrot.slane %v13469_v31, %v13464_v30  ;;  %v13480_v34 = vrot.slane %v13469_v31, %v13472_v32 }
  0xd3   :  { %1457 = vmatprep.subr.bf16.mxu0 %v11230_v38  ;;  %1482 = vmatprep.subr.bf16.mxu1 %v11168_v39  ;;  %16303 = vst [vmem:[#allocation30_spill] sm:$0xff] %v13531_v2  ;;  %v13548_v14 = vrot.slane %v13469_v31, %v13531_v2  ;;  %v1628_v2 = vld [vmem:[#allocation4 + $0x108] sm:$0xff] }
  0xd6   :  { %1458 = vmatpush1.bf16.msra.mxu0 %v11229_v44  ;;  %1483 = vmatpush1.bf16.msra.mxu1 %v11167_v45 }
  0xd7   :  { %1459 = vmatprep.subr.bf16.mxu0 %v11238_v46  ;;  %1484 = vmatprep.subr.bf16.mxu1 %v11176_v47 }
  0xda   :  { %1460 = vmatpush1.bf16.msra.mxu0 %v11237_v52  ;;  %1485 = vmatpush1.bf16.msra.mxu1 %v11175_v6 }
  0xdb   :  { %1461 = vmatprep.subr.bf16.mxu0 %v11246_v53  ;;  %1486 = vmatprep.subr.bf16.mxu1 %v11184_v54  ;;  %v130_v53 = vsub.s32 4, %v13461_v29 }
  0xde   :  { %1462 = vmatpush1.bf16.msra.mxu0 %v11245_v57  ;;  %1487 = vmatpush1.bf16.msra.mxu1 %v11183_v58  ;;  %v134_v58 = vsub.s32 5, %v13461_v29 }
  0xdf   :  { %1488 = vmatprep.subr.bf16.mxu1 %v11192_v59 }
  0xe0   :  { %v13540_v22 = vrot.slane %v13469_v31, %v134_v58  ;;  %v1612_v58 = vld [vmem:[#allocation4 + $0x88] sm:$0xff] }
  0xe1   :  { %1464 = vmatmul.mubr.bf16.vlgmr.msra.gmra.mrb[28].mxu0 %v16040_v0 }
  0xe2   :  { %1489 = vmatpush1.bf16.msra.mxu1 %v11191_v62 }
  0xe3   :  { %1490 = vmatprep.subr.bf16.mxu1 %v11200_v63 }
  0xe6   :  { %1491 = vmatpush1.bf16.msra.mxu1 %v11199_v3  ;;  %v13534_v3 = vrot.slane %v13469_v31, %v130_v53 }
  0xe7   :  { %1492 = vmatprep.subr.bf16.mxu1 %v11208_v4  ;;  %v13537_v4 = vsub.s32 3, %v13461_v29 }
  0xe9   :  { %16304 = vst [vmem:[#allocation31_spill] sm:$0xff] %v13537_v4 }
  0xea   :  { %1493 = vmatpush1.bf16.msra.mxu1 %v11207_v8  ;;  %v1599_v8 = vld [vmem:[#allocation4 + $0x20] sm:$0xff] }
  0xeb   :  { %1494 = vmatprep.subr.bf16.mxu1 %v11216_v9  ;;  %v1596_v9 = vld [vmem:[#allocation4 + $0x8] sm:$0xff]  ;;  %v13555_v18 = vcombine.low %v1595_v7, %v1599_v8 }
  0xee   :  { %1495 = vmatpush1.bf16.msra.mxu1 %v11215_v12  ;;  %v13544_v12 = vcombine.high %v1595_v7, %v1599_v8  ;;  %v1616_v8 = vld [vmem:[#allocation4 + $0xa8] sm:$0xff] }
  0xef   :  { %1496 = vmatprep.subr.bf16.mxu1 %v11224_v13  ;;  %v1600_v13 = vld [vmem:[#allocation4 + $0x28] sm:$0xff] }
  0xf0   :  { %v13557_v19 = vcombine.low %v1596_v9, %v1600_v13  ;;  %2363 = vmatprep.subr.bf16.mxu0 %v13544_v12 }
  0xf1   :  { %2364 = vmatpush1.bf16.msra.mxu0 %v13555_v18 }
  0xf2   :  { %1497 = vmatpush1.bf16.msra.mxu1 %v11223_v16 }
  0xf3   :  { %1498 = vmatprep.subr.bf16.mxu1 %v11232_v17 }
  0xf6   :  { %1499 = vmatpush1.bf16.msra.mxu1 %v11231_v20  ;;  %v13561_v20 = vrot.slane %v13469_v31, %v13537_v4 }
  0xf7   :  { %1500 = vmatprep.subr.bf16.mxu1 %v11240_v5 }
  0xfa   :  { %1501 = vmatpush1.bf16.msra.mxu1 %v11239_v25  ;;  %v13567_v25 = vcombine.high %v1596_v9, %v1600_v13 }
  0xfb   :  { %1502 = vmatprep.subr.bf16.mxu1 %v11248_v26 }
  0xfe   :  { %1503 = vmatpush1.bf16.msra.mxu1 %v11247_v27 }
  0xff   :  { %2404 = vmatprep.subr.bf16.mxu1 %v13567_v25 }
 0x101   :  { %1505 = vmatmul.mubr.bf16.vlgmr.msra.gmra.mrb[44].mxu1 %v16040_v0  ;;  %v1620_v0 = vld [vmem:[#allocation4 + $0xc8] sm:$0xff] }
 0x102   :  { %2405 = vmatpush1.bf16.msra.mxu1 %v13557_v19 }
 0x124   :  { %v279_v35 = vpop.f32.mrb[0].mxu1  ;;  %v13482_v36 = vpop.f32.mrb[0].mxu0 }
 0x125   :  { %v13485_v37 = vadd.f32 %v279_v35, %v13476_v33  ;;  %v281_v21 = vpop.f32.mrb[1].mxu1  ;;  %v13487_v38 = vpop.f32.mrb[1].mxu0 }
 0x126   :  { %v13490_v39 = vadd.f32 %v281_v21, %v13480_v34  ;;  %v283_v40 = vpop.f32.mrb[2].mxu1  ;;  %v263_v41 = vpop.f32.mrb[2].mxu0  ;;  %v1603_v21 = vld [vmem:[#allocation4 + $0x40] sm:$0xff] }
 0x127   :  { %16289 = vst [vmem:[#allocation16_spill] sm:$0xff] %v13485_v37  ;;  %v13493_v42 = vadd.f32 %v283_v40, %v13476_v33  ;;  %v285_v43 = vpop.f32.mrb[3].mxu1  ;;  %v13496_v44 = vadd.f32 %v263_v41, %v13476_v33  ;;  %v265_v45 = vpop.f32.mrb[3].mxu0  ;;  %v1607_v40 = vld [vmem:[#allocation4 + $0x60] sm:$0xff]  ;;  %v1604_v41 = vld [vmem:[#allocation4 + $0x48] sm:$0xff] }
 0x128   :  { %16290 = vst [vmem:[#allocation17_spill] sm:$0xff] %v13490_v39  ;;  %v13499_v46 = vadd.f32 %v285_v43, %v13480_v34  ;;  %v13502_v47 = vadd.f32 %v265_v45, %v13480_v34 }
 0x129   :  { %16291 = vst [vmem:[#allocation18_spill] sm:$0xff] %v13493_v42  ;;  %16292 = vst [vmem:[#allocation19_spill] sm:$0xff] %v13496_v44  ;;  %v1636_v42 = vld [vmem:[#allocation4 + $0x148] sm:$0xff] }
 0x12a   :  { %16293 = vst [vmem:[#allocation20_spill] sm:$0xff] %v13499_v46  ;;  %16294 = vst [vmem:[#allocation21_spill] sm:$0xff] %v13502_v47  ;;  %v1639_v46 = vld [vmem:[#allocation4 + $0x160] sm:$0xff]  ;;  %v1680_v44 = vld [vmem:[#allocation4 + $0x2a8] sm:$0xff] }
 0x12c   :  { %v289_v48 = vpop.f32.mrb[4].mxu1  ;;  %v269_v49 = vpop.f32.mrb[4].mxu0 }
 0x12d   :  { %v13505_v50 = vadd.f32 %v289_v48, %v13476_v33  ;;  %v291_v51 = vpop.f32.mrb[5].mxu1  ;;  %v13508_v52 = vadd.f32 %v269_v49, %v13476_v33  ;;  %v271_v6 = vpop.f32.mrb[5].mxu0  ;;  %v13583_v48 = vcombine.high %v1603_v21, %v1607_v40  ;;  %v1608_v49 = vld [vmem:[#allocation4 + $0x68] sm:$0xff] }
 0x12e   :  { %v13512_v54 = vadd.f32 %v291_v51, %v13480_v34  ;;  %v293_v55 = vpop.f32.mrb[6].mxu1  ;;  %v13515_v56 = vadd.f32 %v271_v6, %v13480_v34  ;;  %v273_v57 = vpop.f32.mrb[6].mxu0  ;;  %v13586_v51 = vcombine.low %v1603_v21, %v1607_v40  ;;  %v13588_v6 = vcombine.low %v1604_v41, %v1608_v49 }
 0x12f   :  { %16295 = vst [vmem:[#allocation22_spill] sm:$0xff] %v13505_v50  ;;  %16296 = vst [vmem:[#allocation23_spill] sm:$0xff] %v13508_v52  ;;  %v13519_v59 = vadd.f32 %v293_v55, %v13476_v33  ;;  %v295_v60 = vpop.f32.mrb[7].mxu1  ;;  %v13522_v61 = vadd.f32 %v273_v57, %v13476_v33  ;;  %v275_v62 = vpop.f32.mrb[7].mxu0  ;;  %v13590_v53 = vcombine.high %v1604_v41, %v1608_v49  ;;  %2365 = vmatprep.subr.bf16.mxu0 %v13583_v48  ;;  %v1611_v55 = vld [vmem:[#allocation4 + $0x80] sm:$0xff] }
 0x130   :  { %16297 = vst [vmem:[#allocation24_spill] sm:$0xff] %v13512_v54  ;;  %16298 = vst [vmem:[#allocation25_spill] sm:$0xff] %v13515_v56  ;;  %v13525_v63 = vadd.f32 %v295_v60, %v13480_v34  ;;  %v13528_v1 = vadd.f32 %v275_v62, %v13480_v34  ;;  %2366 = vmatpush1.bf16.msra.mxu0 %v13586_v51  ;;  %v1615_v57 = vld [vmem:[#allocation4 + $0xa0] sm:$0xff]  ;;  %v13615_v41 = vcombine.high %v1612_v58, %v1616_v8 }
 0x131   :  { %16299 = vst [vmem:[#allocation26_spill] sm:$0xff] %v13519_v59  ;;  %16300 = vst [vmem:[#allocation27_spill] sm:$0xff] %v13522_v61  ;;  %2406 = vmatprep.subr.bf16.mxu1 %v13590_v53  ;;  %v13595_v7 = vcombine.high %v1611_v55, %v1615_v57 }
 0x132   :  { %16301 = vst [vmem:[#allocation28_spill] sm:$0xff] %v13525_v63  ;;  %16302 = vst [vmem:[#allocation29_spill] sm:$0xff] %v13528_v1  ;;  %2407 = vmatpush1.bf16.msra.mxu1 %v13588_v6  ;;  %v1632_v63 = vld [vmem:[#allocation4 + $0x128] sm:$0xff] }
 0x133   :  { %2367 = vmatprep.subr.bf16.mxu0 %v13595_v7  ;;  %2408 = vmatprep.subr.bf16.mxu1 %v13615_v41 }
 0x134   :  { %v13542_v10 = vpop.f32.mrb[8].mxu1  ;;  %v405_v11 = vpop.f32.mrb[8].mxu0 }
 0x135   :  { %v13550_v15 = vpop.f32.mrb[9].mxu1  ;;  %v13553_v16 = vadd.f32 %v405_v11, %v13534_v3  ;;  %v407_v17 = vpop.f32.mrb[9].mxu0 }
 0x136   :  { %v336_v5 = vpop.f32.mrb[10].mxu1  ;;  %v13564_v23 = vadd.f32 %v407_v17, %v13540_v22  ;;  %v409_v24 = vpop.f32.mrb[10].mxu0 }
 0x137   :  { %16305 = vst [vmem:[#allocation32_spill] sm:$0xff] %v13553_v16  ;;  %v13570_v26 = vadd.f32 %v336_v5, %v13548_v14  ;;  %v338_v27 = vpop.f32.mrb[11].mxu1  ;;  %v13573_v28 = vadd.f32 %v409_v24, %v13534_v3  ;;  %v411_v35 = vpop.f32.mrb[11].mxu0  ;;  %v13604_v5 = vcombine.low %v1611_v55, %v1615_v57  ;;  %v13606_v24 = vcombine.low %v1612_v58, %v1616_v8  ;;  %v1624_v8 = vld [vmem:[#allocation4 + $0xe8] sm:$0xff] }
 0x138   :  { %16306 = vst [vmem:[#allocation33_spill] sm:$0xff] %v13564_v23  ;;  %v13577_v43 = vadd.f32 %v338_v27, %v13561_v20  ;;  %v13580_v45 = vadd.f32 %v411_v35, %v13540_v22  ;;  %v13638_v32 = vcombine.high %v1620_v0, %v1624_v8 }
 0x139   :  { %16307 = vst [vmem:[#allocation34_spill] sm:$0xff] %v13570_v26  ;;  %16308 = vst [vmem:[#allocation35_spill] sm:$0xff] %v13573_v28  ;;  %2368 = vmatpush1.bf16.msra.mxu0 %v13604_v5  ;;  %2409 = vmatpush1.bf16.msra.mxu1 %v13606_v24 }
 0x13a   :  { %16309 = vst [vmem:[#allocation36_spill] sm:$0xff] %v13577_v43  ;;  %16310 = vst [vmem:[#allocation37_spill] sm:$0xff] %v13580_v45  ;;  %2410 = vmatprep.subr.bf16.mxu1 %v13638_v32  ;;  %v13654_v45 = vcombine.low %v1628_v2, %v1632_v63  ;;  %v1675_v43 = vld [vmem:[#allocation4 + $0x280] sm:$0xff] }
 0x13c   :  { %v342_v60 = vpop.f32.mrb[12].mxu1  ;;  %v415_v62 = vpop.f32.mrb[12].mxu0 }
 0x13d   :  { %v13598_v9 = vadd.f32 %v342_v60, %v13548_v14  ;;  %v344_v11 = vpop.f32.mrb[13].mxu1  ;;  %v13601_v13 = vadd.f32 %v415_v62, %v13534_v3  ;;  %v417_v17 = vpop.f32.mrb[13].mxu0  ;;  %v1619_v62 = vld [vmem:[#allocation4 + $0xc0] sm:$0xff] }
 0x13e   :  { %v13609_v27 = vadd.f32 %v344_v11, %v13561_v20  ;;  %v346_v35 = vpop.f32.mrb[14].mxu1  ;;  %v13612_v21 = vadd.f32 %v417_v17, %v13540_v22  ;;  %v419_v40 = vpop.f32.mrb[14].mxu0  ;;  %v1623_v11 = vld [vmem:[#allocation4 + $0xe0] sm:$0xff] }
 0x13f   :  { %16311 = vst [vmem:[#allocation38_spill] sm:$0xff] %v13598_v9  ;;  %16312 = vst [vmem:[#allocation39_spill] sm:$0xff] %v13601_v13  ;;  %v13618_v49 = vadd.f32 %v346_v35, %v13548_v14  ;;  %v348_v60 = vpop.f32.mrb[15].mxu1  ;;  %v13621_v55 = vadd.f32 %v419_v40, %v13534_v3  ;;  %v421_v57 = vpop.f32.mrb[15].mxu0  ;;  %v13631_v58 = vcombine.high %v1619_v62, %v1623_v11 }
 0x140   :  { %16313 = vst [vmem:[#allocation40_spill] sm:$0xff] %v13609_v27  ;;  %16314 = vst [vmem:[#allocation41_spill] sm:$0xff] %v13612_v21  ;;  %v13625_v17 = vadd.f32 %v348_v60, %v13561_v20  ;;  %v13628_v4 = vadd.f32 %v421_v57, %v13540_v22  ;;  %v13634_v35 = vcombine.low %v1619_v62, %v1623_v11  ;;  %v1627_v60 = vld [vmem:[#allocation4 + $0x100] sm:$0xff] }
 0x141   :  { %16315 = vst [vmem:[#allocation42_spill] sm:$0xff] %v13618_v49  ;;  %16316 = vst [vmem:[#allocation43_spill] sm:$0xff] %v13621_v55  ;;  %v13636_v40 = vcombine.low %v1620_v0, %v1624_v8  ;;  %2369 = vmatprep.subr.bf16.mxu0 %v13631_v58  ;;  %v1631_v57 = vld [vmem:[#allocation4 + $0x120] sm:$0xff]  ;;  %v13663_v21 = vcombine.high %v1628_v2, %v1632_v63  ;;  %v1640_v63 = vld [vmem:[#allocation4 + $0x168] sm:$0xff]  ;;  %v142_v49 = vsub.s32 7, %v13461_v29 }
 0x142   :  { %16317 = vst [vmem:[#allocation44_spill] sm:$0xff] %v13625_v17  ;;  %16318 = vst [vmem:[#allocation45_spill] sm:$0xff] %v13628_v4  ;;  %2370 = vmatpush1.bf16.msra.mxu0 %v13634_v35  ;;  %v13643_v16 = vcombine.high %v1627_v60, %v1631_v57  ;;  %v13652_v59 = vcombine.low %v1627_v60, %v1631_v57 }
 0x143   :  { %2411 = vmatpush1.bf16.msra.mxu1 %v13636_v40  ;;  %v13740_v27 = vrot.slane %v13469_v31, %v142_v49 }
 0x144   :  { %v352_v30 = vpop.f32.mrb[16].mxu1  ;;  %v425_v23 = vpop.f32.mrb[16].mxu0  ;;  %2371 = vmatprep.subr.bf16.mxu0 %v13643_v16  ;;  %2412 = vmatprep.subr.bf16.mxu1 %v13663_v21 }
 0x145   :  { %v13646_v62 = vadd.f32 %v352_v30, %v13548_v14  ;;  %v354_v11 = vpop.f32.mrb[17].mxu1  ;;  %v13649_v0 = vadd.f32 %v425_v23, %v13534_v3  ;;  %v427_v8 = vpop.f32.mrb[17].mxu0 }
 0x146   :  { %v13657_v28 = vadd.f32 %v354_v11, %v13561_v20  ;;  %v356_v54 = vpop.f32.mrb[18].mxu1  ;;  %v13660_v50 = vadd.f32 %v427_v8, %v13540_v22  ;;  %v429_v30 = vpop.f32.mrb[18].mxu0  ;;  %2372 = vmatpush1.bf16.msra.mxu0 %v13652_v59  ;;  %v1635_v11 = vld [vmem:[#allocation4 + $0x140] sm:$0xff] }
 0x147   :  { %16319 = vst [vmem:[#allocation46_spill] sm:$0xff] %v13646_v62  ;;  %16320 = vst [vmem:[#allocation47_spill] sm:$0xff] %v13649_v0  ;;  %v13666_v23 = vadd.f32 %v356_v54, %v13548_v14  ;;  %v358_v13 = vpop.f32.mrb[19].mxu1  ;;  %v13669_v60 = vadd.f32 %v429_v30, %v13534_v3  ;;  %v431_v57 = vpop.f32.mrb[19].mxu0  ;;  %v13679_v54 = vcombine.high %v1635_v11, %v1639_v46  ;;  %2413 = vmatpush1.bf16.msra.mxu1 %v13654_v45 }
 0x148   :  { %16321 = vst [vmem:[#allocation48_spill] sm:$0xff] %v13657_v28  ;;  %16322 = vst [vmem:[#allocation49_spill] sm:$0xff] %v13660_v50  ;;  %v13673_v8 = vadd.f32 %v358_v13, %v13561_v20  ;;  %v13676_v4 = vadd.f32 %v431_v57, %v13540_v22  ;;  %v13682_v2 = vcombine.low %v1635_v11, %v1639_v46  ;;  %v1643_v13 = vld [vmem:[#allocation4 + $0x180] sm:$0xff]  ;;  %v138_v28 = vsub.s32 6, %v13461_v29  ;;  %v1648_v46 = vld [vmem:[#allocation4 + $0x1a8] sm:$0xff] }
 0x149   :  { %16323 = vst [vmem:[#allocation50_spill] sm:$0xff] %v13666_v23  ;;  %16324 = vst [vmem:[#allocation51_spill] sm:$0xff] %v13669_v60  ;;  %v13684_v30 = vcombine.low %v1636_v42, %v1640_v63  ;;  %v13686_v23 = vcombine.high %v1636_v42, %v1640_v63  ;;  %2373 = vmatprep.subr.bf16.mxu0 %v13679_v54  ;;  %v1647_v57 = vld [vmem:[#allocation4 + $0x1a0] sm:$0xff]  ;;  %v1652_v29 = vld [vmem:[#allocation4 + $0x1c8] sm:$0xff] }
 0x14a   :  { %16325 = vst [vmem:[#allocation52_spill] sm:$0xff] %v13673_v8  ;;  %16326 = vst [vmem:[#allocation53_spill] sm:$0xff] %v13676_v4  ;;  %2374 = vmatpush1.bf16.msra.mxu0 %v13682_v2  ;;  %v1644_v8 = vld [vmem:[#allocation4 + $0x188] sm:$0xff]  ;;  %v13692_v62 = vcombine.high %v1643_v13, %v1647_v57  ;;  %v13701_v50 = vcombine.low %v1643_v13, %v1647_v57 }
 0x14b   :  { %2414 = vmatprep.subr.bf16.mxu1 %v13686_v23  ;;  %v13703_v0 = vcombine.low %v1644_v8, %v1648_v46 }
 0x14c   :  { %v362_v55 = vpop.f32.mrb[20].mxu1  ;;  %v435_v39 = vpop.f32.mrb[20].mxu0  ;;  %2415 = vmatpush1.bf16.msra.mxu1 %v13684_v30  ;;  %2375 = vmatprep.subr.bf16.mxu0 %v13692_v62 }
 0x14d   :  { %v13695_v11 = vadd.f32 %v362_v55, %v13548_v14  ;;  %v364_v42 = vpop.f32.mrb[21].mxu1  ;;  %v13698_v63 = vadd.f32 %v435_v39, %v13534_v3  ;;  %v437_v37 = vpop.f32.mrb[21].mxu0  ;;  %v13715_v39 = vcombine.high %v1644_v8, %v1648_v46  ;;  %v1656_v8 = vld [vmem:[#allocation4 + $0x1e8] sm:$0xff]  ;;  %v13730_v46 = vrot.slane %v13469_v31, %v138_v28  ;;  %v1663_v28 = vld [vmem:[#allocation4 + $0x220] sm:$0xff] }
 0x14e   :  { %v13706_v17 = vadd.f32 %v364_v42, %v13561_v20  ;;  %v366_v1 = vpop.f32.mrb[22].mxu1  ;;  %v13710_v55 = vadd.f32 %v437_v37, %v13540_v22  ;;  %2376 = vmatpush1.bf16.msra.mxu0 %v13701_v50  ;;  %v1651_v42 = vld [vmem:[#allocation4 + $0x1c0] sm:$0xff]  ;;  %v13737_v60 = vcombine.high %v1652_v29, %v1656_v8 }
 0x14f   :  { %16327 = vst [vmem:[#allocation54_spill] sm:$0xff] %v13695_v11  ;;  %16328 = vst [vmem:[#allocation55_spill] sm:$0xff] %v13698_v63  ;;  %v13712_v11 = vpop.f32.mrb[22].mxu0  ;;  %v13718_v13 = vadd.f32 %v366_v1, %v13548_v14  ;;  %v368_v57 = vpop.f32.mrb[23].mxu1  ;;  %2416 = vmatprep.subr.bf16.mxu1 %v13715_v39 }
 0x150   :  { %16329 = vst [vmem:[#allocation56_spill] sm:$0xff] %v13706_v17  ;;  %16330 = vst [vmem:[#allocation57_spill] sm:$0xff] %v13710_v55  ;;  %v13720_v61 = vpop.f32.mrb[23].mxu0  ;;  %v1655_v17 = vld [vmem:[#allocation4 + $0x1e0] sm:$0xff]  ;;  %v13724_v37 = vadd.f32 %v368_v57, %v13561_v20  ;;  %2417 = vmatpush1.bf16.msra.mxu1 %v13703_v0 }
 0x151   :  { %16331 = vst [vmem:[#allocation58_spill] sm:$0xff] %v13718_v13  ;;  %v13727_v4 = vcombine.high %v1651_v42, %v1655_v17  ;;  %v13733_v1 = vcombine.low %v1651_v42, %v1655_v17  ;;  %v13735_v13 = vcombine.low %v1652_v29, %v1656_v8  ;;  %2418 = vmatprep.subr.bf16.mxu1 %v13737_v60  ;;  %v1659_v57 = vld [vmem:[#allocation4 + $0x200] sm:$0xff]  ;;  %v1664_v17 = vld [vmem:[#allocation4 + $0x228] sm:$0xff] }
 0x152   :  { %16332 = vst [vmem:[#allocation59_spill] sm:$0xff] %v13724_v37  ;;  %v1660_v37 = vld [vmem:[#allocation4 + $0x208] sm:$0xff]  ;;  %v13745_v9 = vcombine.high %v1659_v57, %v1663_v28  ;;  %v13751_v31 = vcombine.low %v1659_v57, %v1663_v28  ;;  %v1667_v57 = vld [vmem:[#allocation4 + $0x240] sm:$0xff] }
 0x153   :  { %16333 = vst [vmem:[#allocation60_spill] sm:$0xff] %v13735_v13  ;;  %2377 = vmatprep.subr.bf16.mxu0 %v13727_v4  ;;  %v13753_v49 = vcombine.low %v1660_v37, %v1664_v17  ;;  %v13755_v8 = vcombine.high %v1660_v37, %v1664_v17  ;;  %v1671_v28 = vld [vmem:[#allocation4 + $0x260] sm:$0xff] }
 0x154   :  { %2378 = vmatpush1.bf16.msra.mxu0 %v13733_v1  ;;  %v478_v56 = vpop.f32.mrb[24].mxu1  ;;  %16334 = vst [vmem:[#allocation61_spill] sm:$0xff] %v13745_v9  ;;  %2419 = vmatpush1.bf16.msra.mxu1 %v13735_v13  ;;  %16336 = vst [vmem:[#allocation63_spill] sm:$0xff] %v13751_v31  ;;  %v13769_v17 = vcombine.high %v1667_v57, %v1671_v28 }
 0x155   :  { %v13748_v42 = vadd.f32 %v478_v56, %v13730_v46  ;;  %v480_v29 = vpop.f32.mrb[25].mxu1  ;;  %16337 = vst [vmem:[#allocation64_spill] sm:$0xff] %v13753_v49  ;;  %16338 = vst [vmem:[#allocation65_spill] sm:$0xff] %v13755_v8  ;;  %2379 = vmatprep.subr.bf16.mxu0 %v13745_v9  ;;  %2420 = vmatprep.subr.bf16.mxu1 %v13755_v8  ;;  %v1715_v8 = vld [vmem:[#allocation4 + $0x3c0] sm:$0xff] }
 0x156   :  { %v13758_v52 = vadd.f32 %v480_v29, %v13740_v27  ;;  %v482_v55 = vpop.f32.mrb[26].mxu1  ;;  %16342 = vst [vmem:[#allocation69_spill] sm:$0xff] %v13769_v17  ;;  %v1672_v29 = vld [vmem:[#allocation4 + $0x268] sm:$0xff] }
 0x157   :  { %16335 = vst [vmem:[#allocation62_spill] sm:$0xff] %v13748_v42  ;;  %v13762_v63 = vadd.f32 %v482_v55, %v13730_v46  ;;  %v484_v56 = vpop.f32.mrb[27].mxu1  ;;  %v1668_v42 = vld [vmem:[#allocation4 + $0x248] sm:$0xff] }
 0x158   :  { %16339 = vst [vmem:[#allocation66_spill] sm:$0xff] %v13758_v52  ;;  %2380 = vmatpush1.bf16.msra.mxu0 %v13751_v31  ;;  %v13767_v37 = vadd.f32 %v484_v56, %v13740_v27  ;;  %2421 = vmatpush1.bf16.msra.mxu1 %v13753_v49  ;;  %v13772_v52 = vcombine.low %v1667_v57, %v1671_v28  ;;  %v1679_v56 = vld [vmem:[#allocation4 + $0x2a0] sm:$0xff]  ;;  %v1712_v31 = vld [vmem:[#allocation4 + $0x3a8] sm:$0xff] }
 0x159   :  { %16340 = vst [vmem:[#allocation67_spill] sm:$0xff] %v13762_v63  ;;  %v13774_v55 = vcombine.low %v1668_v42, %v1672_v29  ;;  %v13776_v63 = vcombine.high %v1668_v42, %v1672_v29  ;;  %2381 = vmatprep.subr.bf16.mxu0 %v13769_v17  ;;  %v13781_v26 = vcombine.high %v1675_v43, %v1679_v56 }
 0x15a   :  { %16341 = vst [vmem:[#allocation68_spill] sm:$0xff] %v13767_v37  ;;  %16343 = vst [vmem:[#allocation70_spill] sm:$0xff] %v13772_v52  ;;  %v1676_v37 = vld [vmem:[#allocation4 + $0x288] sm:$0xff]  ;;  %v13787_v42 = vcombine.low %v1675_v43, %v1679_v56  ;;  %v1683_v43 = vld [vmem:[#allocation4 + $0x2c0] sm:$0xff] }
 0x15b   :  { %16344 = vst [vmem:[#allocation71_spill] sm:$0xff] %v13774_v55  ;;  %16345 = vst [vmem:[#allocation72_spill] sm:$0xff] %v13776_v63  ;;  %2422 = vmatprep.subr.bf16.mxu1 %v13776_v63  ;;  %v13789_v29 = vcombine.low %v1676_v37, %v1680_v44  ;;  %v13791_v63 = vcombine.high %v1676_v37, %v1680_v44  ;;  %v1687_v56 = vld [vmem:[#allocation4 + $0x2e0] sm:$0xff] }
 0x15c   :  { %2382 = vmatpush1.bf16.msra.mxu0 %v13772_v52  ;;  %v488_v47 = vpop.f32.mrb[28].mxu1  ;;  %16346 = vst [vmem:[#allocation73_spill] sm:$0xff] %v13781_v26  ;;  %2423 = vmatpush1.bf16.msra.mxu1 %v13774_v55  ;;  %16348 = vst [vmem:[#allocation75_spill] sm:$0xff] %v13787_v42  ;;  %v13805_v37 = vcombine.high %v1683_v43, %v1687_v56  ;;  %v1696_v55 = vld [vmem:[#allocation4 + $0x328] sm:$0xff] }
 0x15d   :  { %v13784_v57 = vadd.f32 %v488_v47, %v13730_v46  ;;  %v490_v28 = vpop.f32.mrb[29].mxu1  ;;  %16349 = vst [vmem:[#allocation76_spill] sm:$0xff] %v13789_v29  ;;  %16350 = vst [vmem:[#allocation77_spill] sm:$0xff] %v13791_v63  ;;  %2383 = vmatprep.subr.bf16.mxu0 %v13781_v26  ;;  %2424 = vmatprep.subr.bf16.mxu1 %v13791_v63 }
 0x15e   :  { %v13794_v52 = vadd.f32 %v490_v28, %v13740_v27  ;;  %v492_v17 = vpop.f32.mrb[30].mxu1  ;;  %16354 = vst [vmem:[#allocation81_spill] sm:$0xff] %v13805_v37  ;;  %v1688_v28 = vld [vmem:[#allocation4 + $0x2e8] sm:$0xff] }
 0x15f   :  { %16347 = vst [vmem:[#allocation74_spill] sm:$0xff] %v13784_v57  ;;  %v13798_v49 = vadd.f32 %v492_v17, %v13730_v46  ;;  %v494_v47 = vpop.f32.mrb[31].mxu1  ;;  %v1684_v57 = vld [vmem:[#allocation4 + $0x2c8] sm:$0xff] }
 0x160   :  { %16351 = vst [vmem:[#allocation78_spill] sm:$0xff] %v13794_v52  ;;  %2384 = vmatpush1.bf16.msra.mxu0 %v13787_v42  ;;  %v13803_v44 = vadd.f32 %v494_v47, %v13740_v27  ;;  %2425 = vmatpush1.bf16.msra.mxu1 %v13789_v29  ;;  %v13808_v52 = vcombine.low %v1683_v43, %v1687_v56  ;;  %v1691_v42 = vld [vmem:[#allocation4 + $0x300] sm:$0xff] }
 0x161   :  { %16352 = vst [vmem:[#allocation79_spill] sm:$0xff] %v13798_v49  ;;  %v13810_v17 = vcombine.low %v1684_v57, %v1688_v28  ;;  %v13812_v49 = vcombine.high %v1684_v57, %v1688_v28  ;;  %2385 = vmatprep.subr.bf16.mxu0 %v13805_v37  ;;  %v1695_v47 = vld [vmem:[#allocation4 + $0x320] sm:$0xff] }
 0x162   :  { %16353 = vst [vmem:[#allocation80_spill] sm:$0xff] %v13803_v44  ;;  %16355 = vst [vmem:[#allocation82_spill] sm:$0xff] %v13808_v52  ;;  %v1692_v44 = vld [vmem:[#allocation4 + $0x308] sm:$0xff]  ;;  %v13817_v26 = vcombine.high %v1691_v42, %v1695_v47  ;;  %v13823_v57 = vcombine.low %v1691_v42, %v1695_v47  ;;  %v1699_v42 = vld [vmem:[#allocation4 + $0x340] sm:$0xff] }
 0x163   :  { %16356 = vst [vmem:[#allocation83_spill] sm:$0xff] %v13810_v17  ;;  %16357 = vst [vmem:[#allocation84_spill] sm:$0xff] %v13812_v49  ;;  %2426 = vmatprep.subr.bf16.mxu1 %v13812_v49  ;;  %v13825_v28 = vcombine.low %v1692_v44, %v1696_v55  ;;  %v13827_v49 = vcombine.high %v1692_v44, %v1696_v55  ;;  %v1703_v47 = vld [vmem:[#allocation4 + $0x360] sm:$0xff] }
 0x164   :  { %2386 = vmatpush1.bf16.msra.mxu0 %v13808_v52  ;;  %v498_v63 = vpop.f32.mrb[32].mxu1  ;;  %16358 = vst [vmem:[#allocation85_spill] sm:$0xff] %v13817_v26  ;;  %2427 = vmatpush1.bf16.msra.mxu1 %v13810_v17  ;;  %16360 = vst [vmem:[#allocation87_spill] sm:$0xff] %v13823_v57  ;;  %v13841_v44 = vcombine.low %v1699_v42, %v1703_v47  ;;  %v1711_v17 = vld [vmem:[#allocation4 + $0x3a0] sm:$0xff] }
 0x165   :  { %v13820_v43 = vadd.f32 %v498_v63, %v13730_v46  ;;  %v500_v56 = vpop.f32.mrb[33].mxu1  ;;  %16361 = vst [vmem:[#allocation88_spill] sm:$0xff] %v13825_v28  ;;  %16362 = vst [vmem:[#allocation89_spill] sm:$0xff] %v13827_v49  ;;  %2387 = vmatprep.subr.bf16.mxu0 %v13817_v26  ;;  %2428 = vmatprep.subr.bf16.mxu1 %v13827_v49  ;;  %v1707_v26 = vld [vmem:[#allocation4 + $0x380] sm:$0xff]  ;;  %v1708_v49 = vld [vmem:[#allocation4 + $0x388] sm:$0xff] }
 0x166   :  { %v13830_v52 = vadd.f32 %v500_v56, %v13740_v27  ;;  %v502_v37 = vpop.f32.mrb[34].mxu1  ;;  %v13843_v56 = vcombine.high %v1699_v42, %v1703_v47  ;;  %v1719_v42 = vld [vmem:[#allocation4 + $0x3e0] sm:$0xff]  ;;  %v13857_v47 = vcombine.low %v1707_v26, %v1711_v17  ;;  %v13866_v13 = vcombine.low %v1708_v49, %v1712_v31 }
 0x167   :  { %16359 = vst [vmem:[#allocation86_spill] sm:$0xff] %v13820_v43  ;;  %v13834_v29 = vadd.f32 %v502_v37, %v13730_v46  ;;  %v504_v63 = vpop.f32.mrb[35].mxu1  ;;  %v1700_v43 = vld [vmem:[#allocation4 + $0x348] sm:$0xff] }
 0x168   :  { %16363 = vst [vmem:[#allocation90_spill] sm:$0xff] %v13830_v52  ;;  %2388 = vmatpush1.bf16.msra.mxu0 %v13823_v57  ;;  %v13839_v55 = vadd.f32 %v504_v63, %v13740_v27  ;;  %16366 = vst [vmem:[#allocation93_spill] sm:$0xff] %v13843_v56  ;;  %v1704_v52 = vld [vmem:[#allocation4 + $0x368] sm:$0xff]  ;;  %2429 = vmatpush1.bf16.msra.mxu1 %v13825_v28  ;;  %v13850_v57 = vcombine.high %v1707_v26, %v1711_v17 }
 0x169   :  { %16364 = vst [vmem:[#allocation91_spill] sm:$0xff] %v13834_v29  ;;  %v13846_v37 = vcombine.low %v1700_v43, %v1704_v52  ;;  %v13848_v29 = vcombine.high %v1700_v43, %v1704_v52  ;;  %2389 = vmatprep.subr.bf16.mxu0 %v13843_v56  ;;  %v13853_v63 = vcombine.high %v1708_v49, %v1712_v31  ;;  %16370 = vst [vmem:[#allocation97_spill] sm:$0xff] %v13857_v47  ;;  %v1720_v28 = vld [vmem:[#allocation4 + $0x3e8] sm:$0xff] }
 0x16a   :  { %16365 = vst [vmem:[#allocation92_spill] sm:$0xff] %v13839_v55  ;;  %16368 = vst [vmem:[#allocation95_spill] sm:$0xff] %v13850_v57  ;;  %v1716_v55 = vld [vmem:[#allocation4 + $0x3c8] sm:$0xff]  ;;  %v13860_v43 = vcombine.high %v1715_v8, %v1719_v42  ;;  %v260_v49 = vadd.f32 %v13482_v36, %v13476_v33 }
 0x16b   :  { %16367 = vst [vmem:[#allocation94_spill] sm:$0xff] %v13848_v29  ;;  %16369 = vst [vmem:[#allocation96_spill] sm:$0xff] %v13853_v63  ;;  %2430 = vmatprep.subr.bf16.mxu1 %v13848_v29  ;;  %v13874_v17 = vcombine.high %v1716_v55, %v1720_v28  ;;  %v13883_v31 = vcombine.low %v1716_v55, %v1720_v28 }
 0x16c   :  { %2390 = vmatpush1.bf16.msra.mxu0 %v13841_v44  ;;  %v508_v52 = vpop.f32.mrb[36].mxu1  ;;  %16371 = vst [vmem:[#allocation98_spill] sm:$0xff] %v13860_v43  ;;  %2431 = vmatpush1.bf16.msra.mxu1 %v13846_v37  ;;  %16373 = vst [vmem:[#allocation100_spill] sm:$0xff] %v13866_v13 }
 0x16d   :  { %2391 = vmatprep.subr.bf16.mxu0 %v13850_v57  ;;  %v13863_v9 = vadd.f32 %v508_v52, %v13730_v46  ;;  %v510_v56 = vpop.f32.mrb[37].mxu1  ;;  %2432 = vmatprep.subr.bf16.mxu1 %v13853_v63  ;;  %16375 = vst [vmem:[#allocation102_spill] sm:$0xff] %v13874_v17  ;;  %v13879_v52 = vcombine.low %v1715_v8, %v1719_v42  ;;  %16377 = vst [vmem:[#allocation104_spill] sm:$0xff] %v13883_v31 }
 0x16e   :  { %v13869_v29 = vadd.f32 %v510_v56, %v13740_v27  ;;  %v13871_v26 = vpop.f32.mrb[38].mxu1  ;;  %v1597_v56 = vld [vmem:[#allocation4 + $0x10] sm:$0xff]  ;;  %v262_v8 = vadd.f32 %v13487_v38, %v13480_v34 }
 0x16f   :  { %16372 = vst [vmem:[#allocation99_spill] sm:$0xff] %v13863_v9  ;;  %v13876_v57 = vpop.f32.mrb[39].mxu1  ;;  %16376 = vst [vmem:[#allocation103_spill] sm:$0xff] %v13879_v52  ;;  %v1598_v9 = vld [vmem:[#allocation4 + $0x18] sm:$0xff] }
 0x170   :  { %16374 = vst [vmem:[#allocation101_spill] sm:$0xff] %v13869_v29  ;;  %2392 = vmatpush1.bf16.msra.mxu0 %v13857_v47  ;;  %2433 = vmatpush1.bf16.msra.mxu1 %v13866_v13  ;;  %v1601_v29 = vld [vmem:[#allocation4 + $0x30] sm:$0xff] }
 0x171   :  { %2393 = vmatprep.subr.bf16.mxu0 %v13860_v43  ;;  %2434 = vmatprep.subr.bf16.mxu1 %v13874_v17  ;;  %v13891_v47 = vcombine.high %v1597_v56, %v1601_v29  ;;  %v1602_v43 = vld [vmem:[#allocation4 + $0x38] sm:$0xff]  ;;  %v13894_v55 = vcombine.low %v1597_v56, %v1601_v29  ;;  %v333_v29 = vadd.f32 %v13542_v10, %v13548_v14 }
 0x172   :  { %v13896_v17 = vcombine.low %v1598_v9, %v1602_v43  ;;  %v13898_v33 = vcombine.high %v1598_v9, %v1602_v43  ;;  %v335_v9 = vadd.f32 %v13550_v15, %v13561_v20  ;;  %v440_v10 = vadd.f32 %v13712_v11, %v13534_v3 }
 0x173   :  { %16378 = vst [vmem:[#allocation105_spill] sm:$0xff] %v13891_v47  ;;  %v442_v14 = vadd.f32 %v13720_v61, %v13540_v22  ;;  %v513_v3 = vadd.f32 %v13871_v26, %v13730_v46  ;;  %v515_v61 = vadd.f32 %v13876_v57, %v13740_v27 }
 0x174   :  { %2394 = vmatpush1.bf16.msra.mxu0 %v13879_v52  ;;  %v1383_v42 = vpop.f32.mrb[24].mxu0  ;;  %2435 = vmatpush1.bf16.msra.mxu1 %v13883_v31  ;;  %16379 = vst [vmem:[#allocation106_spill] sm:$0xff] %v13898_v33 }
 0x175   :  { %v1520_v13 = vadd.f32 %v1383_v42, %v260_v49  ;;  %v1385_v28 = vpop.f32.mrb[25].mxu0  ;;  %2445 = vmatprep.subr.bf16.mxu0 %v13891_v47  ;;  %2486 = vmatprep.subr.bf16.mxu1 %v13898_v33 }
 0x176   :  { %v1521_v36 = vadd.f32 %v1385_v28, %v262_v8  ;;  %v1387_v52 = vpop.f32.mrb[26].mxu0 }
 0x177   :  { %v1388_v63 = vpop.f32.mrb[27].mxu0  ;;  %v11249_v38 = vmul.f32 -1.442695, %v1520_v13 }
 0x178   :  { %v11250_v34 = vmul.f32 -1.442695, %v1521_v36 }
 0x17a   :  { %12690 = vpow2.f32 %v11250_v34 }
 0x17b   :  { %12692 = vpow2.f32 %v11249_v38 }
 0x184   :  { %v12691_v49 = vpop.eup %12690 }
 0x185   :  { %v12693_v42 = vpop.eup %12692  ;;  %v1545_v31 = vadd.f32 1.0, %v12691_v49 }
 0x186   :  { %v1544_v56 = vadd.f32 1.0, %v12693_v42 }
 0x187   :  { %12694 = vrcp.f32 %v1545_v31 }
 0x188   :  { %12696 = vrcp.f32 %v1544_v56 }
 0x191   :  { %v12695_v36 = vpop.eup %12694 }
 0x192   :  { %v12697_v34 = vpop.eup %12696  ;;  %v1554_v49 = vmul.f32 0.0, %v12695_v36 }
 0x194   :  { %v1424_v43 = vpop.f32.mrb[40].mxu1 }
 0x195   :  { %v1522_v52 = vadd.f32 %v1424_v43, %v333_v29  ;;  %v1426_v8 = vpop.f32.mrb[41].mxu1 }
 0x196   :  { %v1523_v63 = vadd.f32 %v1426_v8, %v335_v9  ;;  %v1428_v28 = vpop.f32.mrb[42].mxu1 }
 0x197   :  { %v1429_v13 = vpop.f32.mrb[43].mxu1  ;;  %v11251_v8 = vmul.f32 -1.442695, %v1522_v52 }
 0x198   :  { %12698 = vtanh.f32 %v1523_v63 }
 0x1a2   :  { %v12699_v38 = vpop.eup %12698 }
 0x1a3   :  { %v1555_v33 = vmul.f32 %v12699_v38, %v12697_v34 }
 0x1a5   :  { %v13906_v47 = vadd.f32 %v1555_v33, %v1554_v49 }
 0x1b4   :  { %v1465_v15 = vpop.f32.mrb[28].mxu0 }
 0x1b5   :  { %v1531_v20 = vadd.f32 %v1465_v15, %v440_v10  ;;  %v1467_v31 = vpop.f32.mrb[29].mxu0 }
 0x1b6   :  { %v1532_v42 = vadd.f32 %v1467_v31, %v442_v14  ;;  %v1469_v29 = vpop.f32.mrb[30].mxu0 }
 0x1b7   :  { %v1470_v56 = vpop.f32.mrb[31].mxu0  ;;  %v11252_v43 = vmul.f32 -1.442695, %v1531_v20 }
 0x1b8   :  { %v11253_v9 = vmul.f32 -1.442695, %v1532_v42 }
 0x1ba   :  { %12700 = vpow2.f32 %v11253_v9 }
 0x1bb   :  { %12702 = vpow2.f32 %v11252_v43 }
 0x1bc   :  { %12704 = vpow2.f32 %v11251_v8 }
 0x1c4   :  { %v12701_v63 = vpop.eup %12700 }
 0x1c5   :  { %v12703_v33 = vpop.eup %12702  ;;  %v1569_v28 = vadd.f32 1.0, %v12701_v63 }
 0x1c6   :  { %v1568_v11 = vadd.f32 1.0, %v12703_v33  ;;  %v12705_v10 = vpop.eup %12704  ;;  %v1605_v33 = vld [vmem:[#allocation4 + $0x50] sm:$0xff] }
 0x1c7   :  { %12706 = vrcp.f32 %v1569_v28  ;;  %v1546_v14 = vadd.f32 1.0, %v12705_v10  ;;  %v1609_v28 = vld [vmem:[#allocation4 + $0x70] sm:$0xff] }
 0x1c8   :  { %12708 = vrcp.f32 %v1568_v11  ;;  %v1610_v11 = vld [vmem:[#allocation4 + $0x78] sm:$0xff]  ;;  %v13938_v10 = vcombine.low %v1605_v33, %v1609_v28 }
 0x1d1   :  { %v12707_v15 = vpop.eup %12706 }
 0x1d2   :  { %v12709_v20 = vpop.eup %12708  ;;  %v1578_v31 = vmul.f32 0.0, %v12707_v15 }
 0x1d4   :  { %v1506_v22 = vpop.f32.mrb[44].mxu1 }
 0x1d5   :  { %v1533_v13 = vadd.f32 %v1506_v22, %v513_v3  ;;  %v1508_v36 = vpop.f32.mrb[45].mxu1  ;;  %v1606_v3 = vld [vmem:[#allocation4 + $0x58] sm:$0xff] }
 0x1d6   :  { %v1534_v34 = vadd.f32 %v1508_v36, %v515_v61  ;;  %v1510_v38 = vpop.f32.mrb[46].mxu1  ;;  %v13930_v36 = vcombine.high %v1605_v33, %v1609_v28  ;;  %v1633_v33 = vld [vmem:[#allocation4 + $0x130] sm:$0xff]  ;;  %v1630_v28 = vld [vmem:[#allocation4 + $0x118] sm:$0xff] }
 0x1d7   :  { %v11254_v49 = vmul.f32 -1.442695, %v1533_v13  ;;  %v1511_v52 = vpop.f32.mrb[47].mxu1  ;;  %v1613_v13 = vld [vmem:[#allocation4 + $0x90] sm:$0xff] }
 0x1d8   :  { %12710 = vtanh.f32 %v1534_v34  ;;  %v13932_v34 = vcombine.high %v1606_v3, %v1610_v11  ;;  %v1617_v38 = vld [vmem:[#allocation4 + $0xb0] sm:$0xff]  ;;  %v1618_v52 = vld [vmem:[#allocation4 + $0xb8] sm:$0xff] }
 0x1d9   :  { %12712 = vpow2.f32 %v11254_v49  ;;  %v1614_v49 = vld [vmem:[#allocation4 + $0x98] sm:$0xff]  ;;  %v13942_v15 = vcombine.high %v1613_v13, %v1617_v38 }
 0x1da   :  { %12714 = vrcp.f32 %v1546_v14  ;;  %v13940_v14 = vcombine.low %v1606_v3, %v1610_v11  ;;  %v1634_v3 = vld [vmem:[#allocation4 + $0x138] sm:$0xff] }
 0x1db   :  { %12716 = vtanh.f32 %v13906_v47  ;;  %16380 = vst [vmem:[#allocation107_spill] sm:$0xff] %v13942_v15 }
 0x1e2   :  { %v12711_v46 = vpop.eup %12710 }
 0x1e3   :  { %v12713_v26 = vpop.eup %12712  ;;  %v1579_v27 = vmul.f32 %v12711_v46, %v12709_v20  ;;  %v13944_v20 = vcombine.high %v1614_v49, %v1618_v52  ;;  %v1621_v46 = vld [vmem:[#allocation4 + $0xd0] sm:$0xff] }
 0x1e4   :  { %v1570_v57 = vadd.f32 1.0, %v12713_v26  ;;  %v12715_v29 = vpop.eup %12714  ;;  %v1625_v26 = vld [vmem:[#allocation4 + $0xf0] sm:$0xff] }
 0x1e5   :  { %v13917_v42 = vadd.f32 %v1579_v27, %v1578_v31  ;;  %v12717_v56 = vpop.eup %12716  ;;  %16381 = vst [vmem:[#allocation108_spill] sm:$0xff] %v13944_v20  ;;  %v1622_v31 = vld [vmem:[#allocation4 + $0xd8] sm:$0xff]  ;;  %v13962_v11 = vcombine.low %v1621_v46, %v1625_v26 }
 0x1e6   :  { %12718 = vrcp.f32 %v1570_v57  ;;  %v13920_v8 = vmul.f32 %v12717_v56, %v12715_v29  ;;  %v1626_v27 = vld [vmem:[#allocation4 + $0xf8] sm:$0xff]  ;;  %v13950_v57 = vcombine.low %v1613_v13, %v1617_v38  ;;  %v13952_v29 = vcombine.low %v1614_v49, %v1618_v52  ;;  %v1637_v49 = vld [vmem:[#allocation4 + $0x150] sm:$0xff] }
 0x1e7   :  { %12720 = vtanh.f32 %v13917_v42  ;;  %v13956_v56 = vcombine.high %v1621_v46, %v1625_v26  ;;  %16386 = vst [vmem:[#allocation113_spill] sm:$0xff] %v13962_v11  ;;  %v13970_v38 = vcombine.high %v1630_v28, %v1634_v3  ;;  %v1641_v52 = vld [vmem:[#allocation4 + $0x170] sm:$0xff]  ;;  %v13976_v26 = vcombine.low %v1630_v28, %v1634_v3 }
 0x1e8   :  { %v13928_v22 = vpack.c.bf16 %v13920_v8, %v13920_v8  ;;  %16382 = vst [vmem:[#allocation109_spill] sm:$0xff] %v13950_v57  ;;  %16383 = vst [vmem:[#allocation110_spill] sm:$0xff] %v13952_v29 }
 0x1e9   :  { %16384 = vst [vmem:[#allocation111_spill] sm:$0xff] %v13956_v56  ;;  %16389 = vst [vmem:[#allocation116_spill] sm:$0xff] %v13970_v38 }
 0x1ea   :  { %16391 = vst [vmem:[#allocation118_spill] sm:$0xff] %v13976_v26 }
 0x1f0   :  { %v12719_v9 = vpop.eup %12718 }
 0x1f1   :  { %v12721_v43 = vpop.eup %12720 }
 0x1f2   :  { %v13922_v63 = vmul.f32 %v12721_v43, %v12719_v9  ;;  %v13958_v9 = vcombine.high %v1622_v31, %v1626_v27  ;;  %v1629_v43 = vld [vmem:[#allocation4 + $0x110] sm:$0xff] }
 0x1f3   :  { %v13968_v13 = vcombine.high %v1629_v43, %v1633_v33  ;;  %v13974_v46 = vcombine.low %v1629_v43, %v1633_v33  ;;  %v13986_v43 = vcombine.low %v1637_v49, %v1641_v52 }
 0x1f4   :  { %v1594_v61 = vpack.c.bf16 %v13922_v63, %v13922_v63  ;;  %16385 = vst [vmem:[#allocation112_spill] sm:$0xff] %v13958_v9 }
 0x1f5   :  { %16388 = vst [vmem:[#allocation115_spill] sm:$0xff] %v13968_v13  ;;  %16390 = vst [vmem:[#allocation117_spill] sm:$0xff] %v13974_v46 }
 0x1f6   :  { %2395 = vmatprep.mubr.bf16.mxu0 %v1594_v61  ;;  %2436 = vmatprep.mubr.bf16.mxu1 %v1594_v61  ;;  %16394 = vst [vmem:[#allocation121_spill] sm:$0xff] %v13986_v43 }
 0x1f7   :  { %2396 = vmatmul.mubr.bf16.vlgmr.msra.gmra.mrb[32].mxu0 %v13928_v22  ;;  %2437 = vmatmul.mubr.bf16.vlgmr.msra.gmra.mrb[48].mxu1 %v13928_v22 }
 0x1f8   :  { %2446 = vmatpush1.bf16.msra.mxu0 %v13894_v55  ;;  %2487 = vmatpush1.bf16.msra.mxu1 %v13896_v17 }
 0x1f9   :  { %2477 = vmatprep.mubr.bf16.mxu0 %v1594_v61  ;;  %2518 = vmatprep.mubr.bf16.mxu1 %v1594_v61  ;;  %v13964_v61 = vcombine.low %v1622_v31, %v1626_v27  ;;  %v13980_v31 = vcombine.high %v1637_v49, %v1641_v52 }
 0x1fa   :  { %2447 = vmatprep.subr.bf16.mxu0 %v13930_v36  ;;  %2488 = vmatprep.subr.bf16.mxu1 %v13932_v34 }
 0x1fb   :  { %16387 = vst [vmem:[#allocation114_spill] sm:$0xff] %v13964_v61  ;;  %16392 = vst [vmem:[#allocation119_spill] sm:$0xff] %v13980_v31 }
 0x1fc   :  { %2448 = vmatpush1.bf16.msra.mxu0 %v13938_v10  ;;  %2489 = vmatpush1.bf16.msra.mxu1 %v13940_v14 }
 0x1fd   :  { %2449 = vmatprep.subr.bf16.mxu0 %v13942_v15  ;;  %2490 = vmatprep.subr.bf16.mxu1 %v13944_v20  ;;  %v1638_v20 = vld [vmem:[#allocation4 + $0x158] sm:$0xff] }
 0x1fe   :  { %v1642_v15 = vld [vmem:[#allocation4 + $0x178] sm:$0xff] }
 0x1ff   :  { %v13982_v27 = vcombine.high %v1638_v20, %v1642_v15  ;;  %v13988_v33 = vcombine.low %v1638_v20, %v1642_v15 }
 0x200   :  { %2450 = vmatpush1.bf16.msra.mxu0 %v13950_v57  ;;  %2491 = vmatpush1.bf16.msra.mxu1 %v13952_v29  ;;  %v1646_v29 = vld [vmem:[#allocation4 + $0x198] sm:$0xff] }
 0x201   :  { %2451 = vmatprep.subr.bf16.mxu0 %v13956_v56  ;;  %2492 = vmatprep.subr.bf16.mxu1 %v13958_v9  ;;  %16393 = vst [vmem:[#allocation120_spill] sm:$0xff] %v13982_v27  ;;  %v1645_v9 = vld [vmem:[#allocation4 + $0x190] sm:$0xff]  ;;  %v1650_v57 = vld [vmem:[#allocation4 + $0x1b8] sm:$0xff]  ;;  %16395 = vst [vmem:[#allocation122_spill] sm:$0xff] %v13988_v33 }
 0x202   :  { %v1649_v56 = vld [vmem:[#allocation4 + $0x1b0] sm:$0xff]  ;;  %v13994_v3 = vcombine.high %v1646_v29, %v1650_v57  ;;  %v14000_v15 = vcombine.low %v1646_v29, %v1650_v57 }
 0x203   :  { %v13992_v28 = vcombine.high %v1645_v9, %v1649_v56  ;;  %v13998_v49 = vcombine.low %v1645_v9, %v1649_v56 }
 0x204   :  { %2452 = vmatpush1.bf16.msra.mxu0 %v13962_v11  ;;  %2493 = vmatpush1.bf16.msra.mxu1 %v13964_v61  ;;  %16397 = vst [vmem:[#allocation124_spill] sm:$0xff] %v13994_v3  ;;  %v1654_v61 = vld [vmem:[#allocation4 + $0x1d8] sm:$0xff]  ;;  %16399 = vst [vmem:[#allocation126_spill] sm:$0xff] %v14000_v15 }
 0x205   :  { %2453 = vmatprep.subr.bf16.mxu0 %v13968_v13  ;;  %2494 = vmatprep.subr.bf16.mxu1 %v13970_v38  ;;  %16396 = vst [vmem:[#allocation123_spill] sm:$0xff] %v13992_v28  ;;  %v1653_v38 = vld [vmem:[#allocation4 + $0x1d0] sm:$0xff]  ;;  %v1658_v11 = vld [vmem:[#allocation4 + $0x1f8] sm:$0xff]  ;;  %16398 = vst [vmem:[#allocation125_spill] sm:$0xff] %v13998_v49 }
 0x206   :  { %v1657_v13 = vld [vmem:[#allocation4 + $0x1f0] sm:$0xff]  ;;  %v14006_v52 = vcombine.high %v1654_v61, %v1658_v11  ;;  %v14012_v57 = vcombine.low %v1654_v61, %v1658_v11 }
 0x207   :  { %v14004_v20 = vcombine.high %v1653_v38, %v1657_v13  ;;  %v14010_v56 = vcombine.low %v1653_v38, %v1657_v13 }
 0x208   :  { %2454 = vmatpush1.bf16.msra.mxu0 %v13974_v46  ;;  %2495 = vmatpush1.bf16.msra.mxu1 %v13976_v26  ;;  %16401 = vst [vmem:[#allocation128_spill] sm:$0xff] %v14006_v52  ;;  %v1662_v26 = vld [vmem:[#allocation4 + $0x218] sm:$0xff]  ;;  %16403 = vst [vmem:[#allocation130_spill] sm:$0xff] %v14012_v57 }
 0x209   :  { %2455 = vmatprep.subr.bf16.mxu0 %v13980_v31  ;;  %2496 = vmatprep.subr.bf16.mxu1 %v13982_v27  ;;  %16400 = vst [vmem:[#allocation127_spill] sm:$0xff] %v14004_v20  ;;  %v1661_v27 = vld [vmem:[#allocation4 + $0x210] sm:$0xff]  ;;  %v1666_v46 = vld [vmem:[#allocation4 + $0x238] sm:$0xff]  ;;  %16402 = vst [vmem:[#allocation129_spill] sm:$0xff] %v14010_v56 }
 0x20a   :  { %v1665_v31 = vld [vmem:[#allocation4 + $0x230] sm:$0xff]  ;;  %v14018_v9 = vcombine.high %v1662_v26, %v1666_v46  ;;  %v14024_v11 = vcombine.low %v1662_v26, %v1666_v46 }
 0x20b   :  { %v14016_v29 = vcombine.high %v1661_v27, %v1665_v31  ;;  %v14022_v13 = vcombine.low %v1661_v27, %v1665_v31 }
 0x20c   :  { %2456 = vmatpush1.bf16.msra.mxu0 %v13986_v43  ;;  %2497 = vmatpush1.bf16.msra.mxu1 %v13988_v33  ;;  %16405 = vst [vmem:[#allocation132_spill] sm:$0xff] %v14018_v9  ;;  %v1670_v33 = vld [vmem:[#allocation4 + $0x258] sm:$0xff]  ;;  %16407 = vst [vmem:[#allocation134_spill] sm:$0xff] %v14024_v11 }
 0x20d   :  { %2457 = vmatprep.subr.bf16.mxu0 %v13992_v28  ;;  %2498 = vmatprep.subr.bf16.mxu1 %v13994_v3  ;;  %16404 = vst [vmem:[#allocation131_spill] sm:$0xff] %v14016_v29  ;;  %v1669_v3 = vld [vmem:[#allocation4 + $0x250] sm:$0xff]  ;;  %v1674_v43 = vld [vmem:[#allocation4 + $0x278] sm:$0xff]  ;;  %16406 = vst [vmem:[#allocation133_spill] sm:$0xff] %v14022_v13 }
 0x20e   :  { %v1673_v28 = vld [vmem:[#allocation4 + $0x270] sm:$0xff]  ;;  %v14030_v38 = vcombine.high %v1670_v33, %v1674_v43  ;;  %v14036_v46 = vcombine.low %v1670_v33, %v1674_v43 }
 0x20f   :  { %v14028_v61 = vcombine.high %v1669_v3, %v1673_v28  ;;  %v14034_v31 = vcombine.low %v1669_v3, %v1673_v28 }
 0x210   :  { %2458 = vmatpush1.bf16.msra.mxu0 %v13998_v49  ;;  %2499 = vmatpush1.bf16.msra.mxu1 %v14000_v15  ;;  %16409 = vst [vmem:[#allocation136_spill] sm:$0xff] %v14030_v38  ;;  %v1678_v15 = vld [vmem:[#allocation4 + $0x298] sm:$0xff]  ;;  %16411 = vst [vmem:[#allocation138_spill] sm:$0xff] %v14036_v46 }
 0x211   :  { %2459 = vmatprep.subr.bf16.mxu0 %v14004_v20  ;;  %2500 = vmatprep.subr.bf16.mxu1 %v14006_v52  ;;  %16408 = vst [vmem:[#allocation135_spill] sm:$0xff] %v14028_v61  ;;  %v1677_v52 = vld [vmem:[#allocation4 + $0x290] sm:$0xff]  ;;  %v1682_v49 = vld [vmem:[#allocation4 + $0x2b8] sm:$0xff]  ;;  %16410 = vst [vmem:[#allocation137_spill] sm:$0xff] %v14034_v31 }
 0x212   :  { %v1681_v20 = vld [vmem:[#allocation4 + $0x2b0] sm:$0xff]  ;;  %v14042_v27 = vcombine.high %v1678_v15, %v1682_v49  ;;  %v14048_v43 = vcombine.low %v1678_v15, %v1682_v49 }
 0x213   :  { %v14040_v26 = vcombine.high %v1677_v52, %v1681_v20  ;;  %v14046_v28 = vcombine.low %v1677_v52, %v1681_v20 }
 0x214   :  { %2460 = vmatpush1.bf16.msra.mxu0 %v14010_v56  ;;  %2501 = vmatpush1.bf16.msra.mxu1 %v14012_v57  ;;  %16413 = vst [vmem:[#allocation140_spill] sm:$0xff] %v14042_v27  ;;  %v1686_v57 = vld [vmem:[#allocation4 + $0x2d8] sm:$0xff]  ;;  %16415 = vst [vmem:[#allocation142_spill] sm:$0xff] %v14048_v43 }
 0x215   :  { %2461 = vmatprep.subr.bf16.mxu0 %v14016_v29  ;;  %2502 = vmatprep.subr.bf16.mxu1 %v14018_v9  ;;  %16412 = vst [vmem:[#allocation139_spill] sm:$0xff] %v14040_v26  ;;  %v1685_v9 = vld [vmem:[#allocation4 + $0x2d0] sm:$0xff]  ;;  %v1690_v56 = vld [vmem:[#allocation4 + $0x2f8] sm:$0xff]  ;;  %16414 = vst [vmem:[#allocation141_spill] sm:$0xff] %v14046_v28 }
 0x216   :  { %v1689_v29 = vld [vmem:[#allocation4 + $0x2f0] sm:$0xff]  ;;  %v14054_v3 = vcombine.high %v1686_v57, %v1690_v56  ;;  %v14060_v49 = vcombine.low %v1686_v57, %v1690_v56 }
 0x217   :  { %v14052_v33 = vcombine.high %v1685_v9, %v1689_v29  ;;  %v14058_v20 = vcombine.low %v1685_v9, %v1689_v29 }
 0x218   :  { %2462 = vmatpush1.bf16.msra.mxu0 %v14022_v13  ;;  %2503 = vmatpush1.bf16.msra.mxu1 %v14024_v11  ;;  %16417 = vst [vmem:[#allocation144_spill] sm:$0xff] %v14054_v3  ;;  %v1694_v11 = vld [vmem:[#allocation4 + $0x318] sm:$0xff]  ;;  %16419 = vst [vmem:[#allocation146_spill] sm:$0xff] %v14060_v49 }
 0x219   :  { %2463 = vmatprep.subr.bf16.mxu0 %v14028_v61  ;;  %2504 = vmatprep.subr.bf16.mxu1 %v14030_v38  ;;  %16416 = vst [vmem:[#allocation143_spill] sm:$0xff] %v14052_v33  ;;  %v1693_v38 = vld [vmem:[#allocation4 + $0x310] sm:$0xff]  ;;  %v1698_v13 = vld [vmem:[#allocation4 + $0x338] sm:$0xff]  ;;  %16418 = vst [vmem:[#allocation145_spill] sm:$0xff] %v14058_v20 }
 0x21a   :  { %v1697_v61 = vld [vmem:[#allocation4 + $0x330] sm:$0xff]  ;;  %v14066_v52 = vcombine.high %v1694_v11, %v1698_v13  ;;  %v14072_v56 = vcombine.low %v1694_v11, %v1698_v13 }
 0x21b   :  { %v14064_v15 = vcombine.high %v1693_v38, %v1697_v61  ;;  %v14070_v29 = vcombine.low %v1693_v38, %v1697_v61 }
 0x21c   :  { %2464 = vmatpush1.bf16.msra.mxu0 %v14034_v31  ;;  %2505 = vmatpush1.bf16.msra.mxu1 %v14036_v46  ;;  %16421 = vst [vmem:[#allocation148_spill] sm:$0xff] %v14066_v52  ;;  %v1702_v46 = vld [vmem:[#allocation4 + $0x358] sm:$0xff] }
 0x21d   :  { %2465 = vmatprep.subr.bf16.mxu0 %v14040_v26  ;;  %2506 = vmatprep.subr.bf16.mxu1 %v14042_v27  ;;  %16420 = vst [vmem:[#allocation147_spill] sm:$0xff] %v14064_v15  ;;  %v1701_v27 = vld [vmem:[#allocation4 + $0x350] sm:$0xff]  ;;  %v1706_v31 = vld [vmem:[#allocation4 + $0x378] sm:$0xff] }
 0x21e   :  { %v1705_v26 = vld [vmem:[#allocation4 + $0x370] sm:$0xff]  ;;  %v14078_v9 = vcombine.high %v1702_v46, %v1706_v31  ;;  %v14084_v13 = vcombine.low %v1702_v46, %v1706_v31 }
 0x21f   :  { %v14076_v57 = vcombine.high %v1701_v27, %v1705_v26  ;;  %v14082_v61 = vcombine.low %v1701_v27, %v1705_v26 }
 0x220   :  { %2466 = vmatpush1.bf16.msra.mxu0 %v14046_v28  ;;  %2507 = vmatpush1.bf16.msra.mxu1 %v14048_v43  ;;  %16422 = vst [vmem:[#allocation149_spill] sm:$0xff] %v14078_v9  ;;  %v1710_v43 = vld [vmem:[#allocation4 + $0x398] sm:$0xff] }
 0x221   :  { %2467 = vmatprep.subr.bf16.mxu0 %v14052_v33  ;;  %2508 = vmatprep.subr.bf16.mxu1 %v14054_v3  ;;  %v1709_v3 = vld [vmem:[#allocation4 + $0x390] sm:$0xff]  ;;  %v1714_v28 = vld [vmem:[#allocation4 + $0x3b8] sm:$0xff]  ;;  %16423 = vst [vmem:[#allocation150_spill] sm:$0xff] %v14082_v61 }
 0x222   :  { %v1713_v33 = vld [vmem:[#allocation4 + $0x3b0] sm:$0xff]  ;;  %v14090_v38 = vcombine.high %v1710_v43, %v1714_v28  ;;  %v14096_v31 = vcombine.low %v1710_v43, %v1714_v28  ;;  %v16457_v43 = vld [vmem:[#allocation19_spill] sm:$0xff] }
 0x223   :  { %v14088_v11 = vcombine.high %v1709_v3, %v1713_v33  ;;  %v14094_v26 = vcombine.low %v1709_v3, %v1713_v33  ;;  %v16458_v3 = vld [vmem:[#allocation34_spill] sm:$0xff] }
 0x224   :  { %2468 = vmatpush1.bf16.msra.mxu0 %v14058_v20  ;;  %2509 = vmatpush1.bf16.msra.mxu1 %v14060_v49  ;;  %v1718_v49 = vld [vmem:[#allocation4 + $0x3d8] sm:$0xff] }
 0x225   :  { %2469 = vmatprep.subr.bf16.mxu0 %v14064_v15  ;;  %2510 = vmatprep.subr.bf16.mxu1 %v14066_v52  ;;  %v1717_v52 = vld [vmem:[#allocation4 + $0x3d0] sm:$0xff]  ;;  %v1722_v20 = vld [vmem:[#allocation4 + $0x3f8] sm:$0xff] }
 0x226   :  { %v1721_v15 = vld [vmem:[#allocation4 + $0x3f0] sm:$0xff]  ;;  %v14102_v27 = vcombine.high %v1718_v49, %v1722_v20 }
 0x227   :  { %v14100_v46 = vcombine.high %v1717_v52, %v1721_v15 }
 0x228   :  { %2470 = vmatpush1.bf16.msra.mxu0 %v14070_v29  ;;  %2511 = vmatpush1.bf16.msra.mxu1 %v14072_v56 }
 0x229   :  { %2471 = vmatprep.subr.bf16.mxu0 %v14076_v57  ;;  %2512 = vmatprep.subr.bf16.mxu1 %v14078_v9  ;;  %v14106_v9 = vcombine.low %v1717_v52, %v1721_v15  ;;  %v16459_v52 = vld [vmem:[#allocation21_spill] sm:$0xff] }
 0x22c   :  { %2472 = vmatpush1.bf16.msra.mxu0 %v14082_v61  ;;  %2513 = vmatpush1.bf16.msra.mxu1 %v14084_v13  ;;  %v14108_v61 = vcombine.low %v1718_v49, %v1722_v20 }
 0x22d   :  { %2473 = vmatprep.subr.bf16.mxu0 %v14088_v11  ;;  %2514 = vmatprep.subr.bf16.mxu1 %v14090_v38 }
 0x230   :  { %2474 = vmatpush1.bf16.msra.mxu0 %v14094_v26  ;;  %2515 = vmatpush1.bf16.msra.mxu1 %v14096_v31 }
 0x231   :  { %2475 = vmatprep.subr.bf16.mxu0 %v14100_v46  ;;  %2516 = vmatprep.subr.bf16.mxu1 %v14102_v27 }
 0x234   :  { %2476 = vmatpush1.bf16.msra.mxu0 %v14106_v9  ;;  %2517 = vmatpush1.bf16.msra.mxu1 %v14108_v61 }
 0x235   :  { %3377 = vmatprep.subr.bf16.mxu0 %v13544_v12  ;;  %3418 = vmatprep.subr.bf16.mxu1 %v13567_v25  ;;  %v16426_v12 = vld [vmem:[#allocation65_spill] sm:$0xff]  ;;  %v16431_v25 = vld [vmem:[#allocation70_spill] sm:$0xff] }
 0x237   :  { %2478 = vmatmul.mubr.bf16.vlgmr.msra.gmra.mrb[36].mxu0 %v13928_v22  ;;  %2519 = vmatmul.mubr.bf16.vlgmr.msra.gmra.mrb[52].mxu1 %v13928_v22  ;;  %v16455_v22 = vld [vmem:[#allocation105_spill] sm:$0xff] }
 0x238   :  { %3378 = vmatpush1.bf16.msra.mxu0 %v13555_v18  ;;  %3419 = vmatpush1.bf16.msra.mxu1 %v13557_v19  ;;  %v16428_v18 = vld [vmem:[#allocation64_spill] sm:$0xff]  ;;  %v16429_v19 = vld [vmem:[#allocation69_spill] sm:$0xff] }
 0x239   :  { %3379 = vmatprep.subr.bf16.mxu0 %v13583_v48  ;;  %3420 = vmatprep.subr.bf16.mxu1 %v13590_v53  ;;  %v16434_v48 = vld [vmem:[#allocation77_spill] sm:$0xff] }
 0x23a   :  { %v16437_v53 = vld [vmem:[#allocation81_spill] sm:$0xff] }
 0x23c   :  { %3380 = vmatpush1.bf16.msra.mxu0 %v13586_v51  ;;  %3421 = vmatpush1.bf16.msra.mxu1 %v13588_v6  ;;  %v16435_v51 = vld [vmem:[#allocation75_spill] sm:$0xff]  ;;  %v16436_v6 = vld [vmem:[#allocation76_spill] sm:$0xff] }
 0x23d   :  { %3381 = vmatprep.subr.bf16.mxu0 %v13595_v7  ;;  %3422 = vmatprep.subr.bf16.mxu1 %v13615_v41  ;;  %v16438_v7 = vld [vmem:[#allocation84_spill] sm:$0xff]  ;;  %v16442_v41 = vld [vmem:[#allocation89_spill] sm:$0xff] }
 0x240   :  { %3382 = vmatpush1.bf16.msra.mxu0 %v13604_v5  ;;  %3423 = vmatpush1.bf16.msra.mxu1 %v13606_v24  ;;  %v16439_v5 = vld [vmem:[#allocation82_spill] sm:$0xff]  ;;  %v16440_v24 = vld [vmem:[#allocation83_spill] sm:$0xff] }
 0x241   :  { %3383 = vmatprep.subr.bf16.mxu0 %v13631_v58  ;;  %3424 = vmatprep.subr.bf16.mxu1 %v13638_v32  ;;  %v16424_v32 = vld [vmem:[#allocation60_spill] sm:$0xff]  ;;  %v16443_v58 = vld [vmem:[#allocation87_spill] sm:$0xff] }
 0x244   :  { %3384 = vmatpush1.bf16.msra.mxu0 %v13634_v35  ;;  %3425 = vmatpush1.bf16.msra.mxu1 %v13636_v40  ;;  %v16444_v35 = vld [vmem:[#allocation88_spill] sm:$0xff]  ;;  %v16445_v40 = vld [vmem:[#allocation93_spill] sm:$0xff] }
 0x245   :  { %3385 = vmatprep.subr.bf16.mxu0 %v13643_v16  ;;  %3426 = vmatprep.subr.bf16.mxu1 %v13663_v21  ;;  %v16427_v16 = vld [vmem:[#allocation63_spill] sm:$0xff]  ;;  %v16441_v21 = vld [vmem:[#allocation85_spill] sm:$0xff] }
 0x248   :  { %3386 = vmatpush1.bf16.msra.mxu0 %v13652_v59  ;;  %3427 = vmatpush1.bf16.msra.mxu1 %v13654_v45  ;;  %v16425_v59 = vld [vmem:[#allocation61_spill] sm:$0xff] }
 0x249   :  { %3387 = vmatprep.subr.bf16.mxu0 %v13679_v54  ;;  %3428 = vmatprep.subr.bf16.mxu1 %v13686_v23  ;;  %v16433_v45 = vld [vmem:[#allocation73_spill] sm:$0xff]  ;;  %v16448_v23 = vld [vmem:[#allocation96_spill] sm:$0xff] }
 0x24a   :  { %v16450_v54 = vld [vmem:[#allocation100_spill] sm:$0xff] }
 0x24c   :  { %3388 = vmatpush1.bf16.msra.mxu0 %v13682_v2  ;;  %3429 = vmatpush1.bf16.msra.mxu1 %v13684_v30  ;;  %v16451_v2 = vld [vmem:[#allocation98_spill] sm:$0xff] }
 0x24d   :  { %3389 = vmatprep.subr.bf16.mxu0 %v13692_v62  ;;  %3430 = vmatprep.subr.bf16.mxu1 %v13715_v39  ;;  %v16446_v62 = vld [vmem:[#allocation94_spill] sm:$0xff]  ;;  %v16453_v39 = vld [vmem:[#allocation103_spill] sm:$0xff] }
 0x24e   :  { %v16452_v30 = vld [vmem:[#allocation102_spill] sm:$0xff] }
 0x250   :  { %3390 = vmatpush1.bf16.msra.mxu0 %v13701_v50  ;;  %3431 = vmatpush1.bf16.msra.mxu1 %v13703_v0  ;;  %v16430_v50 = vld [vmem:[#allocation72_spill] sm:$0xff]  ;;  %v16447_v0 = vld [vmem:[#allocation95_spill] sm:$0xff] }
 0x251   :  { %3391 = vmatprep.subr.bf16.mxu0 %v13727_v4  ;;  %3432 = vmatprep.subr.bf16.mxu1 %v13737_v60  ;;  %v16432_v4 = vld [vmem:[#allocation71_spill] sm:$0xff]  ;;  %v16449_v60 = vld [vmem:[#allocation97_spill] sm:$0xff] }
 0x254   :  { %3392 = vmatpush1.bf16.msra.mxu0 %v13733_v1  ;;  %3433 = vmatpush1.bf16.msra.mxu1 %v16424_v32  ;;  %v16454_v1 = vld [vmem:[#allocation104_spill] sm:$0xff] }
 0x255   :  { %3393 = vmatprep.subr.bf16.mxu0 %v16425_v59  ;;  %3434 = vmatprep.subr.bf16.mxu1 %v16426_v12  ;;  %v16460_v59 = vld [vmem:[#allocation36_spill] sm:$0xff] }
 0x258   :  { %3394 = vmatpush1.bf16.msra.mxu0 %v16427_v16  ;;  %3435 = vmatpush1.bf16.msra.mxu1 %v16428_v18 }
 0x259   :  { %3395 = vmatprep.subr.bf16.mxu0 %v16429_v19  ;;  %3436 = vmatprep.subr.bf16.mxu1 %v16430_v50 }
 0x25c   :  { %3396 = vmatpush1.bf16.msra.mxu0 %v16431_v25  ;;  %3437 = vmatpush1.bf16.msra.mxu1 %v16432_v4 }
 0x25d   :  { %3397 = vmatprep.subr.bf16.mxu0 %v16433_v45  ;;  %3438 = vmatprep.subr.bf16.mxu1 %v16434_v48 }
 0x260   :  { %3398 = vmatpush1.bf16.msra.mxu0 %v16435_v51  ;;  %3439 = vmatpush1.bf16.msra.mxu1 %v16436_v6 }
 0x261   :  { %3399 = vmatprep.subr.bf16.mxu0 %v16437_v53  ;;  %3440 = vmatprep.subr.bf16.mxu1 %v16438_v7 }
 0x264   :  { %3400 = vmatpush1.bf16.msra.mxu0 %v16439_v5  ;;  %3441 = vmatpush1.bf16.msra.mxu1 %v16440_v24 }
 0x265   :  { %3401 = vmatprep.subr.bf16.mxu0 %v16441_v21  ;;  %3442 = vmatprep.subr.bf16.mxu1 %v16442_v41 }
 0x268   :  { %3402 = vmatpush1.bf16.msra.mxu0 %v16443_v58  ;;  %3443 = vmatpush1.bf16.msra.mxu1 %v16444_v35 }
 0x269   :  { %3403 = vmatprep.subr.bf16.mxu0 %v16445_v40  ;;  %3444 = vmatprep.subr.bf16.mxu1 %v16446_v62 }
 0x26c   :  { %3404 = vmatpush1.bf16.msra.mxu0 %v13841_v44  ;;  %3445 = vmatpush1.bf16.msra.mxu1 %v13846_v37  ;;  %v16456_v44 = vld [vmem:[#allocation106_spill] sm:$0xff] }
 0x26d   :  { %3405 = vmatprep.subr.bf16.mxu0 %v16447_v0  ;;  %3446 = vmatprep.subr.bf16.mxu1 %v16448_v23 }
 0x270   :  { %3406 = vmatpush1.bf16.msra.mxu0 %v16449_v60  ;;  %3447 = vmatpush1.bf16.msra.mxu1 %v16450_v54  ;;  %v1583_v60 = vmax.f32 %v13920_v8, 0.0 }
 0x271   :  { %3407 = vmatprep.subr.bf16.mxu0 %v16451_v2  ;;  %3448 = vmatprep.subr.bf16.mxu1 %v16452_v30 }
 0x274   :  { %3408 = vmatpush1.bf16.msra.mxu0 %v16453_v39  ;;  %3449 = vmatpush1.bf16.msra.mxu1 %v16454_v1  ;;  %v16462_v1 = vld [vmem:[#allocation55_spill] sm:$0xff] }
 0x275   :  { %3459 = vmatprep.subr.bf16.mxu0 %v16455_v22  ;;  %3500 = vmatprep.subr.bf16.mxu1 %v16456_v44  ;;  %v16463_v44 = vld [vmem:[#allocation99_spill] sm:$0xff] }
 0x2ca   :  { %v2397_v37 = vpop.f32.mrb[32].mxu0  ;;  %v2438_v28 = vpop.f32.mrb[48].mxu1 }
 0x2cb   :  { %v2534_v33 = vadd.f32 %v2397_v37, %v16457_v43  ;;  %v2536_v20 = vadd.f32 %v2438_v28, %v16458_v3  ;;  %v2399_v49 = vpop.f32.mrb[33].mxu0  ;;  %v2440_v15 = vpop.f32.mrb[49].mxu1  ;;  %v16464_v43 = vld [vmem:[#allocation57_spill] sm:$0xff] }
 0x2cc   :  { %v2535_v32 = vadd.f32 %v2399_v49, %v16459_v52  ;;  %v2537_v12 = vadd.f32 %v2440_v15, %v16460_v59  ;;  %v2401_v16 = vpop.f32.mrb[34].mxu0  ;;  %v2442_v18 = vpop.f32.mrb[50].mxu1  ;;  %v16465_v3 = vld [vmem:[#allocation101_spill] sm:$0xff] }
 0x2cd   :  { %v11383_v19 = vmul.f32 -1.442695, %v2534_v33  ;;  %v2402_v50 = vpop.f32.mrb[35].mxu0  ;;  %v2443_v25 = vpop.f32.mrb[51].mxu1  ;;  %v11385_v45 = vmul.f32 -1.442695, %v2536_v20 }
 0x2ce   :  { %v11384_v4 = vmul.f32 -1.442695, %v2535_v32 }
 0x2cf   :  { %12722 = vpow2.f32 %v11383_v19 }
 0x2d0   :  { %12724 = vpow2.f32 %v11384_v4 }
 0x2d1   :  { %12726 = vtanh.f32 %v2537_v12 }
 0x2d2   :  { %12728 = vpow2.f32 %v11385_v45 }
 0x2d9   :  { %v12723_v48 = vpop.eup %12722 }
 0x2da   :  { %v2558_v51 = vadd.f32 1.0, %v12723_v48  ;;  %v12725_v6 = vpop.eup %12724 }
 0x2db   :  { %v2559_v53 = vadd.f32 1.0, %v12725_v6  ;;  %v12727_v7 = vpop.eup %12726 }
 0x2dc   :  { %12730 = vrcp.f32 %v2558_v51  ;;  %v12729_v5 = vpop.eup %12728 }
 0x2dd   :  { %12732 = vrcp.f32 %v2559_v53  ;;  %v2560_v58 = vadd.f32 1.0, %v12729_v5 }
 0x2df   :  { %12734 = vrcp.f32 %v2560_v58  ;;  %v1588_v58 = vmax.f32 %v13922_v63, 0.0  ;;  %v16468_v63 = vld [vmem:[#allocation108_spill] sm:$0xff] }
 0x2e6   :  { %v12731_v24 = vpop.eup %12730 }
 0x2e7   :  { %v2569_v21 = vmul.f32 %v12731_v24, %v12727_v7  ;;  %v12733_v41 = vpop.eup %12732 }
 0x2e8   :  { %v2568_v35 = vmul.f32 %v12733_v41, %v13906_v47 }
 0x2e9   :  { %v12735_v62 = vpop.eup %12734 }
 0x2ea   :  { %v14187_v40 = vadd.f32 %v2569_v21, %v2568_v35 }
 0x2ec   :  { %12736 = vtanh.f32 %v14187_v40 }
 0x2f6   :  { %v12737_v0 = vpop.eup %12736 }
 0x2f7   :  { %v2572_v23 = vmul.f32 %v12737_v0, %v12735_v62 }
 0x2f9   :  { %v2597_v54 = vmax.f32 %v2572_v23, 0.0  ;;  %v14202_v62 = vpack.c.bf16 %v2572_v23, %v2572_v23  ;;  %v16469_v23 = vld [vmem:[#allocation109_spill] sm:$0xff] }
 0x2fb   :  { %v14191_v2 = vpack.c.bf16 %v2597_v54, %v1583_v60  ;;  %v16470_v60 = vld [vmem:[#allocation110_spill] sm:$0xff]  ;;  %v16473_v54 = vld [vmem:[#allocation113_spill] sm:$0xff] }
 0x2fd   :  { %16461 = vst [vmem:[#allocation60_spill] sm:$0xff] %v14191_v2  ;;  %v3739_v2 = vld [vmem:[#allocation4 + $0x3a0] sm:$0xff] }
 0x30a   :  { %v2479_v30 = vpop.f32.mrb[36].mxu0  ;;  %v2520_v39 = vpop.f32.mrb[52].mxu1 }
 0x30b   :  { %v2545_v22 = vadd.f32 %v2479_v30, %v16462_v1  ;;  %v2547_v37 = vadd.f32 %v2520_v39, %v16463_v44  ;;  %v2481_v47 = vpop.f32.mrb[37].mxu0  ;;  %v2522_v28 = vpop.f32.mrb[53].mxu1  ;;  %v16478_v30 = vld [vmem:[#allocation118_spill] sm:$0xff]  ;;  %v16479_v39 = vld [vmem:[#allocation119_spill] sm:$0xff]  ;;  %v16480_v1 = vld [vmem:[#allocation120_spill] sm:$0xff] }
 0x30c   :  { %v2546_v33 = vadd.f32 %v2481_v47, %v16464_v43  ;;  %v2548_v20 = vadd.f32 %v2522_v28, %v16465_v3  ;;  %v2483_v49 = vpop.f32.mrb[38].mxu0  ;;  %v2524_v15 = vpop.f32.mrb[54].mxu1  ;;  %v16482_v44 = vld [vmem:[#allocation122_spill] sm:$0xff]  ;;  %v16484_v47 = vld [vmem:[#allocation124_spill] sm:$0xff]  ;;  %v16485_v28 = vld [vmem:[#allocation125_spill] sm:$0xff] }
 0x30d   :  { %v11386_v52 = vmul.f32 -1.442695, %v2545_v22  ;;  %v2484_v32 = vpop.f32.mrb[39].mxu0  ;;  %v2525_v8 = vpop.f32.mrb[55].mxu1  ;;  %v11388_v12 = vmul.f32 -1.442695, %v2547_v37 }
 0x30e   :  { %v11387_v59 = vmul.f32 -1.442695, %v2546_v33  ;;  %v16481_v22 = vld [vmem:[#allocation121_spill] sm:$0xff]  ;;  %v16483_v37 = vld [vmem:[#allocation123_spill] sm:$0xff]  ;;  %v16486_v43 = vld [vmem:[#allocation126_spill] sm:$0xff] }
 0x30f   :  { %12738 = vpow2.f32 %v11386_v52  ;;  %v16487_v33 = vld [vmem:[#allocation127_spill] sm:$0xff]  ;;  %v16488_v3 = vld [vmem:[#allocation128_spill] sm:$0xff]  ;;  %v16490_v49 = vld [vmem:[#allocation130_spill] sm:$0xff] }
 0x310   :  { %12740 = vpow2.f32 %v11387_v59  ;;  %v16491_v15 = vld [vmem:[#allocation131_spill] sm:$0xff]  ;;  %v16492_v52 = vld [vmem:[#allocation132_spill] sm:$0xff]  ;;  %v16493_v32 = vld [vmem:[#allocation133_spill] sm:$0xff] }
 0x311   :  { %12742 = vtanh.f32 %v2548_v20  ;;  %v16489_v20 = vld [vmem:[#allocation129_spill] sm:$0xff]  ;;  %v16494_v8 = vld [vmem:[#allocation134_spill] sm:$0xff]  ;;  %v16495_v59 = vld [vmem:[#allocation135_spill] sm:$0xff] }
 0x312   :  { %12744 = vpow2.f32 %v11388_v12  ;;  %v16496_v12 = vld [vmem:[#allocation136_spill] sm:$0xff] }
 0x319   :  { %v12739_v16 = vpop.eup %12738 }
 0x31a   :  { %v2582_v18 = vadd.f32 1.0, %v12739_v16  ;;  %v12741_v19 = vpop.eup %12740  ;;  %v16497_v16 = vld [vmem:[#allocation137_spill] sm:$0xff] }
 0x31b   :  { %v2583_v50 = vadd.f32 1.0, %v12741_v19  ;;  %v12743_v25 = vpop.eup %12742  ;;  %v16499_v19 = vld [vmem:[#allocation139_spill] sm:$0xff] }
 0x31c   :  { %12746 = vrcp.f32 %v2582_v18  ;;  %v12745_v4 = vpop.eup %12744  ;;  %v16498_v18 = vld [vmem:[#allocation138_spill] sm:$0xff] }
 0x31d   :  { %12748 = vrcp.f32 %v2583_v50  ;;  %v2584_v6 = vadd.f32 1.0, %v12745_v4  ;;  %v16500_v50 = vld [vmem:[#allocation140_spill] sm:$0xff]  ;;  %v16502_v4 = vld [vmem:[#allocation142_spill] sm:$0xff] }
 0x31f   :  { %12750 = vrcp.f32 %v2584_v6  ;;  %v16506_v6 = vld [vmem:[#allocation146_spill] sm:$0xff] }
 0x326   :  { %v12747_v45 = vpop.eup %12746 }
 0x327   :  { %v2593_v48 = vmul.f32 %v12747_v45, %v12743_v25  ;;  %v12749_v51 = vpop.eup %12748  ;;  %v16501_v25 = vld [vmem:[#allocation141_spill] sm:$0xff]  ;;  %v16503_v45 = vld [vmem:[#allocation143_spill] sm:$0xff] }
 0x328   :  { %v2592_v53 = vmul.f32 %v12749_v51, %v13917_v42  ;;  %v16467_v42 = vld [vmem:[#allocation107_spill] sm:$0xff]  ;;  %v16505_v51 = vld [vmem:[#allocation145_spill] sm:$0xff] }
 0x329   :  { %v12751_v5 = vpop.eup %12750 }
 0x32a   :  { %v14198_v7 = vadd.f32 %v2593_v48, %v2592_v53  ;;  %v16504_v48 = vld [vmem:[#allocation144_spill] sm:$0xff]  ;;  %v16507_v53 = vld [vmem:[#allocation147_spill] sm:$0xff] }
 0x32c   :  { %12752 = vtanh.f32 %v14198_v7 }
 0x336   :  { %v12753_v24 = vpop.eup %12752 }
 0x337   :  { %v2596_v21 = vmul.f32 %v12753_v24, %v12751_v5  ;;  %v16508_v5 = vld [vmem:[#allocation148_spill] sm:$0xff]  ;;  %v16509_v24 = vld [vmem:[#allocation149_spill] sm:$0xff] }
 0x339   :  { %v2608_v41 = vpack.c.bf16 %v2596_v21, %v2596_v21  ;;  %v2602_v35 = vmax.f32 %v2596_v21, 0.0  ;;  %v16510_v21 = vld [vmem:[#allocation150_spill] sm:$0xff] }
 0x33b   :  { %3409 = vmatprep.mubr.bf16.mxu0 %v2608_v41  ;;  %3450 = vmatprep.mubr.bf16.mxu1 %v2608_v41  ;;  %v14204_v0 = vpack.c.bf16 %v1588_v58, %v2602_v35  ;;  %v3639_v58 = vld [vmem:[#allocation4 + $0x80] sm:$0xff] }
 0x33c   :  { %3410 = vmatmul.mubr.bf16.vlgmr.msra.gmra.mrb[40].mxu0 %v14202_v62  ;;  %3451 = vmatmul.mubr.bf16.vlgmr.msra.gmra.mrb[56].mxu1 %v14202_v62 }
 0x33d   :  { %16466 = vst [vmem:[#allocation61_spill] sm:$0xff] %v14204_v0  ;;  %3460 = vmatpush1.bf16.msra.mxu0 %v13894_v55  ;;  %3501 = vmatpush1.bf16.msra.mxu1 %v13896_v17  ;;  %v16471_v55 = vld [vmem:[#allocation111_spill] sm:$0xff]  ;;  %v16472_v17 = vld [vmem:[#allocation112_spill] sm:$0xff] }
 0x33e   :  { %3491 = vmatprep.mubr.bf16.mxu0 %v2608_v41  ;;  %3532 = vmatprep.mubr.bf16.mxu1 %v2608_v41  ;;  %v3636_v41 = vld [vmem:[#allocation4 + $0x68] sm:$0xff] }
 0x33f   :  { %3461 = vmatprep.subr.bf16.mxu0 %v13930_v36  ;;  %3502 = vmatprep.subr.bf16.mxu1 %v13932_v34  ;;  %v16474_v36 = vld [vmem:[#allocation114_spill] sm:$0xff]  ;;  %v16475_v34 = vld [vmem:[#allocation115_spill] sm:$0xff] }
 0x341   :  { %3462 = vmatpush1.bf16.msra.mxu0 %v13938_v10  ;;  %3503 = vmatpush1.bf16.msra.mxu1 %v13940_v14  ;;  %v16476_v10 = vld [vmem:[#allocation116_spill] sm:$0xff]  ;;  %v16477_v14 = vld [vmem:[#allocation117_spill] sm:$0xff] }
 0x342   :  { %3463 = vmatprep.subr.bf16.mxu0 %v16467_v42  ;;  %3504 = vmatprep.subr.bf16.mxu1 %v16468_v63  ;;  %v3640_v42 = vld [vmem:[#allocation4 + $0x88] sm:$0xff] }
 0x343   :  { %v3644_v63 = vld [vmem:[#allocation4 + $0xa8] sm:$0xff] }
 0x345   :  { %3464 = vmatpush1.bf16.msra.mxu0 %v16469_v23  ;;  %3505 = vmatpush1.bf16.msra.mxu1 %v16470_v60 }
 0x346   :  { %3465 = vmatprep.subr.bf16.mxu0 %v16471_v55  ;;  %3506 = vmatprep.subr.bf16.mxu1 %v16472_v17  ;;  %v14296_v17 = vcombine.high %v3640_v42, %v3644_v63 }
 0x349   :  { %3466 = vmatpush1.bf16.msra.mxu0 %v16473_v54  ;;  %3507 = vmatpush1.bf16.msra.mxu1 %v16474_v36  ;;  %v3647_v54 = vld [vmem:[#allocation4 + $0xc0] sm:$0xff] }
 0x34a   :  { %3467 = vmatprep.subr.bf16.mxu0 %v16475_v34  ;;  %3508 = vmatprep.subr.bf16.mxu1 %v16476_v10  ;;  %v3651_v36 = vld [vmem:[#allocation4 + $0xe0] sm:$0xff]  ;;  %v3648_v34 = vld [vmem:[#allocation4 + $0xc8] sm:$0xff] }
 0x34b   :  { %v3652_v10 = vld [vmem:[#allocation4 + $0xe8] sm:$0xff] }
 0x34d   :  { %3468 = vmatpush1.bf16.msra.mxu0 %v16477_v14  ;;  %3509 = vmatpush1.bf16.msra.mxu1 %v16478_v30  ;;  %v14303_v30 = vcombine.low %v3640_v42, %v3644_v63 }
 0x34e   :  { %3469 = vmatprep.subr.bf16.mxu0 %v16479_v39  ;;  %3510 = vmatprep.subr.bf16.mxu1 %v16480_v1  ;;  %v14305_v39 = vcombine.high %v3647_v54, %v3651_v36  ;;  %v14308_v1 = vcombine.high %v3648_v34, %v3652_v10 }
 0x351   :  { %3470 = vmatpush1.bf16.msra.mxu0 %v16481_v22  ;;  %3511 = vmatpush1.bf16.msra.mxu1 %v16482_v44  ;;  %v14311_v22 = vcombine.low %v3647_v54, %v3651_v36  ;;  %v14315_v44 = vcombine.low %v3648_v34, %v3652_v10  ;;  %v3695_v54 = vld [vmem:[#allocation4 + $0x240] sm:$0xff]  ;;  %v3696_v34 = vld [vmem:[#allocation4 + $0x248] sm:$0xff] }
 0x352   :  { %3471 = vmatprep.subr.bf16.mxu0 %v16483_v37  ;;  %3512 = vmatprep.subr.bf16.mxu1 %v16484_v47  ;;  %v3655_v37 = vld [vmem:[#allocation4 + $0x100] sm:$0xff] }
 0x353   :  { %v3659_v47 = vld [vmem:[#allocation4 + $0x120] sm:$0xff] }
 0x354   :  { %v3699_v36 = vld [vmem:[#allocation4 + $0x260] sm:$0xff] }
 0x355   :  { %3472 = vmatpush1.bf16.msra.mxu0 %v16485_v28  ;;  %3513 = vmatpush1.bf16.msra.mxu1 %v16486_v43  ;;  %v3656_v28 = vld [vmem:[#allocation4 + $0x108] sm:$0xff]  ;;  %v14320_v43 = vcombine.high %v3655_v37, %v3659_v47  ;;  %v14380_v10 = vcombine.high %v3695_v54, %v3699_v36 }
 0x356   :  { %3473 = vmatprep.subr.bf16.mxu0 %v16487_v33  ;;  %3514 = vmatprep.subr.bf16.mxu1 %v16488_v3  ;;  %v3660_v33 = vld [vmem:[#allocation4 + $0x128] sm:$0xff]  ;;  %v14322_v3 = vcombine.low %v3655_v37, %v3659_v47  ;;  %v14382_v47 = vcombine.low %v3695_v54, %v3699_v36  ;;  %v3719_v54 = vld [vmem:[#allocation4 + $0x300] sm:$0xff] }
 0x357   :  { %v3700_v37 = vld [vmem:[#allocation4 + $0x268] sm:$0xff]  ;;  %v3723_v36 = vld [vmem:[#allocation4 + $0x320] sm:$0xff] }
 0x358   :  { %16511 = vst [vmem:[#allocation65_spill] sm:$0xff] %v14382_v47 }
 0x359   :  { %3474 = vmatpush1.bf16.msra.mxu0 %v16489_v20  ;;  %3515 = vmatpush1.bf16.msra.mxu1 %v16490_v49  ;;  %v14324_v20 = vcombine.low %v3656_v28, %v3660_v33  ;;  %v14326_v49 = vcombine.high %v3656_v28, %v3660_v33  ;;  %v14384_v28 = vcombine.low %v3696_v34, %v3700_v37 }
 0x35a   :  { %3475 = vmatprep.subr.bf16.mxu0 %v16491_v15  ;;  %3516 = vmatprep.subr.bf16.mxu1 %v16492_v52  ;;  %v3663_v15 = vld [vmem:[#allocation4 + $0x140] sm:$0xff]  ;;  %v14386_v33 = vcombine.high %v3696_v34, %v3700_v37  ;;  %v3720_v34 = vld [vmem:[#allocation4 + $0x308] sm:$0xff]  ;;  %v14416_v37 = vcombine.high %v3719_v54, %v3723_v36 }
 0x35b   :  { %v3667_v52 = vld [vmem:[#allocation4 + $0x160] sm:$0xff]  ;;  %16512 = vst [vmem:[#allocation63_spill] sm:$0xff] %v14384_v28 }
 0x35c   :  { %16521 = vst [vmem:[#allocation76_spill] sm:$0xff] %v14416_v37 }
 0x35d   :  { %3476 = vmatpush1.bf16.msra.mxu0 %v16493_v32  ;;  %3517 = vmatpush1.bf16.msra.mxu1 %v16494_v8  ;;  %v3664_v32 = vld [vmem:[#allocation4 + $0x148] sm:$0xff]  ;;  %v14332_v8 = vcombine.high %v3663_v15, %v3667_v52 }
 0x35e   :  { %3477 = vmatprep.subr.bf16.mxu0 %v16495_v59  ;;  %3518 = vmatprep.subr.bf16.mxu1 %v16496_v12  ;;  %v3668_v59 = vld [vmem:[#allocation4 + $0x168] sm:$0xff]  ;;  %v14334_v12 = vcombine.low %v3663_v15, %v3667_v52  ;;  %v3703_v15 = vld [vmem:[#allocation4 + $0x280] sm:$0xff] }
 0x35f   :  { %v3707_v52 = vld [vmem:[#allocation4 + $0x2a0] sm:$0xff] }
 0x361   :  { %3478 = vmatpush1.bf16.msra.mxu0 %v16497_v16  ;;  %3519 = vmatpush1.bf16.msra.mxu1 %v16498_v18  ;;  %v14336_v16 = vcombine.low %v3664_v32, %v3668_v59  ;;  %v14338_v18 = vcombine.high %v3664_v32, %v3668_v59  ;;  %v3704_v32 = vld [vmem:[#allocation4 + $0x288] sm:$0xff]  ;;  %v14392_v59 = vcombine.high %v3703_v15, %v3707_v52 }
 0x362   :  { %3479 = vmatprep.subr.bf16.mxu0 %v16499_v19  ;;  %3520 = vmatprep.subr.bf16.mxu1 %v16500_v50  ;;  %v3671_v19 = vld [vmem:[#allocation4 + $0x180] sm:$0xff] }
 0x363   :  { %v3675_v50 = vld [vmem:[#allocation4 + $0x1a0] sm:$0xff]  ;;  %16513 = vst [vmem:[#allocation64_spill] sm:$0xff] %v14392_v59 }
 0x365   :  { %3480 = vmatpush1.bf16.msra.mxu0 %v16501_v25  ;;  %3521 = vmatpush1.bf16.msra.mxu1 %v16502_v4  ;;  %v3672_v25 = vld [vmem:[#allocation4 + $0x188] sm:$0xff]  ;;  %v14344_v4 = vcombine.high %v3671_v19, %v3675_v50 }
 0x366   :  { %3481 = vmatprep.subr.bf16.mxu0 %v16503_v45  ;;  %3522 = vmatprep.subr.bf16.mxu1 %v16504_v48  ;;  %v3676_v45 = vld [vmem:[#allocation4 + $0x1a8] sm:$0xff]  ;;  %v14346_v48 = vcombine.low %v3671_v19, %v3675_v50  ;;  %v14394_v50 = vcombine.low %v3703_v15, %v3707_v52  ;;  %v14418_v52 = vcombine.low %v3719_v54, %v3723_v36  ;;  %v3735_v36 = vld [vmem:[#allocation4 + $0x380] sm:$0xff] }
 0x367   :  { %v3708_v19 = vld [vmem:[#allocation4 + $0x2a8] sm:$0xff] }
 0x368   :  { %16514 = vst [vmem:[#allocation69_spill] sm:$0xff] %v14394_v50  ;;  %v3724_v15 = vld [vmem:[#allocation4 + $0x328] sm:$0xff]  ;;  %16522 = vst [vmem:[#allocation81_spill] sm:$0xff] %v14418_v52 }
 0x369   :  { %3482 = vmatpush1.bf16.msra.mxu0 %v16505_v51  ;;  %3523 = vmatpush1.bf16.msra.mxu1 %v16506_v6  ;;  %v14348_v51 = vcombine.low %v3672_v25, %v3676_v45  ;;  %v14350_v6 = vcombine.high %v3672_v25, %v3676_v45  ;;  %v14396_v25 = vcombine.low %v3704_v32, %v3708_v19  ;;  %v3732_v54 = vld [vmem:[#allocation4 + $0x368] sm:$0xff] }
 0x36a   :  { %3483 = vmatprep.subr.bf16.mxu0 %v16507_v53  ;;  %3524 = vmatprep.subr.bf16.mxu1 %v16508_v5  ;;  %v3679_v53 = vld [vmem:[#allocation4 + $0x1c0] sm:$0xff]  ;;  %v14398_v45 = vcombine.high %v3704_v32, %v3708_v19  ;;  %v14420_v32 = vcombine.low %v3720_v34, %v3724_v15  ;;  %v14422_v19 = vcombine.high %v3720_v34, %v3724_v15 }
 0x36b   :  { %v3683_v5 = vld [vmem:[#allocation4 + $0x1e0] sm:$0xff]  ;;  %16515 = vst [vmem:[#allocation72_spill] sm:$0xff] %v14396_v25 }
 0x36c   :  { %16516 = vst [vmem:[#allocation70_spill] sm:$0xff] %v14398_v45  ;;  %16523 = vst [vmem:[#allocation84_spill] sm:$0xff] %v14420_v32 }
 0x36d   :  { %3484 = vmatpush1.bf16.msra.mxu0 %v14070_v29  ;;  %3525 = vmatpush1.bf16.msra.mxu1 %v14072_v56  ;;  %v3623_v29 = vld [vmem:[#allocation4] sm:$0xff]  ;;  %16524 = vst [vmem:[#allocation82_spill] sm:$0xff] %v14422_v19 }
 0x36e   :  { %3485 = vmatprep.subr.bf16.mxu0 %v14076_v57  ;;  %3526 = vmatprep.subr.bf16.mxu1 %v16509_v24  ;;  %v3627_v56 = vld [vmem:[#allocation4 + $0x20] sm:$0xff]  ;;  %v3624_v57 = vld [vmem:[#allocation4 + $0x8] sm:$0xff] }
 0x36f   :  { %v3680_v24 = vld [vmem:[#allocation4 + $0x1c8] sm:$0xff] }
 0x371   :  { %3486 = vmatpush1.bf16.msra.mxu0 %v16510_v21  ;;  %3527 = vmatpush1.bf16.msra.mxu1 %v14084_v13  ;;  %v14272_v13 = vcombine.low %v3623_v29, %v3627_v56  ;;  %v14356_v21 = vcombine.high %v3679_v53, %v3683_v5 }
 0x372   :  { %3487 = vmatprep.subr.bf16.mxu0 %v14088_v11  ;;  %3528 = vmatprep.subr.bf16.mxu1 %v14090_v38  ;;  %v14274_v11 = vcombine.high %v3623_v29, %v3627_v56  ;;  %v3628_v38 = vld [vmem:[#allocation4 + $0x28] sm:$0xff]  ;;  %v14358_v56 = vcombine.low %v3679_v53, %v3683_v5  ;;  %v3711_v53 = vld [vmem:[#allocation4 + $0x2c0] sm:$0xff] }
 0x373   :  { %v3684_v29 = vld [vmem:[#allocation4 + $0x1e8] sm:$0xff]  ;;  %v3715_v5 = vld [vmem:[#allocation4 + $0x2e0] sm:$0xff] }
 0x375   :  { %3488 = vmatpush1.bf16.msra.mxu0 %v14094_v26  ;;  %3529 = vmatpush1.bf16.msra.mxu1 %v14096_v31  ;;  %v3631_v26 = vld [vmem:[#allocation4 + $0x40] sm:$0xff] }
 0x376   :  { %3489 = vmatprep.subr.bf16.mxu0 %v14100_v46  ;;  %3530 = vmatprep.subr.bf16.mxu1 %v14102_v27  ;;  %v3635_v31 = vld [vmem:[#allocation4 + $0x60] sm:$0xff]  ;;  %v14276_v46 = vcombine.low %v3624_v57, %v3628_v38  ;;  %v14278_v27 = vcombine.high %v3624_v57, %v3628_v38  ;;  %v14360_v57 = vcombine.low %v3680_v24, %v3684_v29 }
 0x377   :  { %v14287_v23 = vcombine.low %v3631_v26, %v3635_v31  ;;  %v14362_v38 = vcombine.high %v3680_v24, %v3684_v29  ;;  %v3712_v24 = vld [vmem:[#allocation4 + $0x2c8] sm:$0xff]  ;;  %v14404_v29 = vcombine.high %v3711_v53, %v3715_v5 }
 0x379   :  { %3490 = vmatpush1.bf16.msra.mxu0 %v14106_v9  ;;  %3531 = vmatpush1.bf16.msra.mxu1 %v14108_v61  ;;  %v14280_v9 = vcombine.high %v3631_v26, %v3635_v31  ;;  %v3632_v61 = vld [vmem:[#allocation4 + $0x48] sm:$0xff]  ;;  %v3687_v26 = vld [vmem:[#allocation4 + $0x200] sm:$0xff]  ;;  %16517 = vst [vmem:[#allocation71_spill] sm:$0xff] %v14404_v29 }
 0x37a   :  { %4391 = vmatprep.subr.bf16.mxu0 %v14274_v11  ;;  %v14283_v35 = vcombine.high %v3632_v61, %v3636_v41  ;;  %4432 = vmatprep.subr.bf16.mxu1 %v14278_v27  ;;  %v14291_v60 = vcombine.low %v3632_v61, %v3636_v41  ;;  %v3691_v31 = vld [vmem:[#allocation4 + $0x220] sm:$0xff]  ;;  %v3688_v61 = vld [vmem:[#allocation4 + $0x208] sm:$0xff] }
 0x37b   :  { %v14368_v41 = vcombine.high %v3687_v26, %v3691_v31 }
 0x37c   :  { %3492 = vmatmul.mubr.bf16.vlgmr.msra.gmra.mrb[44].mxu0 %v14202_v62  ;;  %3533 = vmatmul.mubr.bf16.vlgmr.msra.gmra.mrb[60].mxu1 %v14202_v62  ;;  %v3643_v62 = vld [vmem:[#allocation4 + $0xa0] sm:$0xff] }
 0x37d   :  { %4392 = vmatpush1.bf16.msra.mxu0 %v14272_v13  ;;  %4433 = vmatpush1.bf16.msra.mxu1 %v14276_v46  ;;  %v14293_v55 = vcombine.high %v3639_v58, %v3643_v62  ;;  %v14299_v14 = vcombine.low %v3639_v58, %v3643_v62  ;;  %v3692_v58 = vld [vmem:[#allocation4 + $0x228] sm:$0xff]  ;;  %v14370_v62 = vcombine.low %v3687_v26, %v3691_v31 }
 0x37e   :  { %4393 = vmatprep.subr.bf16.mxu0 %v14280_v9  ;;  %4434 = vmatprep.subr.bf16.mxu1 %v14283_v35  ;;  %v14372_v42 = vcombine.low %v3688_v61, %v3692_v58  ;;  %v14374_v63 = vcombine.high %v3688_v61, %v3692_v58  ;;  %v3716_v26 = vld [vmem:[#allocation4 + $0x2e8] sm:$0xff]  ;;  %v14406_v31 = vcombine.low %v3711_v53, %v3715_v5  ;;  %v3727_v53 = vld [vmem:[#allocation4 + $0x340] sm:$0xff] }
 0x37f   :  { %v14408_v61 = vcombine.low %v3712_v24, %v3716_v26  ;;  %v14410_v58 = vcombine.high %v3712_v24, %v3716_v26  ;;  %v3731_v5 = vld [vmem:[#allocation4 + $0x360] sm:$0xff]  ;;  %v3728_v24 = vld [vmem:[#allocation4 + $0x348] sm:$0xff] }
 0x380   :  { %16518 = vst [vmem:[#allocation73_spill] sm:$0xff] %v14406_v31  ;;  %v14428_v26 = vcombine.low %v3727_v53, %v3731_v5  ;;  %v14430_v0 = vcombine.high %v3727_v53, %v3731_v5  ;;  %v14432_v34 = vcombine.low %v3728_v24, %v3732_v54  ;;  %v14434_v15 = vcombine.high %v3728_v24, %v3732_v54  ;;  %v3748_v53 = vld [vmem:[#allocation4 + $0x3e8] sm:$0xff] }
 0x381   :  { %4394 = vmatpush1.bf16.msra.mxu0 %v14287_v23  ;;  %4435 = vmatpush1.bf16.msra.mxu1 %v14291_v60  ;;  %16519 = vst [vmem:[#allocation77_spill] sm:$0xff] %v14408_v61  ;;  %16520 = vst [vmem:[#allocation75_spill] sm:$0xff] %v14410_v58  ;;  %v14443_v5 = vcombine.low %v3735_v36, %v3739_v2 }
 0x382   :  { %4395 = vmatprep.subr.bf16.mxu0 %v14293_v55  ;;  %4436 = vmatprep.subr.bf16.mxu1 %v14296_v17  ;;  %16525 = vst [vmem:[#allocation83_spill] sm:$0xff] %v14428_v26  ;;  %16526 = vst [vmem:[#allocation85_spill] sm:$0xff] %v14430_v0 }
 0x383   :  { %16527 = vst [vmem:[#allocation89_spill] sm:$0xff] %v14432_v34  ;;  %16528 = vst [vmem:[#allocation87_spill] sm:$0xff] %v14434_v15 }
 0x384   :  { %16531 = vst [vmem:[#allocation94_spill] sm:$0xff] %v14443_v5 }
 0x385   :  { %4396 = vmatpush1.bf16.msra.mxu0 %v14299_v14  ;;  %4437 = vmatpush1.bf16.msra.mxu1 %v14303_v30 }
 0x386   :  { %4397 = vmatprep.subr.bf16.mxu0 %v14305_v39  ;;  %4438 = vmatprep.subr.bf16.mxu1 %v14308_v1 }
 0x389   :  { %4398 = vmatpush1.bf16.msra.mxu0 %v14311_v22  ;;  %4439 = vmatpush1.bf16.msra.mxu1 %v14315_v44 }
 0x38a   :  { %4399 = vmatprep.subr.bf16.mxu0 %v14320_v43  ;;  %4440 = vmatprep.subr.bf16.mxu1 %v14326_v49 }
 0x38d   :  { %4400 = vmatpush1.bf16.msra.mxu0 %v14322_v3  ;;  %4441 = vmatpush1.bf16.msra.mxu1 %v14324_v20 }
 0x38e   :  { %4401 = vmatprep.subr.bf16.mxu0 %v14332_v8  ;;  %4442 = vmatprep.subr.bf16.mxu1 %v14338_v18 }
 0x391   :  { %4402 = vmatpush1.bf16.msra.mxu0 %v14334_v12  ;;  %4443 = vmatpush1.bf16.msra.mxu1 %v14336_v16 }
 0x392   :  { %4403 = vmatprep.subr.bf16.mxu0 %v14344_v4  ;;  %4444 = vmatprep.subr.bf16.mxu1 %v14350_v6 }
 0x395   :  { %4404 = vmatpush1.bf16.msra.mxu0 %v14346_v48  ;;  %4445 = vmatpush1.bf16.msra.mxu1 %v14348_v51 }
 0x396   :  { %4405 = vmatprep.subr.bf16.mxu0 %v14356_v21  ;;  %4446 = vmatprep.subr.bf16.mxu1 %v14362_v38 }
 0x399   :  { %4406 = vmatpush1.bf16.msra.mxu0 %v14358_v56  ;;  %4447 = vmatpush1.bf16.msra.mxu1 %v14360_v57 }
 0x39a   :  { %4407 = vmatprep.subr.bf16.mxu0 %v14368_v41  ;;  %4448 = vmatprep.subr.bf16.mxu1 %v14374_v63 }
 0x39d   :  { %4408 = vmatpush1.bf16.msra.mxu0 %v14370_v62  ;;  %4449 = vmatpush1.bf16.msra.mxu1 %v14372_v42 }
 0x39e   :  { %4409 = vmatprep.subr.bf16.mxu0 %v14380_v10  ;;  %4450 = vmatprep.subr.bf16.mxu1 %v14386_v33 }
 0x3a1   :  { %4410 = vmatpush1.bf16.msra.mxu0 %v14382_v47  ;;  %4451 = vmatpush1.bf16.msra.mxu1 %v14384_v28 }
 0x3a2   :  { %4411 = vmatprep.subr.bf16.mxu0 %v14392_v59  ;;  %4452 = vmatprep.subr.bf16.mxu1 %v14398_v45 }
 0x3a5   :  { %4412 = vmatpush1.bf16.msra.mxu0 %v14394_v50  ;;  %4453 = vmatpush1.bf16.msra.mxu1 %v14396_v25 }
 0x3a6   :  { %4413 = vmatprep.subr.bf16.mxu0 %v14404_v29  ;;  %4454 = vmatprep.subr.bf16.mxu1 %v14410_v58  ;;  %v3744_v58 = vld [vmem:[#allocation4 + $0x3c8] sm:$0xff] }
 0x3a9   :  { %4414 = vmatpush1.bf16.msra.mxu0 %v14406_v31  ;;  %4455 = vmatpush1.bf16.msra.mxu1 %v14408_v61  ;;  %v3743_v61 = vld [vmem:[#allocation4 + $0x3c0] sm:$0xff] }
 0x3aa   :  { %4415 = vmatprep.subr.bf16.mxu0 %v14416_v37  ;;  %4456 = vmatprep.subr.bf16.mxu1 %v14422_v19  ;;  %v14436_v37 = vcombine.high %v3735_v36, %v3739_v2  ;;  %v3736_v19 = vld [vmem:[#allocation4 + $0x388] sm:$0xff]  ;;  %v14459_v2 = vcombine.low %v3744_v58, %v3748_v53  ;;  %v3626_v36 = vld [vmem:[#allocation4 + $0x18] sm:$0xff] }
 0x3ac   :  { %16529 = vst [vmem:[#allocation88_spill] sm:$0xff] %v14436_v37  ;;  %16536 = vst [vmem:[#allocation98_spill] sm:$0xff] %v14459_v2 }
 0x3ad   :  { %4416 = vmatpush1.bf16.msra.mxu0 %v14418_v52  ;;  %4457 = vmatpush1.bf16.msra.mxu1 %v14420_v32  ;;  %v3740_v52 = vld [vmem:[#allocation4 + $0x3a8] sm:$0xff]  ;;  %v3747_v32 = vld [vmem:[#allocation4 + $0x3e0] sm:$0xff] }
 0x3ae   :  { %4417 = vmatprep.subr.bf16.mxu0 %v14430_v0  ;;  %v14439_v31 = vcombine.high %v3736_v19, %v3740_v52  ;;  %4458 = vmatprep.subr.bf16.mxu1 %v14434_v15  ;;  %v14447_v24 = vcombine.low %v3736_v19, %v3740_v52  ;;  %v14449_v54 = vcombine.high %v3743_v61, %v3747_v32  ;;  %v3625_v52 = vld [vmem:[#allocation4 + $0x10] sm:$0xff] }
 0x3af   :  { %v14452_v0 = vcombine.high %v3744_v58, %v3748_v53  ;;  %v14455_v29 = vcombine.low %v3743_v61, %v3747_v32  ;;  %v3629_v19 = vld [vmem:[#allocation4 + $0x30] sm:$0xff] }
 0x3b0   :  { %16530 = vst [vmem:[#allocation93_spill] sm:$0xff] %v14439_v31  ;;  %16532 = vst [vmem:[#allocation95_spill] sm:$0xff] %v14447_v24  ;;  %v14466_v61 = vcombine.low %v3625_v52, %v3629_v19 }
 0x3b1   :  { %4418 = vmatpush1.bf16.msra.mxu0 %v14428_v26  ;;  %4459 = vmatpush1.bf16.msra.mxu1 %v14432_v34  ;;  %16533 = vst [vmem:[#allocation96_spill] sm:$0xff] %v14449_v54  ;;  %16534 = vst [vmem:[#allocation97_spill] sm:$0xff] %v14452_v0  ;;  %v16542_v26 = vld [vmem:[#allocation25_spill] sm:$0xff] }
 0x3b2   :  { %4419 = vmatprep.subr.bf16.mxu0 %v14436_v37  ;;  %4460 = vmatprep.subr.bf16.mxu1 %v14439_v31  ;;  %16535 = vst [vmem:[#allocation100_spill] sm:$0xff] %v14455_v29  ;;  %v14464_v31 = vcombine.high %v3625_v52, %v3629_v19  ;;  %v16543_v52 = vld [vmem:[#allocation40_spill] sm:$0xff] }
 0x3b4   :  { %16537 = vst [vmem:[#allocation102_spill] sm:$0xff] %v14464_v31 }
 0x3b5   :  { %4420 = vmatpush1.bf16.msra.mxu0 %v14443_v5  ;;  %4461 = vmatpush1.bf16.msra.mxu1 %v14447_v24  ;;  %v3630_v5 = vld [vmem:[#allocation4 + $0x38] sm:$0xff] }
 0x3b6   :  { %4421 = vmatprep.subr.bf16.mxu0 %v14449_v54  ;;  %4462 = vmatprep.subr.bf16.mxu1 %v14452_v0  ;;  %v14468_v32 = vcombine.low %v3626_v36, %v3630_v5  ;;  %v14470_v24 = vcombine.high %v3626_v36, %v3630_v5  ;;  %v16541_v54 = vld [vmem:[#allocation38_spill] sm:$0xff] }
 0x3b8   :  { %16538 = vst [vmem:[#allocation103_spill] sm:$0xff] %v14468_v32  ;;  %16539 = vst [vmem:[#allocation104_spill] sm:$0xff] %v14470_v24 }
 0x3b9   :  { %4422 = vmatpush1.bf16.msra.mxu0 %v14455_v29  ;;  %4463 = vmatpush1.bf16.msra.mxu1 %v14459_v2  ;;  %v16540_v29 = vld [vmem:[#allocation23_spill] sm:$0xff] }
 0x3ba   :  { %4473 = vmatprep.subr.bf16.mxu0 %v14464_v31  ;;  %4514 = vmatprep.subr.bf16.mxu1 %v14470_v24 }
 0x40f   :  { %v3411_v58 = vpop.f32.mrb[40].mxu0  ;;  %v3452_v53 = vpop.f32.mrb[56].mxu1 }
 0x410   :  { %v3548_v0 = vadd.f32 %v3411_v58, %v16540_v29  ;;  %v3550_v37 = vadd.f32 %v3452_v53, %v16541_v54  ;;  %v3413_v2 = vpop.f32.mrb[41].mxu0  ;;  %v3454_v34 = vpop.f32.mrb[57].mxu1 }
 0x411   :  { %v3549_v15 = vadd.f32 %v3413_v2, %v16542_v26  ;;  %v3551_v19 = vadd.f32 %v3454_v34, %v16543_v52  ;;  %v3415_v25 = vpop.f32.mrb[42].mxu0  ;;  %v3456_v50 = vpop.f32.mrb[58].mxu1  ;;  %v16544_v34 = vld [vmem:[#allocation51_spill] sm:$0xff] }
 0x412   :  { %v11517_v5 = vmul.f32 -1.442695, %v3548_v0  ;;  %v3416_v36 = vpop.f32.mrb[43].mxu0  ;;  %v3457_v45 = vpop.f32.mrb[59].mxu1 }
 0x413   :  { %v11518_v31 = vmul.f32 -1.442695, %v3549_v15 }
 0x414   :  { %12754 = vpow2.f32 %v11517_v5 }
 0x415   :  { %12756 = vpow2.f32 %v11518_v31  ;;  %v16545_v31 = vld [vmem:[#allocation91_spill] sm:$0xff] }
 0x416   :  { %12758 = vtanh.f32 %v3551_v19  ;;  %v16546_v19 = vld [vmem:[#allocation53_spill] sm:$0xff] }
 0x41e   :  { %v12755_v24 = vpop.eup %12754 }
 0x41f   :  { %v3572_v59 = vadd.f32 1.0, %v12755_v24  ;;  %v12757_v28 = vpop.eup %12756 }
 0x420   :  { %v3573_v29 = vadd.f32 1.0, %v12757_v28  ;;  %v12759_v54 = vpop.eup %12758  ;;  %v16547_v28 = vld [vmem:[#allocation92_spill] sm:$0xff] }
 0x421   :  { %12760 = vrcp.f32 %v3572_v59 }
 0x422   :  { %12762 = vrcp.f32 %v3573_v29 }
 0x42b   :  { %v12761_v58 = vpop.eup %12760 }
 0x42c   :  { %v3583_v26 = vmul.f32 %v12761_v58, %v12759_v54  ;;  %v12763_v2 = vpop.eup %12762 }
 0x42d   :  { %v3582_v25 = vmul.f32 %v12763_v2, %v14187_v40 }
 0x42f   :  { %v14479_v50 = vadd.f32 %v3583_v26, %v3582_v25  ;;  %v11519_v26 = vmul.f32 -1.442695, %v3550_v37 }
 0x44f   :  { %v3493_v0 = vpop.f32.mrb[44].mxu0  ;;  %v3534_v45 = vpop.f32.mrb[60].mxu1 }
 0x450   :  { %v3559_v15 = vadd.f32 %v3493_v0, %v16544_v34  ;;  %v3561_v53 = vadd.f32 %v3534_v45, %v16545_v31  ;;  %v3495_v24 = vpop.f32.mrb[45].mxu0  ;;  %v3536_v52 = vpop.f32.mrb[61].mxu1 }
 0x451   :  { %v3560_v59 = vadd.f32 %v3495_v24, %v16546_v19  ;;  %v3562_v5 = vadd.f32 %v3536_v52, %v16547_v28  ;;  %v3497_v36 = vpop.f32.mrb[46].mxu0  ;;  %v3538_v29 = vpop.f32.mrb[62].mxu1 }
 0x452   :  { %v11520_v54 = vmul.f32 -1.442695, %v3559_v15  ;;  %v3498_v58 = vpop.f32.mrb[47].mxu0  ;;  %v3539_v47 = vpop.f32.mrb[63].mxu1  ;;  %v11522_v2 = vmul.f32 -1.442695, %v3561_v53 }
 0x453   :  { %v11521_v40 = vmul.f32 -1.442695, %v3560_v59 }
 0x454   :  { %12764 = vpow2.f32 %v11520_v54 }
 0x455   :  { %12766 = vpow2.f32 %v11521_v40 }
 0x456   :  { %12768 = vpow2.f32 %v11519_v26  ;;  %v3633_v26 = vld [vmem:[#allocation4 + $0x50] sm:$0xff] }
 0x457   :  { %12770 = vtanh.f32 %v3562_v5 }
 0x458   :  { %12772 = vpow2.f32 %v11522_v2  ;;  %v3637_v2 = vld [vmem:[#allocation4 + $0x70] sm:$0xff] }
 0x45e   :  { %v12765_v25 = vpop.eup %12764 }
 0x45f   :  { %v3596_v0 = vadd.f32 1.0, %v12765_v25  ;;  %v12767_v45 = vpop.eup %12766  ;;  %v3634_v25 = vld [vmem:[#allocation4 + $0x58] sm:$0xff] }
 0x460   :  { %v3597_v34 = vadd.f32 1.0, %v12767_v45  ;;  %v12769_v31 = vpop.eup %12768 }
 0x461   :  { %12774 = vrcp.f32 %v3596_v0  ;;  %v12771_v24 = vpop.eup %12770  ;;  %v3574_v19 = vadd.f32 1.0, %v12769_v31  ;;  %v14500_v31 = vcombine.high %v3633_v26, %v3637_v2 }
 0x462   :  { %12776 = vrcp.f32 %v3597_v34  ;;  %v12773_v52 = vpop.eup %12772  ;;  %v3641_v34 = vld [vmem:[#allocation4 + $0x90] sm:$0xff] }
 0x463   :  { %v3598_v28 = vadd.f32 1.0, %v12773_v52  ;;  %12778 = vtanh.f32 %v14479_v50  ;;  %16548 = vst [vmem:[#allocation105_spill] sm:$0xff] %v14500_v31  ;;  %v3645_v52 = vld [vmem:[#allocation4 + $0xb0] sm:$0xff] }
 0x464   :  { %12780 = vrcp.f32 %v3574_v19  ;;  %v3646_v19 = vld [vmem:[#allocation4 + $0xb8] sm:$0xff] }
 0x465   :  { %12782 = vrcp.f32 %v3598_v28  ;;  %v14512_v28 = vcombine.high %v3641_v34, %v3645_v52 }
 0x467   :  { %16552 = vst [vmem:[#allocation21_spill] sm:$0xff] %v14512_v28 }
 0x46b   :  { %v12775_v15 = vpop.eup %12774 }
 0x46c   :  { %v3607_v47 = vmul.f32 %v12775_v15, %v12771_v24  ;;  %v12777_v59 = vpop.eup %12776  ;;  %v3642_v15 = vld [vmem:[#allocation4 + $0x98] sm:$0xff] }
 0x46d   :  { %v3606_v37 = vmul.f32 %v12777_v59, %v14198_v7  ;;  %v12779_v5 = vpop.eup %12778  ;;  %v3638_v7 = vld [vmem:[#allocation4 + $0x78] sm:$0xff] }
 0x46e   :  { %v12781_v36 = vpop.eup %12780  ;;  %v14502_v24 = vcombine.high %v3634_v25, %v3638_v7  ;;  %v14510_v59 = vcombine.low %v3634_v25, %v3638_v7 }
 0x46f   :  { %v14487_v53 = vadd.f32 %v3607_v47, %v3606_v37  ;;  %v12783_v29 = vpop.eup %12782  ;;  %v14490_v58 = vmul.f32 %v12781_v36, %v12779_v5  ;;  %v14508_v47 = vcombine.low %v3633_v26, %v3637_v2  ;;  %v14514_v37 = vcombine.high %v3642_v15, %v3646_v19  ;;  %v3649_v5 = vld [vmem:[#allocation4 + $0xd0] sm:$0xff] }
 0x470   :  { %16549 = vst [vmem:[#allocation106_spill] sm:$0xff] %v14502_v24  ;;  %16551 = vst [vmem:[#allocation34_spill] sm:$0xff] %v14510_v59  ;;  %v3653_v36 = vld [vmem:[#allocation4 + $0xf0] sm:$0xff]  ;;  %v14520_v26 = vcombine.low %v3641_v34, %v3645_v52  ;;  %v14522_v2 = vcombine.low %v3642_v15, %v3646_v19 }
 0x471   :  { %12784 = vtanh.f32 %v14487_v53  ;;  %v14498_v45 = vpack.c.bf16 %v14490_v58, %v14490_v58  ;;  %16550 = vst [vmem:[#allocation19_spill] sm:$0xff] %v14508_v47  ;;  %16553 = vst [vmem:[#allocation36_spill] sm:$0xff] %v14514_v37  ;;  %v14526_v25 = vcombine.high %v3649_v5, %v3653_v36  ;;  %v14532_v34 = vcombine.low %v3649_v5, %v3653_v36 }
 0x472   :  { %16554 = vst [vmem:[#allocation55_spill] sm:$0xff] %v14520_v26  ;;  %16555 = vst [vmem:[#allocation99_spill] sm:$0xff] %v14522_v2 }
 0x473   :  { %16556 = vst [vmem:[#allocation57_spill] sm:$0xff] %v14526_v25  ;;  %16558 = vst [vmem:[#allocation107_spill] sm:$0xff] %v14532_v34 }
 0x47b   :  { %v12785_v54 = vpop.eup %12784 }
 0x47c   :  { %v14492_v40 = vmul.f32 %v12785_v54, %v12783_v29  ;;  %v3650_v29 = vld [vmem:[#allocation4 + $0xd8] sm:$0xff] }
 0x47d   :  { %v3654_v54 = vld [vmem:[#allocation4 + $0xf8] sm:$0xff] }
 0x47e   :  { %v3622_v0 = vpack.c.bf16 %v14492_v40, %v14492_v40  ;;  %v14528_v7 = vcombine.high %v3650_v29, %v3654_v54  ;;  %v14534_v52 = vcombine.low %v3650_v29, %v3654_v54 }
 0x480   :  { %4423 = vmatprep.mubr.bf16.mxu0 %v3622_v0  ;;  %4464 = vmatprep.mubr.bf16.mxu1 %v3622_v0  ;;  %16557 = vst [vmem:[#allocation101_spill] sm:$0xff] %v14528_v7  ;;  %16559 = vst [vmem:[#allocation108_spill] sm:$0xff] %v14534_v52 }
 0x481   :  { %4424 = vmatmul.mubr.bf16.vlgmr.msra.gmra.mrb[48].mxu0 %v14498_v45  ;;  %4465 = vmatmul.mubr.bf16.vlgmr.msra.gmra.mrb[64].mxu1 %v14498_v45 }
 0x482   :  { %4474 = vmatpush1.bf16.msra.mxu0 %v14466_v61  ;;  %4515 = vmatpush1.bf16.msra.mxu1 %v14468_v32  ;;  %v3662_v32 = vld [vmem:[#allocation4 + $0x138] sm:$0xff] }
 0x483   :  { %4505 = vmatprep.mubr.bf16.mxu0 %v3622_v0  ;;  %4546 = vmatprep.mubr.bf16.mxu1 %v3622_v0  ;;  %v3657_v0 = vld [vmem:[#allocation4 + $0x110] sm:$0xff] }
 0x484   :  { %4475 = vmatprep.subr.bf16.mxu0 %v14500_v31  ;;  %4516 = vmatprep.subr.bf16.mxu1 %v14502_v24  ;;  %v3661_v24 = vld [vmem:[#allocation4 + $0x130] sm:$0xff]  ;;  %v3658_v31 = vld [vmem:[#allocation4 + $0x118] sm:$0xff] }
 0x485   :  { %v14538_v15 = vcombine.high %v3657_v0, %v3661_v24  ;;  %v14540_v19 = vcombine.high %v3658_v31, %v3662_v32  ;;  %v14544_v5 = vcombine.low %v3657_v0, %v3661_v24  ;;  %v14546_v36 = vcombine.low %v3658_v31, %v3662_v32 }
 0x486   :  { %4476 = vmatpush1.bf16.msra.mxu0 %v14508_v47  ;;  %4517 = vmatpush1.bf16.msra.mxu1 %v14510_v59  ;;  %v3666_v59 = vld [vmem:[#allocation4 + $0x158] sm:$0xff] }
 0x487   :  { %4477 = vmatprep.subr.bf16.mxu0 %v14512_v28  ;;  %4518 = vmatprep.subr.bf16.mxu1 %v14514_v37  ;;  %16560 = vst [vmem:[#allocation109_spill] sm:$0xff] %v14538_v15  ;;  %16561 = vst [vmem:[#allocation110_spill] sm:$0xff] %v14540_v19  ;;  %v3665_v37 = vld [vmem:[#allocation4 + $0x150] sm:$0xff]  ;;  %v3670_v47 = vld [vmem:[#allocation4 + $0x178] sm:$0xff] }
 0x488   :  { %v3669_v28 = vld [vmem:[#allocation4 + $0x170] sm:$0xff]  ;;  %16562 = vst [vmem:[#allocation111_spill] sm:$0xff] %v14544_v5  ;;  %16563 = vst [vmem:[#allocation112_spill] sm:$0xff] %v14546_v36  ;;  %v14552_v54 = vcombine.high %v3666_v59, %v3670_v47  ;;  %v14558_v32 = vcombine.low %v3666_v59, %v3670_v47 }
 0x489   :  { %v14550_v29 = vcombine.high %v3665_v37, %v3669_v28  ;;  %v14556_v24 = vcombine.low %v3665_v37, %v3669_v28 }
 0x48a   :  { %4478 = vmatpush1.bf16.msra.mxu0 %v14520_v26  ;;  %4519 = vmatpush1.bf16.msra.mxu1 %v14522_v2  ;;  %16565 = vst [vmem:[#allocation114_spill] sm:$0xff] %v14552_v54  ;;  %v3674_v2 = vld [vmem:[#allocation4 + $0x198] sm:$0xff]  ;;  %16567 = vst [vmem:[#allocation116_spill] sm:$0xff] %v14558_v32 }
 0x48b   :  { %4479 = vmatprep.subr.bf16.mxu0 %v14526_v25  ;;  %4520 = vmatprep.subr.bf16.mxu1 %v14528_v7  ;;  %16564 = vst [vmem:[#allocation113_spill] sm:$0xff] %v14550_v29  ;;  %v3673_v7 = vld [vmem:[#allocation4 + $0x190] sm:$0xff]  ;;  %v3678_v26 = vld [vmem:[#allocation4 + $0x1b8] sm:$0xff]  ;;  %16566 = vst [vmem:[#allocation115_spill] sm:$0xff] %v14556_v24 }
 0x48c   :  { %v3677_v25 = vld [vmem:[#allocation4 + $0x1b0] sm:$0xff]  ;;  %v14564_v0 = vcombine.high %v3674_v2, %v3678_v26  ;;  %v14570_v47 = vcombine.low %v3674_v2, %v3678_v26 }
 0x48d   :  { %v14562_v31 = vcombine.high %v3673_v7, %v3677_v25  ;;  %v14568_v28 = vcombine.low %v3673_v7, %v3677_v25 }
 0x48e   :  { %4480 = vmatpush1.bf16.msra.mxu0 %v14532_v34  ;;  %4521 = vmatpush1.bf16.msra.mxu1 %v14534_v52  ;;  %16569 = vst [vmem:[#allocation118_spill] sm:$0xff] %v14564_v0  ;;  %v3682_v52 = vld [vmem:[#allocation4 + $0x1d8] sm:$0xff]  ;;  %16571 = vst [vmem:[#allocation120_spill] sm:$0xff] %v14570_v47 }
 0x48f   :  { %4481 = vmatprep.subr.bf16.mxu0 %v14538_v15  ;;  %4522 = vmatprep.subr.bf16.mxu1 %v14540_v19  ;;  %16568 = vst [vmem:[#allocation117_spill] sm:$0xff] %v14562_v31  ;;  %v3681_v19 = vld [vmem:[#allocation4 + $0x1d0] sm:$0xff]  ;;  %v3686_v34 = vld [vmem:[#allocation4 + $0x1f8] sm:$0xff]  ;;  %16570 = vst [vmem:[#allocation119_spill] sm:$0xff] %v14568_v28 }
 0x490   :  { %v3685_v15 = vld [vmem:[#allocation4 + $0x1f0] sm:$0xff]  ;;  %v14576_v37 = vcombine.high %v3682_v52, %v3686_v34  ;;  %v14582_v26 = vcombine.low %v3682_v52, %v3686_v34 }
 0x491   :  { %v14574_v59 = vcombine.high %v3681_v19, %v3685_v15  ;;  %v14580_v25 = vcombine.low %v3681_v19, %v3685_v15 }
 0x492   :  { %4482 = vmatpush1.bf16.msra.mxu0 %v14544_v5  ;;  %4523 = vmatpush1.bf16.msra.mxu1 %v14546_v36  ;;  %16573 = vst [vmem:[#allocation122_spill] sm:$0xff] %v14576_v37  ;;  %v3690_v36 = vld [vmem:[#allocation4 + $0x218] sm:$0xff]  ;;  %16575 = vst [vmem:[#allocation124_spill] sm:$0xff] %v14582_v26 }
 0x493   :  { %4483 = vmatprep.subr.bf16.mxu0 %v14550_v29  ;;  %4524 = vmatprep.subr.bf16.mxu1 %v14552_v54  ;;  %16572 = vst [vmem:[#allocation121_spill] sm:$0xff] %v14574_v59  ;;  %v3689_v54 = vld [vmem:[#allocation4 + $0x210] sm:$0xff]  ;;  %v3694_v5 = vld [vmem:[#allocation4 + $0x238] sm:$0xff]  ;;  %16574 = vst [vmem:[#allocation123_spill] sm:$0xff] %v14580_v25 }
 0x494   :  { %v3693_v29 = vld [vmem:[#allocation4 + $0x230] sm:$0xff]  ;;  %v14588_v7 = vcombine.high %v3690_v36, %v3694_v5  ;;  %v14594_v34 = vcombine.low %v3690_v36, %v3694_v5 }
 0x495   :  { %v14586_v2 = vcombine.high %v3689_v54, %v3693_v29  ;;  %v14592_v15 = vcombine.low %v3689_v54, %v3693_v29 }
 0x496   :  { %4484 = vmatpush1.bf16.msra.mxu0 %v14556_v24  ;;  %4525 = vmatpush1.bf16.msra.mxu1 %v14558_v32  ;;  %16577 = vst [vmem:[#allocation126_spill] sm:$0xff] %v14588_v7  ;;  %v3698_v32 = vld [vmem:[#allocation4 + $0x258] sm:$0xff]  ;;  %16579 = vst [vmem:[#allocation128_spill] sm:$0xff] %v14594_v34 }
 0x497   :  { %4485 = vmatprep.subr.bf16.mxu0 %v14562_v31  ;;  %4526 = vmatprep.subr.bf16.mxu1 %v14564_v0  ;;  %16576 = vst [vmem:[#allocation125_spill] sm:$0xff] %v14586_v2  ;;  %v3697_v0 = vld [vmem:[#allocation4 + $0x250] sm:$0xff]  ;;  %v3702_v24 = vld [vmem:[#allocation4 + $0x278] sm:$0xff]  ;;  %16578 = vst [vmem:[#allocation127_spill] sm:$0xff] %v14592_v15 }
 0x498   :  { %v3701_v31 = vld [vmem:[#allocation4 + $0x270] sm:$0xff]  ;;  %v14600_v19 = vcombine.high %v3698_v32, %v3702_v24  ;;  %v14606_v5 = vcombine.low %v3698_v32, %v3702_v24 }
 0x499   :  { %v14598_v52 = vcombine.high %v3697_v0, %v3701_v31  ;;  %v14604_v29 = vcombine.low %v3697_v0, %v3701_v31 }
 0x49a   :  { %4486 = vmatpush1.bf16.msra.mxu0 %v14568_v28  ;;  %4527 = vmatpush1.bf16.msra.mxu1 %v14570_v47  ;;  %16581 = vst [vmem:[#allocation130_spill] sm:$0xff] %v14600_v19  ;;  %v3706_v47 = vld [vmem:[#allocation4 + $0x298] sm:$0xff]  ;;  %16583 = vst [vmem:[#allocation132_spill] sm:$0xff] %v14606_v5 }
 0x49b   :  { %4487 = vmatprep.subr.bf16.mxu0 %v14574_v59  ;;  %4528 = vmatprep.subr.bf16.mxu1 %v14576_v37  ;;  %16580 = vst [vmem:[#allocation129_spill] sm:$0xff] %v14598_v52  ;;  %v3705_v37 = vld [vmem:[#allocation4 + $0x290] sm:$0xff]  ;;  %v3710_v28 = vld [vmem:[#allocation4 + $0x2b8] sm:$0xff]  ;;  %16582 = vst [vmem:[#allocation131_spill] sm:$0xff] %v14604_v29 }
 0x49c   :  { %v3709_v59 = vld [vmem:[#allocation4 + $0x2b0] sm:$0xff]  ;;  %v14612_v54 = vcombine.high %v3706_v47, %v3710_v28  ;;  %v14618_v24 = vcombine.low %v3706_v47, %v3710_v28 }
 0x49d   :  { %v14610_v36 = vcombine.high %v3705_v37, %v3709_v59  ;;  %v14616_v31 = vcombine.low %v3705_v37, %v3709_v59 }
 0x49e   :  { %4488 = vmatpush1.bf16.msra.mxu0 %v14580_v25  ;;  %4529 = vmatpush1.bf16.msra.mxu1 %v14582_v26  ;;  %16585 = vst [vmem:[#allocation134_spill] sm:$0xff] %v14612_v54  ;;  %v3714_v26 = vld [vmem:[#allocation4 + $0x2d8] sm:$0xff]  ;;  %16587 = vst [vmem:[#allocation136_spill] sm:$0xff] %v14618_v24 }
 0x49f   :  { %4489 = vmatprep.subr.bf16.mxu0 %v14586_v2  ;;  %4530 = vmatprep.subr.bf16.mxu1 %v14588_v7  ;;  %16584 = vst [vmem:[#allocation133_spill] sm:$0xff] %v14610_v36  ;;  %v3713_v7 = vld [vmem:[#allocation4 + $0x2d0] sm:$0xff]  ;;  %v3718_v25 = vld [vmem:[#allocation4 + $0x2f8] sm:$0xff]  ;;  %16586 = vst [vmem:[#allocation135_spill] sm:$0xff] %v14616_v31 }
 0x4a0   :  { %v3717_v2 = vld [vmem:[#allocation4 + $0x2f0] sm:$0xff]  ;;  %v14624_v0 = vcombine.high %v3714_v26, %v3718_v25  ;;  %v14630_v28 = vcombine.low %v3714_v26, %v3718_v25 }
 0x4a1   :  { %v14622_v32 = vcombine.high %v3713_v7, %v3717_v2  ;;  %v14628_v59 = vcombine.low %v3713_v7, %v3717_v2 }
 0x4a2   :  { %4490 = vmatpush1.bf16.msra.mxu0 %v14592_v15  ;;  %4531 = vmatpush1.bf16.msra.mxu1 %v14594_v34  ;;  %16589 = vst [vmem:[#allocation138_spill] sm:$0xff] %v14624_v0  ;;  %v3722_v34 = vld [vmem:[#allocation4 + $0x318] sm:$0xff]  ;;  %16591 = vst [vmem:[#allocation140_spill] sm:$0xff] %v14630_v28 }
 0x4a3   :  { %4491 = vmatprep.subr.bf16.mxu0 %v14598_v52  ;;  %4532 = vmatprep.subr.bf16.mxu1 %v14600_v19  ;;  %16588 = vst [vmem:[#allocation137_spill] sm:$0xff] %v14622_v32  ;;  %v3721_v19 = vld [vmem:[#allocation4 + $0x310] sm:$0xff]  ;;  %v3726_v15 = vld [vmem:[#allocation4 + $0x338] sm:$0xff]  ;;  %16590 = vst [vmem:[#allocation139_spill] sm:$0xff] %v14628_v59 }
 0x4a4   :  { %v3725_v52 = vld [vmem:[#allocation4 + $0x330] sm:$0xff]  ;;  %v14636_v37 = vcombine.high %v3722_v34, %v3726_v15  ;;  %v14642_v25 = vcombine.low %v3722_v34, %v3726_v15 }
 0x4a5   :  { %v14634_v47 = vcombine.high %v3721_v19, %v3725_v52  ;;  %v14640_v2 = vcombine.low %v3721_v19, %v3725_v52 }
 0x4a6   :  { %4492 = vmatpush1.bf16.msra.mxu0 %v14604_v29  ;;  %4533 = vmatpush1.bf16.msra.mxu1 %v14606_v5  ;;  %16593 = vst [vmem:[#allocation142_spill] sm:$0xff] %v14636_v37  ;;  %v3730_v5 = vld [vmem:[#allocation4 + $0x358] sm:$0xff] }
 0x4a7   :  { %4493 = vmatprep.subr.bf16.mxu0 %v14610_v36  ;;  %4534 = vmatprep.subr.bf16.mxu1 %v14612_v54  ;;  %16592 = vst [vmem:[#allocation141_spill] sm:$0xff] %v14634_v47  ;;  %v3729_v54 = vld [vmem:[#allocation4 + $0x350] sm:$0xff]  ;;  %v3734_v29 = vld [vmem:[#allocation4 + $0x378] sm:$0xff] }
 0x4a8   :  { %v3733_v36 = vld [vmem:[#allocation4 + $0x370] sm:$0xff]  ;;  %v14648_v7 = vcombine.high %v3730_v5, %v3734_v29  ;;  %v14654_v15 = vcombine.low %v3730_v5, %v3734_v29 }
 0x4a9   :  { %v14646_v26 = vcombine.high %v3729_v54, %v3733_v36  ;;  %v14652_v52 = vcombine.low %v3729_v54, %v3733_v36 }
 0x4aa   :  { %4494 = vmatpush1.bf16.msra.mxu0 %v14616_v31  ;;  %4535 = vmatpush1.bf16.msra.mxu1 %v14618_v24  ;;  %16594 = vst [vmem:[#allocation143_spill] sm:$0xff] %v14648_v7  ;;  %v3738_v24 = vld [vmem:[#allocation4 + $0x398] sm:$0xff] }
 0x4ab   :  { %4495 = vmatprep.subr.bf16.mxu0 %v14622_v32  ;;  %4536 = vmatprep.subr.bf16.mxu1 %v14624_v0  ;;  %v3737_v0 = vld [vmem:[#allocation4 + $0x390] sm:$0xff]  ;;  %v3742_v31 = vld [vmem:[#allocation4 + $0x3b8] sm:$0xff]  ;;  %16595 = vst [vmem:[#allocation144_spill] sm:$0xff] %v14652_v52 }
 0x4ac   :  { %v3741_v32 = vld [vmem:[#allocation4 + $0x3b0] sm:$0xff]  ;;  %v14660_v19 = vcombine.high %v3738_v24, %v3742_v31  ;;  %v14666_v29 = vcombine.low %v3738_v24, %v3742_v31 }
 0x4ad   :  { %v14658_v34 = vcombine.high %v3737_v0, %v3741_v32  ;;  %v14664_v36 = vcombine.low %v3737_v0, %v3741_v32 }
 0x4ae   :  { %4496 = vmatpush1.bf16.msra.mxu0 %v14628_v59  ;;  %4537 = vmatpush1.bf16.msra.mxu1 %v14630_v28  ;;  %v3746_v28 = vld [vmem:[#allocation4 + $0x3d8] sm:$0xff] }
 0x4af   :  { %4497 = vmatprep.subr.bf16.mxu0 %v14634_v47  ;;  %4538 = vmatprep.subr.bf16.mxu1 %v14636_v37  ;;  %v3745_v37 = vld [vmem:[#allocation4 + $0x3d0] sm:$0xff]  ;;  %v3750_v59 = vld [vmem:[#allocation4 + $0x3f8] sm:$0xff] }
 0x4b0   :  { %v3749_v47 = vld [vmem:[#allocation4 + $0x3f0] sm:$0xff]  ;;  %v14672_v54 = vcombine.high %v3746_v28, %v3750_v59 }
 0x4b1   :  { %v14670_v5 = vcombine.high %v3745_v37, %v3749_v47 }
 0x4b2   :  { %4498 = vmatpush1.bf16.msra.mxu0 %v14640_v2  ;;  %4539 = vmatpush1.bf16.msra.mxu1 %v14642_v25 }
 0x4b3   :  { %4499 = vmatprep.subr.bf16.mxu0 %v14646_v26  ;;  %4540 = vmatprep.subr.bf16.mxu1 %v14648_v7  ;;  %v14676_v7 = vcombine.low %v3745_v37, %v3749_v47 }
 0x4b6   :  { %4500 = vmatpush1.bf16.msra.mxu0 %v14652_v52  ;;  %4541 = vmatpush1.bf16.msra.mxu1 %v14654_v15  ;;  %v14678_v52 = vcombine.low %v3746_v28, %v3750_v59 }
 0x4b7   :  { %4501 = vmatprep.subr.bf16.mxu0 %v14658_v34  ;;  %4542 = vmatprep.subr.bf16.mxu1 %v14660_v19 }
 0x4ba   :  { %4502 = vmatpush1.bf16.msra.mxu0 %v14664_v36  ;;  %4543 = vmatpush1.bf16.msra.mxu1 %v14666_v29 }
 0x4bb   :  { %4503 = vmatprep.subr.bf16.mxu0 %v14670_v5  ;;  %4544 = vmatprep.subr.bf16.mxu1 %v14672_v54 }
 0x4be   :  { %4504 = vmatpush1.bf16.msra.mxu0 %v14676_v7  ;;  %4545 = vmatpush1.bf16.msra.mxu1 %v14678_v52 }
 0x4bf   :  { %5405 = vmatprep.subr.bf16.mxu0 %v14274_v11  ;;  %5446 = vmatprep.subr.bf16.mxu1 %v14278_v27  ;;  %v16597_v11 = vld [vmem:[#allocation63_spill] sm:$0xff]  ;;  %v16599_v27 = vld [vmem:[#allocation70_spill] sm:$0xff] }
 0x4c1   :  { %4506 = vmatmul.mubr.bf16.vlgmr.msra.gmra.mrb[52].mxu0 %v14498_v45  ;;  %4547 = vmatmul.mubr.bf16.vlgmr.msra.gmra.mrb[68].mxu1 %v14498_v45  ;;  %v16627_v45 = vld [vmem:[#allocation44_spill] sm:$0xff] }
 0x4c2   :  { %5406 = vmatpush1.bf16.msra.mxu0 %v14272_v13  ;;  %5447 = vmatpush1.bf16.msra.mxu1 %v14276_v46  ;;  %v16596_v13 = vld [vmem:[#allocation65_spill] sm:$0xff]  ;;  %v16598_v46 = vld [vmem:[#allocation64_spill] sm:$0xff] }
 0x4c3   :  { %5407 = vmatprep.subr.bf16.mxu0 %v14280_v9  ;;  %5448 = vmatprep.subr.bf16.mxu1 %v14283_v35  ;;  %v16600_v9 = vld [vmem:[#allocation69_spill] sm:$0xff]  ;;  %v16601_v35 = vld [vmem:[#allocation72_spill] sm:$0xff] }
 0x4c6   :  { %5408 = vmatpush1.bf16.msra.mxu0 %v14287_v23  ;;  %5449 = vmatpush1.bf16.msra.mxu1 %v14291_v60  ;;  %v16602_v23 = vld [vmem:[#allocation71_spill] sm:$0xff] }
 0x4c7   :  { %5409 = vmatprep.subr.bf16.mxu0 %v14293_v55  ;;  %5450 = vmatprep.subr.bf16.mxu1 %v14296_v17  ;;  %v16603_v60 = vld [vmem:[#allocation75_spill] sm:$0xff]  ;;  %v16604_v55 = vld [vmem:[#allocation73_spill] sm:$0xff] }
 0x4c8   :  { %v16605_v17 = vld [vmem:[#allocation77_spill] sm:$0xff] }
 0x4ca   :  { %5410 = vmatpush1.bf16.msra.mxu0 %v14299_v14  ;;  %5451 = vmatpush1.bf16.msra.mxu1 %v14303_v30  ;;  %v16606_v14 = vld [vmem:[#allocation76_spill] sm:$0xff]  ;;  %v16607_v30 = vld [vmem:[#allocation82_spill] sm:$0xff] }
 0x4cb   :  { %5411 = vmatprep.subr.bf16.mxu0 %v14305_v39  ;;  %5452 = vmatprep.subr.bf16.mxu1 %v14308_v1  ;;  %v16608_v39 = vld [vmem:[#allocation81_spill] sm:$0xff]  ;;  %v16609_v1 = vld [vmem:[#allocation84_spill] sm:$0xff] }
 0x4ce   :  { %5412 = vmatpush1.bf16.msra.mxu0 %v14311_v22  ;;  %5453 = vmatpush1.bf16.msra.mxu1 %v14315_v44  ;;  %v16610_v22 = vld [vmem:[#allocation85_spill] sm:$0xff]  ;;  %v16611_v44 = vld [vmem:[#allocation87_spill] sm:$0xff] }
 0x4cf   :  { %5413 = vmatprep.subr.bf16.mxu0 %v14320_v43  ;;  %5454 = vmatprep.subr.bf16.mxu1 %v14326_v49  ;;  %v16612_v43 = vld [vmem:[#allocation83_spill] sm:$0xff]  ;;  %v16615_v49 = vld [vmem:[#allocation93_spill] sm:$0xff] }
 0x4d2   :  { %5414 = vmatpush1.bf16.msra.mxu0 %v14322_v3  ;;  %5455 = vmatpush1.bf16.msra.mxu1 %v14324_v20  ;;  %v16613_v3 = vld [vmem:[#allocation89_spill] sm:$0xff]  ;;  %v16614_v20 = vld [vmem:[#allocation88_spill] sm:$0xff] }
 0x4d3   :  { %5415 = vmatprep.subr.bf16.mxu0 %v14332_v8  ;;  %5456 = vmatprep.subr.bf16.mxu1 %v14338_v18  ;;  %v16616_v8 = vld [vmem:[#allocation94_spill] sm:$0xff]  ;;  %v16619_v18 = vld [vmem:[#allocation97_spill] sm:$0xff] }
 0x4d6   :  { %5416 = vmatpush1.bf16.msra.mxu0 %v14334_v12  ;;  %5457 = vmatpush1.bf16.msra.mxu1 %v14336_v16  ;;  %v16617_v12 = vld [vmem:[#allocation95_spill] sm:$0xff]  ;;  %v16618_v16 = vld [vmem:[#allocation96_spill] sm:$0xff] }
 0x4d7   :  { %5417 = vmatprep.subr.bf16.mxu0 %v14344_v4  ;;  %5458 = vmatprep.subr.bf16.mxu1 %v14350_v6  ;;  %v16620_v4 = vld [vmem:[#allocation100_spill] sm:$0xff] }
 0x4d8   :  { %v16623_v6 = vld [vmem:[#allocation104_spill] sm:$0xff] }
 0x4da   :  { %5418 = vmatpush1.bf16.msra.mxu0 %v14346_v48  ;;  %5459 = vmatpush1.bf16.msra.mxu1 %v14348_v51  ;;  %v16621_v48 = vld [vmem:[#allocation98_spill] sm:$0xff] }
 0x4db   :  { %5419 = vmatprep.subr.bf16.mxu0 %v14356_v21  ;;  %5460 = vmatprep.subr.bf16.mxu1 %v14362_v38  ;;  %v16622_v51 = vld [vmem:[#allocation102_spill] sm:$0xff] }
 0x4de   :  { %5420 = vmatpush1.bf16.msra.mxu0 %v14358_v56  ;;  %5461 = vmatpush1.bf16.msra.mxu1 %v14360_v57  ;;  %v16624_v57 = vld [vmem:[#allocation27_spill] sm:$0xff] }
 0x4df   :  { %5421 = vmatprep.subr.bf16.mxu0 %v14368_v41  ;;  %5462 = vmatprep.subr.bf16.mxu1 %v14374_v63  ;;  %v16625_v41 = vld [vmem:[#allocation42_spill] sm:$0xff] }
 0x4e2   :  { %5422 = vmatpush1.bf16.msra.mxu0 %v14370_v62  ;;  %5463 = vmatpush1.bf16.msra.mxu1 %v14372_v42 }
 0x4e3   :  { %5423 = vmatprep.subr.bf16.mxu0 %v14380_v10  ;;  %5464 = vmatprep.subr.bf16.mxu1 %v14386_v33  ;;  %v16626_v10 = vld [vmem:[#allocation29_spill] sm:$0xff] }
 0x4e6   :  { %5424 = vmatpush1.bf16.msra.mxu0 %v16596_v13  ;;  %5465 = vmatpush1.bf16.msra.mxu1 %v16597_v11 }
 0x4e7   :  { %5425 = vmatprep.subr.bf16.mxu0 %v16598_v46  ;;  %5466 = vmatprep.subr.bf16.mxu1 %v16599_v27 }
 0x4ea   :  { %5426 = vmatpush1.bf16.msra.mxu0 %v16600_v9  ;;  %5467 = vmatpush1.bf16.msra.mxu1 %v16601_v35 }
 0x4eb   :  { %5427 = vmatprep.subr.bf16.mxu0 %v16602_v23  ;;  %5468 = vmatprep.subr.bf16.mxu1 %v16603_v60 }
 0x4ee   :  { %5428 = vmatpush1.bf16.msra.mxu0 %v16604_v55  ;;  %5469 = vmatpush1.bf16.msra.mxu1 %v16605_v17 }
 0x4ef   :  { %5429 = vmatprep.subr.bf16.mxu0 %v16606_v14  ;;  %5470 = vmatprep.subr.bf16.mxu1 %v16607_v30 }
 0x4f2   :  { %5430 = vmatpush1.bf16.msra.mxu0 %v16608_v39  ;;  %5471 = vmatpush1.bf16.msra.mxu1 %v16609_v1 }
 0x4f3   :  { %5431 = vmatprep.subr.bf16.mxu0 %v16610_v22  ;;  %5472 = vmatprep.subr.bf16.mxu1 %v16611_v44  ;;  %v3611_v44 = vmax.f32 %v14490_v58, 0.0 }
 0x4f6   :  { %5432 = vmatpush1.bf16.msra.mxu0 %v16612_v43  ;;  %5473 = vmatpush1.bf16.msra.mxu1 %v16613_v3 }
 0x4f7   :  { %5433 = vmatprep.subr.bf16.mxu0 %v16614_v20  ;;  %5474 = vmatprep.subr.bf16.mxu1 %v16615_v49 }
 0x4fa   :  { %5434 = vmatpush1.bf16.msra.mxu0 %v16616_v8  ;;  %5475 = vmatpush1.bf16.msra.mxu1 %v16617_v12  ;;  %v16629_v8 = vld [vmem:[#allocation47_spill] sm:$0xff] }
 0x4fb   :  { %5435 = vmatprep.subr.bf16.mxu0 %v16618_v16  ;;  %5476 = vmatprep.subr.bf16.mxu1 %v16619_v18  ;;  %v16630_v16 = vld [vmem:[#allocation86_spill] sm:$0xff] }
 0x4fe   :  { %5436 = vmatpush1.bf16.msra.mxu0 %v16620_v4  ;;  %5477 = vmatpush1.bf16.msra.mxu1 %v16621_v48  ;;  %v16631_v48 = vld [vmem:[#allocation49_spill] sm:$0xff] }
 0x4ff   :  { %5487 = vmatprep.subr.bf16.mxu0 %v16622_v51  ;;  %5528 = vmatprep.subr.bf16.mxu1 %v16623_v6  ;;  %v16632_v6 = vld [vmem:[#allocation90_spill] sm:$0xff] }
 0x554   :  { %v4425_v21 = vpop.f32.mrb[48].mxu0  ;;  %v4466_v56 = vpop.f32.mrb[64].mxu1 }
 0x555   :  { %v4562_v38 = vadd.f32 %v4425_v21, %v16624_v57  ;;  %v4564_v62 = vadd.f32 %v4466_v56, %v16625_v41  ;;  %v4427_v42 = vpop.f32.mrb[49].mxu0  ;;  %v4468_v63 = vpop.f32.mrb[65].mxu1 }
 0x556   :  { %v4563_v33 = vadd.f32 %v4427_v42, %v16626_v10  ;;  %v4565_v31 = vadd.f32 %v4468_v63, %v16627_v45  ;;  %v4429_v24 = vpop.f32.mrb[50].mxu0  ;;  %v4470_v32 = vpop.f32.mrb[66].mxu1 }
 0x557   :  { %v11651_v0 = vmul.f32 -1.442695, %v4562_v38  ;;  %v4430_v59 = vpop.f32.mrb[51].mxu0  ;;  %v4471_v28 = vpop.f32.mrb[67].mxu1  ;;  %v11653_v37 = vmul.f32 -1.442695, %v4564_v62 }
 0x558   :  { %v11652_v47 = vmul.f32 -1.442695, %v4563_v33 }
 0x559   :  { %12786 = vpow2.f32 %v11651_v0 }
 0x55a   :  { %12788 = vpow2.f32 %v11652_v47 }
 0x55b   :  { %12790 = vtanh.f32 %v4565_v31 }
 0x55c   :  { %12792 = vpow2.f32 %v11653_v37 }
 0x563   :  { %v12787_v13 = vpop.eup %12786 }
 0x564   :  { %v4586_v11 = vadd.f32 1.0, %v12787_v13  ;;  %v12789_v46 = vpop.eup %12788 }
 0x565   :  { %v4587_v27 = vadd.f32 1.0, %v12789_v46  ;;  %v12791_v9 = vpop.eup %12790 }
 0x566   :  { %12794 = vrcp.f32 %v4586_v11  ;;  %v12793_v35 = vpop.eup %12792 }
 0x567   :  { %12796 = vrcp.f32 %v4587_v27  ;;  %v4588_v17 = vadd.f32 1.0, %v12793_v35 }
 0x569   :  { %12798 = vrcp.f32 %v4588_v17  ;;  %v16637_v17 = vld [vmem:[#allocation19_spill] sm:$0xff] }
 0x570   :  { %v12795_v23 = vpop.eup %12794 }
 0x571   :  { %v4597_v60 = vmul.f32 %v12795_v23, %v12791_v9  ;;  %v12797_v55 = vpop.eup %12796  ;;  %v3616_v9 = vmax.f32 %v14492_v40, 0.0  ;;  %v16636_v40 = vld [vmem:[#allocation106_spill] sm:$0xff] }
 0x572   :  { %v4596_v14 = vmul.f32 %v12797_v55, %v14479_v50  ;;  %v16635_v55 = vld [vmem:[#allocation105_spill] sm:$0xff] }
 0x573   :  { %v12799_v39 = vpop.eup %12798 }
 0x574   :  { %v14757_v30 = vadd.f32 %v4597_v60, %v4596_v14  ;;  %v16638_v14 = vld [vmem:[#allocation34_spill] sm:$0xff] }
 0x576   :  { %12800 = vtanh.f32 %v14757_v30 }
 0x580   :  { %v12801_v1 = vpop.eup %12800 }
 0x581   :  { %v4600_v22 = vmul.f32 %v12801_v1, %v12799_v39  ;;  %v16639_v39 = vld [vmem:[#allocation21_spill] sm:$0xff]  ;;  %v16640_v1 = vld [vmem:[#allocation36_spill] sm:$0xff] }
 0x583   :  { %v4625_v43 = vmax.f32 %v4600_v22, 0.0  ;;  %v14772_v23 = vpack.c.bf16 %v4600_v22, %v4600_v22  ;;  %v16641_v22 = vld [vmem:[#allocation55_spill] sm:$0xff] }
 0x585   :  { %v14761_v3 = vpack.c.bf16 %v4625_v43, %v3611_v44  ;;  %v16642_v44 = vld [vmem:[#allocation99_spill] sm:$0xff]  ;;  %v16644_v43 = vld [vmem:[#allocation101_spill] sm:$0xff] }
 0x587   :  { %16628 = vst [vmem:[#allocation145_spill] sm:$0xff] %v14761_v3  ;;  %v5755_v3 = vld [vmem:[#allocation4 + $0x3a0] sm:$0xff] }
 0x594   :  { %v4507_v20 = vpop.f32.mrb[52].mxu0  ;;  %v4548_v49 = vpop.f32.mrb[68].mxu1 }
 0x595   :  { %v4573_v12 = vadd.f32 %v4507_v20, %v16629_v8  ;;  %v4575_v18 = vadd.f32 %v4548_v49, %v16630_v16  ;;  %v4509_v50 = vpop.f32.mrb[53].mxu0  ;;  %v4550_v4 = vpop.f32.mrb[69].mxu1  ;;  %v16645_v20 = vld [vmem:[#allocation107_spill] sm:$0xff]  ;;  %v16646_v49 = vld [vmem:[#allocation108_spill] sm:$0xff]  ;;  %v16647_v8 = vld [vmem:[#allocation109_spill] sm:$0xff] }
 0x596   :  { %v4574_v51 = vadd.f32 %v4509_v50, %v16631_v48  ;;  %v4576_v21 = vadd.f32 %v4550_v4, %v16632_v6  ;;  %v4511_v56 = vpop.f32.mrb[54].mxu0  ;;  %v4552_v57 = vpop.f32.mrb[70].mxu1  ;;  %v16649_v16 = vld [vmem:[#allocation111_spill] sm:$0xff]  ;;  %v16651_v50 = vld [vmem:[#allocation113_spill] sm:$0xff]  ;;  %v16652_v4 = vld [vmem:[#allocation114_spill] sm:$0xff] }
 0x597   :  { %v11654_v38 = vmul.f32 -1.442695, %v4573_v12  ;;  %v4512_v41 = vpop.f32.mrb[55].mxu0  ;;  %v4553_v58 = vpop.f32.mrb[71].mxu1  ;;  %v11656_v42 = vmul.f32 -1.442695, %v4575_v18 }
 0x598   :  { %v11655_v62 = vmul.f32 -1.442695, %v4574_v51  ;;  %v16648_v12 = vld [vmem:[#allocation110_spill] sm:$0xff]  ;;  %v16650_v18 = vld [vmem:[#allocation112_spill] sm:$0xff]  ;;  %v16653_v48 = vld [vmem:[#allocation115_spill] sm:$0xff] }
 0x599   :  { %12802 = vpow2.f32 %v11654_v38  ;;  %v16654_v51 = vld [vmem:[#allocation116_spill] sm:$0xff]  ;;  %v16655_v6 = vld [vmem:[#allocation117_spill] sm:$0xff]  ;;  %v16657_v56 = vld [vmem:[#allocation119_spill] sm:$0xff] }
 0x59a   :  { %12804 = vpow2.f32 %v11655_v62  ;;  %v16658_v57 = vld [vmem:[#allocation120_spill] sm:$0xff]  ;;  %v16659_v38 = vld [vmem:[#allocation121_spill] sm:$0xff]  ;;  %v16660_v41 = vld [vmem:[#allocation122_spill] sm:$0xff] }
 0x59b   :  { %12806 = vtanh.f32 %v4576_v21  ;;  %v16656_v21 = vld [vmem:[#allocation118_spill] sm:$0xff]  ;;  %v16661_v58 = vld [vmem:[#allocation123_spill] sm:$0xff]  ;;  %v16662_v62 = vld [vmem:[#allocation124_spill] sm:$0xff] }
 0x59c   :  { %12808 = vpow2.f32 %v11656_v42  ;;  %v16663_v42 = vld [vmem:[#allocation125_spill] sm:$0xff] }
 0x5a3   :  { %v12803_v63 = vpop.eup %12802 }
 0x5a4   :  { %v4610_v10 = vadd.f32 1.0, %v12803_v63  ;;  %v12805_v33 = vpop.eup %12804  ;;  %v16664_v63 = vld [vmem:[#allocation126_spill] sm:$0xff] }
 0x5a5   :  { %v4611_v45 = vadd.f32 1.0, %v12805_v33  ;;  %v12807_v31 = vpop.eup %12806  ;;  %v16666_v33 = vld [vmem:[#allocation128_spill] sm:$0xff] }
 0x5a6   :  { %12810 = vrcp.f32 %v4610_v10  ;;  %v12809_v24 = vpop.eup %12808  ;;  %v16665_v10 = vld [vmem:[#allocation127_spill] sm:$0xff] }
 0x5a7   :  { %12812 = vrcp.f32 %v4611_v45  ;;  %v4612_v28 = vadd.f32 1.0, %v12809_v24  ;;  %v16667_v45 = vld [vmem:[#allocation129_spill] sm:$0xff]  ;;  %v16669_v24 = vld [vmem:[#allocation131_spill] sm:$0xff] }
 0x5a9   :  { %12814 = vrcp.f32 %v4612_v28  ;;  %v16673_v28 = vld [vmem:[#allocation135_spill] sm:$0xff] }
 0x5b0   :  { %v12811_v32 = vpop.eup %12810 }
 0x5b1   :  { %v4621_v0 = vmul.f32 %v12811_v32, %v12807_v31  ;;  %v12813_v59 = vpop.eup %12812  ;;  %v16668_v31 = vld [vmem:[#allocation130_spill] sm:$0xff]  ;;  %v16670_v32 = vld [vmem:[#allocation132_spill] sm:$0xff] }
 0x5b2   :  { %v4620_v47 = vmul.f32 %v12813_v59, %v14487_v53  ;;  %v16634_v53 = vld [vmem:[#allocation103_spill] sm:$0xff]  ;;  %v16672_v59 = vld [vmem:[#allocation134_spill] sm:$0xff] }
 0x5b3   :  { %v12815_v13 = vpop.eup %12814 }
 0x5b4   :  { %v14768_v37 = vadd.f32 %v4621_v0, %v4620_v47  ;;  %v16671_v0 = vld [vmem:[#allocation133_spill] sm:$0xff]  ;;  %v16674_v47 = vld [vmem:[#allocation136_spill] sm:$0xff] }
 0x5b6   :  { %12816 = vtanh.f32 %v14768_v37 }
 0x5c0   :  { %v12817_v11 = vpop.eup %12816 }
 0x5c1   :  { %v4624_v46 = vmul.f32 %v12817_v11, %v12815_v13  ;;  %v16675_v13 = vld [vmem:[#allocation137_spill] sm:$0xff]  ;;  %v16676_v11 = vld [vmem:[#allocation138_spill] sm:$0xff] }
 0x5c3   :  { %v4636_v27 = vpack.c.bf16 %v4624_v46, %v4624_v46  ;;  %v4630_v35 = vmax.f32 %v4624_v46, 0.0  ;;  %v16677_v46 = vld [vmem:[#allocation139_spill] sm:$0xff] }
 0x5c5   :  { %5437 = vmatprep.mubr.bf16.mxu0 %v4636_v27  ;;  %5478 = vmatprep.mubr.bf16.mxu1 %v4636_v27  ;;  %v14774_v60 = vpack.c.bf16 %v3616_v9, %v4630_v35  ;;  %v16679_v9 = vld [vmem:[#allocation141_spill] sm:$0xff]  ;;  %v16680_v35 = vld [vmem:[#allocation142_spill] sm:$0xff] }
 0x5c6   :  { %5438 = vmatmul.mubr.bf16.vlgmr.msra.gmra.mrb[56].mxu0 %v14772_v23  ;;  %5479 = vmatmul.mubr.bf16.vlgmr.msra.gmra.mrb[72].mxu1 %v14772_v23 }
 0x5c7   :  { %16633 = vst [vmem:[#allocation146_spill] sm:$0xff] %v14774_v60  ;;  %5488 = vmatpush1.bf16.msra.mxu0 %v14466_v61  ;;  %5529 = vmatpush1.bf16.msra.mxu1 %v16634_v53  ;;  %v16643_v61 = vld [vmem:[#allocation57_spill] sm:$0xff]  ;;  %v16681_v53 = vld [vmem:[#allocation143_spill] sm:$0xff] }
 0x5c8   :  { %5519 = vmatprep.mubr.bf16.mxu0 %v4636_v27  ;;  %5560 = vmatprep.mubr.bf16.mxu1 %v4636_v27  ;;  %v16678_v27 = vld [vmem:[#allocation140_spill] sm:$0xff] }
 0x5c9   :  { %5489 = vmatprep.subr.bf16.mxu0 %v16635_v55  ;;  %5530 = vmatprep.subr.bf16.mxu1 %v16636_v40  ;;  %v16682_v55 = vld [vmem:[#allocation144_spill] sm:$0xff]  ;;  %v5652_v40 = vld [vmem:[#allocation4 + $0x68] sm:$0xff] }
 0x5cb   :  { %5490 = vmatpush1.bf16.msra.mxu0 %v16637_v17  ;;  %5531 = vmatpush1.bf16.msra.mxu1 %v16638_v14  ;;  %v5655_v17 = vld [vmem:[#allocation4 + $0x80] sm:$0xff] }
 0x5cc   :  { %5491 = vmatprep.subr.bf16.mxu0 %v16639_v39  ;;  %5532 = vmatprep.subr.bf16.mxu1 %v16640_v1  ;;  %v5659_v14 = vld [vmem:[#allocation4 + $0xa0] sm:$0xff]  ;;  %v5656_v39 = vld [vmem:[#allocation4 + $0x88] sm:$0xff] }
 0x5cd   :  { %v5660_v1 = vld [vmem:[#allocation4 + $0xa8] sm:$0xff] }
 0x5cf   :  { %5492 = vmatpush1.bf16.msra.mxu0 %v16641_v22  ;;  %5533 = vmatpush1.bf16.msra.mxu1 %v16642_v44 }
 0x5d0   :  { %5493 = vmatprep.subr.bf16.mxu0 %v16643_v61  ;;  %5534 = vmatprep.subr.bf16.mxu1 %v16644_v43  ;;  %v14863_v61 = vcombine.high %v5655_v17, %v5659_v14  ;;  %v14866_v43 = vcombine.high %v5656_v39, %v5660_v1 }
 0x5d3   :  { %5494 = vmatpush1.bf16.msra.mxu0 %v16645_v20  ;;  %5535 = vmatpush1.bf16.msra.mxu1 %v16646_v49  ;;  %v5663_v20 = vld [vmem:[#allocation4 + $0xc0] sm:$0xff] }
 0x5d4   :  { %5495 = vmatprep.subr.bf16.mxu0 %v16647_v8  ;;  %5536 = vmatprep.subr.bf16.mxu1 %v16648_v12  ;;  %v5667_v49 = vld [vmem:[#allocation4 + $0xe0] sm:$0xff]  ;;  %v5664_v8 = vld [vmem:[#allocation4 + $0xc8] sm:$0xff] }
 0x5d5   :  { %v5668_v12 = vld [vmem:[#allocation4 + $0xe8] sm:$0xff] }
 0x5d7   :  { %5496 = vmatpush1.bf16.msra.mxu0 %v16649_v16  ;;  %5537 = vmatpush1.bf16.msra.mxu1 %v16650_v18  ;;  %v14869_v16 = vcombine.low %v5655_v17, %v5659_v14  ;;  %v14873_v18 = vcombine.low %v5656_v39, %v5660_v1  ;;  %v5708_v17 = vld [vmem:[#allocation4 + $0x228] sm:$0xff] }
 0x5d8   :  { %5497 = vmatprep.subr.bf16.mxu0 %v16651_v50  ;;  %5538 = vmatprep.subr.bf16.mxu1 %v16652_v4  ;;  %v14875_v50 = vcombine.high %v5663_v20, %v5667_v49  ;;  %v14878_v4 = vcombine.high %v5664_v8, %v5668_v12 }
 0x5db   :  { %5498 = vmatpush1.bf16.msra.mxu0 %v16653_v48  ;;  %5539 = vmatpush1.bf16.msra.mxu1 %v16654_v51  ;;  %v14881_v48 = vcombine.low %v5663_v20, %v5667_v49  ;;  %v14885_v51 = vcombine.low %v5664_v8, %v5668_v12  ;;  %v5711_v20 = vld [vmem:[#allocation4 + $0x240] sm:$0xff]  ;;  %v5712_v8 = vld [vmem:[#allocation4 + $0x248] sm:$0xff] }
 0x5dc   :  { %5499 = vmatprep.subr.bf16.mxu0 %v16655_v6  ;;  %5540 = vmatprep.subr.bf16.mxu1 %v16656_v21  ;;  %v5671_v6 = vld [vmem:[#allocation4 + $0x100] sm:$0xff] }
 0x5dd   :  { %v5675_v21 = vld [vmem:[#allocation4 + $0x120] sm:$0xff] }
 0x5de   :  { %v5715_v49 = vld [vmem:[#allocation4 + $0x260] sm:$0xff] }
 0x5df   :  { %5500 = vmatpush1.bf16.msra.mxu0 %v16657_v56  ;;  %5541 = vmatpush1.bf16.msra.mxu1 %v16658_v57  ;;  %v5672_v56 = vld [vmem:[#allocation4 + $0x108] sm:$0xff]  ;;  %v14890_v57 = vcombine.high %v5671_v6, %v5675_v21  ;;  %v14950_v12 = vcombine.high %v5711_v20, %v5715_v49 }
 0x5e0   :  { %5501 = vmatprep.subr.bf16.mxu0 %v16659_v38  ;;  %5542 = vmatprep.subr.bf16.mxu1 %v16660_v41  ;;  %v5676_v38 = vld [vmem:[#allocation4 + $0x128] sm:$0xff]  ;;  %v14892_v41 = vcombine.low %v5671_v6, %v5675_v21  ;;  %v14952_v21 = vcombine.low %v5711_v20, %v5715_v49  ;;  %v5735_v20 = vld [vmem:[#allocation4 + $0x300] sm:$0xff] }
 0x5e1   :  { %v5716_v6 = vld [vmem:[#allocation4 + $0x268] sm:$0xff]  ;;  %v5739_v49 = vld [vmem:[#allocation4 + $0x320] sm:$0xff] }
 0x5e2   :  { %16683 = vst [vmem:[#allocation147_spill] sm:$0xff] %v14952_v21 }
 0x5e3   :  { %5502 = vmatpush1.bf16.msra.mxu0 %v16661_v58  ;;  %5543 = vmatpush1.bf16.msra.mxu1 %v16662_v62  ;;  %v14894_v58 = vcombine.low %v5672_v56, %v5676_v38  ;;  %v14896_v62 = vcombine.high %v5672_v56, %v5676_v38  ;;  %v14954_v56 = vcombine.low %v5712_v8, %v5716_v6 }
 0x5e4   :  { %5503 = vmatprep.subr.bf16.mxu0 %v16663_v42  ;;  %5544 = vmatprep.subr.bf16.mxu1 %v16664_v63  ;;  %v5679_v42 = vld [vmem:[#allocation4 + $0x140] sm:$0xff]  ;;  %v14956_v38 = vcombine.high %v5712_v8, %v5716_v6  ;;  %v5736_v8 = vld [vmem:[#allocation4 + $0x308] sm:$0xff]  ;;  %v14986_v6 = vcombine.high %v5735_v20, %v5739_v49 }
 0x5e5   :  { %v5683_v63 = vld [vmem:[#allocation4 + $0x160] sm:$0xff]  ;;  %16684 = vst [vmem:[#allocation148_spill] sm:$0xff] %v14954_v56 }
 0x5e6   :  { %16693 = vst [vmem:[#allocation53_spill] sm:$0xff] %v14986_v6 }
 0x5e7   :  { %5504 = vmatpush1.bf16.msra.mxu0 %v16665_v10  ;;  %5545 = vmatpush1.bf16.msra.mxu1 %v16666_v33  ;;  %v5680_v10 = vld [vmem:[#allocation4 + $0x148] sm:$0xff]  ;;  %v14902_v33 = vcombine.high %v5679_v42, %v5683_v63 }
 0x5e8   :  { %5505 = vmatprep.subr.bf16.mxu0 %v16667_v45  ;;  %5546 = vmatprep.subr.bf16.mxu1 %v16668_v31  ;;  %v5684_v45 = vld [vmem:[#allocation4 + $0x168] sm:$0xff]  ;;  %v14904_v31 = vcombine.low %v5679_v42, %v5683_v63  ;;  %v5719_v42 = vld [vmem:[#allocation4 + $0x280] sm:$0xff] }
 0x5e9   :  { %v5723_v63 = vld [vmem:[#allocation4 + $0x2a0] sm:$0xff] }
 0x5eb   :  { %5506 = vmatpush1.bf16.msra.mxu0 %v16669_v24  ;;  %5547 = vmatpush1.bf16.msra.mxu1 %v16670_v32  ;;  %v14906_v24 = vcombine.low %v5680_v10, %v5684_v45  ;;  %v14908_v32 = vcombine.high %v5680_v10, %v5684_v45  ;;  %v5720_v10 = vld [vmem:[#allocation4 + $0x288] sm:$0xff]  ;;  %v14962_v45 = vcombine.high %v5719_v42, %v5723_v63 }
 0x5ec   :  { %5507 = vmatprep.subr.bf16.mxu0 %v16671_v0  ;;  %5548 = vmatprep.subr.bf16.mxu1 %v16672_v59  ;;  %v5687_v0 = vld [vmem:[#allocation4 + $0x180] sm:$0xff] }
 0x5ed   :  { %v5691_v59 = vld [vmem:[#allocation4 + $0x1a0] sm:$0xff]  ;;  %16685 = vst [vmem:[#allocation149_spill] sm:$0xff] %v14962_v45 }
 0x5ef   :  { %5508 = vmatpush1.bf16.msra.mxu0 %v16673_v28  ;;  %5549 = vmatpush1.bf16.msra.mxu1 %v16674_v47  ;;  %v5688_v28 = vld [vmem:[#allocation4 + $0x188] sm:$0xff]  ;;  %v14914_v47 = vcombine.high %v5687_v0, %v5691_v59 }
 0x5f0   :  { %5509 = vmatprep.subr.bf16.mxu0 %v16675_v13  ;;  %5550 = vmatprep.subr.bf16.mxu1 %v16676_v11  ;;  %v5692_v13 = vld [vmem:[#allocation4 + $0x1a8] sm:$0xff]  ;;  %v14916_v11 = vcombine.low %v5687_v0, %v5691_v59  ;;  %v14964_v59 = vcombine.low %v5719_v42, %v5723_v63  ;;  %v14988_v63 = vcombine.low %v5735_v20, %v5739_v49  ;;  %v5751_v49 = vld [vmem:[#allocation4 + $0x380] sm:$0xff] }
 0x5f1   :  { %v5724_v0 = vld [vmem:[#allocation4 + $0x2a8] sm:$0xff] }
 0x5f2   :  { %16686 = vst [vmem:[#allocation150_spill] sm:$0xff] %v14964_v59  ;;  %v5740_v42 = vld [vmem:[#allocation4 + $0x328] sm:$0xff]  ;;  %16694 = vst [vmem:[#allocation92_spill] sm:$0xff] %v14988_v63 }
 0x5f3   :  { %5510 = vmatpush1.bf16.msra.mxu0 %v16677_v46  ;;  %5551 = vmatpush1.bf16.msra.mxu1 %v16678_v27  ;;  %v14918_v46 = vcombine.low %v5688_v28, %v5692_v13  ;;  %v14920_v27 = vcombine.high %v5688_v28, %v5692_v13  ;;  %v14966_v28 = vcombine.low %v5720_v10, %v5724_v0  ;;  %v5748_v20 = vld [vmem:[#allocation4 + $0x368] sm:$0xff] }
 0x5f4   :  { %5511 = vmatprep.subr.bf16.mxu0 %v16679_v9  ;;  %5552 = vmatprep.subr.bf16.mxu1 %v16680_v35  ;;  %v5695_v9 = vld [vmem:[#allocation4 + $0x1c0] sm:$0xff]  ;;  %v14968_v13 = vcombine.high %v5720_v10, %v5724_v0  ;;  %v14990_v10 = vcombine.low %v5736_v8, %v5740_v42  ;;  %v14992_v0 = vcombine.high %v5736_v8, %v5740_v42 }
 0x5f5   :  { %v5699_v35 = vld [vmem:[#allocation4 + $0x1e0] sm:$0xff]  ;;  %16687 = vst [vmem:[#allocation23_spill] sm:$0xff] %v14966_v28 }
 0x5f6   :  { %16688 = vst [vmem:[#allocation38_spill] sm:$0xff] %v14968_v13  ;;  %16695 = vst [vmem:[#allocation65_spill] sm:$0xff] %v14990_v10 }
 0x5f7   :  { %5512 = vmatpush1.bf16.msra.mxu0 %v14640_v2  ;;  %5553 = vmatpush1.bf16.msra.mxu1 %v14642_v25  ;;  %v5639_v2 = vld [vmem:[#allocation4] sm:$0xff]  ;;  %16696 = vst [vmem:[#allocation63_spill] sm:$0xff] %v14992_v0 }
 0x5f8   :  { %5513 = vmatprep.subr.bf16.mxu0 %v14646_v26  ;;  %5554 = vmatprep.subr.bf16.mxu1 %v16681_v53  ;;  %v5643_v25 = vld [vmem:[#allocation4 + $0x20] sm:$0xff]  ;;  %v5640_v26 = vld [vmem:[#allocation4 + $0x8] sm:$0xff] }
 0x5f9   :  { %v5696_v53 = vld [vmem:[#allocation4 + $0x1c8] sm:$0xff] }
 0x5fb   :  { %5514 = vmatpush1.bf16.msra.mxu0 %v16682_v55  ;;  %5555 = vmatpush1.bf16.msra.mxu1 %v14654_v15  ;;  %v14842_v15 = vcombine.low %v5639_v2, %v5643_v25  ;;  %v14926_v55 = vcombine.high %v5695_v9, %v5699_v35 }
 0x5fc   :  { %5515 = vmatprep.subr.bf16.mxu0 %v14658_v34  ;;  %5556 = vmatprep.subr.bf16.mxu1 %v14660_v19  ;;  %v14844_v34 = vcombine.high %v5639_v2, %v5643_v25  ;;  %v5644_v19 = vld [vmem:[#allocation4 + $0x28] sm:$0xff]  ;;  %v14928_v25 = vcombine.low %v5695_v9, %v5699_v35  ;;  %v5727_v9 = vld [vmem:[#allocation4 + $0x2c0] sm:$0xff] }
 0x5fd   :  { %v5700_v2 = vld [vmem:[#allocation4 + $0x1e8] sm:$0xff]  ;;  %v5731_v35 = vld [vmem:[#allocation4 + $0x2e0] sm:$0xff] }
 0x5ff   :  { %5516 = vmatpush1.bf16.msra.mxu0 %v14664_v36  ;;  %5557 = vmatpush1.bf16.msra.mxu1 %v14666_v29  ;;  %v5647_v36 = vld [vmem:[#allocation4 + $0x40] sm:$0xff] }
 0x600   :  { %5517 = vmatprep.subr.bf16.mxu0 %v14670_v5  ;;  %5558 = vmatprep.subr.bf16.mxu1 %v14672_v54  ;;  %v5651_v29 = vld [vmem:[#allocation4 + $0x60] sm:$0xff]  ;;  %v14846_v5 = vcombine.low %v5640_v26, %v5644_v19  ;;  %v14848_v54 = vcombine.high %v5640_v26, %v5644_v19  ;;  %v14930_v26 = vcombine.low %v5696_v53, %v5700_v2 }
 0x601   :  { %v14857_v22 = vcombine.low %v5647_v36, %v5651_v29  ;;  %v14932_v19 = vcombine.high %v5696_v53, %v5700_v2  ;;  %v5728_v53 = vld [vmem:[#allocation4 + $0x2c8] sm:$0xff]  ;;  %v14974_v2 = vcombine.high %v5727_v9, %v5731_v35 }
 0x603   :  { %5518 = vmatpush1.bf16.msra.mxu0 %v14676_v7  ;;  %5559 = vmatpush1.bf16.msra.mxu1 %v14678_v52  ;;  %v14850_v7 = vcombine.high %v5647_v36, %v5651_v29  ;;  %v5648_v52 = vld [vmem:[#allocation4 + $0x48] sm:$0xff]  ;;  %v5703_v36 = vld [vmem:[#allocation4 + $0x200] sm:$0xff]  ;;  %16689 = vst [vmem:[#allocation25_spill] sm:$0xff] %v14974_v2 }
 0x604   :  { %6407 = vmatprep.subr.bf16.mxu0 %v14844_v34  ;;  %6448 = vmatprep.subr.bf16.mxu1 %v14848_v54  ;;  %v14861_v44 = vcombine.low %v5648_v52, %v5652_v40  ;;  %v5707_v29 = vld [vmem:[#allocation4 + $0x220] sm:$0xff] }
 0x605   :  { %v14940_v14 = vcombine.low %v5703_v36, %v5707_v29 }
 0x606   :  { %5520 = vmatmul.mubr.bf16.vlgmr.msra.gmra.mrb[60].mxu0 %v14772_v23  ;;  %5561 = vmatmul.mubr.bf16.vlgmr.msra.gmra.mrb[76].mxu1 %v14772_v23  ;;  %v14853_v23 = vcombine.high %v5648_v52, %v5652_v40  ;;  %v5704_v52 = vld [vmem:[#allocation4 + $0x208] sm:$0xff]  ;;  %v14938_v40 = vcombine.high %v5703_v36, %v5707_v29  ;;  %v14976_v29 = vcombine.low %v5727_v9, %v5731_v35  ;;  %v5743_v9 = vld [vmem:[#allocation4 + $0x340] sm:$0xff] }
 0x607   :  { %6408 = vmatpush1.bf16.msra.mxu0 %v14842_v15  ;;  %6449 = vmatpush1.bf16.msra.mxu1 %v14846_v5  ;;  %v14942_v39 = vcombine.low %v5704_v52, %v5708_v17  ;;  %v14944_v1 = vcombine.high %v5704_v52, %v5708_v17  ;;  %v5732_v36 = vld [vmem:[#allocation4 + $0x2e8] sm:$0xff]  ;;  %v5747_v35 = vld [vmem:[#allocation4 + $0x360] sm:$0xff] }
 0x608   :  { %6409 = vmatprep.subr.bf16.mxu0 %v14850_v7  ;;  %6450 = vmatprep.subr.bf16.mxu1 %v14853_v23  ;;  %16690 = vst [vmem:[#allocation40_spill] sm:$0xff] %v14976_v29  ;;  %v14978_v52 = vcombine.low %v5728_v53, %v5732_v36  ;;  %v14980_v17 = vcombine.high %v5728_v53, %v5732_v36  ;;  %v5744_v53 = vld [vmem:[#allocation4 + $0x348] sm:$0xff] }
 0x609   :  { %v14998_v36 = vcombine.low %v5743_v9, %v5747_v35  ;;  %v15000_v60 = vcombine.high %v5743_v9, %v5747_v35  ;;  %v15002_v8 = vcombine.low %v5744_v53, %v5748_v20  ;;  %v15004_v42 = vcombine.high %v5744_v53, %v5748_v20  ;;  %v5764_v9 = vld [vmem:[#allocation4 + $0x3e8] sm:$0xff] }
 0x60a   :  { %16691 = vst [vmem:[#allocation51_spill] sm:$0xff] %v14978_v52  ;;  %16692 = vst [vmem:[#allocation91_spill] sm:$0xff] %v14980_v17  ;;  %v15013_v35 = vcombine.low %v5751_v49, %v5755_v3 }
 0x60b   :  { %6410 = vmatpush1.bf16.msra.mxu0 %v14857_v22  ;;  %6451 = vmatpush1.bf16.msra.mxu1 %v14861_v44  ;;  %16697 = vst [vmem:[#allocation64_spill] sm:$0xff] %v14998_v36  ;;  %16698 = vst [vmem:[#allocation70_spill] sm:$0xff] %v15000_v60 }
 0x60c   :  { %6411 = vmatprep.subr.bf16.mxu0 %v14863_v61  ;;  %6452 = vmatprep.subr.bf16.mxu1 %v14866_v43  ;;  %16699 = vst [vmem:[#allocation69_spill] sm:$0xff] %v15002_v8  ;;  %16700 = vst [vmem:[#allocation72_spill] sm:$0xff] %v15004_v42 }
 0x60d   :  { %16703 = vst [vmem:[#allocation73_spill] sm:$0xff] %v15013_v35 }
 0x60f   :  { %6412 = vmatpush1.bf16.msra.mxu0 %v14869_v16  ;;  %6453 = vmatpush1.bf16.msra.mxu1 %v14873_v18 }
 0x610   :  { %6413 = vmatprep.subr.bf16.mxu0 %v14875_v50  ;;  %6454 = vmatprep.subr.bf16.mxu1 %v14878_v4 }
 0x613   :  { %6414 = vmatpush1.bf16.msra.mxu0 %v14881_v48  ;;  %6455 = vmatpush1.bf16.msra.mxu1 %v14885_v51 }
 0x614   :  { %6415 = vmatprep.subr.bf16.mxu0 %v14890_v57  ;;  %6456 = vmatprep.subr.bf16.mxu1 %v14896_v62 }
 0x617   :  { %6416 = vmatpush1.bf16.msra.mxu0 %v14892_v41  ;;  %6457 = vmatpush1.bf16.msra.mxu1 %v14894_v58 }
 0x618   :  { %6417 = vmatprep.subr.bf16.mxu0 %v14902_v33  ;;  %6458 = vmatprep.subr.bf16.mxu1 %v14908_v32 }
 0x61b   :  { %6418 = vmatpush1.bf16.msra.mxu0 %v14904_v31  ;;  %6459 = vmatpush1.bf16.msra.mxu1 %v14906_v24 }
 0x61c   :  { %6419 = vmatprep.subr.bf16.mxu0 %v14914_v47  ;;  %6460 = vmatprep.subr.bf16.mxu1 %v14920_v27 }
 0x61f   :  { %6420 = vmatpush1.bf16.msra.mxu0 %v14916_v11  ;;  %6461 = vmatpush1.bf16.msra.mxu1 %v14918_v46 }
 0x620   :  { %6421 = vmatprep.subr.bf16.mxu0 %v14926_v55  ;;  %6462 = vmatprep.subr.bf16.mxu1 %v14932_v19 }
 0x623   :  { %6422 = vmatpush1.bf16.msra.mxu0 %v14928_v25  ;;  %6463 = vmatpush1.bf16.msra.mxu1 %v14930_v26 }
 0x624   :  { %6423 = vmatprep.subr.bf16.mxu0 %v14938_v40  ;;  %6464 = vmatprep.subr.bf16.mxu1 %v14944_v1 }
 0x627   :  { %6424 = vmatpush1.bf16.msra.mxu0 %v14940_v14  ;;  %6465 = vmatpush1.bf16.msra.mxu1 %v14942_v39 }
 0x628   :  { %6425 = vmatprep.subr.bf16.mxu0 %v14950_v12  ;;  %6466 = vmatprep.subr.bf16.mxu1 %v14956_v38 }
 0x62b   :  { %6426 = vmatpush1.bf16.msra.mxu0 %v14952_v21  ;;  %6467 = vmatpush1.bf16.msra.mxu1 %v14954_v56 }
 0x62c   :  { %6427 = vmatprep.subr.bf16.mxu0 %v14962_v45  ;;  %6468 = vmatprep.subr.bf16.mxu1 %v14968_v13 }
 0x62f   :  { %6428 = vmatpush1.bf16.msra.mxu0 %v14964_v59  ;;  %6469 = vmatpush1.bf16.msra.mxu1 %v14966_v28 }
 0x630   :  { %6429 = vmatprep.subr.bf16.mxu0 %v14974_v2  ;;  %6470 = vmatprep.subr.bf16.mxu1 %v14980_v17  ;;  %v5760_v17 = vld [vmem:[#allocation4 + $0x3c8] sm:$0xff] }
 0x633   :  { %6430 = vmatpush1.bf16.msra.mxu0 %v14976_v29  ;;  %6471 = vmatpush1.bf16.msra.mxu1 %v14978_v52  ;;  %v5759_v52 = vld [vmem:[#allocation4 + $0x3c0] sm:$0xff] }
 0x634   :  { %6431 = vmatprep.subr.bf16.mxu0 %v14986_v6  ;;  %6472 = vmatprep.subr.bf16.mxu1 %v14992_v0  ;;  %v15006_v6 = vcombine.high %v5751_v49, %v5755_v3  ;;  %v5752_v0 = vld [vmem:[#allocation4 + $0x388] sm:$0xff]  ;;  %v15029_v3 = vcombine.low %v5760_v17, %v5764_v9  ;;  %v5642_v49 = vld [vmem:[#allocation4 + $0x18] sm:$0xff] }
 0x636   :  { %16701 = vst [vmem:[#allocation71_spill] sm:$0xff] %v15006_v6  ;;  %16708 = vst [vmem:[#allocation84_spill] sm:$0xff] %v15029_v3 }
 0x637   :  { %6432 = vmatpush1.bf16.msra.mxu0 %v14988_v63  ;;  %6473 = vmatpush1.bf16.msra.mxu1 %v14990_v10  ;;  %v5756_v63 = vld [vmem:[#allocation4 + $0x3a8] sm:$0xff]  ;;  %v5763_v10 = vld [vmem:[#allocation4 + $0x3e0] sm:$0xff] }
 0x638   :  { %6433 = vmatprep.subr.bf16.mxu0 %v15000_v60  ;;  %v15009_v29 = vcombine.high %v5752_v0, %v5756_v63  ;;  %6474 = vmatprep.subr.bf16.mxu1 %v15004_v42  ;;  %v15017_v53 = vcombine.low %v5752_v0, %v5756_v63  ;;  %v15019_v20 = vcombine.high %v5759_v52, %v5763_v10  ;;  %v5641_v63 = vld [vmem:[#allocation4 + $0x10] sm:$0xff] }
 0x639   :  { %v15022_v60 = vcombine.high %v5760_v17, %v5764_v9  ;;  %v15025_v2 = vcombine.low %v5759_v52, %v5763_v10  ;;  %v5645_v0 = vld [vmem:[#allocation4 + $0x30] sm:$0xff] }
 0x63a   :  { %16702 = vst [vmem:[#allocation75_spill] sm:$0xff] %v15009_v29  ;;  %16704 = vst [vmem:[#allocation77_spill] sm:$0xff] %v15017_v53  ;;  %v15036_v52 = vcombine.low %v5641_v63, %v5645_v0 }
 0x63b   :  { %6434 = vmatpush1.bf16.msra.mxu0 %v14998_v36  ;;  %6475 = vmatpush1.bf16.msra.mxu1 %v15002_v8  ;;  %16705 = vst [vmem:[#allocation76_spill] sm:$0xff] %v15019_v20  ;;  %16706 = vst [vmem:[#allocation82_spill] sm:$0xff] %v15022_v60  ;;  %v16714_v36 = vld [vmem:[#allocation17_spill] sm:$0xff] }
 0x63c   :  { %6435 = vmatprep.subr.bf16.mxu0 %v15006_v6  ;;  %6476 = vmatprep.subr.bf16.mxu1 %v15009_v29  ;;  %16707 = vst [vmem:[#allocation81_spill] sm:$0xff] %v15025_v2  ;;  %v15034_v29 = vcombine.high %v5641_v63, %v5645_v0  ;;  %v16715_v63 = vld [vmem:[#allocation48_spill] sm:$0xff] }
 0x63e   :  { %16709 = vst [vmem:[#allocation85_spill] sm:$0xff] %v15034_v29 }
 0x63f   :  { %6436 = vmatpush1.bf16.msra.mxu0 %v15013_v35  ;;  %6477 = vmatpush1.bf16.msra.mxu1 %v15017_v53  ;;  %v5646_v35 = vld [vmem:[#allocation4 + $0x38] sm:$0xff] }
 0x640   :  { %6437 = vmatprep.subr.bf16.mxu0 %v15019_v20  ;;  %6478 = vmatprep.subr.bf16.mxu1 %v15022_v60  ;;  %v15038_v10 = vcombine.low %v5642_v49, %v5646_v35  ;;  %v15040_v53 = vcombine.high %v5642_v49, %v5646_v35  ;;  %v16713_v20 = vld [vmem:[#allocation46_spill] sm:$0xff] }
 0x642   :  { %16710 = vst [vmem:[#allocation87_spill] sm:$0xff] %v15038_v10  ;;  %16711 = vst [vmem:[#allocation83_spill] sm:$0xff] %v15040_v53 }
 0x643   :  { %6438 = vmatpush1.bf16.msra.mxu0 %v15025_v2  ;;  %6479 = vmatpush1.bf16.msra.mxu1 %v15029_v3  ;;  %v16712_v2 = vld [vmem:[#allocation16_spill] sm:$0xff] }
 0x644   :  { %6489 = vmatprep.subr.bf16.mxu0 %v15034_v29  ;;  %6530 = vmatprep.subr.bf16.mxu1 %v15040_v53 }
 0x699   :  { %v5439_v17 = vpop.f32.mrb[56].mxu0  ;;  %v5480_v9 = vpop.f32.mrb[72].mxu1 }
 0x69a   :  { %v5573_v60 = vadd.f32 %v5439_v17, %v16712_v2  ;;  %v5575_v6 = vadd.f32 %v5480_v9, %v16713_v20  ;;  %v5441_v3 = vpop.f32.mrb[57].mxu0  ;;  %v5482_v8 = vpop.f32.mrb[73].mxu1 }
 0x69b   :  { %v5574_v42 = vadd.f32 %v5441_v3, %v16714_v36  ;;  %v5576_v0 = vadd.f32 %v5482_v8, %v16715_v63  ;;  %v5443_v28 = vpop.f32.mrb[58].mxu0  ;;  %v5484_v59 = vpop.f32.mrb[74].mxu1  ;;  %v16716_v8 = vld [vmem:[#allocation43_spill] sm:$0xff] }
 0x69c   :  { %v11785_v35 = vmul.f32 -1.442695, %v5573_v60  ;;  %v5444_v49 = vpop.f32.mrb[59].mxu0  ;;  %v5485_v13 = vpop.f32.mrb[75].mxu1 }
 0x69d   :  { %v11786_v29 = vmul.f32 -1.442695, %v5574_v42 }
 0x69e   :  { %12818 = vpow2.f32 %v11785_v35 }
 0x69f   :  { %12820 = vpow2.f32 %v11786_v29  ;;  %v16717_v29 = vld [vmem:[#allocation79_spill] sm:$0xff] }
 0x6a0   :  { %12822 = vtanh.f32 %v5576_v0  ;;  %v16718_v0 = vld [vmem:[#allocation45_spill] sm:$0xff] }
 0x6a8   :  { %v12819_v53 = vpop.eup %12818 }
 0x6a9   :  { %v5594_v45 = vadd.f32 1.0, %v12819_v53  ;;  %v12821_v56 = vpop.eup %12820 }
 0x6aa   :  { %v5595_v2 = vadd.f32 1.0, %v12821_v56  ;;  %v12823_v20 = vpop.eup %12822  ;;  %v16719_v56 = vld [vmem:[#allocation80_spill] sm:$0xff] }
 0x6ab   :  { %12824 = vrcp.f32 %v5594_v45 }
 0x6ac   :  { %12826 = vrcp.f32 %v5595_v2 }
 0x6b5   :  { %v12825_v17 = vpop.eup %12824 }
 0x6b6   :  { %v5605_v36 = vmul.f32 %v12825_v17, %v12823_v20  ;;  %v12827_v3 = vpop.eup %12826 }
 0x6b7   :  { %v5604_v28 = vmul.f32 %v12827_v3, %v14757_v30 }
 0x6b9   :  { %v15049_v59 = vadd.f32 %v5605_v36, %v5604_v28  ;;  %v11787_v36 = vmul.f32 -1.442695, %v5575_v6 }
 0x6d9   :  { %v5521_v60 = vpop.f32.mrb[60].mxu0  ;;  %v5562_v13 = vpop.f32.mrb[76].mxu1 }
 0x6da   :  { %v5581_v42 = vadd.f32 %v5521_v60, %v16716_v8  ;;  %v5583_v9 = vadd.f32 %v5562_v13, %v16717_v29  ;;  %v5523_v53 = vpop.f32.mrb[61].mxu0  ;;  %v5564_v63 = vpop.f32.mrb[77].mxu1 }
 0x6db   :  { %v5582_v45 = vadd.f32 %v5523_v53, %v16718_v0  ;;  %v5584_v35 = vadd.f32 %v5564_v63, %v16719_v56  ;;  %v5525_v49 = vpop.f32.mrb[62].mxu0  ;;  %v5566_v2 = vpop.f32.mrb[78].mxu1 }
 0x6dc   :  { %v11788_v20 = vmul.f32 -1.442695, %v5581_v42  ;;  %v5526_v17 = vpop.f32.mrb[63].mxu0  ;;  %v5567_v21 = vpop.f32.mrb[79].mxu1  ;;  %v11790_v3 = vmul.f32 -1.442695, %v5583_v9 }
 0x6dd   :  { %v11789_v30 = vmul.f32 -1.442695, %v5582_v45 }
 0x6de   :  { %12828 = vpow2.f32 %v11788_v20 }
 0x6df   :  { %12830 = vpow2.f32 %v11789_v30 }
 0x6e0   :  { %12832 = vpow2.f32 %v11787_v36  ;;  %v5649_v36 = vld [vmem:[#allocation4 + $0x50] sm:$0xff] }
 0x6e1   :  { %12834 = vtanh.f32 %v5584_v35 }
 0x6e2   :  { %12836 = vpow2.f32 %v11790_v3  ;;  %v5653_v3 = vld [vmem:[#allocation4 + $0x70] sm:$0xff] }
 0x6e8   :  { %v12829_v28 = vpop.eup %12828 }
 0x6e9   :  { %v5618_v60 = vadd.f32 1.0, %v12829_v28  ;;  %v12831_v13 = vpop.eup %12830  ;;  %v5650_v28 = vld [vmem:[#allocation4 + $0x58] sm:$0xff] }
 0x6ea   :  { %v5619_v8 = vadd.f32 1.0, %v12831_v13  ;;  %v12833_v29 = vpop.eup %12832 }
 0x6eb   :  { %12838 = vrcp.f32 %v5618_v60  ;;  %v12835_v53 = vpop.eup %12834  ;;  %v5596_v0 = vadd.f32 1.0, %v12833_v29  ;;  %v15070_v29 = vcombine.high %v5649_v36, %v5653_v3 }
 0x6ec   :  { %12840 = vrcp.f32 %v5619_v8  ;;  %v12837_v63 = vpop.eup %12836  ;;  %v5657_v8 = vld [vmem:[#allocation4 + $0x90] sm:$0xff] }
 0x6ed   :  { %v5620_v56 = vadd.f32 1.0, %v12837_v63  ;;  %12842 = vtanh.f32 %v15049_v59  ;;  %16720 = vst [vmem:[#allocation89_spill] sm:$0xff] %v15070_v29  ;;  %v5661_v63 = vld [vmem:[#allocation4 + $0xb0] sm:$0xff] }
 0x6ee   :  { %12844 = vrcp.f32 %v5596_v0  ;;  %v5662_v0 = vld [vmem:[#allocation4 + $0xb8] sm:$0xff] }
 0x6ef   :  { %12846 = vrcp.f32 %v5620_v56  ;;  %v15082_v56 = vcombine.high %v5657_v8, %v5661_v63 }
 0x6f1   :  { %16724 = vst [vmem:[#allocation95_spill] sm:$0xff] %v15082_v56 }
 0x6f5   :  { %v12839_v42 = vpop.eup %12838 }
 0x6f6   :  { %v5629_v21 = vmul.f32 %v12839_v42, %v12835_v53  ;;  %v12841_v45 = vpop.eup %12840  ;;  %v5658_v42 = vld [vmem:[#allocation4 + $0x98] sm:$0xff] }
 0x6f7   :  { %v5628_v6 = vmul.f32 %v12841_v45, %v14768_v37  ;;  %v12843_v35 = vpop.eup %12842  ;;  %v5654_v37 = vld [vmem:[#allocation4 + $0x78] sm:$0xff] }
 0x6f8   :  { %v12845_v49 = vpop.eup %12844  ;;  %v15072_v53 = vcombine.high %v5650_v28, %v5654_v37  ;;  %v15080_v45 = vcombine.low %v5650_v28, %v5654_v37 }
 0x6f9   :  { %v15057_v9 = vadd.f32 %v5629_v21, %v5628_v6  ;;  %v12847_v2 = vpop.eup %12846  ;;  %v15060_v17 = vmul.f32 %v12845_v49, %v12843_v35  ;;  %v15078_v21 = vcombine.low %v5649_v36, %v5653_v3  ;;  %v15084_v6 = vcombine.high %v5658_v42, %v5662_v0  ;;  %v5665_v35 = vld [vmem:[#allocation4 + $0xd0] sm:$0xff] }
 0x6fa   :  { %16721 = vst [vmem:[#allocation88_spill] sm:$0xff] %v15072_v53  ;;  %16723 = vst [vmem:[#allocation94_spill] sm:$0xff] %v15080_v45  ;;  %v5669_v49 = vld [vmem:[#allocation4 + $0xf0] sm:$0xff]  ;;  %v15090_v36 = vcombine.low %v5657_v8, %v5661_v63  ;;  %v15092_v3 = vcombine.low %v5658_v42, %v5662_v0 }
 0x6fb   :  { %12848 = vtanh.f32 %v15057_v9  ;;  %v15068_v13 = vpack.c.bf16 %v15060_v17, %v15060_v17  ;;  %16722 = vst [vmem:[#allocation93_spill] sm:$0xff] %v15078_v21  ;;  %16725 = vst [vmem:[#allocation96_spill] sm:$0xff] %v15084_v6  ;;  %v15096_v28 = vcombine.high %v5665_v35, %v5669_v49  ;;  %v15102_v8 = vcombine.low %v5665_v35, %v5669_v49 }
 0x6fc   :  { %16726 = vst [vmem:[#allocation97_spill] sm:$0xff] %v15090_v36  ;;  %16727 = vst [vmem:[#allocation100_spill] sm:$0xff] %v15092_v3 }
 0x6fd   :  { %16728 = vst [vmem:[#allocation98_spill] sm:$0xff] %v15096_v28  ;;  %16730 = vst [vmem:[#allocation104_spill] sm:$0xff] %v15102_v8 }
 0x705   :  { %v12849_v20 = vpop.eup %12848 }
 0x706   :  { %v15062_v30 = vmul.f32 %v12849_v20, %v12847_v2  ;;  %v5666_v2 = vld [vmem:[#allocation4 + $0xd8] sm:$0xff] }
 0x707   :  { %v5670_v20 = vld [vmem:[#allocation4 + $0xf8] sm:$0xff] }
 0x708   :  { %v5638_v60 = vpack.c.bf16 %v15062_v30, %v15062_v30  ;;  %v15098_v37 = vcombine.high %v5666_v2, %v5670_v20  ;;  %v15104_v63 = vcombine.low %v5666_v2, %v5670_v20 }
 0x70a   :  { %6439 = vmatprep.mubr.bf16.mxu0 %v5638_v60  ;;  %6480 = vmatprep.mubr.bf16.mxu1 %v5638_v60  ;;  %16729 = vst [vmem:[#allocation102_spill] sm:$0xff] %v15098_v37  ;;  %16731 = vst [vmem:[#allocation27_spill] sm:$0xff] %v15104_v63 }
 0x70b   :  { %6440 = vmatmul.mubr.bf16.vlgmr.msra.gmra.mrb[64].mxu0 %v15068_v13  ;;  %6481 = vmatmul.mubr.bf16.vlgmr.msra.gmra.mrb[80].mxu1 %v15068_v13 }
 0x70c   :  { %6490 = vmatpush1.bf16.msra.mxu0 %v15036_v52  ;;  %6531 = vmatpush1.bf16.msra.mxu1 %v15038_v10  ;;  %v5678_v10 = vld [vmem:[#allocation4 + $0x138] sm:$0xff] }
 0x70d   :  { %6521 = vmatprep.mubr.bf16.mxu0 %v5638_v60  ;;  %6562 = vmatprep.mubr.bf16.mxu1 %v5638_v60  ;;  %v5673_v60 = vld [vmem:[#allocation4 + $0x110] sm:$0xff] }
 0x70e   :  { %6491 = vmatprep.subr.bf16.mxu0 %v15070_v29  ;;  %6532 = vmatprep.subr.bf16.mxu1 %v15072_v53  ;;  %v5677_v53 = vld [vmem:[#allocation4 + $0x130] sm:$0xff]  ;;  %v5674_v29 = vld [vmem:[#allocation4 + $0x118] sm:$0xff] }
 0x70f   :  { %v15108_v42 = vcombine.high %v5673_v60, %v5677_v53  ;;  %v15110_v0 = vcombine.high %v5674_v29, %v5678_v10  ;;  %v15114_v35 = vcombine.low %v5673_v60, %v5677_v53  ;;  %v15116_v49 = vcombine.low %v5674_v29, %v5678_v10 }
 0x710   :  { %6492 = vmatpush1.bf16.msra.mxu0 %v15078_v21  ;;  %6533 = vmatpush1.bf16.msra.mxu1 %v15080_v45  ;;  %v5682_v45 = vld [vmem:[#allocation4 + $0x158] sm:$0xff] }
 0x711   :  { %6493 = vmatprep.subr.bf16.mxu0 %v15082_v56  ;;  %6534 = vmatprep.subr.bf16.mxu1 %v15084_v6  ;;  %16732 = vst [vmem:[#allocation42_spill] sm:$0xff] %v15108_v42  ;;  %16733 = vst [vmem:[#allocation29_spill] sm:$0xff] %v15110_v0  ;;  %v5681_v6 = vld [vmem:[#allocation4 + $0x150] sm:$0xff]  ;;  %v5686_v21 = vld [vmem:[#allocation4 + $0x178] sm:$0xff] }
 0x712   :  { %v5685_v56 = vld [vmem:[#allocation4 + $0x170] sm:$0xff]  ;;  %16734 = vst [vmem:[#allocation44_spill] sm:$0xff] %v15114_v35  ;;  %16735 = vst [vmem:[#allocation47_spill] sm:$0xff] %v15116_v49  ;;  %v15122_v20 = vcombine.high %v5682_v45, %v5686_v21  ;;  %v15128_v10 = vcombine.low %v5682_v45, %v5686_v21 }
 0x713   :  { %v15120_v2 = vcombine.high %v5681_v6, %v5685_v56  ;;  %v15126_v53 = vcombine.low %v5681_v6, %v5685_v56 }
 0x714   :  { %6494 = vmatpush1.bf16.msra.mxu0 %v15090_v36  ;;  %6535 = vmatpush1.bf16.msra.mxu1 %v15092_v3  ;;  %16737 = vst [vmem:[#allocation49_spill] sm:$0xff] %v15122_v20  ;;  %v5690_v3 = vld [vmem:[#allocation4 + $0x198] sm:$0xff]  ;;  %16739 = vst [vmem:[#allocation103_spill] sm:$0xff] %v15128_v10 }
 0x715   :  { %6495 = vmatprep.subr.bf16.mxu0 %v15096_v28  ;;  %6536 = vmatprep.subr.bf16.mxu1 %v15098_v37  ;;  %16736 = vst [vmem:[#allocation86_spill] sm:$0xff] %v15120_v2  ;;  %v5689_v37 = vld [vmem:[#allocation4 + $0x190] sm:$0xff]  ;;  %v5694_v36 = vld [vmem:[#allocation4 + $0x1b8] sm:$0xff]  ;;  %16738 = vst [vmem:[#allocation90_spill] sm:$0xff] %v15126_v53 }
 0x716   :  { %v5693_v28 = vld [vmem:[#allocation4 + $0x1b0] sm:$0xff]  ;;  %v15134_v60 = vcombine.high %v5690_v3, %v5694_v36  ;;  %v15140_v21 = vcombine.low %v5690_v3, %v5694_v36 }
 0x717   :  { %v15132_v29 = vcombine.high %v5689_v37, %v5693_v28  ;;  %v15138_v56 = vcombine.low %v5689_v37, %v5693_v28 }
 0x718   :  { %6496 = vmatpush1.bf16.msra.mxu0 %v15102_v8  ;;  %6537 = vmatpush1.bf16.msra.mxu1 %v15104_v63  ;;  %16741 = vst [vmem:[#allocation106_spill] sm:$0xff] %v15134_v60  ;;  %v5698_v63 = vld [vmem:[#allocation4 + $0x1d8] sm:$0xff]  ;;  %16743 = vst [vmem:[#allocation34_spill] sm:$0xff] %v15140_v21 }
 0x719   :  { %6497 = vmatprep.subr.bf16.mxu0 %v15108_v42  ;;  %6538 = vmatprep.subr.bf16.mxu1 %v15110_v0  ;;  %16740 = vst [vmem:[#allocation105_spill] sm:$0xff] %v15132_v29  ;;  %v5697_v0 = vld [vmem:[#allocation4 + $0x1d0] sm:$0xff]  ;;  %v5702_v8 = vld [vmem:[#allocation4 + $0x1f8] sm:$0xff]  ;;  %16742 = vst [vmem:[#allocation19_spill] sm:$0xff] %v15138_v56 }
 0x71a   :  { %v5701_v42 = vld [vmem:[#allocation4 + $0x1f0] sm:$0xff]  ;;  %v15146_v6 = vcombine.high %v5698_v63, %v5702_v8  ;;  %v15152_v36 = vcombine.low %v5698_v63, %v5702_v8 }
 0x71b   :  { %v15144_v45 = vcombine.high %v5697_v0, %v5701_v42  ;;  %v15150_v28 = vcombine.low %v5697_v0, %v5701_v42 }
 0x71c   :  { %6498 = vmatpush1.bf16.msra.mxu0 %v15114_v35  ;;  %6539 = vmatpush1.bf16.msra.mxu1 %v15116_v49  ;;  %16745 = vst [vmem:[#allocation36_spill] sm:$0xff] %v15146_v6  ;;  %v5706_v49 = vld [vmem:[#allocation4 + $0x218] sm:$0xff]  ;;  %16747 = vst [vmem:[#allocation99_spill] sm:$0xff] %v15152_v36 }
 0x71d   :  { %6499 = vmatprep.subr.bf16.mxu0 %v15120_v2  ;;  %6540 = vmatprep.subr.bf16.mxu1 %v15122_v20  ;;  %16744 = vst [vmem:[#allocation21_spill] sm:$0xff] %v15144_v45  ;;  %v5705_v20 = vld [vmem:[#allocation4 + $0x210] sm:$0xff]  ;;  %v5710_v35 = vld [vmem:[#allocation4 + $0x238] sm:$0xff]  ;;  %16746 = vst [vmem:[#allocation55_spill] sm:$0xff] %v15150_v28 }
 0x71e   :  { %v5709_v2 = vld [vmem:[#allocation4 + $0x230] sm:$0xff]  ;;  %v15158_v37 = vcombine.high %v5706_v49, %v5710_v35  ;;  %v15164_v8 = vcombine.low %v5706_v49, %v5710_v35 }
 0x71f   :  { %v15156_v3 = vcombine.high %v5705_v20, %v5709_v2  ;;  %v15162_v42 = vcombine.low %v5705_v20, %v5709_v2 }
 0x720   :  { %6500 = vmatpush1.bf16.msra.mxu0 %v15126_v53  ;;  %6541 = vmatpush1.bf16.msra.mxu1 %v15128_v10  ;;  %16749 = vst [vmem:[#allocation101_spill] sm:$0xff] %v15158_v37  ;;  %v5714_v10 = vld [vmem:[#allocation4 + $0x258] sm:$0xff]  ;;  %16751 = vst [vmem:[#allocation108_spill] sm:$0xff] %v15164_v8 }
 0x721   :  { %6501 = vmatprep.subr.bf16.mxu0 %v15132_v29  ;;  %6542 = vmatprep.subr.bf16.mxu1 %v15134_v60  ;;  %16748 = vst [vmem:[#allocation57_spill] sm:$0xff] %v15156_v3  ;;  %v5713_v60 = vld [vmem:[#allocation4 + $0x250] sm:$0xff]  ;;  %v5718_v53 = vld [vmem:[#allocation4 + $0x278] sm:$0xff]  ;;  %16750 = vst [vmem:[#allocation107_spill] sm:$0xff] %v15162_v42 }
 0x722   :  { %v5717_v29 = vld [vmem:[#allocation4 + $0x270] sm:$0xff]  ;;  %v15170_v0 = vcombine.high %v5714_v10, %v5718_v53  ;;  %v15176_v35 = vcombine.low %v5714_v10, %v5718_v53 }
 0x723   :  { %v15168_v63 = vcombine.high %v5713_v60, %v5717_v29  ;;  %v15174_v2 = vcombine.low %v5713_v60, %v5717_v29 }
 0x724   :  { %6502 = vmatpush1.bf16.msra.mxu0 %v15138_v56  ;;  %6543 = vmatpush1.bf16.msra.mxu1 %v15140_v21  ;;  %16753 = vst [vmem:[#allocation110_spill] sm:$0xff] %v15170_v0  ;;  %v5722_v21 = vld [vmem:[#allocation4 + $0x298] sm:$0xff]  ;;  %16755 = vst [vmem:[#allocation112_spill] sm:$0xff] %v15176_v35 }
 0x725   :  { %6503 = vmatprep.subr.bf16.mxu0 %v15144_v45  ;;  %6544 = vmatprep.subr.bf16.mxu1 %v15146_v6  ;;  %16752 = vst [vmem:[#allocation109_spill] sm:$0xff] %v15168_v63  ;;  %v5721_v6 = vld [vmem:[#allocation4 + $0x290] sm:$0xff]  ;;  %v5726_v56 = vld [vmem:[#allocation4 + $0x2b8] sm:$0xff]  ;;  %16754 = vst [vmem:[#allocation111_spill] sm:$0xff] %v15174_v2 }
 0x726   :  { %v5725_v45 = vld [vmem:[#allocation4 + $0x2b0] sm:$0xff]  ;;  %v15182_v20 = vcombine.high %v5722_v21, %v5726_v56  ;;  %v15188_v53 = vcombine.low %v5722_v21, %v5726_v56 }
 0x727   :  { %v15180_v49 = vcombine.high %v5721_v6, %v5725_v45  ;;  %v15186_v29 = vcombine.low %v5721_v6, %v5725_v45 }
 0x728   :  { %6504 = vmatpush1.bf16.msra.mxu0 %v15150_v28  ;;  %6545 = vmatpush1.bf16.msra.mxu1 %v15152_v36  ;;  %16757 = vst [vmem:[#allocation114_spill] sm:$0xff] %v15182_v20  ;;  %v5730_v36 = vld [vmem:[#allocation4 + $0x2d8] sm:$0xff]  ;;  %16759 = vst [vmem:[#allocation116_spill] sm:$0xff] %v15188_v53 }
 0x729   :  { %6505 = vmatprep.subr.bf16.mxu0 %v15156_v3  ;;  %6546 = vmatprep.subr.bf16.mxu1 %v15158_v37  ;;  %16756 = vst [vmem:[#allocation113_spill] sm:$0xff] %v15180_v49  ;;  %v5729_v37 = vld [vmem:[#allocation4 + $0x2d0] sm:$0xff]  ;;  %v5734_v28 = vld [vmem:[#allocation4 + $0x2f8] sm:$0xff]  ;;  %16758 = vst [vmem:[#allocation115_spill] sm:$0xff] %v15186_v29 }
 0x72a   :  { %v5733_v3 = vld [vmem:[#allocation4 + $0x2f0] sm:$0xff]  ;;  %v15194_v60 = vcombine.high %v5730_v36, %v5734_v28  ;;  %v15200_v56 = vcombine.low %v5730_v36, %v5734_v28 }
 0x72b   :  { %v15192_v10 = vcombine.high %v5729_v37, %v5733_v3  ;;  %v15198_v45 = vcombine.low %v5729_v37, %v5733_v3 }
 0x72c   :  { %6506 = vmatpush1.bf16.msra.mxu0 %v15162_v42  ;;  %6547 = vmatpush1.bf16.msra.mxu1 %v15164_v8  ;;  %16761 = vst [vmem:[#allocation118_spill] sm:$0xff] %v15194_v60  ;;  %v5738_v8 = vld [vmem:[#allocation4 + $0x318] sm:$0xff]  ;;  %16763 = vst [vmem:[#allocation120_spill] sm:$0xff] %v15200_v56 }
 0x72d   :  { %6507 = vmatprep.subr.bf16.mxu0 %v15168_v63  ;;  %6548 = vmatprep.subr.bf16.mxu1 %v15170_v0  ;;  %16760 = vst [vmem:[#allocation117_spill] sm:$0xff] %v15192_v10  ;;  %v5737_v0 = vld [vmem:[#allocation4 + $0x310] sm:$0xff]  ;;  %v5742_v42 = vld [vmem:[#allocation4 + $0x338] sm:$0xff]  ;;  %16762 = vst [vmem:[#allocation119_spill] sm:$0xff] %v15198_v45 }
 0x72e   :  { %v5741_v63 = vld [vmem:[#allocation4 + $0x330] sm:$0xff]  ;;  %v15206_v6 = vcombine.high %v5738_v8, %v5742_v42  ;;  %v15212_v28 = vcombine.low %v5738_v8, %v5742_v42 }
 0x72f   :  { %v15204_v21 = vcombine.high %v5737_v0, %v5741_v63  ;;  %v15210_v3 = vcombine.low %v5737_v0, %v5741_v63 }
 0x730   :  { %6508 = vmatpush1.bf16.msra.mxu0 %v15174_v2  ;;  %6549 = vmatpush1.bf16.msra.mxu1 %v15176_v35  ;;  %16765 = vst [vmem:[#allocation122_spill] sm:$0xff] %v15206_v6  ;;  %v5746_v35 = vld [vmem:[#allocation4 + $0x358] sm:$0xff] }
 0x731   :  { %6509 = vmatprep.subr.bf16.mxu0 %v15180_v49  ;;  %6550 = vmatprep.subr.bf16.mxu1 %v15182_v20  ;;  %16764 = vst [vmem:[#allocation121_spill] sm:$0xff] %v15204_v21  ;;  %v5745_v20 = vld [vmem:[#allocation4 + $0x350] sm:$0xff]  ;;  %v5750_v2 = vld [vmem:[#allocation4 + $0x378] sm:$0xff] }
 0x732   :  { %v5749_v49 = vld [vmem:[#allocation4 + $0x370] sm:$0xff]  ;;  %v15218_v37 = vcombine.high %v5746_v35, %v5750_v2  ;;  %v15224_v42 = vcombine.low %v5746_v35, %v5750_v2 }
 0x733   :  { %v15216_v36 = vcombine.high %v5745_v20, %v5749_v49  ;;  %v15222_v63 = vcombine.low %v5745_v20, %v5749_v49 }
 0x734   :  { %6510 = vmatpush1.bf16.msra.mxu0 %v15186_v29  ;;  %6551 = vmatpush1.bf16.msra.mxu1 %v15188_v53  ;;  %16766 = vst [vmem:[#allocation123_spill] sm:$0xff] %v15218_v37  ;;  %v5754_v53 = vld [vmem:[#allocation4 + $0x398] sm:$0xff] }
 0x735   :  { %6511 = vmatprep.subr.bf16.mxu0 %v15192_v10  ;;  %6552 = vmatprep.subr.bf16.mxu1 %v15194_v60  ;;  %v5753_v60 = vld [vmem:[#allocation4 + $0x390] sm:$0xff]  ;;  %v5758_v29 = vld [vmem:[#allocation4 + $0x3b8] sm:$0xff]  ;;  %16767 = vst [vmem:[#allocation124_spill] sm:$0xff] %v15222_v63 }
 0x736   :  { %v5757_v10 = vld [vmem:[#allocation4 + $0x3b0] sm:$0xff]  ;;  %v15230_v0 = vcombine.high %v5754_v53, %v5758_v29  ;;  %v15236_v2 = vcombine.low %v5754_v53, %v5758_v29 }
 0x737   :  { %v15228_v8 = vcombine.high %v5753_v60, %v5757_v10  ;;  %v15234_v49 = vcombine.low %v5753_v60, %v5757_v10 }
 0x738   :  { %6512 = vmatpush1.bf16.msra.mxu0 %v15198_v45  ;;  %6553 = vmatpush1.bf16.msra.mxu1 %v15200_v56  ;;  %v5762_v56 = vld [vmem:[#allocation4 + $0x3d8] sm:$0xff] }
 0x739   :  { %6513 = vmatprep.subr.bf16.mxu0 %v15204_v21  ;;  %6554 = vmatprep.subr.bf16.mxu1 %v15206_v6  ;;  %v5761_v6 = vld [vmem:[#allocation4 + $0x3d0] sm:$0xff]  ;;  %v5766_v45 = vld [vmem:[#allocation4 + $0x3f8] sm:$0xff] }
 0x73a   :  { %v5765_v21 = vld [vmem:[#allocation4 + $0x3f0] sm:$0xff]  ;;  %v15242_v20 = vcombine.high %v5762_v56, %v5766_v45 }
 0x73b   :  { %v15240_v35 = vcombine.high %v5761_v6, %v5765_v21 }
 0x73c   :  { %6514 = vmatpush1.bf16.msra.mxu0 %v15210_v3  ;;  %6555 = vmatpush1.bf16.msra.mxu1 %v15212_v28 }
 0x73d   :  { %6515 = vmatprep.subr.bf16.mxu0 %v15216_v36  ;;  %6556 = vmatprep.subr.bf16.mxu1 %v15218_v37  ;;  %v15246_v37 = vcombine.low %v5761_v6, %v5765_v21 }
 0x740   :  { %6516 = vmatpush1.bf16.msra.mxu0 %v15222_v63  ;;  %6557 = vmatpush1.bf16.msra.mxu1 %v15224_v42  ;;  %v15248_v63 = vcombine.low %v5762_v56, %v5766_v45 }
 0x741   :  { %6517 = vmatprep.subr.bf16.mxu0 %v15228_v8  ;;  %6558 = vmatprep.subr.bf16.mxu1 %v15230_v0 }
 0x744   :  { %6518 = vmatpush1.bf16.msra.mxu0 %v15234_v49  ;;  %6559 = vmatpush1.bf16.msra.mxu1 %v15236_v2 }
 0x745   :  { %6519 = vmatprep.subr.bf16.mxu0 %v15240_v35  ;;  %6560 = vmatprep.subr.bf16.mxu1 %v15242_v20 }
 0x748   :  { %6520 = vmatpush1.bf16.msra.mxu0 %v15246_v37  ;;  %6561 = vmatpush1.bf16.msra.mxu1 %v15248_v63 }
 0x749   :  { %7409 = vmatprep.subr.bf16.mxu0 %v14844_v34  ;;  %7450 = vmatprep.subr.bf16.mxu1 %v14848_v54  ;;  %v16769_v34 = vld [vmem:[#allocation148_spill] sm:$0xff]  ;;  %v16771_v54 = vld [vmem:[#allocation38_spill] sm:$0xff] }
 0x74b   :  { %6522 = vmatmul.mubr.bf16.vlgmr.msra.gmra.mrb[68].mxu0 %v15068_v13  ;;  %6563 = vmatmul.mubr.bf16.vlgmr.msra.gmra.mrb[84].mxu1 %v15068_v13  ;;  %v16799_v13 = vld [vmem:[#allocation52_spill] sm:$0xff] }
 0x74c   :  { %7410 = vmatpush1.bf16.msra.mxu0 %v14842_v15  ;;  %7451 = vmatpush1.bf16.msra.mxu1 %v14846_v5  ;;  %v16768_v15 = vld [vmem:[#allocation147_spill] sm:$0xff]  ;;  %v16770_v5 = vld [vmem:[#allocation149_spill] sm:$0xff] }
 0x74d   :  { %7411 = vmatprep.subr.bf16.mxu0 %v14850_v7  ;;  %7452 = vmatprep.subr.bf16.mxu1 %v14853_v23  ;;  %v16772_v7 = vld [vmem:[#allocation150_spill] sm:$0xff]  ;;  %v16773_v23 = vld [vmem:[#allocation23_spill] sm:$0xff] }
 0x750   :  { %7412 = vmatpush1.bf16.msra.mxu0 %v14857_v22  ;;  %7453 = vmatpush1.bf16.msra.mxu1 %v14861_v44  ;;  %v16774_v22 = vld [vmem:[#allocation25_spill] sm:$0xff]  ;;  %v16775_v44 = vld [vmem:[#allocation91_spill] sm:$0xff] }
 0x751   :  { %7413 = vmatprep.subr.bf16.mxu0 %v14863_v61  ;;  %7454 = vmatprep.subr.bf16.mxu1 %v14866_v43  ;;  %v16776_v61 = vld [vmem:[#allocation40_spill] sm:$0xff]  ;;  %v16777_v43 = vld [vmem:[#allocation51_spill] sm:$0xff] }
 0x754   :  { %7414 = vmatpush1.bf16.msra.mxu0 %v14869_v16  ;;  %7455 = vmatpush1.bf16.msra.mxu1 %v14873_v18  ;;  %v16778_v16 = vld [vmem:[#allocation53_spill] sm:$0xff]  ;;  %v16779_v18 = vld [vmem:[#allocation63_spill] sm:$0xff] }
 0x755   :  { %7415 = vmatprep.subr.bf16.mxu0 %v14875_v50  ;;  %7456 = vmatprep.subr.bf16.mxu1 %v14878_v4  ;;  %v16780_v50 = vld [vmem:[#allocation92_spill] sm:$0xff]  ;;  %v16781_v4 = vld [vmem:[#allocation65_spill] sm:$0xff] }
 0x758   :  { %7416 = vmatpush1.bf16.msra.mxu0 %v14881_v48  ;;  %7457 = vmatpush1.bf16.msra.mxu1 %v14885_v51  ;;  %v16782_v48 = vld [vmem:[#allocation70_spill] sm:$0xff]  ;;  %v16783_v51 = vld [vmem:[#allocation72_spill] sm:$0xff] }
 0x759   :  { %7417 = vmatprep.subr.bf16.mxu0 %v14890_v57  ;;  %7458 = vmatprep.subr.bf16.mxu1 %v14896_v62  ;;  %v16784_v57 = vld [vmem:[#allocation64_spill] sm:$0xff]  ;;  %v16787_v62 = vld [vmem:[#allocation75_spill] sm:$0xff] }
 0x75c   :  { %7418 = vmatpush1.bf16.msra.mxu0 %v14892_v41  ;;  %7459 = vmatpush1.bf16.msra.mxu1 %v14894_v58  ;;  %v16785_v41 = vld [vmem:[#allocation69_spill] sm:$0xff]  ;;  %v16786_v58 = vld [vmem:[#allocation71_spill] sm:$0xff] }
 0x75d   :  { %7419 = vmatprep.subr.bf16.mxu0 %v14902_v33  ;;  %7460 = vmatprep.subr.bf16.mxu1 %v14908_v32  ;;  %v16788_v33 = vld [vmem:[#allocation73_spill] sm:$0xff]  ;;  %v16791_v32 = vld [vmem:[#allocation82_spill] sm:$0xff] }
 0x760   :  { %7420 = vmatpush1.bf16.msra.mxu0 %v14904_v31  ;;  %7461 = vmatpush1.bf16.msra.mxu1 %v14906_v24  ;;  %v16789_v31 = vld [vmem:[#allocation77_spill] sm:$0xff]  ;;  %v16790_v24 = vld [vmem:[#allocation76_spill] sm:$0xff] }
 0x761   :  { %7421 = vmatprep.subr.bf16.mxu0 %v14914_v47  ;;  %7462 = vmatprep.subr.bf16.mxu1 %v14920_v27  ;;  %v16792_v47 = vld [vmem:[#allocation81_spill] sm:$0xff]  ;;  %v16795_v27 = vld [vmem:[#allocation83_spill] sm:$0xff] }
 0x764   :  { %7422 = vmatpush1.bf16.msra.mxu0 %v14916_v11  ;;  %7463 = vmatpush1.bf16.msra.mxu1 %v14918_v46  ;;  %v16793_v11 = vld [vmem:[#allocation84_spill] sm:$0xff]  ;;  %v16794_v46 = vld [vmem:[#allocation85_spill] sm:$0xff] }
 0x765   :  { %7423 = vmatprep.subr.bf16.mxu0 %v14926_v55  ;;  %7464 = vmatprep.subr.bf16.mxu1 %v14932_v19 }
 0x768   :  { %7424 = vmatpush1.bf16.msra.mxu0 %v14928_v25  ;;  %7465 = vmatpush1.bf16.msra.mxu1 %v14930_v26  ;;  %v16796_v26 = vld [vmem:[#allocation18_spill] sm:$0xff] }
 0x769   :  { %7425 = vmatprep.subr.bf16.mxu0 %v14938_v40  ;;  %7466 = vmatprep.subr.bf16.mxu1 %v14944_v1  ;;  %v16797_v40 = vld [vmem:[#allocation50_spill] sm:$0xff] }
 0x76c   :  { %7426 = vmatpush1.bf16.msra.mxu0 %v14940_v14  ;;  %7467 = vmatpush1.bf16.msra.mxu1 %v14942_v39 }
 0x76d   :  { %7427 = vmatprep.subr.bf16.mxu0 %v14950_v12  ;;  %7468 = vmatprep.subr.bf16.mxu1 %v14956_v38  ;;  %v16798_v12 = vld [vmem:[#allocation20_spill] sm:$0xff] }
 0x770   :  { %7428 = vmatpush1.bf16.msra.mxu0 %v16768_v15  ;;  %7469 = vmatpush1.bf16.msra.mxu1 %v16769_v34 }
 0x771   :  { %7429 = vmatprep.subr.bf16.mxu0 %v16770_v5  ;;  %7470 = vmatprep.subr.bf16.mxu1 %v16771_v54 }
 0x774   :  { %7430 = vmatpush1.bf16.msra.mxu0 %v16772_v7  ;;  %7471 = vmatpush1.bf16.msra.mxu1 %v16773_v23 }
 0x775   :  { %7431 = vmatprep.subr.bf16.mxu0 %v16774_v22  ;;  %7472 = vmatprep.subr.bf16.mxu1 %v16775_v44 }
 0x778   :  { %7432 = vmatpush1.bf16.msra.mxu0 %v16776_v61  ;;  %7473 = vmatpush1.bf16.msra.mxu1 %v16777_v43 }
 0x779   :  { %7433 = vmatprep.subr.bf16.mxu0 %v16778_v16  ;;  %7474 = vmatprep.subr.bf16.mxu1 %v16779_v18 }
 0x77c   :  { %7434 = vmatpush1.bf16.msra.mxu0 %v16780_v50  ;;  %7475 = vmatpush1.bf16.msra.mxu1 %v16781_v4 }
 0x77d   :  { %7435 = vmatprep.subr.bf16.mxu0 %v16782_v48  ;;  %7476 = vmatprep.subr.bf16.mxu1 %v16783_v51  ;;  %v5633_v51 = vmax.f32 %v15060_v17, 0.0 }
 0x780   :  { %7436 = vmatpush1.bf16.msra.mxu0 %v16784_v57  ;;  %7477 = vmatpush1.bf16.msra.mxu1 %v16785_v41 }
 0x781   :  { %7437 = vmatprep.subr.bf16.mxu0 %v16786_v58  ;;  %7478 = vmatprep.subr.bf16.mxu1 %v16787_v62 }
 0x784   :  { %7438 = vmatpush1.bf16.msra.mxu0 %v16788_v33  ;;  %7479 = vmatpush1.bf16.msra.mxu1 %v16789_v31  ;;  %v16800_v33 = vld [vmem:[#allocation39_spill] sm:$0xff] }
 0x785   :  { %7439 = vmatprep.subr.bf16.mxu0 %v16790_v24  ;;  %7480 = vmatprep.subr.bf16.mxu1 %v16791_v32  ;;  %v16801_v24 = vld [vmem:[#allocation74_spill] sm:$0xff] }
 0x788   :  { %7440 = vmatpush1.bf16.msra.mxu0 %v16792_v47  ;;  %7481 = vmatpush1.bf16.msra.mxu1 %v16793_v11  ;;  %v16802_v11 = vld [vmem:[#allocation41_spill] sm:$0xff] }
 0x789   :  { %7491 = vmatprep.subr.bf16.mxu0 %v16794_v46  ;;  %7532 = vmatprep.subr.bf16.mxu1 %v16795_v27  ;;  %v16803_v27 = vld [vmem:[#allocation78_spill] sm:$0xff] }
 0x7de   :  { %v6441_v55 = vpop.f32.mrb[64].mxu0  ;;  %v6482_v25 = vpop.f32.mrb[80].mxu1 }
 0x7df   :  { %v6575_v19 = vadd.f32 %v6441_v55, %v16796_v26  ;;  %v6577_v14 = vadd.f32 %v6482_v25, %v16797_v40  ;;  %v6443_v39 = vpop.f32.mrb[65].mxu0  ;;  %v6484_v1 = vpop.f32.mrb[81].mxu1 }
 0x7e0   :  { %v6576_v38 = vadd.f32 %v6443_v39, %v16798_v12  ;;  %v6578_v29 = vadd.f32 %v6484_v1, %v16799_v13  ;;  %v6445_v53 = vpop.f32.mrb[66].mxu0  ;;  %v6486_v10 = vpop.f32.mrb[82].mxu1 }
 0x7e1   :  { %v11919_v60 = vmul.f32 -1.442695, %v6575_v19  ;;  %v6446_v45 = vpop.f32.mrb[67].mxu0  ;;  %v6487_v56 = vpop.f32.mrb[83].mxu1  ;;  %v11921_v6 = vmul.f32 -1.442695, %v6577_v14 }
 0x7e2   :  { %v11920_v21 = vmul.f32 -1.442695, %v6576_v38 }
 0x7e3   :  { %12850 = vpow2.f32 %v11919_v60 }
 0x7e4   :  { %12852 = vpow2.f32 %v11920_v21 }
 0x7e5   :  { %12854 = vtanh.f32 %v6578_v29 }
 0x7e6   :  { %12856 = vpow2.f32 %v11921_v6 }
 0x7ed   :  { %v12851_v15 = vpop.eup %12850 }
 0x7ee   :  { %v6596_v34 = vadd.f32 1.0, %v12851_v15  ;;  %v12853_v5 = vpop.eup %12852 }
 0x7ef   :  { %v6597_v54 = vadd.f32 1.0, %v12853_v5  ;;  %v12855_v7 = vpop.eup %12854 }
 0x7f0   :  { %12858 = vrcp.f32 %v6596_v34  ;;  %v12857_v23 = vpop.eup %12856 }
 0x7f1   :  { %12860 = vrcp.f32 %v6597_v54  ;;  %v6598_v43 = vadd.f32 1.0, %v12857_v23 }
 0x7f3   :  { %12862 = vrcp.f32 %v6598_v43  ;;  %v16807_v43 = vld [vmem:[#allocation93_spill] sm:$0xff] }
 0x7fa   :  { %v12859_v22 = vpop.eup %12858 }
 0x7fb   :  { %v6607_v44 = vmul.f32 %v12859_v22, %v12855_v7  ;;  %v12861_v61 = vpop.eup %12860  ;;  %v5635_v7 = vmax.f32 %v15062_v30, 0.0  ;;  %v16806_v30 = vld [vmem:[#allocation88_spill] sm:$0xff] }
 0x7fc   :  { %v6606_v16 = vmul.f32 %v12861_v61, %v15049_v59  ;;  %v16805_v61 = vld [vmem:[#allocation89_spill] sm:$0xff] }
 0x7fd   :  { %v12863_v50 = vpop.eup %12862 }
 0x7fe   :  { %v15327_v18 = vadd.f32 %v6607_v44, %v6606_v16  ;;  %v16808_v16 = vld [vmem:[#allocation94_spill] sm:$0xff] }
 0x800   :  { %12864 = vtanh.f32 %v15327_v18 }
 0x80a   :  { %v12865_v4 = vpop.eup %12864 }
 0x80b   :  { %v6610_v48 = vmul.f32 %v12865_v4, %v12863_v50  ;;  %v16809_v50 = vld [vmem:[#allocation95_spill] sm:$0xff]  ;;  %v16810_v4 = vld [vmem:[#allocation96_spill] sm:$0xff] }
 0x80d   :  { %v6635_v57 = vmax.f32 %v6610_v48, 0.0  ;;  %v15342_v22 = vpack.c.bf16 %v6610_v48, %v6610_v48  ;;  %v16811_v48 = vld [vmem:[#allocation97_spill] sm:$0xff] }
 0x80f   :  { %v15331_v41 = vpack.c.bf16 %v6635_v57, %v5633_v51  ;;  %v16812_v51 = vld [vmem:[#allocation100_spill] sm:$0xff]  ;;  %v16814_v57 = vld [vmem:[#allocation102_spill] sm:$0xff] }
 0x81e   :  { %v6523_v58 = vpop.f32.mrb[68].mxu0  ;;  %v6564_v62 = vpop.f32.mrb[84].mxu1 }
 0x81f   :  { %v6583_v31 = vadd.f32 %v6523_v58, %v16800_v33  ;;  %v6585_v32 = vadd.f32 %v6564_v62, %v16801_v24  ;;  %v6525_v59 = vpop.f32.mrb[69].mxu0  ;;  %v6566_v47 = vpop.f32.mrb[85].mxu1  ;;  %v16815_v58 = vld [vmem:[#allocation104_spill] sm:$0xff]  ;;  %v16816_v62 = vld [vmem:[#allocation27_spill] sm:$0xff]  ;;  %v16817_v33 = vld [vmem:[#allocation42_spill] sm:$0xff] }
 0x820   :  { %v6584_v46 = vadd.f32 %v6525_v59, %v16802_v11  ;;  %v6586_v55 = vadd.f32 %v6566_v47, %v16803_v27  ;;  %v6527_v25 = vpop.f32.mrb[70].mxu0  ;;  %v6568_v26 = vpop.f32.mrb[86].mxu1  ;;  %v16819_v24 = vld [vmem:[#allocation44_spill] sm:$0xff]  ;;  %v16821_v59 = vld [vmem:[#allocation86_spill] sm:$0xff]  ;;  %v16822_v47 = vld [vmem:[#allocation49_spill] sm:$0xff] }
 0x821   :  { %v11922_v19 = vmul.f32 -1.442695, %v6583_v31  ;;  %v6528_v40 = vpop.f32.mrb[71].mxu0  ;;  %v6569_v17 = vpop.f32.mrb[87].mxu1  ;;  %v11924_v39 = vmul.f32 -1.442695, %v6585_v32 }
 0x822   :  { %v11923_v14 = vmul.f32 -1.442695, %v6584_v46  ;;  %v16818_v31 = vld [vmem:[#allocation29_spill] sm:$0xff]  ;;  %v16820_v32 = vld [vmem:[#allocation47_spill] sm:$0xff]  ;;  %v16823_v11 = vld [vmem:[#allocation90_spill] sm:$0xff] }
 0x823   :  { %12866 = vpow2.f32 %v11922_v19  ;;  %v16824_v46 = vld [vmem:[#allocation103_spill] sm:$0xff]  ;;  %v16825_v27 = vld [vmem:[#allocation105_spill] sm:$0xff]  ;;  %v16828_v26 = vld [vmem:[#allocation34_spill] sm:$0xff] }
 0x824   :  { %12868 = vpow2.f32 %v11923_v14  ;;  %v16827_v25 = vld [vmem:[#allocation19_spill] sm:$0xff]  ;;  %v16829_v19 = vld [vmem:[#allocation21_spill] sm:$0xff]  ;;  %v16830_v40 = vld [vmem:[#allocation36_spill] sm:$0xff] }
 0x825   :  { %12870 = vtanh.f32 %v6586_v55  ;;  %v16826_v55 = vld [vmem:[#allocation106_spill] sm:$0xff]  ;;  %v16831_v17 = vld [vmem:[#allocation55_spill] sm:$0xff] }
 0x826   :  { %12872 = vpow2.f32 %v11924_v39  ;;  %v16832_v14 = vld [vmem:[#allocation99_spill] sm:$0xff]  ;;  %v16833_v39 = vld [vmem:[#allocation57_spill] sm:$0xff] }
 0x82d   :  { %v12867_v1 = vpop.eup %12866 }
 0x82e   :  { %v6620_v12 = vadd.f32 1.0, %v12867_v1  ;;  %v12869_v38 = vpop.eup %12868  ;;  %v16834_v1 = vld [vmem:[#allocation101_spill] sm:$0xff] }
 0x82f   :  { %v6621_v13 = vadd.f32 1.0, %v12869_v38  ;;  %v12871_v29 = vpop.eup %12870  ;;  %v16836_v38 = vld [vmem:[#allocation108_spill] sm:$0xff] }
 0x830   :  { %12874 = vrcp.f32 %v6620_v12  ;;  %v12873_v53 = vpop.eup %12872  ;;  %v16835_v12 = vld [vmem:[#allocation107_spill] sm:$0xff] }
 0x831   :  { %12876 = vrcp.f32 %v6621_v13  ;;  %v6622_v56 = vadd.f32 1.0, %v12873_v53  ;;  %v16837_v13 = vld [vmem:[#allocation109_spill] sm:$0xff]  ;;  %v16839_v53 = vld [vmem:[#allocation111_spill] sm:$0xff] }
 0x833   :  { %12878 = vrcp.f32 %v6622_v56  ;;  %v16843_v56 = vld [vmem:[#allocation115_spill] sm:$0xff] }
 0x83a   :  { %v12875_v10 = vpop.eup %12874 }
 0x83b   :  { %v6631_v60 = vmul.f32 %v12875_v10, %v12871_v29  ;;  %v12877_v45 = vpop.eup %12876  ;;  %v16838_v29 = vld [vmem:[#allocation110_spill] sm:$0xff]  ;;  %v16840_v10 = vld [vmem:[#allocation112_spill] sm:$0xff] }
 0x83c   :  { %v6630_v21 = vmul.f32 %v12877_v45, %v15057_v9  ;;  %v16804_v9 = vld [vmem:[#allocation87_spill] sm:$0xff]  ;;  %v16842_v45 = vld [vmem:[#allocation114_spill] sm:$0xff] }
 0x83d   :  { %v12879_v15 = vpop.eup %12878 }
 0x83e   :  { %v15338_v6 = vadd.f32 %v6631_v60, %v6630_v21  ;;  %v16841_v60 = vld [vmem:[#allocation113_spill] sm:$0xff]  ;;  %v16844_v21 = vld [vmem:[#allocation116_spill] sm:$0xff] }
 0x840   :  { %12880 = vtanh.f32 %v15338_v6 }
 0x84a   :  { %v12881_v34 = vpop.eup %12880 }
 0x84b   :  { %v6634_v5 = vmul.f32 %v12881_v34, %v12879_v15  ;;  %v16845_v15 = vld [vmem:[#allocation117_spill] sm:$0xff]  ;;  %v16846_v34 = vld [vmem:[#allocation118_spill] sm:$0xff] }
 0x84d   :  { %v6640_v54 = vpack.c.bf16 %v6634_v5, %v6634_v5  ;;  %v6637_v23 = vmax.f32 %v6634_v5, 0.0  ;;  %v16847_v5 = vld [vmem:[#allocation119_spill] sm:$0xff] }
 0x84f   :  { %7441 = vmatprep.mubr.bf16.mxu0 %v6640_v54  ;;  %7482 = vmatprep.mubr.bf16.mxu1 %v6640_v54  ;;  %v15344_v44 = vpack.c.bf16 %v5635_v7, %v6637_v23  ;;  %v16849_v7 = vld [vmem:[#allocation121_spill] sm:$0xff]  ;;  %v16850_v23 = vld [vmem:[#allocation122_spill] sm:$0xff] }
 0x850   :  { %7442 = vmatmul.mubr.bf16.vlgmr.msra.gmra.mrb[72].mxu0 %v15342_v22  ;;  %7483 = vmatmul.mubr.bf16.vlgmr.msra.gmra.mrb[88].mxu1 %v15342_v22 }
 0x851   :  { %7492 = vmatpush1.bf16.msra.mxu0 %v15036_v52  ;;  %7533 = vmatpush1.bf16.msra.mxu1 %v16804_v9  ;;  %v16813_v52 = vld [vmem:[#allocation98_spill] sm:$0xff]  ;;  %v16851_v9 = vld [vmem:[#allocation123_spill] sm:$0xff] }
 0x852   :  { %7523 = vmatprep.mubr.bf16.mxu0 %v6640_v54  ;;  %7564 = vmatprep.mubr.bf16.mxu1 %v6640_v54  ;;  %v16848_v54 = vld [vmem:[#allocation120_spill] sm:$0xff] }
 0x853   :  { %7493 = vmatprep.subr.bf16.mxu0 %v16805_v61  ;;  %7534 = vmatprep.subr.bf16.mxu1 %v16806_v30  ;;  %v16852_v61 = vld [vmem:[#allocation124_spill] sm:$0xff] }
 0x855   :  { %7494 = vmatpush1.bf16.msra.mxu0 %v16807_v43  ;;  %7535 = vmatpush1.bf16.msra.mxu1 %v16808_v16  ;;  %v7656_v16 = vld [vmem:[#allocation4 + $0x68] sm:$0xff] }
 0x856   :  { %7495 = vmatprep.subr.bf16.mxu0 %v16809_v50  ;;  %7536 = vmatprep.subr.bf16.mxu1 %v16810_v4  ;;  %v7663_v50 = vld [vmem:[#allocation4 + $0xa0] sm:$0xff]  ;;  %v7660_v4 = vld [vmem:[#allocation4 + $0x88] sm:$0xff] }
 0x859   :  { %7496 = vmatpush1.bf16.msra.mxu0 %v16811_v48  ;;  %7537 = vmatpush1.bf16.msra.mxu1 %v16812_v51  ;;  %v7664_v48 = vld [vmem:[#allocation4 + $0xa8] sm:$0xff] }
 0x85a   :  { %7497 = vmatprep.subr.bf16.mxu0 %v16813_v52  ;;  %7538 = vmatprep.subr.bf16.mxu1 %v16814_v57  ;;  %v12078_v57 = vcombine.high %v7660_v4, %v7664_v48 }
 0x85d   :  { %7498 = vmatpush1.bf16.msra.mxu0 %v16815_v58  ;;  %7539 = vmatpush1.bf16.msra.mxu1 %v16816_v62  ;;  %v7667_v58 = vld [vmem:[#allocation4 + $0xc0] sm:$0xff] }
 0x85e   :  { %7499 = vmatprep.subr.bf16.mxu0 %v16817_v33  ;;  %7540 = vmatprep.subr.bf16.mxu1 %v16818_v31  ;;  %v7671_v62 = vld [vmem:[#allocation4 + $0xe0] sm:$0xff]  ;;  %v7668_v33 = vld [vmem:[#allocation4 + $0xc8] sm:$0xff] }
 0x85f   :  { %v7672_v31 = vld [vmem:[#allocation4 + $0xe8] sm:$0xff] }
 0x861   :  { %7500 = vmatpush1.bf16.msra.mxu0 %v16819_v24  ;;  %7541 = vmatpush1.bf16.msra.mxu1 %v16820_v32  ;;  %v12077_v32 = vcombine.low %v7660_v4, %v7664_v48  ;;  %v7720_v4 = vld [vmem:[#allocation4 + $0x268] sm:$0xff] }
 0x862   :  { %7501 = vmatprep.subr.bf16.mxu0 %v16821_v59  ;;  %7542 = vmatprep.subr.bf16.mxu1 %v16822_v47  ;;  %v12084_v59 = vcombine.high %v7667_v58, %v7671_v62  ;;  %v12086_v47 = vcombine.high %v7668_v33, %v7672_v31 }
 0x865   :  { %7502 = vmatpush1.bf16.msra.mxu0 %v16823_v11  ;;  %7543 = vmatpush1.bf16.msra.mxu1 %v16824_v46  ;;  %v12083_v11 = vcombine.low %v7667_v58, %v7671_v62  ;;  %v12085_v46 = vcombine.low %v7668_v33, %v7672_v31  ;;  %v7724_v58 = vld [vmem:[#allocation4 + $0x288] sm:$0xff] }
 0x866   :  { %7503 = vmatprep.subr.bf16.mxu0 %v16825_v27  ;;  %7544 = vmatprep.subr.bf16.mxu1 %v16826_v55  ;;  %v7675_v27 = vld [vmem:[#allocation4 + $0x100] sm:$0xff]  ;;  %v7728_v33 = vld [vmem:[#allocation4 + $0x2a8] sm:$0xff] }
 0x867   :  { %v7679_v55 = vld [vmem:[#allocation4 + $0x120] sm:$0xff] }
 0x869   :  { %7504 = vmatpush1.bf16.msra.mxu0 %v16827_v25  ;;  %7545 = vmatpush1.bf16.msra.mxu1 %v16828_v26  ;;  %v7676_v25 = vld [vmem:[#allocation4 + $0x108] sm:$0xff]  ;;  %v12092_v26 = vcombine.high %v7675_v27, %v7679_v55 }
 0x86a   :  { %7505 = vmatprep.subr.bf16.mxu0 %v16829_v19  ;;  %7546 = vmatprep.subr.bf16.mxu1 %v16830_v40  ;;  %v7680_v19 = vld [vmem:[#allocation4 + $0x128] sm:$0xff]  ;;  %v12091_v40 = vcombine.low %v7675_v27, %v7679_v55 }
 0x86b   :  { %v7736_v27 = vld [vmem:[#allocation4 + $0x2e8] sm:$0xff] }
 0x86d   :  { %7506 = vmatpush1.bf16.msra.mxu0 %v16831_v17  ;;  %7547 = vmatpush1.bf16.msra.mxu1 %v16832_v14  ;;  %v12093_v17 = vcombine.low %v7676_v25, %v7680_v19  ;;  %v12094_v14 = vcombine.high %v7676_v25, %v7680_v19  ;;  %v7739_v19 = vld [vmem:[#allocation4 + $0x300] sm:$0xff] }
 0x86e   :  { %7507 = vmatprep.subr.bf16.mxu0 %v16833_v39  ;;  %7548 = vmatprep.subr.bf16.mxu1 %v16834_v1  ;;  %v7683_v39 = vld [vmem:[#allocation4 + $0x140] sm:$0xff] }
 0x86f   :  { %v7687_v1 = vld [vmem:[#allocation4 + $0x160] sm:$0xff] }
 0x871   :  { %7508 = vmatpush1.bf16.msra.mxu0 %v16835_v12  ;;  %7549 = vmatpush1.bf16.msra.mxu1 %v16836_v38  ;;  %v7684_v12 = vld [vmem:[#allocation4 + $0x148] sm:$0xff]  ;;  %v12100_v38 = vcombine.high %v7683_v39, %v7687_v1 }
 0x872   :  { %7509 = vmatprep.subr.bf16.mxu0 %v16837_v13  ;;  %7550 = vmatprep.subr.bf16.mxu1 %v16838_v29  ;;  %v7688_v13 = vld [vmem:[#allocation4 + $0x168] sm:$0xff]  ;;  %v12099_v29 = vcombine.low %v7683_v39, %v7687_v1 }
 0x873   :  { %v7744_v39 = vld [vmem:[#allocation4 + $0x328] sm:$0xff] }
 0x875   :  { %7510 = vmatpush1.bf16.msra.mxu0 %v16839_v53  ;;  %7551 = vmatpush1.bf16.msra.mxu1 %v16840_v10  ;;  %v12101_v53 = vcombine.low %v7684_v12, %v7688_v13  ;;  %v12102_v10 = vcombine.high %v7684_v12, %v7688_v13  ;;  %v7747_v13 = vld [vmem:[#allocation4 + $0x340] sm:$0xff] }
 0x876   :  { %7511 = vmatprep.subr.bf16.mxu0 %v16841_v60  ;;  %7552 = vmatprep.subr.bf16.mxu1 %v16842_v45  ;;  %v7691_v60 = vld [vmem:[#allocation4 + $0x180] sm:$0xff] }
 0x877   :  { %v7695_v45 = vld [vmem:[#allocation4 + $0x1a0] sm:$0xff] }
 0x879   :  { %7512 = vmatpush1.bf16.msra.mxu0 %v16843_v56  ;;  %7553 = vmatpush1.bf16.msra.mxu1 %v16844_v21  ;;  %v7692_v56 = vld [vmem:[#allocation4 + $0x188] sm:$0xff]  ;;  %v12108_v21 = vcombine.high %v7691_v60, %v7695_v45 }
 0x87a   :  { %7513 = vmatprep.subr.bf16.mxu0 %v16845_v15  ;;  %7554 = vmatprep.subr.bf16.mxu1 %v16846_v34  ;;  %v7696_v15 = vld [vmem:[#allocation4 + $0x1a8] sm:$0xff]  ;;  %v12107_v34 = vcombine.low %v7691_v60, %v7695_v45 }
 0x87b   :  { %v7752_v45 = vld [vmem:[#allocation4 + $0x368] sm:$0xff] }
 0x87d   :  { %7514 = vmatpush1.bf16.msra.mxu0 %v16847_v5  ;;  %7555 = vmatpush1.bf16.msra.mxu1 %v16848_v54  ;;  %v12109_v5 = vcombine.low %v7692_v56, %v7696_v15  ;;  %v12110_v54 = vcombine.high %v7692_v56, %v7696_v15  ;;  %v7755_v56 = vld [vmem:[#allocation4 + $0x380] sm:$0xff] }
 0x87e   :  { %7515 = vmatprep.subr.bf16.mxu0 %v16849_v7  ;;  %7556 = vmatprep.subr.bf16.mxu1 %v16850_v23  ;;  %v7699_v7 = vld [vmem:[#allocation4 + $0x1c0] sm:$0xff] }
 0x87f   :  { %v7703_v23 = vld [vmem:[#allocation4 + $0x1e0] sm:$0xff] }
 0x881   :  { %7516 = vmatpush1.bf16.msra.mxu0 %v15210_v3  ;;  %7557 = vmatpush1.bf16.msra.mxu1 %v15212_v28  ;;  %v7643_v3 = vld [vmem:[#allocation4] sm:$0xff] }
 0x882   :  { %7517 = vmatprep.subr.bf16.mxu0 %v15216_v36  ;;  %7558 = vmatprep.subr.bf16.mxu1 %v16851_v9  ;;  %v7647_v28 = vld [vmem:[#allocation4 + $0x20] sm:$0xff]  ;;  %v7644_v36 = vld [vmem:[#allocation4 + $0x8] sm:$0xff] }
 0x883   :  { %v7700_v9 = vld [vmem:[#allocation4 + $0x1c8] sm:$0xff] }
 0x885   :  { %7518 = vmatpush1.bf16.msra.mxu0 %v16852_v61  ;;  %7559 = vmatpush1.bf16.msra.mxu1 %v15224_v42  ;;  %v12059_v42 = vcombine.low %v7643_v3, %v7647_v28  ;;  %v12116_v61 = vcombine.high %v7699_v7, %v7703_v23 }
 0x886   :  { %7519 = vmatprep.subr.bf16.mxu0 %v15228_v8  ;;  %7560 = vmatprep.subr.bf16.mxu1 %v15230_v0  ;;  %v12060_v8 = vcombine.high %v7643_v3, %v7647_v28  ;;  %v7648_v0 = vld [vmem:[#allocation4 + $0x28] sm:$0xff]  ;;  %v12115_v28 = vcombine.low %v7699_v7, %v7703_v23  ;;  %v7763_v23 = vld [vmem:[#allocation4 + $0x3c0] sm:$0xff] }
 0x887   :  { %v12061_v30 = vcombine.low %v7644_v36, %v7648_v0  ;;  %v7704_v3 = vld [vmem:[#allocation4 + $0x1e8] sm:$0xff] }
 0x888   :  { %v7760_v7 = vld [vmem:[#allocation4 + $0x3a8] sm:$0xff] }
 0x889   :  { %7520 = vmatpush1.bf16.msra.mxu0 %v15234_v49  ;;  %7561 = vmatpush1.bf16.msra.mxu1 %v15236_v2  ;;  %v7651_v49 = vld [vmem:[#allocation4 + $0x40] sm:$0xff] }
 0x88a   :  { %7521 = vmatprep.subr.bf16.mxu0 %v15240_v35  ;;  %7562 = vmatprep.subr.bf16.mxu1 %v15242_v20  ;;  %v7655_v2 = vld [vmem:[#allocation4 + $0x60] sm:$0xff]  ;;  %v12062_v35 = vcombine.high %v7644_v36, %v7648_v0  ;;  %v7652_v20 = vld [vmem:[#allocation4 + $0x48] sm:$0xff]  ;;  %v12117_v36 = vcombine.low %v7700_v9, %v7704_v3 }
 0x88b   :  { %v12068_v43 = vcombine.high %v7651_v49, %v7655_v2  ;;  %v12069_v51 = vcombine.low %v7652_v20, %v7656_v16  ;;  %v7711_v0 = vld [vmem:[#allocation4 + $0x220] sm:$0xff] }
 0x88d   :  { %7522 = vmatpush1.bf16.msra.mxu0 %v15246_v37  ;;  %7563 = vmatpush1.bf16.msra.mxu1 %v15248_v63  ;;  %v7659_v37 = vld [vmem:[#allocation4 + $0x80] sm:$0xff]  ;;  %v12070_v63 = vcombine.high %v7652_v20, %v7656_v16 }
 0x88e   :  { %8411 = vmatprep.subr.bf16.mxu0 %v12060_v8  ;;  %8452 = vmatprep.subr.bf16.mxu1 %v12062_v35  ;;  %v12076_v52 = vcombine.high %v7659_v37, %v7663_v50  ;;  %v12075_v24 = vcombine.low %v7659_v37, %v7663_v50  ;;  %v7707_v8 = vld [vmem:[#allocation4 + $0x200] sm:$0xff] }
 0x88f   :  { %v12123_v35 = vcombine.low %v7707_v8, %v7711_v0  ;;  %v7715_v16 = vld [vmem:[#allocation4 + $0x240] sm:$0xff] }
 0x890   :  { %7524 = vmatmul.mubr.bf16.vlgmr.msra.gmra.mrb[76].mxu0 %v15342_v22  ;;  %7565 = vmatmul.mubr.bf16.vlgmr.msra.gmra.mrb[92].mxu1 %v15342_v22  ;;  %v12067_v22 = vcombine.low %v7651_v49, %v7655_v2  ;;  %v7708_v49 = vld [vmem:[#allocation4 + $0x208] sm:$0xff]  ;;  %v12124_v2 = vcombine.high %v7707_v8, %v7711_v0  ;;  %v7719_v37 = vld [vmem:[#allocation4 + $0x260] sm:$0xff] }
 0x891   :  { %8412 = vmatpush1.bf16.msra.mxu0 %v12059_v42  ;;  %8453 = vmatpush1.bf16.msra.mxu1 %v12061_v30  ;;  %v12118_v42 = vcombine.high %v7700_v9, %v7704_v3  ;;  %v7712_v30 = vld [vmem:[#allocation4 + $0x228] sm:$0xff]  ;;  %v12132_v50 = vcombine.high %v7715_v16, %v7719_v37  ;;  %v12131_v48 = vcombine.low %v7715_v16, %v7719_v37  ;;  %v15420_v16 = vld [vmem:[#allocation4 + $0x38] sm:$0xff] }
 0x892   :  { %8413 = vmatprep.subr.bf16.mxu0 %v12068_v43  ;;  %8454 = vmatprep.subr.bf16.mxu1 %v12070_v63  ;;  %v12125_v43 = vcombine.low %v7708_v49, %v7712_v30  ;;  %v12126_v20 = vcombine.high %v7708_v49, %v7712_v30  ;;  %v7716_v63 = vld [vmem:[#allocation4 + $0x248] sm:$0xff]  ;;  %v15412_v30 = vld [vmem:[#allocation4 + $0x10] sm:$0xff] }
 0x893   :  { %v7764_v3 = vld [vmem:[#allocation4 + $0x3c8] sm:$0xff] }
 0x895   :  { %8414 = vmatpush1.bf16.msra.mxu0 %v12067_v22  ;;  %8455 = vmatpush1.bf16.msra.mxu1 %v12069_v51  ;;  %v12133_v22 = vcombine.low %v7716_v63, %v7720_v4  ;;  %v12134_v51 = vcombine.high %v7716_v63, %v7720_v4 }
 0x896   :  { %8415 = vmatprep.subr.bf16.mxu0 %v12076_v52  ;;  %8456 = vmatprep.subr.bf16.mxu1 %v12078_v57  ;;  %v7723_v52 = vld [vmem:[#allocation4 + $0x280] sm:$0xff] }
 0x897   :  { %v7727_v57 = vld [vmem:[#allocation4 + $0x2a0] sm:$0xff] }
 0x898   :  { %v12140_v62 = vcombine.high %v7723_v52, %v7727_v57  ;;  %v12139_v31 = vcombine.low %v7723_v52, %v7727_v57  ;;  %v16854_v52 = vld [vmem:[#allocation54_spill] sm:$0xff] }
 0x899   :  { %8416 = vmatpush1.bf16.msra.mxu0 %v12075_v24  ;;  %8457 = vmatpush1.bf16.msra.mxu1 %v12077_v32  ;;  %v12141_v24 = vcombine.low %v7724_v58, %v7728_v33  ;;  %v12142_v32 = vcombine.high %v7724_v58, %v7728_v33  ;;  %v16855_v33 = vld [vmem:[#allocation24_spill] sm:$0xff] }
 0x89a   :  { %8417 = vmatprep.subr.bf16.mxu0 %v12084_v59  ;;  %8458 = vmatprep.subr.bf16.mxu1 %v12086_v47  ;;  %v7731_v59 = vld [vmem:[#allocation4 + $0x2c0] sm:$0xff] }
 0x89b   :  { %v7735_v47 = vld [vmem:[#allocation4 + $0x2e0] sm:$0xff] }
 0x89c   :  { %v12147_v55 = vcombine.low %v7731_v59, %v7735_v47 }
 0x89d   :  { %8418 = vmatpush1.bf16.msra.mxu0 %v12083_v11  ;;  %8459 = vmatpush1.bf16.msra.mxu1 %v12085_v46  ;;  %v7732_v11 = vld [vmem:[#allocation4 + $0x2c8] sm:$0xff]  ;;  %v12148_v46 = vcombine.high %v7731_v59, %v7735_v47 }
 0x89e   :  { %8419 = vmatprep.subr.bf16.mxu0 %v12092_v26  ;;  %8460 = vmatprep.subr.bf16.mxu1 %v12094_v14  ;;  %v12149_v25 = vcombine.low %v7732_v11, %v7736_v27  ;;  %v12150_v26 = vcombine.high %v7732_v11, %v7736_v27 }
 0x8a1   :  { %8420 = vmatpush1.bf16.msra.mxu0 %v12091_v40  ;;  %8461 = vmatpush1.bf16.msra.mxu1 %v12093_v17  ;;  %v7743_v40 = vld [vmem:[#allocation4 + $0x320] sm:$0xff]  ;;  %v7740_v17 = vld [vmem:[#allocation4 + $0x308] sm:$0xff] }
 0x8a2   :  { %8421 = vmatprep.subr.bf16.mxu0 %v12100_v38  ;;  %8462 = vmatprep.subr.bf16.mxu1 %v12102_v10  ;;  %v12156_v14 = vcombine.high %v7739_v19, %v7743_v40  ;;  %v12155_v1 = vcombine.low %v7739_v19, %v7743_v40  ;;  %v12157_v12 = vcombine.low %v7740_v17, %v7744_v39 }
 0x8a3   :  { %v12158_v38 = vcombine.high %v7740_v17, %v7744_v39 }
 0x8a5   :  { %8422 = vmatpush1.bf16.msra.mxu0 %v12099_v29  ;;  %8463 = vmatpush1.bf16.msra.mxu1 %v12101_v53  ;;  %v7751_v29 = vld [vmem:[#allocation4 + $0x360] sm:$0xff]  ;;  %v7748_v53 = vld [vmem:[#allocation4 + $0x348] sm:$0xff] }
 0x8a6   :  { %8423 = vmatprep.subr.bf16.mxu0 %v12108_v21  ;;  %8464 = vmatprep.subr.bf16.mxu1 %v12110_v54  ;;  %v12163_v10 = vcombine.low %v7747_v13, %v7751_v29  ;;  %v12164_v60 = vcombine.high %v7747_v13, %v7751_v29  ;;  %v7759_v21 = vld [vmem:[#allocation4 + $0x3a0] sm:$0xff]  ;;  %v12165_v15 = vcombine.low %v7748_v53, %v7752_v45  ;;  %v7756_v54 = vld [vmem:[#allocation4 + $0x388] sm:$0xff] }
 0x8a7   :  { %v12174_v9 = vcombine.high %v7756_v54, %v7760_v7 }
 0x8a9   :  { %8424 = vmatpush1.bf16.msra.mxu0 %v12107_v34  ;;  %8465 = vmatpush1.bf16.msra.mxu1 %v12109_v5  ;;  %v12166_v34 = vcombine.high %v7748_v53, %v7752_v45  ;;  %v12172_v5 = vcombine.high %v7755_v56, %v7759_v21  ;;  %v16857_v53 = vld [vmem:[#allocation35_spill] sm:$0xff] }
 0x8aa   :  { %8425 = vmatprep.subr.bf16.mxu0 %v12116_v61  ;;  %8466 = vmatprep.subr.bf16.mxu1 %v12118_v42  ;;  %v7767_v61 = vld [vmem:[#allocation4 + $0x3e0] sm:$0xff]  ;;  %v12173_v42 = vcombine.low %v7756_v54, %v7760_v7 }
 0x8ab   :  { %v12180_v8 = vcombine.high %v7763_v23, %v7767_v61  ;;  %v12179_v49 = vcombine.low %v7763_v23, %v7767_v61 }
 0x8ad   :  { %8426 = vmatpush1.bf16.msra.mxu0 %v12115_v28  ;;  %8467 = vmatpush1.bf16.msra.mxu1 %v12117_v36  ;;  %v7768_v28 = vld [vmem:[#allocation4 + $0x3e8] sm:$0xff]  ;;  %v12171_v36 = vcombine.low %v7755_v56, %v7759_v21 }
 0x8ae   :  { %8427 = vmatprep.subr.bf16.mxu0 %v12124_v2  ;;  %8468 = vmatprep.subr.bf16.mxu1 %v12126_v20  ;;  %v12182_v0 = vcombine.high %v7764_v3, %v7768_v28  ;;  %v12181_v2 = vcombine.low %v7764_v3, %v7768_v28 }
 0x8b1   :  { %8428 = vmatpush1.bf16.msra.mxu0 %v12123_v35  ;;  %8469 = vmatpush1.bf16.msra.mxu1 %v12125_v43  ;;  %v15414_v35 = vld [vmem:[#allocation4 + $0x30] sm:$0xff]  ;;  %v15416_v43 = vld [vmem:[#allocation4 + $0x18] sm:$0xff] }
 0x8b2   :  { %8429 = vmatprep.subr.bf16.mxu0 %v12132_v50  ;;  %8470 = vmatprep.subr.bf16.mxu1 %v12134_v51  ;;  %v12064_v20 = vcombine.high %v15412_v30, %v15414_v35  ;;  %v12063_v37 = vcombine.low %v15412_v30, %v15414_v35  ;;  %v12065_v63 = vcombine.low %v15416_v43, %v15420_v16 }
 0x8b3   :  { %v12066_v50 = vcombine.high %v15416_v43, %v15420_v16 }
 0x8b5   :  { %8430 = vmatpush1.bf16.msra.mxu0 %v12131_v48  ;;  %8471 = vmatpush1.bf16.msra.mxu1 %v12133_v22  ;;  %v16853_v22 = vld [vmem:[#allocation22_spill] sm:$0xff] }
 0x8b6   :  { %8431 = vmatprep.subr.bf16.mxu0 %v12140_v62  ;;  %8472 = vmatprep.subr.bf16.mxu1 %v12142_v32 }
 0x8b9   :  { %8432 = vmatpush1.bf16.msra.mxu0 %v12139_v31  ;;  %8473 = vmatpush1.bf16.msra.mxu1 %v12141_v24  ;;  %v16856_v24 = vld [vmem:[#allocation56_spill] sm:$0xff] }
 0x8ba   :  { %8433 = vmatprep.subr.bf16.mxu0 %v12148_v46  ;;  %8474 = vmatprep.subr.bf16.mxu1 %v12150_v26 }
 0x8bd   :  { %8434 = vmatpush1.bf16.msra.mxu0 %v12147_v55  ;;  %8475 = vmatpush1.bf16.msra.mxu1 %v12149_v25 }
 0x8be   :  { %8435 = vmatprep.subr.bf16.mxu0 %v12156_v14  ;;  %8476 = vmatprep.subr.bf16.mxu1 %v12158_v38 }
 0x8c1   :  { %8436 = vmatpush1.bf16.msra.mxu0 %v12155_v1  ;;  %8477 = vmatpush1.bf16.msra.mxu1 %v12157_v12 }
 0x8c2   :  { %8437 = vmatprep.subr.bf16.mxu0 %v12164_v60  ;;  %8478 = vmatprep.subr.bf16.mxu1 %v12166_v34  ;;  %v16858_v60 = vld [vmem:[#allocation67_spill] sm:$0xff] }
 0x8c5   :  { %8438 = vmatpush1.bf16.msra.mxu0 %v12163_v10  ;;  %8479 = vmatpush1.bf16.msra.mxu1 %v12165_v15  ;;  %v16859_v15 = vld [vmem:[#allocation37_spill] sm:$0xff] }
 0x8c6   :  { %8439 = vmatprep.subr.bf16.mxu0 %v12172_v5  ;;  %8480 = vmatprep.subr.bf16.mxu1 %v12174_v9  ;;  %v16860_v5 = vld [vmem:[#allocation68_spill] sm:$0xff] }
 0x8c9   :  { %8440 = vmatpush1.bf16.msra.mxu0 %v12171_v36  ;;  %8481 = vmatpush1.bf16.msra.mxu1 %v12173_v42 }
 0x8ca   :  { %8441 = vmatprep.subr.bf16.mxu0 %v12180_v8  ;;  %8482 = vmatprep.subr.bf16.mxu1 %v12182_v0 }
 0x8cd   :  { %8442 = vmatpush1.bf16.msra.mxu0 %v12179_v49  ;;  %8483 = vmatpush1.bf16.msra.mxu1 %v12181_v2 }
 0x8ce   :  { %8493 = vmatprep.subr.bf16.mxu0 %v12064_v20  ;;  %8534 = vmatprep.subr.bf16.mxu1 %v12066_v50 }
 0x923   :  { %v7443_v4 = vpop.f32.mrb[72].mxu0  ;;  %v7484_v48 = vpop.f32.mrb[88].mxu1 }
 0x924   :  { %v7577_v51 = vadd.f32 %v7443_v4, %v16853_v22  ;;  %v7579_v57 = vadd.f32 %v7484_v48, %v16854_v52  ;;  %v7445_v58 = vpop.f32.mrb[73].mxu0  ;;  %v7486_v62 = vpop.f32.mrb[89].mxu1 }
 0x925   :  { %v7578_v31 = vadd.f32 %v7445_v58, %v16855_v33  ;;  %v7580_v32 = vadd.f32 %v7486_v62, %v16856_v24  ;;  %v7447_v59 = vpop.f32.mrb[74].mxu0  ;;  %v7488_v47 = vpop.f32.mrb[90].mxu1 }
 0x926   :  { %v12053_v11 = vmul.f32 -1.442695, %v7577_v51  ;;  %v7448_v46 = vpop.f32.mrb[75].mxu0  ;;  %v7489_v27 = vpop.f32.mrb[91].mxu1  ;;  %v12055_v28 = vmul.f32 -1.442695, %v7579_v57 }
 0x927   :  { %v12054_v55 = vmul.f32 -1.442695, %v7578_v31  ;;  %v7653_v47 = vld [vmem:[#allocation4 + $0x50] sm:$0xff]  ;;  %v7654_v46 = vld [vmem:[#allocation4 + $0x58] sm:$0xff] }
 0x928   :  { %12882 = vpow2.f32 %v12053_v11  ;;  %v7657_v11 = vld [vmem:[#allocation4 + $0x70] sm:$0xff] }
 0x929   :  { %12884 = vpow2.f32 %v12054_v55 }
 0x92a   :  { %12886 = vtanh.f32 %v7580_v32 }
 0x932   :  { %v12883_v25 = vpop.eup %12882 }
 0x933   :  { %v7598_v26 = vadd.f32 1.0, %v12883_v25  ;;  %v12885_v19 = vpop.eup %12884  ;;  %v7661_v25 = vld [vmem:[#allocation4 + $0x90] sm:$0xff] }
 0x934   :  { %v7599_v40 = vadd.f32 1.0, %v12885_v19  ;;  %v12887_v17 = vpop.eup %12886 }
 0x935   :  { %12888 = vrcp.f32 %v7598_v26  ;;  %v12072_v26 = vcombine.high %v7653_v47, %v7657_v11 }
 0x936   :  { %12890 = vrcp.f32 %v7599_v40  ;;  %v7665_v40 = vld [vmem:[#allocation4 + $0xb0] sm:$0xff] }
 0x937   :  { %v12079_v30 = vcombine.low %v7661_v25, %v7665_v40 }
 0x93f   :  { %v12889_v14 = vpop.eup %12888 }
 0x940   :  { %v7609_v39 = vmul.f32 %v12889_v14, %v12887_v17  ;;  %v12891_v1 = vpop.eup %12890  ;;  %v7662_v17 = vld [vmem:[#allocation4 + $0x98] sm:$0xff] }
 0x941   :  { %v7608_v12 = vmul.f32 %v12891_v1, %v15327_v18  ;;  %v7666_v14 = vld [vmem:[#allocation4 + $0xb8] sm:$0xff] }
 0x942   :  { %v12081_v35 = vcombine.low %v7662_v17, %v7666_v14 }
 0x943   :  { %v15433_v38 = vadd.f32 %v7609_v39, %v7608_v12  ;;  %v12071_v39 = vcombine.low %v7653_v47, %v7657_v11  ;;  %v12080_v12 = vcombine.high %v7661_v25, %v7665_v40  ;;  %v7710_v47 = vld [vmem:[#allocation4 + $0x218] sm:$0xff] }
 0x944   :  { %v7714_v11 = vld [vmem:[#allocation4 + $0x238] sm:$0xff] }
 0x945   :  { %v12130_v25 = vcombine.high %v7710_v47, %v7714_v11  ;;  %v7718_v40 = vld [vmem:[#allocation4 + $0x258] sm:$0xff] }
 0x963   :  { %v7525_v13 = vpop.f32.mrb[76].mxu0  ;;  %v7566_v29 = vpop.f32.mrb[92].mxu1 }
 0x964   :  { %v7585_v10 = vadd.f32 %v7525_v13, %v16857_v53  ;;  %v7587_v45 = vadd.f32 %v7566_v29, %v16858_v60  ;;  %v7527_v56 = vpop.f32.mrb[77].mxu0  ;;  %v7568_v21 = vpop.f32.mrb[93].mxu1  ;;  %v12082_v13 = vcombine.high %v7662_v17, %v7666_v14  ;;  %v7669_v29 = vld [vmem:[#allocation4 + $0xd0] sm:$0xff]  ;;  %v7674_v60 = vld [vmem:[#allocation4 + $0xf8] sm:$0xff] }
 0x965   :  { %v7586_v34 = vadd.f32 %v7527_v56, %v16859_v15  ;;  %v7588_v54 = vadd.f32 %v7568_v21, %v16860_v5  ;;  %v7529_v7 = vpop.f32.mrb[78].mxu0  ;;  %v7570_v23 = vpop.f32.mrb[94].mxu1  ;;  %v7673_v53 = vld [vmem:[#allocation4 + $0xf0] sm:$0xff]  ;;  %v7682_v56 = vld [vmem:[#allocation4 + $0x138] sm:$0xff] }
 0x966   :  { %v12056_v9 = vmul.f32 -1.442695, %v7585_v10  ;;  %v7530_v61 = vpop.f32.mrb[79].mxu0  ;;  %v7571_v3 = vpop.f32.mrb[95].mxu1  ;;  %v12058_v36 = vmul.f32 -1.442695, %v7587_v45  ;;  %v12088_v43 = vcombine.high %v7669_v29, %v7673_v53  ;;  %v12087_v21 = vcombine.low %v7669_v29, %v7673_v53 }
 0x967   :  { %v12057_v18 = vmul.f32 -1.442695, %v7586_v34  ;;  %v7670_v10 = vld [vmem:[#allocation4 + $0xd8] sm:$0xff]  ;;  %v7689_v7 = vld [vmem:[#allocation4 + $0x170] sm:$0xff] }
 0x968   :  { %12892 = vpow2.f32 %v12056_v9  ;;  %v12090_v16 = vcombine.high %v7670_v10, %v7674_v60  ;;  %v7678_v45 = vld [vmem:[#allocation4 + $0x118] sm:$0xff]  ;;  %v12089_v15 = vcombine.low %v7670_v10, %v7674_v60  ;;  %v7729_v29 = vld [vmem:[#allocation4 + $0x2b0] sm:$0xff] }
 0x969   :  { %12894 = vpow2.f32 %v12057_v18  ;;  %v12098_v5 = vcombine.high %v7678_v45, %v7682_v56  ;;  %v7686_v23 = vld [vmem:[#allocation4 + $0x158] sm:$0xff]  ;;  %v12097_v3 = vcombine.low %v7678_v45, %v7682_v56 }
 0x96a   :  { %12896 = vpow2.f32 %v12055_v28  ;;  %v7690_v9 = vld [vmem:[#allocation4 + $0x178] sm:$0xff] }
 0x96b   :  { %12898 = vtanh.f32 %v7588_v54  ;;  %v7685_v54 = vld [vmem:[#allocation4 + $0x150] sm:$0xff]  ;;  %v12106_v28 = vcombine.high %v7686_v23, %v7690_v9  ;;  %v7722_v17 = vld [vmem:[#allocation4 + $0x278] sm:$0xff] }
 0x96c   :  { %12900 = vpow2.f32 %v12058_v36  ;;  %v12104_v18 = vcombine.high %v7685_v54, %v7689_v7  ;;  %v7693_v36 = vld [vmem:[#allocation4 + $0x190] sm:$0xff]  ;;  %v7726_v53 = vld [vmem:[#allocation4 + $0x298] sm:$0xff] }
 0x96d   :  { %v7730_v10 = vld [vmem:[#allocation4 + $0x2b8] sm:$0xff] }
 0x96e   :  { %v7738_v45 = vld [vmem:[#allocation4 + $0x2f8] sm:$0xff] }
 0x972   :  { %v12893_v42 = vpop.eup %12892 }
 0x973   :  { %v7622_v8 = vadd.f32 1.0, %v12893_v42  ;;  %v12895_v0 = vpop.eup %12894  ;;  %v7697_v42 = vld [vmem:[#allocation4 + $0x1b0] sm:$0xff] }
 0x974   :  { %v7623_v49 = vadd.f32 1.0, %v12895_v0  ;;  %v12897_v2 = vpop.eup %12896  ;;  %v7698_v0 = vld [vmem:[#allocation4 + $0x1b8] sm:$0xff] }
 0x975   :  { %12902 = vrcp.f32 %v7622_v8  ;;  %v12899_v20 = vpop.eup %12898  ;;  %v7600_v48 = vadd.f32 1.0, %v12897_v2  ;;  %v7694_v8 = vld [vmem:[#allocation4 + $0x198] sm:$0xff]  ;;  %v12105_v2 = vcombine.low %v7686_v23, %v7690_v9 }
 0x976   :  { %12904 = vrcp.f32 %v7623_v49  ;;  %v12901_v50 = vpop.eup %12900  ;;  %v12103_v49 = vcombine.low %v7685_v54, %v7689_v7  ;;  %v7745_v54 = vld [vmem:[#allocation4 + $0x330] sm:$0xff]  ;;  %v7742_v7 = vld [vmem:[#allocation4 + $0x318] sm:$0xff] }
 0x977   :  { %v7624_v52 = vadd.f32 1.0, %v12901_v50  ;;  %12906 = vtanh.f32 %v15433_v38  ;;  %v12114_v50 = vcombine.high %v7694_v8, %v7698_v0  ;;  %v7746_v23 = vld [vmem:[#allocation4 + $0x338] sm:$0xff] }
 0x978   :  { %12908 = vrcp.f32 %v7600_v48  ;;  %v7705_v48 = vld [vmem:[#allocation4 + $0x1f0] sm:$0xff] }
 0x979   :  { %12910 = vrcp.f32 %v7624_v52  ;;  %v12111_v52 = vcombine.low %v7693_v36, %v7697_v42 }
 0x97f   :  { %v12903_v4 = vpop.eup %12902 }
 0x980   :  { %v7633_v22 = vmul.f32 %v12903_v4, %v12899_v20  ;;  %v12905_v51 = vpop.eup %12904  ;;  %v12112_v20 = vcombine.high %v7693_v36, %v7697_v42  ;;  %v7701_v4 = vld [vmem:[#allocation4 + $0x1d0] sm:$0xff]  ;;  %v7750_v42 = vld [vmem:[#allocation4 + $0x358] sm:$0xff] }
 0x981   :  { %v7632_v57 = vmul.f32 %v12905_v51, %v15338_v6  ;;  %v12907_v62 = vpop.eup %12906  ;;  %v7658_v6 = vld [vmem:[#allocation4 + $0x78] sm:$0xff]  ;;  %v7753_v36 = vld [vmem:[#allocation4 + $0x370] sm:$0xff] }
 0x982   :  { %v12909_v33 = vpop.eup %12908  ;;  %v12074_v19 = vcombine.high %v7654_v46, %v7658_v6  ;;  %v12073_v1 = vcombine.low %v7654_v46, %v7658_v6  ;;  %v7706_v51 = vld [vmem:[#allocation4 + $0x1f8] sm:$0xff]  ;;  %v12119_v46 = vcombine.low %v7701_v4, %v7705_v48 }
 0x983   :  { %v15441_v58 = vadd.f32 %v7633_v22, %v7632_v57  ;;  %v12911_v31 = vpop.eup %12910  ;;  %v15444_v32 = vmul.f32 %v12909_v33, %v12907_v62  ;;  %v7702_v22 = vld [vmem:[#allocation4 + $0x1d8] sm:$0xff]  ;;  %v12113_v57 = vcombine.low %v7694_v8, %v7698_v0  ;;  %v12120_v62 = vcombine.high %v7701_v4, %v7705_v48  ;;  %v7761_v4 = vld [vmem:[#allocation4 + $0x3b0] sm:$0xff] }
 0x984   :  { %v12122_v33 = vcombine.high %v7702_v22, %v7706_v51  ;;  %v12121_v6 = vcombine.low %v7702_v22, %v7706_v51  ;;  %v7754_v8 = vld [vmem:[#allocation4 + $0x378] sm:$0xff] }
 0x985   :  { %12912 = vtanh.f32 %v15441_v58  ;;  %v15452_v55 = vpack.c.bf16 %v15444_v32, %v15444_v32  ;;  %v7758_v48 = vld [vmem:[#allocation4 + $0x398] sm:$0xff] }
 0x986   :  { %v7762_v22 = vld [vmem:[#allocation4 + $0x3b8] sm:$0xff] }
 0x98f   :  { %v12913_v24 = vpop.eup %12912 }
 0x990   :  { %v15446_v59 = vmul.f32 %v12913_v24, %v12911_v31  ;;  %v7709_v31 = vld [vmem:[#allocation4 + $0x210] sm:$0xff] }
 0x991   :  { %v7713_v24 = vld [vmem:[#allocation4 + $0x230] sm:$0xff] }
 0x992   :  { %v7642_v27 = vpack.c.bf16 %v15446_v59, %v15446_v59  ;;  %v12127_v14 = vcombine.low %v7709_v31, %v7713_v24 }
 0x994   :  { %8443 = vmatprep.mubr.bf16.mxu0 %v7642_v27  ;;  %8484 = vmatprep.mubr.bf16.mxu1 %v7642_v27 }
 0x995   :  { %8444 = vmatmul.mubr.bf16.vlgmr.msra.gmra.mrb[80].mxu0 %v15452_v55  ;;  %8485 = vmatmul.mubr.bf16.vlgmr.msra.gmra.mrb[96].mxu1 %v15452_v55 }
 0x996   :  { %8494 = vmatpush1.bf16.msra.mxu0 %v12063_v37  ;;  %8535 = vmatpush1.bf16.msra.mxu1 %v12065_v63  ;;  %v7677_v37 = vld [vmem:[#allocation4 + $0x110] sm:$0xff] }
 0x997   :  { %8525 = vmatprep.mubr.bf16.mxu0 %v7642_v27  ;;  %8566 = vmatprep.mubr.bf16.mxu1 %v7642_v27  ;;  %v7681_v63 = vld [vmem:[#allocation4 + $0x130] sm:$0xff]  ;;  %v12128_v27 = vcombine.high %v7709_v31, %v7713_v24  ;;  %v7766_v24 = vld [vmem:[#allocation4 + $0x3d8] sm:$0xff] }
 0x998   :  { %8495 = vmatprep.subr.bf16.mxu0 %v12072_v26  ;;  %8536 = vmatprep.subr.bf16.mxu1 %v12074_v19  ;;  %v12096_v34 = vcombine.high %v7677_v37, %v7681_v63  ;;  %v12095_v61 = vcombine.low %v7677_v37, %v7681_v63  ;;  %v7717_v26 = vld [vmem:[#allocation4 + $0x250] sm:$0xff]  ;;  %v7734_v63 = vld [vmem:[#allocation4 + $0x2d8] sm:$0xff] }
 0x999   :  { %v7721_v19 = vld [vmem:[#allocation4 + $0x270] sm:$0xff] }
 0x99a   :  { %8496 = vmatpush1.bf16.msra.mxu0 %v12071_v39  ;;  %8537 = vmatpush1.bf16.msra.mxu1 %v12073_v1  ;;  %v12129_v39 = vcombine.low %v7710_v47, %v7714_v11  ;;  %v12136_v1 = vcombine.high %v7717_v26, %v7721_v19  ;;  %v12135_v60 = vcombine.low %v7717_v26, %v7721_v19  ;;  %v7737_v37 = vld [vmem:[#allocation4 + $0x2f0] sm:$0xff]  ;;  %v7770_v47 = vld [vmem:[#allocation4 + $0x3f8] sm:$0xff] }
 0x99b   :  { %8497 = vmatprep.subr.bf16.mxu0 %v12080_v12  ;;  %8538 = vmatprep.subr.bf16.mxu1 %v12082_v13  ;;  %v12138_v12 = vcombine.high %v7718_v40, %v7722_v17  ;;  %v7725_v13 = vld [vmem:[#allocation4 + $0x290] sm:$0xff]  ;;  %v12185_v26 = vcombine.low %v7766_v24, %v7770_v47 }
 0x99c   :  { %v12143_v56 = vcombine.low %v7725_v13, %v7729_v29  ;;  %v7769_v31 = vld [vmem:[#allocation4 + $0x3f0] sm:$0xff] }
 0x99d   :  { %v12434_v19 = vld [vmem:[#allocation6] ss:$16 sps:$4 sm:$0xff]  }
 0x99e   :  { %8498 = vmatpush1.bf16.msra.mxu0 %v12079_v30  ;;  %8539 = vmatpush1.bf16.msra.mxu1 %v12081_v35  ;;  %v12137_v30 = vcombine.low %v7718_v40, %v7722_v17  ;;  %v12144_v35 = vcombine.high %v7725_v13, %v7729_v29  ;;  %v12436_v40 = vld [vmem:[#allocation6 + $0x4] ss:$16 sps:$4 sm:$0xff]   ;;  %v12437_v17 = vld [vmem:[#allocation6 + $0x8] ss:$16 sps:$4 sm:$0xff]  }
 0x99f   :  { %8499 = vmatprep.subr.bf16.mxu0 %v12088_v43  ;;  %8540 = vmatprep.subr.bf16.mxu1 %v12090_v16  ;;  %v12146_v43 = vcombine.high %v7726_v53, %v7730_v10  ;;  %v7733_v16 = vld [vmem:[#allocation4 + $0x2d0] sm:$0xff]  ;;  %v12443_v13 = vld [vmem:[#allocation6 + $0x28] ss:$16 sps:$4 sm:$0xff]  }
 0x9a0   :  { %v12151_v9 = vcombine.low %v7733_v16, %v7737_v37  ;;  %v12448_v29 = vld [vmem:[#allocation6 + $0x44] ss:$16 sps:$4 sm:$0xff]  }
 0x9a2   :  { %8500 = vmatpush1.bf16.msra.mxu0 %v12087_v21  ;;  %8541 = vmatpush1.bf16.msra.mxu1 %v12089_v15  ;;  %v12145_v21 = vcombine.low %v7726_v53, %v7730_v10  ;;  %v12152_v15 = vcombine.high %v7733_v16, %v7737_v37  ;;  %v12451_v53 = vld [vmem:[#allocation6 + $0x4c] ss:$16 sps:$4 sm:$0xff]   ;;  %v12446_v10 = vld [vmem:[#allocation6 + $0x40] ss:$16 sps:$4 sm:$0xff]   ;;  %v12460_v16 = vld [vmem:[#allocation6 + $0x84] ss:$16 sps:$4 sm:$0xff]  }
 0x9a3   :  { %8501 = vmatprep.subr.bf16.mxu0 %v12096_v34  ;;  %8542 = vmatprep.subr.bf16.mxu1 %v12098_v5  ;;  %v12154_v34 = vcombine.high %v7734_v63, %v7738_v45  ;;  %v7741_v5 = vld [vmem:[#allocation4 + $0x310] sm:$0xff]  ;;  %v12463_v37 = vld [vmem:[#allocation6 + $0x8c] ss:$16 sps:$4 sm:$0xff]  }
 0x9a4   :  { %v12159_v0 = vcombine.low %v7741_v5, %v7745_v54 }
 0x9a6   :  { %8502 = vmatpush1.bf16.msra.mxu0 %v12095_v61  ;;  %8543 = vmatpush1.bf16.msra.mxu1 %v12097_v3  ;;  %v12153_v61 = vcombine.low %v7734_v63, %v7738_v45  ;;  %v12160_v3 = vcombine.high %v7741_v5, %v7745_v54  ;;  %v12458_v63 = vld [vmem:[#allocation6 + $0x80] ss:$16 sps:$4 sm:$0xff]   ;;  %v12461_v45 = vld [vmem:[#allocation6 + $0x88] ss:$16 sps:$4 sm:$0xff]   ;;  %v12472_v5 = vld [vmem:[#allocation6 + $0xc4] ss:$16 sps:$4 sm:$0xff]  }
 0x9a7   :  { %8503 = vmatprep.subr.bf16.mxu0 %v12104_v18  ;;  %8544 = vmatprep.subr.bf16.mxu1 %v12106_v28  ;;  %v12162_v18 = vcombine.high %v7742_v7, %v7746_v23  ;;  %v7749_v28 = vld [vmem:[#allocation4 + $0x350] sm:$0xff]  ;;  %v12475_v54 = vld [vmem:[#allocation6 + $0xcc] ss:$16 sps:$4 sm:$0xff]  }
 0x9a8   :  { %v12167_v51 = vcombine.low %v7749_v28, %v7753_v36 }
 0x9aa   :  { %8504 = vmatpush1.bf16.msra.mxu0 %v12103_v49  ;;  %8545 = vmatpush1.bf16.msra.mxu1 %v12105_v2  ;;  %v12161_v49 = vcombine.low %v7742_v7, %v7746_v23  ;;  %v12168_v2 = vcombine.high %v7749_v28, %v7753_v36  ;;  %v12470_v7 = vld [vmem:[#allocation6 + $0xc0] ss:$16 sps:$4 sm:$0xff]   ;;  %v12473_v23 = vld [vmem:[#allocation6 + $0xc8] ss:$16 sps:$4 sm:$0xff]   ;;  %v12484_v28 = vld [vmem:[#allocation6 + $0x104] ss:$16 sps:$4 sm:$0xff]  }
 0x9ab   :  { %8505 = vmatprep.subr.bf16.mxu0 %v12112_v20  ;;  %8546 = vmatprep.subr.bf16.mxu1 %v12114_v50  ;;  %v12170_v20 = vcombine.high %v7750_v42, %v7754_v8  ;;  %v7757_v50 = vld [vmem:[#allocation4 + $0x390] sm:$0xff]  ;;  %v12487_v36 = vld [vmem:[#allocation6 + $0x10c] ss:$16 sps:$4 sm:$0xff]  }
 0x9ac   :  { %v12175_v11 = vcombine.low %v7757_v50, %v7761_v4 }
 0x9ae   :  { %8506 = vmatpush1.bf16.msra.mxu0 %v12111_v52  ;;  %8547 = vmatpush1.bf16.msra.mxu1 %v12113_v57  ;;  %v12169_v52 = vcombine.low %v7750_v42, %v7754_v8  ;;  %v12176_v57 = vcombine.high %v7757_v50, %v7761_v4  ;;  %v12482_v42 = vld [vmem:[#allocation6 + $0x100] ss:$16 sps:$4 sm:$0xff]   ;;  %v12485_v8 = vld [vmem:[#allocation6 + $0x108] ss:$16 sps:$4 sm:$0xff]   ;;  %v12496_v50 = vld [vmem:[#allocation6 + $0x144] ss:$16 sps:$4 sm:$0xff]  }
 0x9af   :  { %8507 = vmatprep.subr.bf16.mxu0 %v12120_v62  ;;  %8548 = vmatprep.subr.bf16.mxu1 %v12122_v33  ;;  %v12178_v62 = vcombine.high %v7758_v48, %v7762_v22  ;;  %v7765_v33 = vld [vmem:[#allocation4 + $0x3d0] sm:$0xff]  ;;  %v12499_v4 = vld [vmem:[#allocation6 + $0x14c] ss:$16 sps:$4 sm:$0xff]  }
 0x9b2   :  { %8508 = vmatpush1.bf16.msra.mxu0 %v12119_v46  ;;  %8549 = vmatpush1.bf16.msra.mxu1 %v12121_v6  ;;  %v12177_v46 = vcombine.low %v7758_v48, %v7762_v22  ;;  %v12184_v6 = vcombine.high %v7765_v33, %v7769_v31  ;;  %v12494_v48 = vld [vmem:[#allocation6 + $0x140] ss:$16 sps:$4 sm:$0xff]   ;;  %v12497_v22 = vld [vmem:[#allocation6 + $0x148] ss:$16 sps:$4 sm:$0xff]  }
 0x9b3   :  { %8509 = vmatprep.subr.bf16.mxu0 %v12128_v27  ;;  %8550 = vmatprep.subr.bf16.mxu1 %v12130_v25  ;;  %v12186_v27 = vcombine.high %v7766_v24, %v7770_v47  ;;  %v12183_v25 = vcombine.low %v7765_v33, %v7769_v31  ;;  %v12506_v33 = vld [vmem:[#allocation6 + $0x180] ss:$16 sps:$4 sm:$0xff]   ;;  %v12508_v31 = vld [vmem:[#allocation6 + $0x184] ss:$16 sps:$4 sm:$0xff]   ;;  %v12509_v24 = vld [vmem:[#allocation6 + $0x188] ss:$16 sps:$4 sm:$0xff]  }
 0x9b4   :  { %v12511_v47 = vld [vmem:[#allocation6 + $0x18c] ss:$16 sps:$4 sm:$0xff]  }
 0x9b6   :  { %8510 = vmatpush1.bf16.msra.mxu0 %v12127_v14  ;;  %8551 = vmatpush1.bf16.msra.mxu1 %v12129_v39  ;;  %v12439_v14 = vld [vmem:[#allocation6 + $0xc] ss:$16 sps:$4 sm:$0xff]   ;;  %v12442_v39 = vld [vmem:[#allocation6 + $0x24] ss:$16 sps:$4 sm:$0xff]  }
 0x9b7   :  { %8511 = vmatprep.subr.bf16.mxu0 %v12136_v1  ;;  %8552 = vmatprep.subr.bf16.mxu1 %v12138_v12  ;;  %v12445_v1 = vld [vmem:[#allocation6 + $0x2c] ss:$16 sps:$4 sm:$0xff]   ;;  %v12440_v12 = vld [vmem:[#allocation6 + $0x20] ss:$16 sps:$4 sm:$0xff]  }
 0x9ba   :  { %8512 = vmatpush1.bf16.msra.mxu0 %v12135_v60  ;;  %8553 = vmatpush1.bf16.msra.mxu1 %v12137_v30  ;;  %v12454_v60 = vld [vmem:[#allocation6 + $0x64] ss:$16 sps:$4 sm:$0xff]   ;;  %v12457_v30 = vld [vmem:[#allocation6 + $0x6c] ss:$16 sps:$4 sm:$0xff]  }
 0x9bb   :  { %8513 = vmatprep.subr.bf16.mxu0 %v12144_v35  ;;  %8554 = vmatprep.subr.bf16.mxu1 %v12146_v43  ;;  %v12452_v35 = vld [vmem:[#allocation6 + $0x60] ss:$16 sps:$4 sm:$0xff]   ;;  %v12455_v43 = vld [vmem:[#allocation6 + $0x68] ss:$16 sps:$4 sm:$0xff]  }
 0x9be   :  { %8514 = vmatpush1.bf16.msra.mxu0 %v12143_v56  ;;  %8555 = vmatpush1.bf16.msra.mxu1 %v12145_v21  ;;  %v12466_v56 = vld [vmem:[#allocation6 + $0xa4] ss:$16 sps:$4 sm:$0xff]   ;;  %v12469_v21 = vld [vmem:[#allocation6 + $0xac] ss:$16 sps:$4 sm:$0xff]  }
 0x9bf   :  { %8515 = vmatprep.subr.bf16.mxu0 %v12152_v15  ;;  %8556 = vmatprep.subr.bf16.mxu1 %v12154_v34  ;;  %v12464_v15 = vld [vmem:[#allocation6 + $0xa0] ss:$16 sps:$4 sm:$0xff]   ;;  %v12467_v34 = vld [vmem:[#allocation6 + $0xa8] ss:$16 sps:$4 sm:$0xff]  }
 0x9c2   :  { %8516 = vmatpush1.bf16.msra.mxu0 %v12151_v9  ;;  %8557 = vmatpush1.bf16.msra.mxu1 %v12153_v61  ;;  %v12478_v9 = vld [vmem:[#allocation6 + $0xe4] ss:$16 sps:$4 sm:$0xff]   ;;  %v12481_v61 = vld [vmem:[#allocation6 + $0xec] ss:$16 sps:$4 sm:$0xff]  }
 0x9c3   :  { %8517 = vmatprep.subr.bf16.mxu0 %v12160_v3  ;;  %8558 = vmatprep.subr.bf16.mxu1 %v12162_v18  ;;  %v12476_v3 = vld [vmem:[#allocation6 + $0xe0] ss:$16 sps:$4 sm:$0xff]   ;;  %v12479_v18 = vld [vmem:[#allocation6 + $0xe8] ss:$16 sps:$4 sm:$0xff]  }
 0x9c6   :  { %8518 = vmatpush1.bf16.msra.mxu0 %v12159_v0  ;;  %8559 = vmatpush1.bf16.msra.mxu1 %v12161_v49  ;;  %v12490_v0 = vld [vmem:[#allocation6 + $0x124] ss:$16 sps:$4 sm:$0xff]   ;;  %v12493_v49 = vld [vmem:[#allocation6 + $0x12c] ss:$16 sps:$4 sm:$0xff]  }
 0x9c7   :  { %8519 = vmatprep.subr.bf16.mxu0 %v12168_v2  ;;  %8560 = vmatprep.subr.bf16.mxu1 %v12170_v20  ;;  %v12488_v2 = vld [vmem:[#allocation6 + $0x120] ss:$16 sps:$4 sm:$0xff]   ;;  %v12491_v20 = vld [vmem:[#allocation6 + $0x128] ss:$16 sps:$4 sm:$0xff]  }
 0x9ca   :  { %8520 = vmatpush1.bf16.msra.mxu0 %v12167_v51  ;;  %8561 = vmatpush1.bf16.msra.mxu1 %v12169_v52  ;;  %v12502_v51 = vld [vmem:[#allocation6 + $0x164] ss:$16 sps:$4 sm:$0xff]   ;;  %v12505_v52 = vld [vmem:[#allocation6 + $0x16c] ss:$16 sps:$4 sm:$0xff]  }
 0x9cb   :  { %8521 = vmatprep.subr.bf16.mxu0 %v12176_v57  ;;  %8562 = vmatprep.subr.bf16.mxu1 %v12178_v62  ;;  %v12500_v57 = vld [vmem:[#allocation6 + $0x160] ss:$16 sps:$4 sm:$0xff]   ;;  %v12503_v62 = vld [vmem:[#allocation6 + $0x168] ss:$16 sps:$4 sm:$0xff]  }
 0x9ce   :  { %8522 = vmatpush1.bf16.msra.mxu0 %v12175_v11  ;;  %8563 = vmatpush1.bf16.msra.mxu1 %v12177_v46  ;;  %v12514_v11 = vld [vmem:[#allocation6 + $0x1a4] ss:$16 sps:$4 sm:$0xff]   ;;  %v12517_v46 = vld [vmem:[#allocation6 + $0x1ac] ss:$16 sps:$4 sm:$0xff]  }
 0x9cf   :  { %8523 = vmatprep.subr.bf16.mxu0 %v12184_v6  ;;  %8564 = vmatprep.subr.bf16.mxu1 %v12186_v27  ;;  %v12512_v6 = vld [vmem:[#allocation6 + $0x1a0] ss:$16 sps:$4 sm:$0xff]   ;;  %v12515_v27 = vld [vmem:[#allocation6 + $0x1a8] ss:$16 sps:$4 sm:$0xff]  }
 0x9d2   :  { %8524 = vmatpush1.bf16.msra.mxu0 %v12183_v25  ;;  %8565 = vmatpush1.bf16.msra.mxu1 %v12185_v26  ;;  %v12520_v25 = vld [vmem:[#allocation6 + $0x1c4] ss:$16 sps:$4 sm:$0xff]   ;;  %v12523_v26 = vld [vmem:[#allocation6 + $0x1cc] ss:$16 sps:$4 sm:$0xff]  }
 0x9d3   :  { %9073 = vmatprep.subr.bf16.mxu0 %v12436_v40  ;;  %9146 = vmatprep.subr.bf16.mxu1 %v12439_v14  ;;  %v12521_v40 = vld [vmem:[#allocation6 + $0x1c8] ss:$16 sps:$4 sm:$0xff]   ;;  %v12529_v14 = vld [vmem:[#allocation6 + $0x1ec] ss:$16 sps:$4 sm:$0xff]  }
 0x9d5   :  { %8526 = vmatmul.mubr.bf16.vlgmr.msra.gmra.mrb[84].mxu0 %v15452_v55  ;;  %8567 = vmatmul.mubr.bf16.vlgmr.msra.gmra.mrb[100].mxu1 %v15452_v55  ;;  %v12449_v55 = vld [vmem:[#allocation6 + $0x48] ss:$16 sps:$4 sm:$0xff]  }
 0x9d6   :  { %9074 = vmatpush1.bf16.msra.mxu0 %v12434_v19  ;;  %9147 = vmatpush1.bf16.msra.mxu1 %v12437_v17  ;;  %v12518_v19 = vld [vmem:[#allocation6 + $0x1c0] ss:$16 sps:$4 sm:$0xff]   ;;  %v12526_v17 = vld [vmem:[#allocation6 + $0x1e4] ss:$16 sps:$4 sm:$0xff]  }
 0x9d7   :  { %9075 = vmatprep.subr.bf16.mxu0 %v12442_v39  ;;  %9148 = vmatprep.subr.bf16.mxu1 %v12445_v1  ;;  %v12524_v39 = vld [vmem:[#allocation6 + $0x1e0] ss:$16 sps:$4 sm:$0xff]   ;;  %v12527_v1 = vld [vmem:[#allocation6 + $0x1e8] ss:$16 sps:$4 sm:$0xff]  }
 0x9da   :  { %9076 = vmatpush1.bf16.msra.mxu0 %v12440_v12  ;;  %9149 = vmatpush1.bf16.msra.mxu1 %v12443_v13  ;;  %v15464_v12 = vld [vmem:[#allocation8 + $0x4] ss:$16 sps:$4 sm:$0xff]   ;;  %v15466_v13 = vld [vmem:[#allocation8 + $0xc] ss:$16 sps:$4 sm:$0xff]  }
 0x9db   :  { %9077 = vmatprep.subr.bf16.mxu0 %v12448_v29  ;;  %9150 = vmatprep.subr.bf16.mxu1 %v12451_v53 }
 0x9de   :  { %9078 = vmatpush1.bf16.msra.mxu0 %v12446_v10  ;;  %9151 = vmatpush1.bf16.msra.mxu1 %v12449_v55  ;;  %v16861_v10 = vld [vmem:[#allocation26_spill] sm:$0xff] }
 0x9df   :  { %9079 = vmatprep.subr.bf16.mxu0 %v12454_v60  ;;  %9152 = vmatprep.subr.bf16.mxu1 %v12457_v30  ;;  %v16862_v60 = vld [vmem:[#allocation58_spill] sm:$0xff] }
 0x9e2   :  { %9080 = vmatpush1.bf16.msra.mxu0 %v12452_v35  ;;  %9153 = vmatpush1.bf16.msra.mxu1 %v12455_v43 }
 0x9e3   :  { %9081 = vmatprep.subr.bf16.mxu0 %v12460_v16  ;;  %9154 = vmatprep.subr.bf16.mxu1 %v12463_v37  ;;  %v16863_v16 = vld [vmem:[#allocation28_spill] sm:$0xff] }
 0x9e6   :  { %9082 = vmatpush1.bf16.msra.mxu0 %v12458_v63  ;;  %9155 = vmatpush1.bf16.msra.mxu1 %v12461_v45  ;;  %v16864_v63 = vld [vmem:[#allocation59_spill] sm:$0xff] }
 0x9e7   :  { %9083 = vmatprep.subr.bf16.mxu0 %v12466_v56  ;;  %9156 = vmatprep.subr.bf16.mxu1 %v12469_v21 }
 0x9ea   :  { %9084 = vmatpush1.bf16.msra.mxu0 %v12464_v15  ;;  %9157 = vmatpush1.bf16.msra.mxu1 %v12467_v34 }
 0x9eb   :  { %9085 = vmatprep.subr.bf16.mxu0 %v12472_v5  ;;  %9158 = vmatprep.subr.bf16.mxu1 %v12475_v54 }
 0x9ee   :  { %9086 = vmatpush1.bf16.msra.mxu0 %v12470_v7  ;;  %9159 = vmatpush1.bf16.msra.mxu1 %v12473_v23 }
 0x9ef   :  { %9087 = vmatprep.subr.bf16.mxu0 %v12478_v9  ;;  %9160 = vmatprep.subr.bf16.mxu1 %v12481_v61 }
 0x9f2   :  { %9088 = vmatpush1.bf16.msra.mxu0 %v12476_v3  ;;  %9161 = vmatpush1.bf16.msra.mxu1 %v12479_v18 }
 0x9f3   :  { %9089 = vmatprep.subr.bf16.mxu0 %v12484_v28  ;;  %9162 = vmatprep.subr.bf16.mxu1 %v12487_v36 }
 0x9f6   :  { %9090 = vmatpush1.bf16.msra.mxu0 %v12482_v42  ;;  %9163 = vmatpush1.bf16.msra.mxu1 %v12485_v8 }
 0x9f7   :  { %9091 = vmatprep.subr.bf16.mxu0 %v12490_v0  ;;  %9164 = vmatprep.subr.bf16.mxu1 %v12493_v49 }
 0x9fa   :  { %9092 = vmatpush1.bf16.msra.mxu0 %v12488_v2  ;;  %9165 = vmatpush1.bf16.msra.mxu1 %v12491_v20 }
 0x9fb   :  { %9093 = vmatprep.subr.bf16.mxu0 %v12496_v50  ;;  %9166 = vmatprep.subr.bf16.mxu1 %v12499_v4 }
 0x9fe   :  { %9094 = vmatpush1.bf16.msra.mxu0 %v12494_v48  ;;  %9167 = vmatpush1.bf16.msra.mxu1 %v12497_v22  ;;  %v7637_v48 = vmax.f32 %v15444_v32, 0.0 }
 0x9ff   :  { %9095 = vmatprep.subr.bf16.mxu0 %v12502_v51  ;;  %9168 = vmatprep.subr.bf16.mxu1 %v12505_v52 }
 0xa02   :  { %9096 = vmatpush1.bf16.msra.mxu0 %v12500_v57  ;;  %9169 = vmatpush1.bf16.msra.mxu1 %v12503_v62  ;;  %v16866_v62 = vld [vmem:[#allocation32_spill] sm:$0xff] }
 0xa03   :  { %9097 = vmatprep.subr.bf16.mxu0 %v12508_v31  ;;  %9170 = vmatprep.subr.bf16.mxu1 %v12511_v47  ;;  %v16867_v31 = vld [vmem:[#allocation62_spill] sm:$0xff] }
 0xa06   :  { %9098 = vmatpush1.bf16.msra.mxu0 %v12506_v33  ;;  %9171 = vmatpush1.bf16.msra.mxu1 %v12509_v24 }
 0xa07   :  { %9099 = vmatprep.subr.bf16.mxu0 %v12514_v11  ;;  %9172 = vmatprep.subr.bf16.mxu1 %v12517_v46 }
 0xa0a   :  { %9100 = vmatpush1.bf16.msra.mxu0 %v12512_v6  ;;  %9173 = vmatpush1.bf16.msra.mxu1 %v12515_v27  ;;  %v16869_v6 = vld [vmem:[#allocation66_spill] sm:$0xff] }
 0xa0b   :  { %9101 = vmatprep.subr.bf16.mxu0 %v12520_v25  ;;  %9174 = vmatprep.subr.bf16.mxu1 %v12523_v26 }
 0xa0e   :  { %9102 = vmatpush1.bf16.msra.mxu0 %v12518_v19  ;;  %9175 = vmatpush1.bf16.msra.mxu1 %v12521_v40 }
 0xa0f   :  { %9103 = vmatprep.subr.bf16.mxu0 %v12526_v17  ;;  %9176 = vmatprep.subr.bf16.mxu1 %v12529_v14 }
 0xa12   :  { %9104 = vmatpush1.bf16.msra.mxu0 %v12524_v39  ;;  %9177 = vmatpush1.bf16.msra.mxu1 %v12527_v1 }
 0xa13   :  { %9447 = vmatprep.subr.bf16.mxu0 %v15464_v12  ;;  %9488 = vmatprep.subr.bf16.mxu1 %v15466_v13 }
 0xa68   :  { %v8445_v29 = vpop.f32.mrb[80].mxu0  ;;  %v8486_v53 = vpop.f32.mrb[96].mxu1 }
 0xa69   :  { %v8579_v55 = vadd.f32 %v8445_v29, %v16861_v10  ;;  %v8581_v30 = vadd.f32 %v8486_v53, %v16862_v60  ;;  %v8447_v35 = vpop.f32.mrb[81].mxu0  ;;  %v8488_v43 = vpop.f32.mrb[97].mxu1 }
 0xa6a   :  { %v8580_v37 = vadd.f32 %v8447_v35, %v16863_v16  ;;  %v8582_v45 = vadd.f32 %v8488_v43, %v16864_v63  ;;  %v8449_v56 = vpop.f32.mrb[82].mxu0  ;;  %v8490_v21 = vpop.f32.mrb[98].mxu1 }
 0xa6b   :  { %v12187_v15 = vmul.f32 -1.442695, %v8579_v55  ;;  %v8450_v34 = vpop.f32.mrb[83].mxu0  ;;  %v8491_v5 = vpop.f32.mrb[99].mxu1  ;;  %v12189_v7 = vmul.f32 -1.442695, %v8581_v30 }
 0xa6c   :  { %v12188_v54 = vmul.f32 -1.442695, %v8580_v37  ;;  %v7639_v21 = vmax.f32 %v15446_v59, 0.0  ;;  %v15484_v5 = vld [vmem:[#allocation8] ss:$16 sps:$4 sm:$0xff]  }
 0xa6d   :  { %12914 = vpow2.f32 %v12187_v15  ;;  %v15498_v59 = vld [vmem:[#allocation8 + $0x20] ss:$16 sps:$4 sm:$0xff]  }
 0xa6e   :  { %12916 = vpow2.f32 %v12188_v54  ;;  %v15486_v54 = vld [vmem:[#allocation8 + $0x8] ss:$16 sps:$4 sm:$0xff]  }
 0xa6f   :  { %12918 = vtanh.f32 %v8582_v45 }
 0xa70   :  { %12920 = vpow2.f32 %v12189_v7  ;;  %v15488_v7 = vld [vmem:[#allocation8 + $0x24] ss:$16 sps:$4 sm:$0xff]  }
 0xa77   :  { %v12915_v23 = vpop.eup %12914 }
 0xa78   :  { %v8600_v9 = vadd.f32 1.0, %v12915_v23  ;;  %v12917_v61 = vpop.eup %12916  ;;  %v15490_v23 = vld [vmem:[#allocation8 + $0x2c] ss:$16 sps:$4 sm:$0xff]  }
 0xa79   :  { %v8601_v3 = vadd.f32 1.0, %v12917_v61  ;;  %v12919_v18 = vpop.eup %12918  ;;  %v15504_v61 = vld [vmem:[#allocation8 + $0x44] ss:$16 sps:$4 sm:$0xff]  }
 0xa7a   :  { %12922 = vrcp.f32 %v8600_v9  ;;  %v12921_v28 = vpop.eup %12920  ;;  %v15500_v9 = vld [vmem:[#allocation8 + $0x28] ss:$16 sps:$4 sm:$0xff]  }
 0xa7b   :  { %12924 = vrcp.f32 %v8601_v3  ;;  %v8602_v0 = vadd.f32 1.0, %v12921_v28  ;;  %v15506_v3 = vld [vmem:[#allocation8 + $0x4c] ss:$16 sps:$4 sm:$0xff]   ;;  %v15516_v28 = vld [vmem:[#allocation8 + $0x64] ss:$16 sps:$4 sm:$0xff]  }
 0xa7d   :  { %12926 = vrcp.f32 %v8602_v0  ;;  %v15526_v0 = vld [vmem:[#allocation8 + $0x60] ss:$16 sps:$4 sm:$0xff]  }
 0xa84   :  { %v12923_v36 = vpop.eup %12922 }
 0xa85   :  { %v8611_v42 = vmul.f32 %v12923_v36, %v12919_v18  ;;  %v12925_v8 = vpop.eup %12924  ;;  %v15512_v18 = vld [vmem:[#allocation8 + $0x48] ss:$16 sps:$4 sm:$0xff]   ;;  %v15518_v36 = vld [vmem:[#allocation8 + $0x6c] ss:$16 sps:$4 sm:$0xff]  }
 0xa86   :  { %v8610_v49 = vmul.f32 %v12925_v8, %v15433_v38  ;;  %v16868_v38 = vld [vmem:[#allocation33_spill] sm:$0xff]  ;;  %v16872_v8 = vld [vmem:[#allocation146_spill] sm:$0xff] }
 0xa87   :  { %v12927_v20 = vpop.eup %12926 }
 0xa88   :  { %v8612_v2 = vadd.f32 %v8611_v42, %v8610_v49  ;;  %v16871_v42 = vld [vmem:[#allocation145_spill] sm:$0xff] }
 0xa89   :  { %v15528_v49 = vld [vmem:[#allocation8 + $0x68] ss:$16 sps:$4 sm:$0xff]  }
 0xa8a   :  { %12928 = vtanh.f32 %v8612_v2  ;;  %v15532_v2 = vld [vmem:[#allocation8 + $0x84] ss:$16 sps:$4 sm:$0xff]  }
 0xa94   :  { %v12929_v50 = vpop.eup %12928 }
 0xa95   :  { %v8614_v4 = vmul.f32 %v12929_v50, %v12927_v20  ;;  %v15534_v20 = vld [vmem:[#allocation8 + $0x8c] ss:$16 sps:$4 sm:$0xff]   ;;  %v15538_v50 = vld [vmem:[#allocation8 + $0x80] ss:$16 sps:$4 sm:$0xff]  }
 0xa97   :  { %v8639_v22 = vmax.f32 %v8614_v4, 0.0  ;;  %v15540_v4 = vld [vmem:[#allocation8 + $0x88] ss:$16 sps:$4 sm:$0xff]  }
 0xa99   :  { %v15476_v51 = vpack.c.bf16 %v8639_v22, %v7637_v48  ;;  %v15544_v48 = vld [vmem:[#allocation8 + $0xa4] ss:$16 sps:$4 sm:$0xff]   ;;  %v15546_v22 = vld [vmem:[#allocation8 + $0xac] ss:$16 sps:$4 sm:$0xff]  }
 0xa9b   :  { %16865 = vst [vmem:[#allocation125_spill] sm:$0xff] %v15476_v51 }
 0xaa8   :  { %v8527_v52 = vpop.f32.mrb[84].mxu0  ;;  %v8568_v57 = vpop.f32.mrb[100].mxu1 }
 0xaa9   :  { %v8587_v33 = vadd.f32 %v8527_v52, %v16866_v62  ;;  %v8589_v24 = vadd.f32 %v8568_v57, %v16867_v31  ;;  %v8529_v47 = vpop.f32.mrb[85].mxu0  ;;  %v8570_v11 = vpop.f32.mrb[101].mxu1  ;;  %v16873_v52 = vld [vmem:[#allocation61_spill] sm:$0xff]  ;;  %v15554_v57 = vld [vmem:[#allocation8 + $0xa0] ss:$16 sps:$4 sm:$0xff]  }
 0xaaa   :  { %v8588_v46 = vadd.f32 %v8529_v47, %v16868_v38  ;;  %v8590_v27 = vadd.f32 %v8570_v11, %v16869_v6  ;;  %v8531_v25 = vpop.f32.mrb[86].mxu0  ;;  %v8572_v26 = vpop.f32.mrb[102].mxu1  ;;  %v15556_v62 = vld [vmem:[#allocation8 + $0xa8] ss:$16 sps:$4 sm:$0xff]   ;;  %v15562_v31 = vld [vmem:[#allocation8 + $0xcc] ss:$16 sps:$4 sm:$0xff]  }
 0xaab   :  { %v12190_v19 = vmul.f32 -1.442695, %v8587_v33  ;;  %v8532_v40 = vpop.f32.mrb[87].mxu0  ;;  %v8573_v32 = vpop.f32.mrb[103].mxu1  ;;  %v12192_v14 = vmul.f32 -1.442695, %v8589_v24 }
 0xaac   :  { %v12191_v17 = vmul.f32 -1.442695, %v8588_v46  ;;  %v15560_v33 = vld [vmem:[#allocation8 + $0xc4] ss:$16 sps:$4 sm:$0xff]   ;;  %v15568_v24 = vld [vmem:[#allocation8 + $0xc8] ss:$16 sps:$4 sm:$0xff]  }
 0xaad   :  { %12930 = vpow2.f32 %v12190_v19  ;;  %v15572_v47 = vld [vmem:[#allocation8 + $0xe4] ss:$16 sps:$4 sm:$0xff]   ;;  %v15574_v11 = vld [vmem:[#allocation8 + $0xec] ss:$16 sps:$4 sm:$0xff]   ;;  %v16874_v38 = vmov 0  }
 0xaae   :  { %12932 = vpow2.f32 %v12191_v17  ;;  %v15582_v46 = vld [vmem:[#allocation8 + $0xe0] ss:$16 sps:$4 sm:$0xff]   ;;  %v15584_v6 = vld [vmem:[#allocation8 + $0xe8] ss:$16 sps:$4 sm:$0xff]  }
 0xaaf   :  { %12934 = vtanh.f32 %v8590_v27  ;;  %v8731_v27 = vld [vmem:[%s16034_s6] sm:$0xf] }
 0xab0   :  { %12936 = vpow2.f32 %v12192_v14  ;;  %v16875_v19 = vld [vmem:[#allocation14_spill] sm:$0xff] }
 0xab1   :  { %v8736_v40 = vrot.slane %v8731_v27, %v16875_v19  ;;  %v16876_v32 = vld [vmem:[#allocation30_spill] sm:$0xff] }
 0xab2   :  { %v8744_v17 = vrot.slane %v8731_v27, %v16876_v32 }
 0xab7   :  { %v12931_v39 = vpop.eup %12930 }
 0xab8   :  { %v8624_v1 = vadd.f32 1.0, %v12931_v39  ;;  %v12933_v29 = vpop.eup %12932 }
 0xab9   :  { %v8625_v53 = vadd.f32 1.0, %v12933_v29  ;;  %v12935_v10 = vpop.eup %12934 }
 0xaba   :  { %12938 = vrcp.f32 %v8624_v1  ;;  %v12937_v55 = vpop.eup %12936  ;;  %v16877_v1 = vld [vmem:[#allocation15_spill] sm:$0xff] }
 0xabb   :  { %12940 = vrcp.f32 %v8625_v53  ;;  %v8626_v43 = vadd.f32 1.0, %v12937_v55  ;;  %v8740_v29 = vrot.slane %v8731_v27, %v16877_v1  ;;  %v16878_v53 = vld [vmem:[#allocation31_spill] sm:$0xff] }
 0xabd   :  { %12942 = vrcp.f32 %v8626_v43 }
 0xac4   :  { %v12939_v60 = vpop.eup %12938 }
 0xac5   :  { %v8635_v30 = vmul.f32 %v12939_v60, %v12935_v10  ;;  %v12941_v35 = vpop.eup %12940  ;;  %v8748_v10 = vrot.slane %v8731_v27, %v16878_v53 }
 0xac6   :  { %v8634_v16 = vmul.f32 %v12941_v35, %v15441_v58  ;;  %v16870_v58 = vld [vmem:[#allocation60_spill] sm:$0xff] }
 0xac7   :  { %v12943_v63 = vpop.eup %12942 }
 0xac8   :  { %v8636_v37 = vadd.f32 %v8635_v30, %v8634_v16 }
 0xaca   :  { %12944 = vtanh.f32 %v8636_v37 }
 0xad4   :  { %v12945_v45 = vpop.eup %12944 }
 0xad5   :  { %v8638_v56 = vmul.f32 %v12945_v45, %v12943_v63 }
 0xad7   :  { %v8641_v15 = vmax.f32 %v8638_v56, 0.0 }
 0xad9   :  { %v8660_v34 = vpack.c.bf16 %v7639_v21, %v8641_v15 }
 0xadb   :  { %9105 = vmatprep.mubr.bf16.mxu0 %v8660_v34  ;;  %9178 = vmatprep.mubr.bf16.mxu1 %v8660_v34 }
 0xadc   :  { %9106 = vmatmul.mubr.bf16.vlgmr.msra.gmra.mrb[88].mxu0 %v16870_v58  ;;  %9179 = vmatmul.mubr.bf16.vlgmr.msra.gmra.mrb[104].mxu1 %v16870_v58 }
 0xadd   :  { %9115 = vmatprep.mubr.bf16.mxu0 %v15344_v44  ;;  %9188 = vmatprep.mubr.bf16.mxu1 %v15344_v44  ;;  %v15510_v44 = vld [vmem:[#allocation8 + $0x40] ss:$16 sps:$4 sm:$0xff]  }
 0xade   :  { %9448 = vmatpush1.bf16.msra.mxu0 %v15484_v5  ;;  %9489 = vmatpush1.bf16.msra.mxu1 %v15486_v54 }
 0xadf   :  { %9449 = vmatprep.subr.bf16.mxu0 %v15488_v7  ;;  %9490 = vmatprep.subr.bf16.mxu1 %v15490_v23 }
 0xae2   :  { %9450 = vmatpush1.bf16.msra.mxu0 %v15498_v59  ;;  %9491 = vmatpush1.bf16.msra.mxu1 %v15500_v9 }
 0xae3   :  { %9451 = vmatprep.subr.bf16.mxu0 %v15504_v61  ;;  %9492 = vmatprep.subr.bf16.mxu1 %v15506_v3 }
 0xae4   :  { %9116 = vmatmul.mubr.bf16.gmra.mrb[92].mxu0 %v16871_v42  ;;  %9189 = vmatmul.mubr.bf16.gmra.mrb[108].mxu1 %v16871_v42 }
 0xae5   :  { %9125 = vmatprep.mubr.bf16.mxu0 %v16872_v8  ;;  %9198 = vmatprep.mubr.bf16.mxu1 %v16872_v8 }
 0xae6   :  { %9452 = vmatpush1.bf16.msra.mxu0 %v15510_v44  ;;  %9493 = vmatpush1.bf16.msra.mxu1 %v15512_v18 }
 0xae7   :  { %9453 = vmatprep.subr.bf16.mxu0 %v15516_v28  ;;  %9494 = vmatprep.subr.bf16.mxu1 %v15518_v36 }
 0xaea   :  { %9454 = vmatpush1.bf16.msra.mxu0 %v15526_v0  ;;  %9495 = vmatpush1.bf16.msra.mxu1 %v15528_v49 }
 0xaeb   :  { %9455 = vmatprep.subr.bf16.mxu0 %v15532_v2  ;;  %9496 = vmatprep.subr.bf16.mxu1 %v15534_v20 }
 0xaec   :  { %9126 = vmatmul.mubr.bf16.gmra.mrb[96].mxu0 %v15331_v41  ;;  %9199 = vmatmul.mubr.bf16.gmra.mrb[112].mxu1 %v15331_v41  ;;  %v15566_v41 = vld [vmem:[#allocation8 + $0xc0] ss:$16 sps:$4 sm:$0xff]  }
 0xaed   :  { %9135 = vmatprep.mubr.bf16.mxu0 %v16873_v52  ;;  %9208 = vmatprep.mubr.bf16.mxu1 %v16873_v52 }
 0xaee   :  { %9456 = vmatpush1.bf16.msra.mxu0 %v15538_v50  ;;  %9497 = vmatpush1.bf16.msra.mxu1 %v15540_v4 }
 0xaef   :  { %9457 = vmatprep.subr.bf16.mxu0 %v15544_v48  ;;  %9498 = vmatprep.subr.bf16.mxu1 %v15546_v22 }
 0xaf2   :  { %9458 = vmatpush1.bf16.msra.mxu0 %v15554_v57  ;;  %9499 = vmatpush1.bf16.msra.mxu1 %v15556_v62 }
 0xaf3   :  { %9459 = vmatprep.subr.bf16.mxu0 %v15560_v33  ;;  %9500 = vmatprep.subr.bf16.mxu1 %v15562_v31 }
 0xaf4   :  { %9136 = vmatmul.mubr.bf16.gmra.mrb[100].mxu0 %v15476_v51  ;;  %9209 = vmatmul.mubr.bf16.gmra.mrb[116].mxu1 %v15476_v51 }
 0xaf5   :  { %9479 = vmatprep.mubr.bf16.mxu0 %v16874_v38  ;;  %9520 = vmatprep.mubr.bf16.mxu1 %v16874_v38 }
 0xaf6   :  { %9460 = vmatpush1.bf16.msra.mxu0 %v15566_v41  ;;  %9501 = vmatpush1.bf16.msra.mxu1 %v15568_v24 }
 0xaf7   :  { %9461 = vmatprep.subr.bf16.mxu0 %v15572_v47  ;;  %9502 = vmatprep.subr.bf16.mxu1 %v15574_v11 }
 0xafa   :  { %9462 = vmatpush1.bf16.msra.mxu0 %v15582_v46  ;;  %9503 = vmatpush1.bf16.msra.mxu1 %v15584_v6 }
 0xafb   :  { %9562 = vmatprep.subr.bf16.mxu0 %v15464_v12  ;;  %9603 = vmatprep.subr.bf16.mxu1 %v15466_v13 }
 0xafd   :  { %9480 = vmatmul.mubr.bf16.vlgmr.msra.gmra.mrb[104].mxu0 %v16874_v38  ;;  %9521 = vmatmul.mubr.bf16.vlgmr.msra.gmra.mrb[120].mxu1 %v16874_v38 }
 0xafe   :  { %9563 = vmatpush1.bf16.msra.mxu0 %v15484_v5  ;;  %9604 = vmatpush1.bf16.msra.mxu1 %v15486_v54 }
 0xaff   :  { %9564 = vmatprep.subr.bf16.mxu0 %v15488_v7  ;;  %9605 = vmatprep.subr.bf16.mxu1 %v15490_v23 }
 0xb00   :  { %9594 = vmatprep.mubr.bf16.mxu0 %v16874_v38  ;;  %9635 = vmatprep.mubr.bf16.mxu1 %v16874_v38 }
 0xb02   :  { %9565 = vmatpush1.bf16.msra.mxu0 %v15498_v59  ;;  %9606 = vmatpush1.bf16.msra.mxu1 %v15500_v9 }
 0xb03   :  { %9566 = vmatprep.subr.bf16.mxu0 %v15504_v61  ;;  %9607 = vmatprep.subr.bf16.mxu1 %v15506_v3 }
 0xb06   :  { %9567 = vmatpush1.bf16.msra.mxu0 %v15510_v44  ;;  %9608 = vmatpush1.bf16.msra.mxu1 %v15512_v18 }
 0xb07   :  { %9568 = vmatprep.subr.bf16.mxu0 %v15516_v28  ;;  %9609 = vmatprep.subr.bf16.mxu1 %v15518_v36 }
 0xb0a   :  { %9569 = vmatpush1.bf16.msra.mxu0 %v15526_v0  ;;  %9610 = vmatpush1.bf16.msra.mxu1 %v15528_v49 }
 0xb0b   :  { %9570 = vmatprep.subr.bf16.mxu0 %v15532_v2  ;;  %9611 = vmatprep.subr.bf16.mxu1 %v15534_v20 }
 0xb0e   :  { %9571 = vmatpush1.bf16.msra.mxu0 %v15538_v50  ;;  %9612 = vmatpush1.bf16.msra.mxu1 %v15540_v4 }
 0xb0f   :  { %9572 = vmatprep.subr.bf16.mxu0 %v15544_v48  ;;  %9613 = vmatprep.subr.bf16.mxu1 %v15546_v22 }
 0xb12   :  { %9573 = vmatpush1.bf16.msra.mxu0 %v15554_v57  ;;  %9614 = vmatpush1.bf16.msra.mxu1 %v15556_v62 }
 0xb13   :  { %9574 = vmatprep.subr.bf16.mxu0 %v15560_v33  ;;  %9615 = vmatprep.subr.bf16.mxu1 %v15562_v31 }
 0xb16   :  { %9575 = vmatpush1.bf16.msra.mxu0 %v15566_v41  ;;  %9616 = vmatpush1.bf16.msra.mxu1 %v15568_v24 }
 0xb17   :  { %9576 = vmatprep.subr.bf16.mxu0 %v15572_v47  ;;  %9617 = vmatprep.subr.bf16.mxu1 %v15574_v11 }
 0xb1a   :  { %9577 = vmatpush1.bf16.msra.mxu0 %v15582_v46  ;;  %9618 = vmatpush1.bf16.msra.mxu1 %v15584_v6 }
 0xb1b   :  { %9677 = vmatprep.subr.bf16.mxu0 %v15464_v12  ;;  %9718 = vmatprep.subr.bf16.mxu1 %v15466_v13 }
 0xbaf   :  { %v15631_v25 = vpop.f32.mrb[88].mxu0  ;;  %v15633_v26 = vpop.f32.mrb[104].mxu1 }
 0xbb0   :  { %v9109_v14 = vpop.f32.mrb[89].mxu0  ;;  %v9182_v39 = vpop.f32.mrb[105].mxu1 }
 0xbb1   :  { %v9111_v55 = vpop.f32.mrb[90].mxu0  ;;  %v9184_v60 = vpop.f32.mrb[106].mxu1 }
 0xbb2   :  { %v15639_v30 = vadd.f32 %v9111_v55, %v8736_v40  ;;  %v15641_v35 = vadd.f32 %v9184_v60, %v8744_v17  ;;  %v9113_v43 = vpop.f32.mrb[91].mxu0  ;;  %v9186_v16 = vpop.f32.mrb[107].mxu1 }
 0xbb3   :  { %v15643_v37 = vadd.f32 %v9113_v43, %v8740_v29  ;;  %v15645_v63 = vadd.f32 %v9186_v16, %v8748_v10 }
 0xbb7   :  { %v9117_v45 = vpop.f32.mrb[92].mxu0  ;;  %v9190_v56 = vpop.f32.mrb[108].mxu1 }
 0xbb8   :  { %v15647_v21 = vadd.f32 %v9117_v45, %v8736_v40  ;;  %v15649_v15 = vadd.f32 %v9190_v56, %v8744_v17  ;;  %v9119_v34 = vpop.f32.mrb[93].mxu0  ;;  %v9192_v58 = vpop.f32.mrb[109].mxu1 }
 0xbb9   :  { %v15651_v42 = vadd.f32 %v9119_v34, %v8740_v29  ;;  %v15653_v8 = vadd.f32 %v9192_v58, %v8748_v10  ;;  %v9121_v27 = vpop.f32.mrb[94].mxu0  ;;  %v9194_v55 = vpop.f32.mrb[110].mxu1 }
 0xbba   :  { %16879 = vst [vmem:[#allocation126_spill] sm:$0xff] %v15649_v15  ;;  %v15655_v60 = vadd.f32 %v9121_v27, %v8736_v40  ;;  %v15657_v43 = vadd.f32 %v9194_v55, %v8744_v17  ;;  %v9123_v16 = vpop.f32.mrb[95].mxu0  ;;  %v9196_v53 = vpop.f32.mrb[111].mxu1 }
 0xbbb   :  { %16880 = vst [vmem:[#allocation127_spill] sm:$0xff] %v15651_v42  ;;  %16881 = vst [vmem:[#allocation128_spill] sm:$0xff] %v15653_v8  ;;  %v15659_v32 = vadd.f32 %v9123_v16, %v8740_v29  ;;  %v15661_v45 = vadd.f32 %v9196_v53, %v8748_v10 }
 0xbbc   :  { %16882 = vst [vmem:[#allocation129_spill] sm:$0xff] %v15655_v60  ;;  %16883 = vst [vmem:[#allocation130_spill] sm:$0xff] %v15657_v43 }
 0xbbd   :  { %16884 = vst [vmem:[#allocation131_spill] sm:$0xff] %v15659_v32  ;;  %16885 = vst [vmem:[#allocation132_spill] sm:$0xff] %v15661_v45 }
 0xbbf   :  { %v9127_v56 = vpop.f32.mrb[96].mxu0  ;;  %v9200_v1 = vpop.f32.mrb[112].mxu1 }
 0xbc0   :  { %v15663_v19 = vadd.f32 %v9127_v56, %v8736_v40  ;;  %v15665_v34 = vadd.f32 %v9200_v1, %v8744_v17  ;;  %v9129_v58 = vpop.f32.mrb[97].mxu0  ;;  %v9202_v51 = vpop.f32.mrb[113].mxu1 }
 0xbc1   :  { %v15667_v52 = vadd.f32 %v9129_v58, %v8740_v29  ;;  %v15669_v27 = vadd.f32 %v9202_v51, %v8748_v10  ;;  %v9131_v55 = vpop.f32.mrb[98].mxu0  ;;  %v9204_v43 = vpop.f32.mrb[114].mxu1 }
 0xbc2   :  { %16886 = vst [vmem:[#allocation133_spill] sm:$0xff] %v15663_v19  ;;  %16887 = vst [vmem:[#allocation134_spill] sm:$0xff] %v15665_v34  ;;  %v15671_v60 = vadd.f32 %v9131_v55, %v8736_v40  ;;  %v15673_v16 = vadd.f32 %v9204_v43, %v8744_v17  ;;  %v9133_v53 = vpop.f32.mrb[99].mxu0  ;;  %v9206_v45 = vpop.f32.mrb[115].mxu1 }
 0xbc3   :  { %16888 = vst [vmem:[#allocation135_spill] sm:$0xff] %v15667_v52  ;;  %16889 = vst [vmem:[#allocation136_spill] sm:$0xff] %v15669_v27  ;;  %v15675_v32 = vadd.f32 %v9133_v53, %v8740_v29  ;;  %v15677_v56 = vadd.f32 %v9206_v45, %v8748_v10 }
 0xbc4   :  { %16890 = vst [vmem:[#allocation137_spill] sm:$0xff] %v15671_v60  ;;  %16891 = vst [vmem:[#allocation138_spill] sm:$0xff] %v15673_v16 }
 0xbc5   :  { %16892 = vst [vmem:[#allocation139_spill] sm:$0xff] %v15675_v32  ;;  %16893 = vst [vmem:[#allocation140_spill] sm:$0xff] %v15677_v56 }
 0xbc7   :  { %v9137_v1 = vpop.f32.mrb[100].mxu0  ;;  %v9210_v34 = vpop.f32.mrb[116].mxu1 }
 0xbc8   :  { %v15679_v19 = vadd.f32 %v9137_v1, %v8736_v40  ;;  %v15681_v58 = vadd.f32 %v9210_v34, %v8744_v17  ;;  %v9139_v51 = vpop.f32.mrb[101].mxu0  ;;  %v9212_v27 = vpop.f32.mrb[117].mxu1  ;;  %v9108_v34 = vadd.f32 %v15631_v25, %v8736_v40 }
 0xbc9   :  { %v15683_v52 = vadd.f32 %v9139_v51, %v8740_v29  ;;  %v15685_v55 = vadd.f32 %v9212_v27, %v8748_v10  ;;  %v9141_v43 = vpop.f32.mrb[102].mxu0  ;;  %v9214_v16 = vpop.f32.mrb[118].mxu1  ;;  %v9110_v51 = vadd.f32 %v9109_v14, %v8740_v29 }
 0xbca   :  { %16894 = vst [vmem:[#allocation141_spill] sm:$0xff] %v15679_v19  ;;  %16895 = vst [vmem:[#allocation142_spill] sm:$0xff] %v15681_v58  ;;  %v15687_v60 = vadd.f32 %v9141_v43, %v8736_v40  ;;  %v15689_v53 = vadd.f32 %v9214_v16, %v8744_v17  ;;  %v9143_v45 = vpop.f32.mrb[103].mxu0  ;;  %v9216_v56 = vpop.f32.mrb[119].mxu1  ;;  %v9181_v58 = vadd.f32 %v15633_v26, %v8744_v17 }
 0xbcb   :  { %16896 = vst [vmem:[#allocation143_spill] sm:$0xff] %v15683_v52  ;;  %16897 = vst [vmem:[#allocation144_spill] sm:$0xff] %v15685_v55  ;;  %v15691_v32 = vadd.f32 %v9143_v45, %v8740_v29  ;;  %v15693_v1 = vadd.f32 %v9216_v56, %v8748_v10  ;;  %v9183_v52 = vadd.f32 %v9182_v39, %v8748_v10 }
 0xbcc   :  { %16898 = vst [vmem:[#allocation16_spill] sm:$0xff] %v15687_v60  ;;  %16899 = vst [vmem:[#allocation46_spill] sm:$0xff] %v15689_v53 }
 0xbcd   :  { %16900 = vst [vmem:[#allocation17_spill] sm:$0xff] %v15691_v32  ;;  %16901 = vst [vmem:[#allocation48_spill] sm:$0xff] %v15693_v1 }
 0xbd0   :  { %v9481_v27 = vpop.f32.mrb[104].mxu0  ;;  %v9522_v55 = vpop.f32.mrb[120].mxu1 }
 0xbd1   :  { %v9529_v19 = vadd.f32 %v9481_v27, %v9108_v34  ;;  %v9531_v8 = vadd.f32 %v9522_v55, %v9181_v58  ;;  %v9483_v43 = vpop.f32.mrb[105].mxu0  ;;  %v9524_v60 = vpop.f32.mrb[121].mxu1 }
 0xbd2   :  { %v9530_v16 = vadd.f32 %v9483_v43, %v9110_v51  ;;  %v9532_v53 = vadd.f32 %v9524_v60, %v9183_v52  ;;  %v9485_v42 = vpop.f32.mrb[106].mxu0  ;;  %v9526_v15 = vpop.f32.mrb[122].mxu1 }
 0xbd3   :  { %v12289_v45 = vmul.f32 -1.442695, %v9529_v19  ;;  %v9486_v32 = vpop.f32.mrb[107].mxu0  ;;  %v9527_v56 = vpop.f32.mrb[123].mxu1  ;;  %v12291_v25 = vmul.f32 -1.442695, %v9531_v8 }
 0xbd4   :  { %v12290_v1 = vmul.f32 -1.442695, %v9530_v16 }
 0xbd5   :  { %12946 = vpow2.f32 %v12289_v45 }
 0xbd6   :  { %12948 = vpow2.f32 %v12290_v1 }
 0xbd7   :  { %12950 = vtanh.f32 %v9532_v53 }
 0xbd8   :  { %12952 = vpow2.f32 %v12291_v25 }
 0xbdf   :  { %v12947_v26 = vpop.eup %12946 }
 0xbe0   :  { %v9542_v40 = vadd.f32 1.0, %v12947_v26  ;;  %v12949_v17 = vpop.eup %12948 }
 0xbe1   :  { %v9543_v14 = vadd.f32 1.0, %v12949_v17  ;;  %v12951_v39 = vpop.eup %12950 }
 0xbe2   :  { %12954 = vrcp.f32 %v9542_v40  ;;  %v12953_v29 = vpop.eup %12952 }
 0xbe3   :  { %12956 = vrcp.f32 %v9543_v14  ;;  %v9544_v19 = vadd.f32 1.0, %v12953_v29 }
 0xbe5   :  { %12958 = vrcp.f32 %v9544_v19 }
 0xbec   :  { %v12955_v52 = vpop.eup %12954 }
 0xbed   :  { %v9553_v10 = vmul.f32 %v12955_v52, %v12951_v39  ;;  %v12957_v15 = vpop.eup %12956 }
 0xbee   :  { %v9552_v32 = vmul.f32 0.0, %v12957_v15 }
 0xbef   :  { %v12959_v8 = vpop.eup %12958 }
 0xbf0   :  { %v15697_v42 = vadd.f32 %v9553_v10, %v9552_v32 }
 0xbf2   :  { %12960 = vtanh.f32 %v15697_v42 }
 0xbfc   :  { %v12961_v60 = vpop.eup %12960 }
 0xbfd   :  { %v9556_v58 = vmul.f32 %v12961_v60, %v12959_v8 }
 0xbff   :  { %v9561_v55 = vpack.c.bf16 %v9556_v58, %v9556_v58 }
 0xc01   :  { %9595 = vmatmul.mubr.bf16.vlgmr.msra.gmra.mrb[108].mxu0 %v9561_v55  ;;  %9636 = vmatmul.mubr.bf16.vlgmr.msra.gmra.mrb[124].mxu1 %v9561_v55 }
 0xc02   :  { %9678 = vmatpush1.bf16.msra.mxu0 %v15484_v5  ;;  %9719 = vmatpush1.bf16.msra.mxu1 %v15486_v54 }
 0xc03   :  { %9679 = vmatprep.subr.bf16.mxu0 %v15488_v7  ;;  %9720 = vmatprep.subr.bf16.mxu1 %v15490_v23 }
 0xc04   :  { %9709 = vmatprep.mubr.bf16.mxu0 %v16874_v38  ;;  %9750 = vmatprep.mubr.bf16.mxu1 %v16874_v38 }
 0xc06   :  { %9680 = vmatpush1.bf16.msra.mxu0 %v15498_v59  ;;  %9721 = vmatpush1.bf16.msra.mxu1 %v15500_v9 }
 0xc07   :  { %9681 = vmatprep.subr.bf16.mxu0 %v15504_v61  ;;  %9722 = vmatprep.subr.bf16.mxu1 %v15506_v3 }
 0xc0a   :  { %9682 = vmatpush1.bf16.msra.mxu0 %v15510_v44  ;;  %9723 = vmatpush1.bf16.msra.mxu1 %v15512_v18 }
 0xc0b   :  { %9683 = vmatprep.subr.bf16.mxu0 %v15516_v28  ;;  %9724 = vmatprep.subr.bf16.mxu1 %v15518_v36 }
 0xc0e   :  { %9684 = vmatpush1.bf16.msra.mxu0 %v15526_v0  ;;  %9725 = vmatpush1.bf16.msra.mxu1 %v15528_v49 }
 0xc0f   :  { %9685 = vmatprep.subr.bf16.mxu0 %v15532_v2  ;;  %9726 = vmatprep.subr.bf16.mxu1 %v15534_v20 }
 0xc12   :  { %9686 = vmatpush1.bf16.msra.mxu0 %v15538_v50  ;;  %9727 = vmatpush1.bf16.msra.mxu1 %v15540_v4 }
 0xc13   :  { %9687 = vmatprep.subr.bf16.mxu0 %v15544_v48  ;;  %9728 = vmatprep.subr.bf16.mxu1 %v15546_v22 }
 0xc16   :  { %9688 = vmatpush1.bf16.msra.mxu0 %v15554_v57  ;;  %9729 = vmatpush1.bf16.msra.mxu1 %v15556_v62 }
 0xc17   :  { %9689 = vmatprep.subr.bf16.mxu0 %v15560_v33  ;;  %9730 = vmatprep.subr.bf16.mxu1 %v15562_v31 }
 0xc1a   :  { %9690 = vmatpush1.bf16.msra.mxu0 %v15566_v41  ;;  %9731 = vmatpush1.bf16.msra.mxu1 %v15568_v24 }
 0xc1b   :  { %9691 = vmatprep.subr.bf16.mxu0 %v15572_v47  ;;  %9732 = vmatprep.subr.bf16.mxu1 %v15574_v11 }
 0xc1e   :  { %9692 = vmatpush1.bf16.msra.mxu0 %v15582_v46  ;;  %9733 = vmatpush1.bf16.msra.mxu1 %v15584_v6 }
 0xc1f   :  { %9792 = vmatprep.subr.bf16.mxu0 %v15464_v12  ;;  %9833 = vmatprep.subr.bf16.mxu1 %v15466_v13 }
 0xcd4   :  { %v9596_v53 = vpop.f32.mrb[108].mxu0  ;;  %v9637_v1 = vpop.f32.mrb[124].mxu1 }
 0xcd5   :  { %v9644_v34 = vadd.f32 %v9596_v53, %v15639_v30  ;;  %v9646_v51 = vadd.f32 %v9637_v1, %v15641_v35  ;;  %v9598_v27 = vpop.f32.mrb[109].mxu0  ;;  %v9639_v43 = vpop.f32.mrb[125].mxu1 }
 0xcd6   :  { %v9645_v16 = vadd.f32 %v9598_v27, %v15643_v37  ;;  %v9647_v45 = vadd.f32 %v9639_v43, %v15645_v63  ;;  %v9600_v56 = vpop.f32.mrb[110].mxu0  ;;  %v9641_v25 = vpop.f32.mrb[126].mxu1  ;;  %v16902_v27 = vld [vmem:[#allocation126_spill] sm:$0xff] }
 0xcd7   :  { %v12292_v26 = vmul.f32 -1.442695, %v9644_v34  ;;  %v9601_v40 = vpop.f32.mrb[111].mxu0  ;;  %v9642_v17 = vpop.f32.mrb[127].mxu1  ;;  %v12294_v39 = vmul.f32 -1.442695, %v9646_v51 }
 0xcd8   :  { %v12293_v14 = vmul.f32 -1.442695, %v9645_v16  ;;  %v16903_v56 = vld [vmem:[#allocation127_spill] sm:$0xff] }
 0xcd9   :  { %12962 = vpow2.f32 %v12292_v26  ;;  %v16904_v26 = vld [vmem:[#allocation128_spill] sm:$0xff] }
 0xcda   :  { %12964 = vpow2.f32 %v12293_v14 }
 0xcdb   :  { %12966 = vtanh.f32 %v9647_v45 }
 0xcdc   :  { %12968 = vpow2.f32 %v12294_v39 }
 0xce3   :  { %v12963_v29 = vpop.eup %12962 }
 0xce4   :  { %v9657_v52 = vadd.f32 1.0, %v12963_v29  ;;  %v12965_v30 = vpop.eup %12964 }
 0xce5   :  { %v9658_v35 = vadd.f32 1.0, %v12965_v30  ;;  %v12967_v37 = vpop.eup %12966 }
 0xce6   :  { %12970 = vrcp.f32 %v9657_v52  ;;  %v12969_v10 = vpop.eup %12968 }
 0xce7   :  { %12972 = vrcp.f32 %v9658_v35  ;;  %v9659_v32 = vadd.f32 1.0, %v12969_v10 }
 0xce9   :  { %12974 = vrcp.f32 %v9659_v32 }
 0xcf0   :  { %v12971_v63 = vpop.eup %12970 }
 0xcf1   :  { %v9668_v15 = vmul.f32 %v12971_v63, %v12967_v37  ;;  %v12973_v19 = vpop.eup %12972 }
 0xcf2   :  { %v9667_v8 = vmul.f32 %v12973_v19, %v15697_v42 }
 0xcf3   :  { %v12975_v58 = vpop.eup %12974 }
 0xcf4   :  { %v15739_v60 = vadd.f32 %v9668_v15, %v9667_v8 }
 0xcf6   :  { %12976 = vtanh.f32 %v15739_v60 }
 0xd00   :  { %v12977_v55 = vpop.eup %12976 }
 0xd01   :  { %v9671_v53 = vmul.f32 %v12977_v55, %v12975_v58 }
 0xd03   :  { %v9676_v1 = vpack.c.bf16 %v9671_v53, %v9671_v53 }
 0xd05   :  { %9710 = vmatmul.mubr.bf16.vlgmr.msra.gmra.mrb[112].mxu0 %v9676_v1  ;;  %9751 = vmatmul.mubr.bf16.vlgmr.msra.gmra.mrb[128].mxu1 %v9676_v1 }
 0xd06   :  { %9793 = vmatpush1.bf16.msra.mxu0 %v15484_v5  ;;  %9834 = vmatpush1.bf16.msra.mxu1 %v15486_v54 }
 0xd07   :  { %9794 = vmatprep.subr.bf16.mxu0 %v15488_v7  ;;  %9835 = vmatprep.subr.bf16.mxu1 %v15490_v23 }
 0xd08   :  { %9824 = vmatprep.mubr.bf16.mxu0 %v16874_v38  ;;  %9865 = vmatprep.mubr.bf16.mxu1 %v16874_v38 }
 0xd0a   :  { %9795 = vmatpush1.bf16.msra.mxu0 %v15498_v59  ;;  %9836 = vmatpush1.bf16.msra.mxu1 %v15500_v9 }
 0xd0b   :  { %9796 = vmatprep.subr.bf16.mxu0 %v15504_v61  ;;  %9837 = vmatprep.subr.bf16.mxu1 %v15506_v3 }
 0xd0e   :  { %9797 = vmatpush1.bf16.msra.mxu0 %v15510_v44  ;;  %9838 = vmatpush1.bf16.msra.mxu1 %v15512_v18 }
 0xd0f   :  { %9798 = vmatprep.subr.bf16.mxu0 %v15516_v28  ;;  %9839 = vmatprep.subr.bf16.mxu1 %v15518_v36 }
 0xd12   :  { %9799 = vmatpush1.bf16.msra.mxu0 %v15526_v0  ;;  %9840 = vmatpush1.bf16.msra.mxu1 %v15528_v49 }
 0xd13   :  { %9800 = vmatprep.subr.bf16.mxu0 %v15532_v2  ;;  %9841 = vmatprep.subr.bf16.mxu1 %v15534_v20 }
 0xd16   :  { %9801 = vmatpush1.bf16.msra.mxu0 %v15538_v50  ;;  %9842 = vmatpush1.bf16.msra.mxu1 %v15540_v4 }
 0xd17   :  { %9802 = vmatprep.subr.bf16.mxu0 %v15544_v48  ;;  %9843 = vmatprep.subr.bf16.mxu1 %v15546_v22 }
 0xd1a   :  { %9803 = vmatpush1.bf16.msra.mxu0 %v15554_v57  ;;  %9844 = vmatpush1.bf16.msra.mxu1 %v15556_v62 }
 0xd1b   :  { %9804 = vmatprep.subr.bf16.mxu0 %v15560_v33  ;;  %9845 = vmatprep.subr.bf16.mxu1 %v15562_v31 }
 0xd1e   :  { %9805 = vmatpush1.bf16.msra.mxu0 %v15566_v41  ;;  %9846 = vmatpush1.bf16.msra.mxu1 %v15568_v24 }
 0xd1f   :  { %9806 = vmatprep.subr.bf16.mxu0 %v15572_v47  ;;  %9847 = vmatprep.subr.bf16.mxu1 %v15574_v11 }
 0xd22   :  { %9807 = vmatpush1.bf16.msra.mxu0 %v15582_v46  ;;  %9848 = vmatpush1.bf16.msra.mxu1 %v15584_v6 }
 0xd23   :  { %9907 = vmatprep.subr.bf16.mxu0 %v15464_v12  ;;  %9948 = vmatprep.subr.bf16.mxu1 %v15466_v13 }
 0xdd8   :  { %v9711_v42 = vpop.f32.mrb[112].mxu0  ;;  %v9752_v34 = vpop.f32.mrb[128].mxu1 }
 0xdd9   :  { %v9759_v51 = vadd.f32 %v9711_v42, %v15647_v21  ;;  %v9761_v43 = vadd.f32 %v9752_v34, %v16902_v27  ;;  %v9713_v16 = vpop.f32.mrb[113].mxu0  ;;  %v9754_v45 = vpop.f32.mrb[129].mxu1 }
 0xdda   :  { %v9760_v25 = vadd.f32 %v9713_v16, %v16903_v56  ;;  %v9762_v40 = vadd.f32 %v9754_v45, %v16904_v26  ;;  %v9715_v17 = vpop.f32.mrb[114].mxu0  ;;  %v9756_v14 = vpop.f32.mrb[130].mxu1  ;;  %v16905_v16 = vld [vmem:[#allocation129_spill] sm:$0xff]  ;;  %v16906_v56 = vld [vmem:[#allocation130_spill] sm:$0xff] }
 0xddb   :  { %v12295_v39 = vmul.f32 -1.442695, %v9759_v51  ;;  %v9716_v29 = vpop.f32.mrb[115].mxu0  ;;  %v9757_v52 = vpop.f32.mrb[131].mxu1  ;;  %v12297_v35 = vmul.f32 -1.442695, %v9761_v43 }
 0xddc   :  { %v12296_v30 = vmul.f32 -1.442695, %v9760_v25  ;;  %v16907_v17 = vld [vmem:[#allocation131_spill] sm:$0xff] }
 0xddd   :  { %12978 = vpow2.f32 %v12295_v39  ;;  %v16908_v39 = vld [vmem:[#allocation132_spill] sm:$0xff] }
 0xdde   :  { %12980 = vpow2.f32 %v12296_v30 }
 0xddf   :  { %12982 = vtanh.f32 %v9762_v40 }
 0xde0   :  { %12984 = vpow2.f32 %v12297_v35 }
 0xde7   :  { %v12979_v37 = vpop.eup %12978 }
 0xde8   :  { %v9772_v10 = vadd.f32 1.0, %v12979_v37  ;;  %v12981_v21 = vpop.eup %12980 }
 0xde9   :  { %v9773_v63 = vadd.f32 1.0, %v12981_v21  ;;  %v12983_v15 = vpop.eup %12982 }
 0xdea   :  { %12986 = vrcp.f32 %v9772_v10  ;;  %v12985_v19 = vpop.eup %12984 }
 0xdeb   :  { %12988 = vrcp.f32 %v9773_v63  ;;  %v9774_v55 = vadd.f32 1.0, %v12985_v19 }
 0xded   :  { %12990 = vrcp.f32 %v9774_v55 }
 0xdf4   :  { %v12987_v32 = vpop.eup %12986 }
 0xdf5   :  { %v9783_v8 = vmul.f32 %v12987_v32, %v12983_v15  ;;  %v12989_v58 = vpop.eup %12988 }
 0xdf6   :  { %v9782_v53 = vmul.f32 %v12989_v58, %v15739_v60 }
 0xdf7   :  { %v12991_v42 = vpop.eup %12990 }
 0xdf8   :  { %v15781_v1 = vadd.f32 %v9783_v8, %v9782_v53 }
 0xdfa   :  { %12992 = vtanh.f32 %v15781_v1 }
 0xe04   :  { %v12993_v34 = vpop.eup %12992 }
 0xe05   :  { %v9786_v51 = vmul.f32 %v12993_v34, %v12991_v42 }
 0xe07   :  { %v9791_v27 = vpack.c.bf16 %v9786_v51, %v9786_v51 }
 0xe09   :  { %9825 = vmatmul.mubr.bf16.vlgmr.msra.gmra.mrb[116].mxu0 %v9791_v27  ;;  %9866 = vmatmul.mubr.bf16.vlgmr.msra.gmra.mrb[132].mxu1 %v9791_v27 }
 0xe0a   :  { %9908 = vmatpush1.bf16.msra.mxu0 %v15484_v5  ;;  %9949 = vmatpush1.bf16.msra.mxu1 %v15486_v54 }
 0xe0b   :  { %9909 = vmatprep.subr.bf16.mxu0 %v15488_v7  ;;  %9950 = vmatprep.subr.bf16.mxu1 %v15490_v23 }
 0xe0c   :  { %9939 = vmatprep.mubr.bf16.mxu0 %v16874_v38  ;;  %9980 = vmatprep.mubr.bf16.mxu1 %v16874_v38 }
 0xe0e   :  { %9910 = vmatpush1.bf16.msra.mxu0 %v15498_v59  ;;  %9951 = vmatpush1.bf16.msra.mxu1 %v15500_v9 }
 0xe0f   :  { %9911 = vmatprep.subr.bf16.mxu0 %v15504_v61  ;;  %9952 = vmatprep.subr.bf16.mxu1 %v15506_v3 }
 0xe12   :  { %9912 = vmatpush1.bf16.msra.mxu0 %v15510_v44  ;;  %9953 = vmatpush1.bf16.msra.mxu1 %v15512_v18 }
 0xe13   :  { %9913 = vmatprep.subr.bf16.mxu0 %v15516_v28  ;;  %9954 = vmatprep.subr.bf16.mxu1 %v15518_v36 }
 0xe16   :  { %9914 = vmatpush1.bf16.msra.mxu0 %v15526_v0  ;;  %9955 = vmatpush1.bf16.msra.mxu1 %v15528_v49 }
 0xe17   :  { %9915 = vmatprep.subr.bf16.mxu0 %v15532_v2  ;;  %9956 = vmatprep.subr.bf16.mxu1 %v15534_v20 }
 0xe1a   :  { %9916 = vmatpush1.bf16.msra.mxu0 %v15538_v50  ;;  %9957 = vmatpush1.bf16.msra.mxu1 %v15540_v4 }
 0xe1b   :  { %9917 = vmatprep.subr.bf16.mxu0 %v15544_v48  ;;  %9958 = vmatprep.subr.bf16.mxu1 %v15546_v22 }
 0xe1e   :  { %9918 = vmatpush1.bf16.msra.mxu0 %v15554_v57  ;;  %9959 = vmatpush1.bf16.msra.mxu1 %v15556_v62 }
 0xe1f   :  { %9919 = vmatprep.subr.bf16.mxu0 %v15560_v33  ;;  %9960 = vmatprep.subr.bf16.mxu1 %v15562_v31 }
 0xe22   :  { %9920 = vmatpush1.bf16.msra.mxu0 %v15566_v41  ;;  %9961 = vmatpush1.bf16.msra.mxu1 %v15568_v24 }
 0xe23   :  { %9921 = vmatprep.subr.bf16.mxu0 %v15572_v47  ;;  %9962 = vmatprep.subr.bf16.mxu1 %v15574_v11 }
 0xe26   :  { %9922 = vmatpush1.bf16.msra.mxu0 %v15582_v46  ;;  %9963 = vmatpush1.bf16.msra.mxu1 %v15584_v6 }
 0xe27   :  { %10022 = vmatprep.subr.bf16.mxu0 %v15464_v12  ;;  %10063 = vmatprep.subr.bf16.mxu1 %v15466_v13 }
 0xedc   :  { %v9826_v60 = vpop.f32.mrb[116].mxu0  ;;  %v9867_v43 = vpop.f32.mrb[132].mxu1 }
 0xedd   :  { %v9874_v45 = vadd.f32 %v9826_v60, %v16905_v16  ;;  %v9876_v25 = vadd.f32 %v9867_v43, %v16906_v56  ;;  %v9828_v26 = vpop.f32.mrb[117].mxu0  ;;  %v9869_v40 = vpop.f32.mrb[133].mxu1 }
 0xede   :  { %v9875_v14 = vadd.f32 %v9828_v26, %v16907_v17  ;;  %v9877_v29 = vadd.f32 %v9869_v40, %v16908_v39  ;;  %v9830_v52 = vpop.f32.mrb[118].mxu0  ;;  %v9871_v30 = vpop.f32.mrb[134].mxu1 }
 0xedf   :  { %v12298_v35 = vmul.f32 -1.442695, %v9874_v45  ;;  %v9831_v37 = vpop.f32.mrb[119].mxu0  ;;  %v9872_v10 = vpop.f32.mrb[135].mxu1  ;;  %v12300_v13 = vmul.f32 -1.442695, %v9876_v25 }
 0xee0   :  { %v12299_v12 = vmul.f32 -1.442695, %v9875_v14 }
 0xee1   :  { %12994 = vpow2.f32 %v12298_v35 }
 0xee2   :  { %12996 = vpow2.f32 %v12299_v12 }
 0xee3   :  { %12998 = vtanh.f32 %v9877_v29 }
 0xee4   :  { %13000 = vpow2.f32 %v12300_v13 }
 0xeeb   :  { %v12995_v21 = vpop.eup %12994 }
 0xeec   :  { %v9887_v63 = vadd.f32 1.0, %v12995_v21  ;;  %v12997_v15 = vpop.eup %12996 }
 0xeed   :  { %v9888_v19 = vadd.f32 1.0, %v12997_v15  ;;  %v12999_v32 = vpop.eup %12998 }
 0xeee   :  { %13002 = vrcp.f32 %v9887_v63  ;;  %v13001_v8 = vpop.eup %13000 }
 0xeef   :  { %13004 = vrcp.f32 %v9888_v19  ;;  %v9889_v42 = vadd.f32 1.0, %v13001_v8 }
 0xef1   :  { %13006 = vrcp.f32 %v9889_v42  ;;  %v15875_v42 = vld [vmem:[#allocation8 + $0x8] ss:$16 sps:$4 sm:$0xff]  }
 0xef8   :  { %v13003_v58 = vpop.eup %13002 }
 0xef9   :  { %v9898_v55 = vmul.f32 %v13003_v58, %v12999_v32  ;;  %v13005_v53 = vpop.eup %13004 }
 0xefa   :  { %v9897_v34 = vmul.f32 %v13005_v53, %v15781_v1  ;;  %v16912_v1 = vld [vmem:[#allocation136_spill] sm:$0xff] }
 0xefb   :  { %v13007_v27 = vpop.eup %13006  ;;  %v15872_v53 = vld [vmem:[#allocation8] ss:$16 sps:$4 sm:$0xff]  }
 0xefc   :  { %v15823_v51 = vadd.f32 %v9898_v55, %v9897_v34  ;;  %v15878_v34 = vld [vmem:[#allocation8 + $0x24] ss:$16 sps:$4 sm:$0xff]  }
 0xefe   :  { %13008 = vtanh.f32 %v15823_v51 }
 0xf08   :  { %v13009_v60 = vpop.eup %13008 }
 0xf09   :  { %v9901_v43 = vmul.f32 %v13009_v60, %v13007_v27  ;;  %v15886_v27 = vld [vmem:[#allocation8 + $0x20] ss:$16 sps:$4 sm:$0xff]   ;;  %v15889_v60 = vld [vmem:[#allocation8 + $0x28] ss:$16 sps:$4 sm:$0xff]  }
 0xf0b   :  { %v9906_v16 = vpack.c.bf16 %v9901_v43, %v9901_v43  ;;  %v15892_v43 = vld [vmem:[#allocation8 + $0x44] ss:$16 sps:$4 sm:$0xff]  }
 0xf0d   :  { %9940 = vmatmul.mubr.bf16.vlgmr.msra.gmra.mrb[120].mxu0 %v9906_v16  ;;  %9981 = vmatmul.mubr.bf16.vlgmr.msra.gmra.mrb[136].mxu1 %v9906_v16  ;;  %v15895_v16 = vld [vmem:[#allocation8 + $0x4c] ss:$16 sps:$4 sm:$0xff]  }
 0xf0e   :  { %10023 = vmatpush1.bf16.msra.mxu0 %v15484_v5  ;;  %10064 = vmatpush1.bf16.msra.mxu1 %v15486_v54  ;;  %v15858_v5 = vld [vmem:[#allocation8 + $0x4] ss:$16 sps:$4 sm:$0xff]   ;;  %v15861_v54 = vld [vmem:[#allocation8 + $0xc] ss:$16 sps:$4 sm:$0xff]  }
 0xf0f   :  { %10024 = vmatprep.subr.bf16.mxu0 %v15488_v7  ;;  %10065 = vmatprep.subr.bf16.mxu1 %v15490_v23 }
 0xf10   :  { %10054 = vmatprep.mubr.bf16.mxu0 %v16874_v38  ;;  %10095 = vmatprep.mubr.bf16.mxu1 %v16874_v38 }
 0xf12   :  { %10025 = vmatpush1.bf16.msra.mxu0 %v15498_v59  ;;  %10066 = vmatpush1.bf16.msra.mxu1 %v15500_v9  ;;  %v16909_v59 = vld [vmem:[#allocation133_spill] sm:$0xff] }
 0xf13   :  { %10026 = vmatprep.subr.bf16.mxu0 %v15504_v61  ;;  %10067 = vmatprep.subr.bf16.mxu1 %v15506_v3  ;;  %v16910_v61 = vld [vmem:[#allocation134_spill] sm:$0xff] }
 0xf16   :  { %10027 = vmatpush1.bf16.msra.mxu0 %v15510_v44  ;;  %10068 = vmatpush1.bf16.msra.mxu1 %v15512_v18 }
 0xf17   :  { %10028 = vmatprep.subr.bf16.mxu0 %v15516_v28  ;;  %10069 = vmatprep.subr.bf16.mxu1 %v15518_v36  ;;  %v16911_v28 = vld [vmem:[#allocation135_spill] sm:$0xff] }
 0xf1a   :  { %10029 = vmatpush1.bf16.msra.mxu0 %v15526_v0  ;;  %10070 = vmatpush1.bf16.msra.mxu1 %v15528_v49 }
 0xf1b   :  { %10030 = vmatprep.subr.bf16.mxu0 %v15532_v2  ;;  %10071 = vmatprep.subr.bf16.mxu1 %v15534_v20 }
 0xf1e   :  { %10031 = vmatpush1.bf16.msra.mxu0 %v15538_v50  ;;  %10072 = vmatpush1.bf16.msra.mxu1 %v15540_v4 }
 0xf1f   :  { %10032 = vmatprep.subr.bf16.mxu0 %v15544_v48  ;;  %10073 = vmatprep.subr.bf16.mxu1 %v15546_v22 }
 0xf22   :  { %10033 = vmatpush1.bf16.msra.mxu0 %v15554_v57  ;;  %10074 = vmatpush1.bf16.msra.mxu1 %v15556_v62 }
 0xf23   :  { %10034 = vmatprep.subr.bf16.mxu0 %v15560_v33  ;;  %10075 = vmatprep.subr.bf16.mxu1 %v15562_v31 }
 0xf26   :  { %10035 = vmatpush1.bf16.msra.mxu0 %v15566_v41  ;;  %10076 = vmatpush1.bf16.msra.mxu1 %v15568_v24 }
 0xf27   :  { %10036 = vmatprep.subr.bf16.mxu0 %v15572_v47  ;;  %10077 = vmatprep.subr.bf16.mxu1 %v15574_v11 }
 0xf2a   :  { %10037 = vmatpush1.bf16.msra.mxu0 %v15582_v46  ;;  %10078 = vmatpush1.bf16.msra.mxu1 %v15584_v6 }
 0xf2b   :  { %10137 = vmatprep.subr.bf16.mxu0 %v15858_v5  ;;  %10178 = vmatprep.subr.bf16.mxu1 %v15861_v54 }
 0xfe0   :  { %v9941_v7 = vpop.f32.mrb[120].mxu0  ;;  %v9982_v23 = vpop.f32.mrb[136].mxu1 }
 0xfe1   :  { %v9989_v9 = vadd.f32 %v9941_v7, %v16909_v59  ;;  %v9991_v3 = vadd.f32 %v9982_v23, %v16910_v61  ;;  %v9943_v44 = vpop.f32.mrb[121].mxu0  ;;  %v9984_v18 = vpop.f32.mrb[137].mxu1  ;;  %v15898_v7 = vld [vmem:[#allocation8 + $0x40] ss:$16 sps:$4 sm:$0xff]   ;;  %v15901_v23 = vld [vmem:[#allocation8 + $0x48] ss:$16 sps:$4 sm:$0xff]  }
 0xfe2   :  { %v9990_v36 = vadd.f32 %v9943_v44, %v16911_v28  ;;  %v9992_v45 = vadd.f32 %v9984_v18, %v16912_v1  ;;  %v9945_v56 = vpop.f32.mrb[122].mxu0  ;;  %v9986_v25 = vpop.f32.mrb[138].mxu1  ;;  %v15904_v59 = vld [vmem:[#allocation8 + $0x64] ss:$16 sps:$4 sm:$0xff]  }
 0xfe3   :  { %v12301_v26 = vmul.f32 -1.442695, %v9989_v9  ;;  %v9946_v40 = vpop.f32.mrb[123].mxu0  ;;  %v9987_v17 = vpop.f32.mrb[139].mxu1  ;;  %v12303_v39 = vmul.f32 -1.442695, %v9991_v3 }
 0xfe4   :  { %v12302_v14 = vmul.f32 -1.442695, %v9990_v36  ;;  %v15907_v9 = vld [vmem:[#allocation8 + $0x6c] ss:$16 sps:$4 sm:$0xff]  }
 0xfe5   :  { %13010 = vpow2.f32 %v12301_v26 }
 0xfe6   :  { %13012 = vpow2.f32 %v12302_v14 }
 0xfe7   :  { %13014 = vtanh.f32 %v9992_v45 }
 0xfe8   :  { %13016 = vpow2.f32 %v12303_v39 }
 0xfef   :  { %v13011_v29 = vpop.eup %13010 }
 0xff0   :  { %v10002_v52 = vadd.f32 1.0, %v13011_v29  ;;  %v13013_v30 = vpop.eup %13012  ;;  %v13108_v29 = vld [vmem:[#allocation8 + $0x60] ss:$16 sps:$4 sm:$0xff]  }
 0xff1   :  { %v10003_v35 = vadd.f32 1.0, %v13013_v30  ;;  %v13015_v37 = vpop.eup %13014  ;;  %v13111_v30 = vld [vmem:[#allocation8 + $0x8c] ss:$16 sps:$4 sm:$0xff]  }
 0xff2   :  { %13018 = vrcp.f32 %v10002_v52  ;;  %v13017_v10 = vpop.eup %13016  ;;  %v13109_v52 = vld [vmem:[#allocation8 + $0x68] ss:$16 sps:$4 sm:$0xff]  }
 0xff3   :  { %13020 = vrcp.f32 %v10003_v35  ;;  %v10004_v63 = vadd.f32 1.0, %v13017_v10  ;;  %v13112_v35 = vld [vmem:[#allocation8 + $0x80] ss:$16 sps:$4 sm:$0xff]   ;;  %v13114_v10 = vld [vmem:[#allocation8 + $0xa4] ss:$16 sps:$4 sm:$0xff]  }
 0xff5   :  { %13022 = vrcp.f32 %v10004_v63  ;;  %v13118_v63 = vld [vmem:[#allocation8 + $0xc4] ss:$16 sps:$4 sm:$0xff]  }
 0xffc   :  { %v13019_v12 = vpop.eup %13018 }
 0xffd   :  { %v10013_v13 = vmul.f32 %v13019_v12, %v13015_v37  ;;  %v13021_v21 = vpop.eup %13020  ;;  %v13113_v37 = vld [vmem:[#allocation8 + $0x88] ss:$16 sps:$4 sm:$0xff]   ;;  %v13115_v12 = vld [vmem:[#allocation8 + $0xac] ss:$16 sps:$4 sm:$0xff]  }
 0xffe   :  { %v10012_v15 = vmul.f32 %v13021_v21, %v15823_v51  ;;  %v15881_v51 = vld [vmem:[#allocation8 + $0x2c] ss:$16 sps:$4 sm:$0xff]   ;;  %v13117_v21 = vld [vmem:[#allocation8 + $0xa8] ss:$16 sps:$4 sm:$0xff]  }
 0xfff   :  { %v13023_v32 = vpop.eup %13022 }
0x1000   :  { %v15869_v19 = vadd.f32 %v10013_v13, %v10012_v15  ;;  %v13116_v13 = vld [vmem:[#allocation8 + $0xa0] ss:$16 sps:$4 sm:$0xff]   ;;  %v13119_v15 = vld [vmem:[#allocation8 + $0xcc] ss:$16 sps:$4 sm:$0xff]  }
0x1002   :  { %13024 = vtanh.f32 %v15869_v19 }
0x100c   :  { %v13025_v8 = vpop.eup %13024 }
0x100d   :  { %v10016_v58 = vmul.f32 %v13025_v8, %v13023_v32  ;;  %v13121_v32 = vld [vmem:[#allocation8 + $0xc8] ss:$16 sps:$4 sm:$0xff]   ;;  %v13122_v8 = vld [vmem:[#allocation8 + $0xe4] ss:$16 sps:$4 sm:$0xff]  }
0x100f   :  { %v10021_v55 = vpack.c.bf16 %v10016_v58, %v10016_v58  ;;  %v13123_v58 = vld [vmem:[#allocation8 + $0xec] ss:$16 sps:$4 sm:$0xff]  }
0x1011   :  { %10055 = vmatmul.mubr.bf16.vlgmr.msra.gmra.mrb[124].mxu0 %v10021_v55  ;;  %10096 = vmatmul.mubr.bf16.vlgmr.msra.gmra.mrb[140].mxu1 %v10021_v55  ;;  %v13124_v55 = vld [vmem:[#allocation8 + $0xe0] ss:$16 sps:$4 sm:$0xff]  }
0x1012   :  { %10138 = vmatpush1.bf16.msra.mxu0 %v15872_v53  ;;  %10179 = vmatpush1.bf16.msra.mxu1 %v15875_v42 }
0x1013   :  { %10139 = vmatprep.subr.bf16.mxu0 %v15878_v34  ;;  %10180 = vmatprep.subr.bf16.mxu1 %v15881_v51 }
0x1014   :  { %10169 = vmatprep.mubr.bf16.mxu0 %v16874_v38  ;;  %10210 = vmatprep.mubr.bf16.mxu1 %v16874_v38 }
0x1016   :  { %10140 = vmatpush1.bf16.msra.mxu0 %v15886_v27  ;;  %10181 = vmatpush1.bf16.msra.mxu1 %v15889_v60 }
0x1017   :  { %10141 = vmatprep.subr.bf16.mxu0 %v15892_v43  ;;  %10182 = vmatprep.subr.bf16.mxu1 %v15895_v16 }
0x101a   :  { %10142 = vmatpush1.bf16.msra.mxu0 %v15898_v7  ;;  %10183 = vmatpush1.bf16.msra.mxu1 %v15901_v23 }
0x101b   :  { %10143 = vmatprep.subr.bf16.mxu0 %v15904_v59  ;;  %10184 = vmatprep.subr.bf16.mxu1 %v15907_v9 }
0x101e   :  { %10144 = vmatpush1.bf16.msra.mxu0 %v15526_v0  ;;  %10185 = vmatpush1.bf16.msra.mxu1 %v15528_v49 }
0x101f   :  { %10145 = vmatprep.subr.bf16.mxu0 %v15532_v2  ;;  %10186 = vmatprep.subr.bf16.mxu1 %v15534_v20  ;;  %v16913_v2 = vld [vmem:[#allocation137_spill] sm:$0xff] }
0x1022   :  { %10146 = vmatpush1.bf16.msra.mxu0 %v15538_v50  ;;  %10187 = vmatpush1.bf16.msra.mxu1 %v15540_v4  ;;  %v16914_v50 = vld [vmem:[#allocation138_spill] sm:$0xff] }
0x1023   :  { %10147 = vmatprep.subr.bf16.mxu0 %v15544_v48  ;;  %10188 = vmatprep.subr.bf16.mxu1 %v15546_v22 }
0x1026   :  { %10148 = vmatpush1.bf16.msra.mxu0 %v15554_v57  ;;  %10189 = vmatpush1.bf16.msra.mxu1 %v15556_v62  ;;  %v16915_v57 = vld [vmem:[#allocation139_spill] sm:$0xff] }
0x1027   :  { %10149 = vmatprep.subr.bf16.mxu0 %v15560_v33  ;;  %10190 = vmatprep.subr.bf16.mxu1 %v15562_v31  ;;  %v16916_v33 = vld [vmem:[#allocation140_spill] sm:$0xff] }
0x102a   :  { %10150 = vmatpush1.bf16.msra.mxu0 %v15566_v41  ;;  %10191 = vmatpush1.bf16.msra.mxu1 %v15568_v24 }
0x102b   :  { %10151 = vmatprep.subr.bf16.mxu0 %v15572_v47  ;;  %10192 = vmatprep.subr.bf16.mxu1 %v15574_v11 }
0x102e   :  { %10152 = vmatpush1.bf16.msra.mxu0 %v15582_v46  ;;  %10193 = vmatpush1.bf16.msra.mxu1 %v15584_v6 }
0x102f   :  { %10252 = vmatprep.subr.bf16.mxu0 %v15858_v5  ;;  %10293 = vmatprep.subr.bf16.mxu1 %v15861_v54 }
0x10e4   :  { %v10056_v0 = vpop.f32.mrb[124].mxu0  ;;  %v10097_v49 = vpop.f32.mrb[140].mxu1 }
0x10e5   :  { %v10104_v20 = vadd.f32 %v10056_v0, %v16913_v2  ;;  %v10106_v4 = vadd.f32 %v10097_v49, %v16914_v50  ;;  %v10058_v48 = vpop.f32.mrb[125].mxu0  ;;  %v10099_v22 = vpop.f32.mrb[141].mxu1  ;;  %v16920_v49 = vld [vmem:[#allocation144_spill] sm:$0xff] }
0x10e6   :  { %v10105_v62 = vadd.f32 %v10058_v48, %v16915_v57  ;;  %v10107_v31 = vadd.f32 %v10099_v22, %v16916_v33  ;;  %v10060_v41 = vpop.f32.mrb[126].mxu0  ;;  %v10101_v24 = vpop.f32.mrb[142].mxu1 }
0x10e7   :  { %v12304_v47 = vmul.f32 -1.442695, %v10104_v20  ;;  %v10061_v11 = vpop.f32.mrb[127].mxu0  ;;  %v10102_v46 = vpop.f32.mrb[143].mxu1  ;;  %v12306_v5 = vmul.f32 -1.442695, %v10106_v4 }
0x10e8   :  { %v12305_v6 = vmul.f32 -1.442695, %v10105_v62 }
0x10e9   :  { %13026 = vpow2.f32 %v12304_v47 }
0x10ea   :  { %13028 = vpow2.f32 %v12305_v6 }
0x10eb   :  { %13030 = vtanh.f32 %v10107_v31 }
0x10ec   :  { %13032 = vpow2.f32 %v12306_v5 }
0x10f3   :  { %v13027_v54 = vpop.eup %13026 }
0x10f4   :  { %v10117_v61 = vadd.f32 1.0, %v13027_v54  ;;  %v13029_v3 = vpop.eup %13028 }
0x10f5   :  { %v10118_v44 = vadd.f32 1.0, %v13029_v3  ;;  %v13031_v18 = vpop.eup %13030 }
0x10f6   :  { %13034 = vrcp.f32 %v10117_v61  ;;  %v13033_v28 = vpop.eup %13032 }
0x10f7   :  { %13036 = vrcp.f32 %v10118_v44  ;;  %v10119_v56 = vadd.f32 1.0, %v13033_v28 }
0x10f9   :  { %13038 = vrcp.f32 %v10119_v56  ;;  %v12586_v56 = vld [vmem:[#allocation9 + $0x24] ss:$16 sps:$4 sm:$0xff]  }
0x1100   :  { %v13035_v36 = vpop.eup %13034 }
0x1101   :  { %v10128_v1 = vmul.f32 %v13035_v36, %v13031_v18  ;;  %v13037_v45 = vpop.eup %13036  ;;  %v12578_v36 = vld [vmem:[#allocation9] ss:$16 sps:$4 sm:$0xff]  }
0x1102   :  { %v10127_v25 = vmul.f32 %v13037_v45, %v15869_v19  ;;  %v13120_v19 = vld [vmem:[#allocation8 + $0xc0] ss:$16 sps:$4 sm:$0xff]  }
0x1103   :  { %v13039_v40 = vpop.eup %13038 }
0x1104   :  { %v15935_v26 = vadd.f32 %v10128_v1, %v10127_v25  ;;  %v12581_v1 = vld [vmem:[#allocation9 + $0x8] ss:$16 sps:$4 sm:$0xff]   ;;  %v12589_v25 = vld [vmem:[#allocation9 + $0x2c] ss:$16 sps:$4 sm:$0xff]  }
0x1106   :  { %13040 = vtanh.f32 %v15935_v26 }
0x1110   :  { %v13041_v17 = vpop.eup %13040 }
0x1111   :  { %v10131_v14 = vmul.f32 %v13041_v17, %v13039_v40  ;;  %v16921_v40 = vld [vmem:[#allocation61_spill] sm:$0xff] }
0x1112   :  { %v10451_v17 = vrot.slane %v16921_v40, 4  ;;  %v12675_v40 = vld [vmem:[%s16037_s9] sm:$0xff]  }
0x1113   :  { %v10136_v39 = vpack.c.bf16 %v10131_v14, %v10131_v14  ;;  %v12587_v14 = vld [vmem:[#allocation9 + $0x28] ss:$16 sps:$4 sm:$0xff]  }
0x1115   :  { %10170 = vmatmul.mubr.bf16.vlgmr.msra.gmra.mrb[128].mxu0 %v10136_v39  ;;  %10211 = vmatmul.mubr.bf16.vlgmr.msra.gmra.mrb[144].mxu1 %v10136_v39  ;;  %v12592_v39 = vld [vmem:[#allocation9 + $0x44] ss:$16 sps:$4 sm:$0xff]  }
0x1116   :  { %10253 = vmatpush1.bf16.msra.mxu0 %v15872_v53  ;;  %10294 = vmatpush1.bf16.msra.mxu1 %v15875_v42  ;;  %v13125_v53 = vld [vmem:[#allocation8 + $0xe8] ss:$16 sps:$4 sm:$0xff]   ;;  %v12580_v42 = vld [vmem:[#allocation9 + $0x4] ss:$16 sps:$4 sm:$0xff]  }
0x1117   :  { %10254 = vmatprep.subr.bf16.mxu0 %v15878_v34  ;;  %10295 = vmatprep.subr.bf16.mxu1 %v15881_v51  ;;  %v12583_v34 = vld [vmem:[#allocation9 + $0xc] ss:$16 sps:$4 sm:$0xff]  }
0x1118   :  { %10284 = vmatprep.mubr.bf16.mxu0 %v16874_v38  ;;  %10325 = vmatprep.mubr.bf16.mxu1 %v16874_v38  ;;  %v13110_v38 = vld [vmem:[#allocation8 + $0x84] ss:$16 sps:$4 sm:$0xff]  }
0x111a   :  { %10255 = vmatpush1.bf16.msra.mxu0 %v15886_v27  ;;  %10296 = vmatpush1.bf16.msra.mxu1 %v15889_v60  ;;  %v16917_v60 = vld [vmem:[#allocation141_spill] sm:$0xff] }
0x111b   :  { %10256 = vmatprep.subr.bf16.mxu0 %v15892_v43  ;;  %10297 = vmatprep.subr.bf16.mxu1 %v15895_v16  ;;  %v16918_v16 = vld [vmem:[#allocation142_spill] sm:$0xff] }
0x111e   :  { %10257 = vmatpush1.bf16.msra.mxu0 %v15898_v7  ;;  %10298 = vmatpush1.bf16.msra.mxu1 %v15901_v23 }
0x111f   :  { %10258 = vmatprep.subr.bf16.mxu0 %v15904_v59  ;;  %10299 = vmatprep.subr.bf16.mxu1 %v15907_v9  ;;  %v16919_v9 = vld [vmem:[#allocation143_spill] sm:$0xff] }
0x1122   :  { %10259 = vmatpush1.bf16.msra.mxu0 %v13108_v29  ;;  %10300 = vmatpush1.bf16.msra.mxu1 %v13109_v52  ;;  %v12595_v29 = vld [vmem:[#allocation9 + $0x4c] ss:$16 sps:$4 sm:$0xff]   ;;  %v12590_v52 = vld [vmem:[#allocation9 + $0x40] ss:$16 sps:$4 sm:$0xff]  }
0x1123   :  { %10260 = vmatprep.subr.bf16.mxu0 %v13110_v38  ;;  %10301 = vmatprep.subr.bf16.mxu1 %v13111_v30  ;;  %v12593_v38 = vld [vmem:[#allocation9 + $0x48] ss:$16 sps:$4 sm:$0xff]   ;;  %v12598_v30 = vld [vmem:[#allocation9 + $0x64] ss:$16 sps:$4 sm:$0xff]  }
0x1126   :  { %10261 = vmatpush1.bf16.msra.mxu0 %v13112_v35  ;;  %10302 = vmatpush1.bf16.msra.mxu1 %v13113_v37  ;;  %v12601_v35 = vld [vmem:[#allocation9 + $0x6c] ss:$16 sps:$4 sm:$0xff]   ;;  %v12596_v37 = vld [vmem:[#allocation9 + $0x60] ss:$16 sps:$4 sm:$0xff]  }
0x1127   :  { %10262 = vmatprep.subr.bf16.mxu0 %v13114_v10  ;;  %10303 = vmatprep.subr.bf16.mxu1 %v13115_v12  ;;  %v12599_v10 = vld [vmem:[#allocation9 + $0x68] ss:$16 sps:$4 sm:$0xff]   ;;  %v12604_v12 = vld [vmem:[#allocation9 + $0x84] ss:$16 sps:$4 sm:$0xff]  }
0x112a   :  { %10263 = vmatpush1.bf16.msra.mxu0 %v13116_v13  ;;  %10304 = vmatpush1.bf16.msra.mxu1 %v13117_v21  ;;  %v12607_v13 = vld [vmem:[#allocation9 + $0x8c] ss:$16 sps:$4 sm:$0xff]   ;;  %v12602_v21 = vld [vmem:[#allocation9 + $0x80] ss:$16 sps:$4 sm:$0xff]  }
0x112b   :  { %10264 = vmatprep.subr.bf16.mxu0 %v13118_v63  ;;  %10305 = vmatprep.subr.bf16.mxu1 %v13119_v15  ;;  %v12605_v63 = vld [vmem:[#allocation9 + $0x88] ss:$16 sps:$4 sm:$0xff]   ;;  %v12610_v15 = vld [vmem:[#allocation9 + $0xa4] ss:$16 sps:$4 sm:$0xff]  }
0x112e   :  { %10265 = vmatpush1.bf16.msra.mxu0 %v13120_v19  ;;  %10306 = vmatpush1.bf16.msra.mxu1 %v13121_v32  ;;  %v12613_v19 = vld [vmem:[#allocation9 + $0xac] ss:$16 sps:$4 sm:$0xff]   ;;  %v12608_v32 = vld [vmem:[#allocation9 + $0xa0] ss:$16 sps:$4 sm:$0xff]  }
0x112f   :  { %10266 = vmatprep.subr.bf16.mxu0 %v13122_v8  ;;  %10307 = vmatprep.subr.bf16.mxu1 %v13123_v58  ;;  %v12611_v8 = vld [vmem:[#allocation9 + $0xa8] ss:$16 sps:$4 sm:$0xff]   ;;  %v12616_v58 = vld [vmem:[#allocation9 + $0xc4] ss:$16 sps:$4 sm:$0xff]  }
0x1132   :  { %10267 = vmatpush1.bf16.msra.mxu0 %v13124_v55  ;;  %10308 = vmatpush1.bf16.msra.mxu1 %v13125_v53  ;;  %v12619_v55 = vld [vmem:[#allocation9 + $0xcc] ss:$16 sps:$4 sm:$0xff]   ;;  %v12614_v53 = vld [vmem:[#allocation9 + $0xc0] ss:$16 sps:$4 sm:$0xff]  }
0x1133   :  { %10774 = vmatprep.subr.bf16.mxu0 %v12580_v42  ;;  %10815 = vmatprep.subr.bf16.mxu1 %v12583_v34  ;;  %v12617_v42 = vld [vmem:[#allocation9 + $0xc8] ss:$16 sps:$4 sm:$0xff]   ;;  %v12622_v34 = vld [vmem:[#allocation9 + $0xe4] ss:$16 sps:$4 sm:$0xff]  }
0x11e8   :  { %v10171_v51 = vpop.f32.mrb[128].mxu0  ;;  %v10212_v27 = vpop.f32.mrb[144].mxu1 }
0x11e9   :  { %v10219_v43 = vadd.f32 %v10171_v51, %v16917_v60  ;;  %v10221_v7 = vadd.f32 %v10212_v27, %v16918_v16  ;;  %v10173_v23 = vpop.f32.mrb[129].mxu0  ;;  %v10214_v59 = vpop.f32.mrb[145].mxu1  ;;  %v12625_v51 = vld [vmem:[#allocation9 + $0xec] ss:$16 sps:$4 sm:$0xff]   ;;  %v12620_v27 = vld [vmem:[#allocation9 + $0xe0] ss:$16 sps:$4 sm:$0xff]  }
0x11ea   :  { %v10220_v0 = vadd.f32 %v10173_v23, %v16919_v9  ;;  %v10222_v2 = vadd.f32 %v10214_v59, %v16920_v49  ;;  %v10175_v20 = vpop.f32.mrb[130].mxu0  ;;  %v10216_v50 = vpop.f32.mrb[146].mxu1  ;;  %v12623_v60 = vld [vmem:[#allocation9 + $0xe8] ss:$16 sps:$4 sm:$0xff]   ;;  %v12631_v16 = vld [vmem:[#allocation9 + $0x10c] ss:$16 sps:$4 sm:$0xff]  }
0x11eb   :  { %v12307_v4 = vmul.f32 -1.442695, %v10219_v43  ;;  %v10176_v48 = vpop.f32.mrb[131].mxu0  ;;  %v10217_v22 = vpop.f32.mrb[147].mxu1  ;;  %v12309_v62 = vmul.f32 -1.442695, %v10221_v7 }
0x11ec   :  { %v12308_v57 = vmul.f32 -1.442695, %v10220_v0  ;;  %v12628_v43 = vld [vmem:[#allocation9 + $0x104] ss:$16 sps:$4 sm:$0xff]   ;;  %v12626_v7 = vld [vmem:[#allocation9 + $0x100] ss:$16 sps:$4 sm:$0xff]  }
0x11ed   :  { %13042 = vpow2.f32 %v12307_v4  ;;  %v12629_v23 = vld [vmem:[#allocation9 + $0x108] ss:$16 sps:$4 sm:$0xff]   ;;  %v12634_v59 = vld [vmem:[#allocation9 + $0x124] ss:$16 sps:$4 sm:$0xff]   ;;  %v12637_v9 = vld [vmem:[#allocation9 + $0x12c] ss:$16 sps:$4 sm:$0xff]  }
0x11ee   :  { %13044 = vpow2.f32 %v12308_v57  ;;  %v12632_v0 = vld [vmem:[#allocation9 + $0x120] ss:$16 sps:$4 sm:$0xff]   ;;  %v12635_v49 = vld [vmem:[#allocation9 + $0x128] ss:$16 sps:$4 sm:$0xff]   ;;  %v12643_v20 = vld [vmem:[#allocation9 + $0x14c] ss:$16 sps:$4 sm:$0xff]  }
0x11ef   :  { %13046 = vtanh.f32 %v10222_v2  ;;  %v12640_v2 = vld [vmem:[#allocation9 + $0x144] ss:$16 sps:$4 sm:$0xff]   ;;  %v12638_v50 = vld [vmem:[#allocation9 + $0x140] ss:$16 sps:$4 sm:$0xff]   ;;  %v12641_v4 = vld [vmem:[#allocation9 + $0x148] ss:$16 sps:$4 sm:$0xff]  }
0x11f0   :  { %13048 = vpow2.f32 %v12309_v62  ;;  %v12646_v48 = vld [vmem:[#allocation9 + $0x164] ss:$16 sps:$4 sm:$0xff]   ;;  %v12649_v22 = vld [vmem:[#allocation9 + $0x16c] ss:$16 sps:$4 sm:$0xff]   ;;  %v12644_v57 = vld [vmem:[#allocation9 + $0x160] ss:$16 sps:$4 sm:$0xff]  }
0x11f1   :  { %v12647_v62 = vld [vmem:[#allocation9 + $0x168] ss:$16 sps:$4 sm:$0xff]  }
0x11f7   :  { %v13043_v33 = vpop.eup %13042 }
0x11f8   :  { %v10232_v31 = vadd.f32 1.0, %v13043_v33  ;;  %v13045_v41 = vpop.eup %13044  ;;  %v12652_v33 = vld [vmem:[#allocation9 + $0x184] ss:$16 sps:$4 sm:$0xff]  }
0x11f9   :  { %v10233_v24 = vadd.f32 1.0, %v13045_v41  ;;  %v13047_v47 = vpop.eup %13046  ;;  %v12650_v41 = vld [vmem:[#allocation9 + $0x180] ss:$16 sps:$4 sm:$0xff]  }
0x11fa   :  { %13050 = vrcp.f32 %v10232_v31  ;;  %v13049_v11 = vpop.eup %13048  ;;  %v12655_v31 = vld [vmem:[#allocation9 + $0x18c] ss:$16 sps:$4 sm:$0xff]  }
0x11fb   :  { %13052 = vrcp.f32 %v10233_v24  ;;  %v10234_v54 = vadd.f32 1.0, %v13049_v11  ;;  %v12653_v24 = vld [vmem:[#allocation9 + $0x188] ss:$16 sps:$4 sm:$0xff]   ;;  %v12661_v11 = vld [vmem:[#allocation9 + $0x1ac] ss:$16 sps:$4 sm:$0xff]  }
0x11fd   :  { %13054 = vrcp.f32 %v10234_v54  ;;  %v12667_v54 = vld [vmem:[#allocation9 + $0x1cc] ss:$16 sps:$4 sm:$0xff]  }
0x1204   :  { %v13051_v46 = vpop.eup %13050 }
0x1205   :  { %v10243_v6 = vmul.f32 %v13051_v46, %v13047_v47  ;;  %v13053_v5 = vpop.eup %13052  ;;  %v12658_v47 = vld [vmem:[#allocation9 + $0x1a4] ss:$16 sps:$4 sm:$0xff]   ;;  %v12656_v46 = vld [vmem:[#allocation9 + $0x1a0] ss:$16 sps:$4 sm:$0xff]  }
0x1206   :  { %v10242_v61 = vmul.f32 %v13053_v5, %v15935_v26  ;;  %v12584_v26 = vld [vmem:[#allocation9 + $0x20] ss:$16 sps:$4 sm:$0xff]   ;;  %v12664_v5 = vld [vmem:[#allocation9 + $0x1c4] ss:$16 sps:$4 sm:$0xff]  }
0x1207   :  { %v13055_v44 = vpop.eup %13054 }
0x1208   :  { %v15957_v3 = vadd.f32 %v10243_v6, %v10242_v61  ;;  %v12659_v6 = vld [vmem:[#allocation9 + $0x1a8] ss:$16 sps:$4 sm:$0xff]   ;;  %v12662_v61 = vld [vmem:[#allocation9 + $0x1c0] ss:$16 sps:$4 sm:$0xff]  }
0x120a   :  { %13056 = vtanh.f32 %v15957_v3 }
0x1214   :  { %v13057_v18 = vpop.eup %13056 }
0x1215   :  { %v10246_v28 = vmul.f32 %v13057_v18, %v13055_v44  ;;  %v12665_v44 = vld [vmem:[#allocation9 + $0x1c8] ss:$16 sps:$4 sm:$0xff]   ;;  %v12670_v18 = vld [vmem:[#allocation9 + $0x1e4] ss:$16 sps:$4 sm:$0xff]  }
0x1217   :  { %v10251_v45 = vpack.c.bf16 %v10246_v28, %v10246_v28  ;;  %v12673_v28 = vld [vmem:[#allocation9 + $0x1ec] ss:$16 sps:$4 sm:$0xff]  }
0x1219   :  { %10285 = vmatmul.mubr.bf16.vlgmr.msra.gmra.mrb[132].mxu0 %v10251_v45  ;;  %10326 = vmatmul.mubr.bf16.vlgmr.msra.gmra.mrb[148].mxu1 %v10251_v45  ;;  %v16922_v45 = vld [vmem:[#allocation125_spill] sm:$0xff] }
0x121a   :  { %10775 = vmatpush1.bf16.msra.mxu0 %v12578_v36  ;;  %10816 = vmatpush1.bf16.msra.mxu1 %v12581_v1  ;;  %v12668_v36 = vld [vmem:[#allocation9 + $0x1e0] ss:$16 sps:$4 sm:$0xff]   ;;  %v12671_v1 = vld [vmem:[#allocation9 + $0x1e8] ss:$16 sps:$4 sm:$0xff]  }
0x121b   :  { %10806 = vmatprep.mubr.bf16.mxu0 %v10451_v17  ;;  %10847 = vmatprep.mubr.bf16.mxu1 %v10451_v17  ;;  %v12676_v17 = vld [vmem:[%s16037_s9 + $0x48] sm:$0xff]  }
0x121c   :  { %10776 = vmatprep.subr.bf16.mxu0 %v12586_v56  ;;  %10817 = vmatprep.subr.bf16.mxu1 %v12589_v25  ;;  %v10450_v56 = vrot.slane %v16922_v45, 4  ;;  %v12674_v25 = vld [vmem:[%s16037_s9 + $0x40] sm:$0xff]  }
0x121e   :  { %10777 = vmatpush1.bf16.msra.mxu0 %v12584_v26  ;;  %10818 = vmatpush1.bf16.msra.mxu1 %v12587_v14  ;;  %v12677_v26 = vld [vmem:[%s16037_s9 + $0x8] sm:$0xff]   ;;  %v12678_v14 = vld [vmem:[%s16037_s9 + $0x50] sm:$0xff]  }
0x121f   :  { %10778 = vmatprep.subr.bf16.mxu0 %v12592_v39  ;;  %10819 = vmatprep.subr.bf16.mxu1 %v12595_v29  ;;  %v12679_v39 = vld [vmem:[%s16037_s9 + $0x10] sm:$0xff]   ;;  %v12680_v29 = vld [vmem:[%s16037_s9 + $0x58] sm:$0xff]  }
0x1222   :  { %10779 = vmatpush1.bf16.msra.mxu0 %v12590_v52  ;;  %10820 = vmatpush1.bf16.msra.mxu1 %v12593_v38  ;;  %v12681_v52 = vld [vmem:[%s16037_s9 + $0x18] sm:$0xff]   ;;  %v12682_v38 = vld [vmem:[%s16037_s9 + $0x60] sm:$0xff]  }
0x1223   :  { %10780 = vmatprep.subr.bf16.mxu0 %v12598_v30  ;;  %10821 = vmatprep.subr.bf16.mxu1 %v12601_v35  ;;  %v12683_v30 = vld [vmem:[%s16037_s9 + $0x20] sm:$0xff]   ;;  %v12684_v35 = vld [vmem:[%s16037_s9 + $0x68] sm:$0xff]  }
0x1226   :  { %10781 = vmatpush1.bf16.msra.mxu0 %v12596_v37  ;;  %10822 = vmatpush1.bf16.msra.mxu1 %v12599_v10  ;;  %v12685_v37 = vld [vmem:[%s16037_s9 + $0x28] sm:$0xff]   ;;  %v12686_v10 = vld [vmem:[%s16037_s9 + $0x70] sm:$0xff]  }
0x1227   :  { %10782 = vmatprep.subr.bf16.mxu0 %v12604_v12  ;;  %10823 = vmatprep.subr.bf16.mxu1 %v12607_v13  ;;  %v12687_v12 = vld [vmem:[%s16037_s9 + $0x30] sm:$0xff]   ;;  %v12688_v13 = vld [vmem:[%s16037_s9 + $0x78] sm:$0xff]  }
0x122a   :  { %10783 = vmatpush1.bf16.msra.mxu0 %v12602_v21  ;;  %10824 = vmatpush1.bf16.msra.mxu1 %v12605_v63  ;;  %v12689_v21 = vld [vmem:[%s16037_s9 + $0x38] sm:$0xff]  }
0x122b   :  { %10784 = vmatprep.subr.bf16.mxu0 %v12610_v15  ;;  %10825 = vmatprep.subr.bf16.mxu1 %v12613_v19  ;;  %v16923_v19 = vld [vmem:[#allocation16_spill] sm:$0xff] }
0x122e   :  { %10785 = vmatpush1.bf16.msra.mxu0 %v12608_v32  ;;  %10826 = vmatpush1.bf16.msra.mxu1 %v12611_v8  ;;  %v16924_v8 = vld [vmem:[#allocation46_spill] sm:$0xff] }
0x122f   :  { %10786 = vmatprep.subr.bf16.mxu0 %v12616_v58  ;;  %10827 = vmatprep.subr.bf16.mxu1 %v12619_v55 }
0x1232   :  { %10787 = vmatpush1.bf16.msra.mxu0 %v12614_v53  ;;  %10828 = vmatpush1.bf16.msra.mxu1 %v12617_v42  ;;  %v16925_v42 = vld [vmem:[#allocation17_spill] sm:$0xff] }
0x1233   :  { %10788 = vmatprep.subr.bf16.mxu0 %v12622_v34  ;;  %10829 = vmatprep.subr.bf16.mxu1 %v12625_v51  ;;  %v16926_v51 = vld [vmem:[#allocation48_spill] sm:$0xff] }
0x1236   :  { %10789 = vmatpush1.bf16.msra.mxu0 %v12620_v27  ;;  %10830 = vmatpush1.bf16.msra.mxu1 %v12623_v60 }
0x1237   :  { %10790 = vmatprep.subr.bf16.mxu0 %v12628_v43  ;;  %10831 = vmatprep.subr.bf16.mxu1 %v12631_v16 }
0x123a   :  { %10791 = vmatpush1.bf16.msra.mxu0 %v12626_v7  ;;  %10832 = vmatpush1.bf16.msra.mxu1 %v12629_v23 }
0x123b   :  { %10792 = vmatprep.subr.bf16.mxu0 %v12634_v59  ;;  %10833 = vmatprep.subr.bf16.mxu1 %v12637_v9 }
0x123e   :  { %10793 = vmatpush1.bf16.msra.mxu0 %v12632_v0  ;;  %10834 = vmatpush1.bf16.msra.mxu1 %v12635_v49 }
0x123f   :  { %10794 = vmatprep.subr.bf16.mxu0 %v12640_v2  ;;  %10835 = vmatprep.subr.bf16.mxu1 %v12643_v20 }
0x1242   :  { %10795 = vmatpush1.bf16.msra.mxu0 %v12638_v50  ;;  %10836 = vmatpush1.bf16.msra.mxu1 %v12641_v4 }
0x1243   :  { %10796 = vmatprep.subr.bf16.mxu0 %v12646_v48  ;;  %10837 = vmatprep.subr.bf16.mxu1 %v12649_v22 }
0x1246   :  { %10797 = vmatpush1.bf16.msra.mxu0 %v12644_v57  ;;  %10838 = vmatpush1.bf16.msra.mxu1 %v12647_v62 }
0x1247   :  { %10798 = vmatprep.subr.bf16.mxu0 %v12652_v33  ;;  %10839 = vmatprep.subr.bf16.mxu1 %v12655_v31 }
0x124a   :  { %10799 = vmatpush1.bf16.msra.mxu0 %v12650_v41  ;;  %10840 = vmatpush1.bf16.msra.mxu1 %v12653_v24 }
0x124b   :  { %10800 = vmatprep.subr.bf16.mxu0 %v12658_v47  ;;  %10841 = vmatprep.subr.bf16.mxu1 %v12661_v11  ;;  %v10426_v11 = vld [vmem:[%s16036_s8] sm:$0xf] }
0x124e   :  { %10801 = vmatpush1.bf16.msra.mxu0 %v12656_v46  ;;  %10842 = vmatpush1.bf16.msra.mxu1 %v12659_v6  ;;  %v16927_v46 = vld [vmem:[#allocation14_spill] sm:$0xff] }
0x124f   :  { %10802 = vmatprep.subr.bf16.mxu0 %v12664_v5  ;;  %10843 = vmatprep.subr.bf16.mxu1 %v12667_v54  ;;  %v10431_v6 = vrot.slane %v10426_v11, %v16927_v46  ;;  %v16928_v5 = vld [vmem:[#allocation15_spill] sm:$0xff] }
0x1250   :  { %v10435_v54 = vrot.slane %v10426_v11, %v16928_v5 }
0x1252   :  { %10803 = vmatpush1.bf16.msra.mxu0 %v12662_v61  ;;  %10844 = vmatpush1.bf16.msra.mxu1 %v12665_v44 }
0x1253   :  { %10804 = vmatprep.subr.bf16.mxu0 %v12670_v18  ;;  %10845 = vmatprep.subr.bf16.mxu1 %v12673_v28 }
0x1256   :  { %10805 = vmatpush1.bf16.msra.mxu0 %v12668_v36  ;;  %10846 = vmatpush1.bf16.msra.mxu1 %v12671_v1 }
0x1257   :  { %12397 = vmatprep.subr.bf16.mxu0 %v12674_v25 }
0x1259   :  { %10807 = vmatmul.mubr.bf16.vlgmr.msra.gmra.mrb[136].mxu0 %v10450_v56  ;;  %10848 = vmatmul.mubr.bf16.vlgmr.msra.gmra.mrb[152].mxu1 %v10450_v56 }
0x125a   :  { %12398 = vmatpush3.bf16.msra.mxu0 %v12675_v40 }
0x125b   :  { %12399 = vmatprep.subr.bf16.mxu0 %v12676_v17 }
0x125e   :  { %12400 = vmatpush3.bf16.msra.mxu0 %v12677_v26  ;;  %v16929_v26 = vld [vmem:[#allocation30_spill] sm:$0xff] }
0x125f   :  { %12401 = vmatprep.subr.bf16.mxu0 %v12678_v14  ;;  %v10439_v14 = vrot.slane %v10426_v11, %v16929_v26 }
0x1262   :  { %12402 = vmatpush3.bf16.msra.mxu0 %v12679_v39  ;;  %v16930_v39 = vld [vmem:[#allocation31_spill] sm:$0xff] }
0x1263   :  { %12403 = vmatprep.subr.bf16.mxu0 %v12680_v29  ;;  %v10443_v29 = vrot.slane %v10426_v11, %v16930_v39 }
0x1266   :  { %12404 = vmatpush3.bf16.msra.mxu0 %v12681_v52 }
0x1267   :  { %12405 = vmatprep.subr.bf16.mxu0 %v12682_v38 }
0x126a   :  { %12406 = vmatpush3.bf16.msra.mxu0 %v12683_v30 }
0x126b   :  { %12407 = vmatprep.subr.bf16.mxu0 %v12684_v35 }
0x126e   :  { %12408 = vmatpush3.bf16.msra.mxu0 %v12685_v37 }
0x126f   :  { %12409 = vmatprep.subr.bf16.mxu0 %v12686_v10 }
0x1272   :  { %12410 = vmatpush3.bf16.msra.mxu0 %v12687_v12 }
0x1273   :  { %12411 = vmatprep.subr.bf16.mxu0 %v12688_v13 }
0x1276   :  { %12412 = vmatpush3.bf16.msra.mxu0 %v12689_v21 }
0x12ec   :  { %v10286_v63 = vpop.f32.mrb[132].mxu0  ;;  %v10327_v15 = vpop.f32.mrb[148].mxu1 }
0x12ed   :  { %v10334_v32 = vadd.f32 %v10286_v63, %v16923_v19  ;;  %v10336_v58 = vadd.f32 %v10327_v15, %v16924_v8  ;;  %v10288_v55 = vpop.f32.mrb[133].mxu0  ;;  %v10329_v53 = vpop.f32.mrb[149].mxu1 }
0x12ee   :  { %v10335_v34 = vadd.f32 %v10288_v55, %v16925_v42  ;;  %v10337_v27 = vadd.f32 %v10329_v53, %v16926_v51  ;;  %v10290_v60 = vpop.f32.mrb[134].mxu0  ;;  %v10331_v43 = vpop.f32.mrb[150].mxu1 }
0x12ef   :  { %v12310_v16 = vmul.f32 -1.442695, %v10334_v32  ;;  %v10291_v7 = vpop.f32.mrb[135].mxu0  ;;  %v10332_v23 = vpop.f32.mrb[151].mxu1  ;;  %v12312_v9 = vmul.f32 -1.442695, %v10336_v58 }
0x12f0   :  { %v12311_v59 = vmul.f32 -1.442695, %v10335_v34  ;;  %v12380_v7 = vld [vmem:[%s16038_s10] ss:$0 sm:$0xff] }
0x12f1   :  { %13058 = vpow2.f32 %v12310_v16 }
0x12f2   :  { %13060 = vpow2.f32 %v12311_v59 }
0x12f3   :  { %13062 = vtanh.f32 %v10337_v27 }
0x12f4   :  { %13064 = vpow2.f32 %v12312_v9 }
0x12fb   :  { %v13059_v0 = vpop.eup %13058 }
0x12fc   :  { %v10347_v49 = vadd.f32 1.0, %v13059_v0  ;;  %v13061_v2 = vpop.eup %13060 }
0x12fd   :  { %v10348_v20 = vadd.f32 1.0, %v13061_v2  ;;  %v13063_v50 = vpop.eup %13062 }
0x12fe   :  { %13066 = vrcp.f32 %v10347_v49  ;;  %v13065_v4 = vpop.eup %13064 }
0x12ff   :  { %13068 = vrcp.f32 %v10348_v20  ;;  %v10349_v62 = vadd.f32 1.0, %v13065_v4 }
0x1301   :  { %13070 = vrcp.f32 %v10349_v62 }
0x1308   :  { %v13067_v48 = vpop.eup %13066 }
0x1309   :  { %v10358_v22 = vmul.f32 %v13067_v48, %v13063_v50  ;;  %v13069_v57 = vpop.eup %13068 }
0x130a   :  { %v10357_v33 = vmul.f32 %v13069_v57, %v15957_v3 }
0x130b   :  { %v13071_v41 = vpop.eup %13070 }
0x130c   :  { %v10359_v31 = vadd.f32 %v10358_v22, %v10357_v33 }
0x130e   :  { %13072 = vtanh.f32 %v10359_v31 }
0x1318   :  { %v13073_v24 = vpop.eup %13072 }
0x1319   :  { %v10361_v47 = vmul.f32 %v13073_v24, %v13071_v41 }
0x131b   :  { %v10880_v34 = vmax.f32 %v10361_v47, 0.0 }
0x131d   :  { %v10882_v60 = vpack.c.bf16 %v10880_v34, %v10880_v34 }
0x132c   :  { %v10808_v61 = vpop.f32.mrb[136].mxu0  ;;  %v10849_v44 = vpop.f32.mrb[152].mxu1 }
0x132d   :  { %v10809_v18 = vadd.f32 %v10808_v61, %v10431_v6  ;;  %v10810_v28 = vpop.f32.mrb[137].mxu0  ;;  %v10851_v36 = vpop.f32.mrb[153].mxu1  ;;  %v10850_v52 = vadd.f32 %v10849_v44, %v10439_v14 }
0x132e   :  { %v10811_v3 = vadd.f32 %v10810_v28, %v10435_v54  ;;  %v10812_v1 = vpop.f32.mrb[138].mxu0  ;;  %v10853_v45 = vpop.f32.mrb[154].mxu1  ;;  %v10852_v38 = vadd.f32 %v10851_v36, %v10443_v29 }
0x132f   :  { %v12377_v56 = vmul.f32 -1.442695, %v10809_v18  ;;  %v10813_v25 = vpop.f32.mrb[139].mxu0  ;;  %v10854_v40 = vpop.f32.mrb[155].mxu1  ;;  %v12379_v30 = vmul.f32 -1.442695, %v10850_v52 }
0x1330   :  { %v12378_v17 = vmul.f32 -1.442695, %v10811_v3 }
0x1331   :  { %13074 = vpow2.f32 %v12377_v56 }
0x1332   :  { %13076 = vpow2.f32 %v12378_v17 }
0x1333   :  { %13078 = vtanh.f32 %v10852_v38 }
0x1334   :  { %13080 = vpow2.f32 %v12379_v30 }
0x133b   :  { %v13075_v35 = vpop.eup %13074 }
0x133c   :  { %v10865_v37 = vadd.f32 1.0, %v13075_v35  ;;  %v13077_v10 = vpop.eup %13076 }
0x133d   :  { %v10866_v12 = vadd.f32 1.0, %v13077_v10  ;;  %v13079_v13 = vpop.eup %13078 }
0x133e   :  { %13082 = vrcp.f32 %v10865_v37  ;;  %v13081_v21 = vpop.eup %13080 }
0x133f   :  { %13084 = vrcp.f32 %v10866_v12  ;;  %v10867_v32 = vadd.f32 1.0, %v13081_v21 }
0x1341   :  { %13086 = vrcp.f32 %v10867_v32 }
0x1348   :  { %v13083_v63 = vpop.eup %13082 }
0x1349   :  { %v10876_v15 = vmul.f32 %v13083_v63, %v13079_v13  ;;  %v13085_v19 = vpop.eup %13084 }
0x134a   :  { %v10875_v8 = vmul.f32 0.0, %v13085_v19 }
0x134b   :  { %v13087_v55 = vpop.eup %13086 }
0x134c   :  { %v10877_v58 = vadd.f32 %v10876_v15, %v10875_v8 }
0x134e   :  { %13088 = vtanh.f32 %v10877_v58 }
0x1358   :  { %v13089_v53 = vpop.eup %13088 }
0x1359   :  { %v10879_v42 = vmul.f32 %v13089_v53, %v13087_v55 }
0x135b   :  { %v10881_v51 = vmax.f32 %v10879_v42, 0.0 }
0x135d   :  { %v10883_v27 = vpack.c.bf16 %v10881_v51, %v10881_v51 }
0x135f   :  { %11051 = vmatprep.mubr.bf16.mxu0 %v10883_v27 }
0x1360   :  { %11052 = vmatmul.mubr.bf16.vlgmr.msra.gmra.mrb[140].mxu0 %v10882_v60 }
0x1433   :  { %v12413_v43 = vpop.f32.mrb[140].mxu0 }
0x1434   :  { %v12414_v16 = vpop.f32.mrb[141].mxu0 }
0x1435   :  { %v12415_v23 = vadd.f32 %v12414_v16, %v12413_v43  ;;  %v12416_v59 = vpop.f32.mrb[142].mxu0 }
0x1436   :  { %v12417_v9 = vpop.f32.mrb[143].mxu0 }
0x1437   :  { %v11054_v0 = vadd.f32 %v12415_v23, %v12380_v7 }
0x1439   :  { %v11060_v49 = vsel %vm11059_vm1, %v11054_v0, -inf }
0x143a   :  { %11061 = vmax.xlane.f32.xlu0 %v11060_v49 }
0x14c7   :  { %v11062_v2 = vpop.xlane.xlu0 %11061 }
0x14c8   :  { %v11063_v20 = vsub.f32 %v11054_v0, %v11062_v2 }
0x14ca   :  { %v11064_v50 = vmul.f32 1.442695, %v11063_v20 }
0x14cc   :  { %13090 = vpow2.f32 %v11064_v50 }
0x14d6   :  { %v13091_v4 = vpop.eup %13090 }
0x14d7   :  { %v11066_v48 = vsel %vm11059_vm1, %v13091_v4, 0.0 }
0x14d8   :  { %11067 = vadd.xlane.f32.xlu0 %v11066_v48 }
0x1565   :  { %v11068_v22 = vpop.xlane.xlu0 %11067 }
0x1566   :  { %13092 = vrcp.f32 %v11068_v22 }
0x1570   :  { %v13093_v57 = vpop.eup %13092 }
0x1571   :  { %v11070_v62 = vmul.f32 %v13093_v57, %v13091_v4 }
0x1573   :  { %11071 = vst.msk [vmem:[%s16039_s11] sm:$0xff] %vm11059_vm1, %v11070_v62 }
0x1574   :  { %11076 = vsyncpa [#allocation5], 1 }
0x1575   :  { %11077 = vsyncpa [#allocation7], 1 }
0x1576   :  { %11078 = vsyncpa [#allocation10], 1 }

</bundles_post_ra>
